<compile_context>
chip_gen: v7x
topology: tpu7x:2x2x1
jax: 0.10.0
libtpu: 0.0.40
codegen_flags: <defaults>
</compile_context>

<pallas_src>
import jax
import jax.numpy as jnp
from jax.experimental import pallas as pl
from jax.experimental.pallas import tpu as pltpu

D_MODEL = 100   # d_model / signal_shape (real feature count)
D_PAD = 128     # lane-padded feature dim
N_TOK = 64      # "batch" dim of the (S=1, N=64, E=100) transformer input
D_FF = 2048     # nn.Transformer default dim_feedforward
D_OUT = 20      # dense head output
LN_EPS = 1e-5   # nn.LayerNorm default eps

# ---- row indices into the packed (16, 128) bias / LayerNorm slab ----
V_E_ATTN_B = 0
V_E_LN1G, V_E_LN1B = 1, 2
V_E_B2 = 3
V_E_LN2G, V_E_LN2B = 4, 5
V_D_SA_B = 6
V_D_LN1G, V_D_LN1B = 7, 8
V_D_CA_B = 9
V_D_LN2G, V_D_LN2B = 10, 11
V_D_B2 = 12
V_D_LN3G, V_D_LN3B = 13, 14
V_DN_B = 15
N_VEC = 16

# ---- indices into the packed (4, 128, 128) attention / dense weight slab ----
W_E_ATTN, W_D_SA, W_D_CA, W_DENSE = 0, 1, 2, 3


# ------------------------------ kernel -------------------------------

def encoder_kernel(x_ref, wattn_ref, w1s_ref, w2s_ref, vec_ref, ffb_ref, out_ref):
    x = x_ref[...]                       # (64, 128); lanes >= 100 are exactly zero
    vecs = vec_ref[...]                  # (16, 128) packed biases / LN gamma+beta
    ffb = ffb_ref[...]                   # (2, 2048) FFN first-layer biases

    inv_d = 1.0 / D_MODEL
    lane = jax.lax.broadcasted_iota(jnp.int32, (N_TOK, D_PAD), 1)
    feat_mask = (lane < D_MODEL).astype(jnp.float32)   # 1.0 on the 100 real lanes

    def norm(v):
        # LayerNorm statistics over the 100 real features only.  Inputs always
        # carry exact zeros in the 28 padded lanes, so full-lane sums are
        # identical to real-feature sums; the mask keeps the output zero there.
        mu = jnp.sum(v, axis=-1, keepdims=True) * inv_d
        d = (v - mu) * feat_mask
        var = jnp.sum(d * d, axis=-1, keepdims=True) * inv_d
        return d * jax.lax.rsqrt(var + LN_EPS)

    def layernorm(v, gi, bi):
        # gamma/beta rows are zero-padded -> padded lanes stay exactly zero.
        return norm(v) * vecs[gi:gi + 1, :] + vecs[bi:bi + 1, :]

    def attn(inp, wi, bi):
        # seq_len == 1  =>  softmax over one key == 1.0 exactly, so
        # MultiheadAttention == one matmul with the host-folded (Wv@Wo, bv@Wo+bo).
        return (jnp.dot(inp, wattn_ref[wi], preferred_element_type=jnp.float32)
                + vecs[bi:bi + 1, :])

    def ffn(inp, i, b2i):
        # bf16 weights, f32 activations/accumulation.
        h = (jnp.dot(inp, w1s_ref[i], preferred_element_type=jnp.float32)
             + ffb[i:i + 1, :])
        h = jnp.maximum(h, 0.0)          # ReLU (nn.Transformer default activation)
        return (jnp.dot(h, w2s_ref[i], preferred_element_type=jnp.float32)
                + vecs[b2i:b2i + 1, :])

    # ----- transformer encoder layer (post-norm) -----
    s = layernorm(x + attn(x, W_E_ATTN, V_E_ATTN_B), V_E_LN1G, V_E_LN1B)
    s = layernorm(s + ffn(s, 0, V_E_B2), V_E_LN2G, V_E_LN2B)
    memory = norm(s)   # encoder final LayerNorm; affine folded into cross-attn W/b

    # ----- transformer decoder layer (post-norm), tgt == src == x -----
    t = layernorm(x + attn(x, W_D_SA, V_D_SA_B), V_D_LN1G, V_D_LN1B)
    # cross-attention: keys/values come from encoder memory (query irrelevant, S=1)
    t = layernorm(t + attn(memory, W_D_CA, V_D_CA_B), V_D_LN2G, V_D_LN2B)
    t = layernorm(t + ffn(t, 1, V_D_B2), V_D_LN3G, V_D_LN3B)
    t = norm(t)        # decoder final LayerNorm; affine folded into dense head

    # ----- dense head: 100 -> 20, lane-padded to 128 -----
    out_ref[...] = (jnp.dot(t, wattn_ref[W_DENSE], preferred_element_type=jnp.float32)
                    + vecs[V_DN_B:V_DN_B + 1, :])


# --------------------------- parameter init ---------------------------

def make_params(key):
    keys = iter(jax.random.split(key, 24))

    def rnd(shape):
        return 0.02 * jax.random.normal(next(keys), shape, dtype=jnp.float32)

    def pad_to(a, shape):
        out = jnp.zeros(shape, jnp.float32)
        return out.at[tuple(slice(0, s) for s in a.shape)].set(a)

    def pad_vec(v):
        return jnp.zeros((D_PAD,), jnp.float32).at[: v.shape[0]].set(v)

    def folded_attn(pre_gamma=None, pre_beta=None):
        # PyTorch MHA params; only the V slice reaches the output when S == 1.
        in_proj_w = rnd((3 * D_MODEL, D_MODEL))      # in_proj_weight (3E, E)
        in_proj_b = rnd((3 * D_MODEL,))              # in_proj_bias   (3E,)
        out_w = rnd((D_MODEL, D_MODEL))              # out_proj.weight
        out_b = rnd((D_MODEL,))                      # out_proj.bias
        wv = in_proj_w[2 * D_MODEL:].T               # (E, E), for x @ Wv
        bv = in_proj_b[2 * D_MODEL:]
        wo = out_w.T
        W = wv @ wo                                  # fold Wv @ Wo
        b = bv @ wo + out_b
        if pre_gamma is not None:                    # fold preceding LN affine
            b = pre_beta @ W + b                     # (norm*g + beta) @ W + b
            W = pre_gamma[:, None] * W
        return W, b

    ones = jnp.ones((D_MODEL,), jnp.float32)         # LayerNorm default gamma
    zeros = jnp.zeros((D_MODEL,), jnp.float32)       # LayerNorm default beta

    # ----- encoder layer -----
    e_attn_W, e_attn_b = folded_attn()
    e_ln1g, e_ln1b = ones, zeros
    e_w1 = rnd((D_FF, D_MODEL)).T                    # (100, 2048)
    e_b1 = rnd((D_FF,))
    e_w2 = rnd((D_MODEL, D_FF)).T                    # (2048, 100)
    e_b2 = rnd((D_MODEL,))
    e_ln2g, e_ln2b = ones, zeros
    e_ng, e_nb = ones, zeros                         # encoder final LayerNorm

    # ----- decoder layer -----
    d_sa_W, d_sa_b = folded_attn()
    d_ln1g, d_ln1b = ones, zeros
    d_ca_W, d_ca_b = folded_attn(pre_gamma=e_ng, pre_beta=e_nb)   # fold enc-final LN
    d_ln2g, d_ln2b = ones, zeros
    d_w1 = rnd((D_FF, D_MODEL)).T
    d_b1 = rnd((D_FF,))
    d_w2 = rnd((D_MODEL, D_FF)).T
    d_b2 = rnd((D_MODEL,))
    d_ln3g, d_ln3b = ones, zeros
    d_ng, d_nb = ones, zeros                         # decoder final LayerNorm

    # ----- dense head (fold decoder-final LN affine) -----
    dn_w = rnd((D_OUT, D_MODEL)).T                   # (100, 20)
    dn_b = rnd((D_OUT,))
    dn_b = d_nb @ dn_w + dn_b
    dn_w = d_ng[:, None] * dn_w

    # ----- pack slabs -----
    w_attn = jnp.stack([
        pad_to(e_attn_W, (D_PAD, D_PAD)),
        pad_to(d_sa_W, (D_PAD, D_PAD)),
        pad_to(d_ca_W, (D_PAD, D_PAD)),
        pad_to(dn_w, (D_PAD, D_PAD)),
    ])                                               # (4, 128, 128) f32
    w1s = jnp.stack([pad_to(e_w1, (D_PAD, D_FF)),
                     pad_to(d_w1, (D_PAD, D_FF))]).astype(jnp.bfloat16)   # (2,128,2048)
    w2s = jnp.stack([pad_to(e_w2, (D_FF, D_PAD)),
                     pad_to(d_w2, (D_FF, D_PAD))]).astype(jnp.bfloat16)   # (2,2048,128)
    vec = jnp.stack([
        pad_vec(e_attn_b),
        pad_vec(e_ln1g), pad_vec(e_ln1b),
        pad_vec(e_b2),
        pad_vec(e_ln2g), pad_vec(e_ln2b),
        pad_vec(d_sa_b),
        pad_vec(d_ln1g), pad_vec(d_ln1b),
        pad_vec(d_ca_b),
        pad_vec(d_ln2g), pad_vec(d_ln2b),
        pad_vec(d_b2),
        pad_vec(d_ln3g), pad_vec(d_ln3b),
        pad_vec(dn_b),
    ])                                               # (16, 128) f32
    ffb = jnp.stack([e_b1, d_b1])                    # (2, 2048) f32
    return (w_attn, w1s, w2s, vec, ffb)


# ------------------------------ wrapper -------------------------------

@jax.jit
def encoder_forward(x, params):
    # x: any array with 64*100 elements (mirrors x.view(1, 64, 100).float())
    x2d = x.reshape(N_TOK, D_MODEL).astype(jnp.float32)
    x_p = jnp.zeros((N_TOK, D_PAD), jnp.float32).at[:, :D_MODEL].set(x2d)

    vmem = pl.BlockSpec(memory_space=pltpu.MemorySpace.VMEM)
    cost = pl.CostEstimate(flops=142_606_336, transcendentals=448,
                           bytes_accessed=2_449_408)
    out = pl.pallas_call(
        encoder_kernel,
        out_shape=jax.ShapeDtypeStruct((N_TOK, D_PAD), jnp.float32),
        in_specs=[vmem] * 6,
        out_specs=vmem,
        cost_estimate=cost,
    )(x_p, *params)
    # slice the 20 real output features, restore PyTorch (T=1, N=64, 20) shape
    return out[:, :D_OUT].reshape(1, N_TOK, D_OUT)


if __name__ == "__main__":
    key = jax.random.PRNGKey(0)
    kx, kp = jax.random.split(key)
    x = jax.random.normal(kx, (1, N_TOK, D_MODEL), dtype=jnp.float32)
    params = make_params(kp)
    y = encoder_forward(x, params)
    jax.block_until_ready(y)
    assert y.shape == (1, N_TOK, D_OUT) and y.dtype == jnp.float32
    print("KERNEL_OK")
</pallas_src>

<mosaic_0001>
module attributes {stable_mosaic.version = 11 : i64} {
  func.func @encoder_kernel(%arg0: memref<64x128xf32, #tpu.memory_space<vmem>>, %arg1: memref<4x128x128xf32, #tpu.memory_space<vmem>>, %arg2: memref<2x128x2048xbf16, #tpu.memory_space<vmem>>, %arg3: memref<2x2048x128xbf16, #tpu.memory_space<vmem>>, %arg4: memref<16x128xf32, #tpu.memory_space<vmem>>, %arg5: memref<2x2048xf32, #tpu.memory_space<vmem>>, %arg6: memref<64x128xf32, #tpu.memory_space<vmem>>) attributes {dimension_semantics = [], scalar_prefetch = 0 : i64, scratch_operands = 0 : i64, tpu.core_type = #tpu.core_type<tc>} {
    %c0 = arith.constant 0 : index
    %c0_0 = arith.constant 0 : index
    %0 = vector.load %arg0[%c0, %c0_0] : memref<64x128xf32, #tpu.memory_space<vmem>>, vector<64x128xf32>
    %c0_1 = arith.constant 0 : index
    %c0_2 = arith.constant 0 : index
    %1 = vector.load %arg4[%c0_1, %c0_2] : memref<16x128xf32, #tpu.memory_space<vmem>>, vector<16x128xf32>
    %c0_3 = arith.constant 0 : index
    %c0_4 = arith.constant 0 : index
    %2 = vector.load %arg5[%c0_3, %c0_4] : memref<2x2048xf32, #tpu.memory_space<vmem>>, vector<2x2048xf32>
    %3 = tpu.iota {dimensions = array<i32: 1>} : vector<64x128xi32>
    %c100_i32 = arith.constant 100 : i32
    %4 = vector.broadcast %c100_i32 : i32 to vector<64x128xi32>
    %5 = arith.cmpi slt, %3, %4 : vector<64x128xi32>
    %6 = arith.extui %5 : vector<64x128xi1> to vector<64x128xi32>
    %7 = arith.sitofp %6 : vector<64x128xi32> to vector<64x128xf32>
    %c0_5 = arith.constant 0 : index
    %c0_6 = arith.constant 0 : index
    %c0_7 = arith.constant 0 : index
    %8 = vector.load %arg1[%c0_5, %c0_6, %c0_7] : memref<4x128x128xf32, #tpu.memory_space<vmem>>, vector<1x128x128xf32>
    %9 = vector.shape_cast %8 : vector<1x128x128xf32> to vector<128x128xf32>
    %cst = arith.constant dense<0.000000e+00> : vector<64x128xf32>
    %10 = tpu.matmul %0, %9, %cst {dimension_numbers = #tpu.dot_dimension_numbers<[1], [0], [0], [1], [0, 0, 1, 1], [], []>} : vector<64x128xf32>, vector<128x128xf32>, vector<64x128xf32> -> vector<64x128xf32>
    %11 = vector.extract_strided_slice %1 {offsets = [0, 0], sizes = [1, 128], strides = [1, 1]} : vector<16x128xf32> to vector<1x128xf32>
    %12 = vector.broadcast %11 : vector<1x128xf32> to vector<64x128xf32>
    %13 = arith.addf %10, %12 : vector<64x128xf32>
    %14 = arith.addf %0, %13 : vector<64x128xf32>
    %cst_8 = arith.constant dense<0.000000e+00> : vector<64xf32>
    %15 = vector.multi_reduction <add>, %14, %cst_8 [1] : vector<64x128xf32> to vector<64xf32>
    %16 = vector.shape_cast %15 : vector<64xf32> to vector<64x1xf32>
    %cst_9 = arith.constant 0.00999999977 : f32
    %17 = vector.broadcast %cst_9 : f32 to vector<64x1xf32>
    %18 = arith.mulf %16, %17 : vector<64x1xf32>
    %19 = vector.broadcast %18 : vector<64x1xf32> to vector<64x128xf32>
    %20 = arith.subf %14, %19 : vector<64x128xf32>
    %21 = arith.mulf %20, %7 : vector<64x128xf32>
    %22 = arith.mulf %21, %21 : vector<64x128xf32>
    %cst_10 = arith.constant dense<0.000000e+00> : vector<64xf32>
    %23 = vector.multi_reduction <add>, %22, %cst_10 [1] : vector<64x128xf32> to vector<64xf32>
    %24 = vector.shape_cast %23 : vector<64xf32> to vector<64x1xf32>
    %cst_11 = arith.constant 0.00999999977 : f32
    %25 = vector.broadcast %cst_11 : f32 to vector<64x1xf32>
    %26 = arith.mulf %24, %25 : vector<64x1xf32>
    %cst_12 = arith.constant 9.99999974E-6 : f32
    %27 = vector.broadcast %cst_12 : f32 to vector<64x1xf32>
    %28 = arith.addf %26, %27 : vector<64x1xf32>
    %29 = math.rsqrt %28 : vector<64x1xf32>
    %30 = vector.broadcast %29 : vector<64x1xf32> to vector<64x128xf32>
    %31 = arith.mulf %21, %30 : vector<64x128xf32>
    %32 = vector.extract_strided_slice %1 {offsets = [1, 0], sizes = [1, 128], strides = [1, 1]} : vector<16x128xf32> to vector<1x128xf32>
    %33 = vector.broadcast %32 : vector<1x128xf32> to vector<64x128xf32>
    %34 = arith.mulf %31, %33 : vector<64x128xf32>
    %35 = vector.extract_strided_slice %1 {offsets = [2, 0], sizes = [1, 128], strides = [1, 1]} : vector<16x128xf32> to vector<1x128xf32>
    %36 = vector.broadcast %35 : vector<1x128xf32> to vector<64x128xf32>
    %37 = arith.addf %34, %36 : vector<64x128xf32>
    %c0_13 = arith.constant 0 : index
    %c0_14 = arith.constant 0 : index
    %c0_15 = arith.constant 0 : index
    %38 = vector.load %arg2[%c0_13, %c0_14, %c0_15] : memref<2x128x2048xbf16, #tpu.memory_space<vmem>>, vector<1x128x2048xbf16>
    %39 = vector.shape_cast %38 : vector<1x128x2048xbf16> to vector<128x2048xbf16>
    %cst_16 = arith.constant dense<0.000000e+00> : vector<64x2048xf32>
    %40 = tpu.matmul %37, %39, %cst_16 {dimension_numbers = #tpu.dot_dimension_numbers<[1], [0], [0], [1], [0, 0, 1, 1], [], []>} : vector<64x128xf32>, vector<128x2048xbf16>, vector<64x2048xf32> -> vector<64x2048xf32>
    %41 = vector.extract_strided_slice %2 {offsets = [0, 0], sizes = [1, 2048], strides = [1, 1]} : vector<2x2048xf32> to vector<1x2048xf32>
    %42 = vector.broadcast %41 : vector<1x2048xf32> to vector<64x2048xf32>
    %43 = arith.addf %40, %42 : vector<64x2048xf32>
    %cst_17 = arith.constant 0.000000e+00 : f32
    %44 = vector.broadcast %cst_17 : f32 to vector<64x2048xf32>
    %45 = arith.maximumf %43, %44 : vector<64x2048xf32>
    %c0_18 = arith.constant 0 : index
    %c0_19 = arith.constant 0 : index
    %c0_20 = arith.constant 0 : index
    %46 = vector.load %arg3[%c0_18, %c0_19, %c0_20] : memref<2x2048x128xbf16, #tpu.memory_space<vmem>>, vector<1x2048x128xbf16>
    %47 = vector.shape_cast %46 : vector<1x2048x128xbf16> to vector<2048x128xbf16>
    %cst_21 = arith.constant dense<0.000000e+00> : vector<64x128xf32>
    %48 = tpu.matmul %45, %47, %cst_21 {dimension_numbers = #tpu.dot_dimension_numbers<[1], [0], [0], [1], [0, 0, 1, 1], [], []>} : vector<64x2048xf32>, vector<2048x128xbf16>, vector<64x128xf32> -> vector<64x128xf32>
    %49 = vector.extract_strided_slice %1 {offsets = [3, 0], sizes = [1, 128], strides = [1, 1]} : vector<16x128xf32> to vector<1x128xf32>
    %50 = vector.broadcast %49 : vector<1x128xf32> to vector<64x128xf32>
    %51 = arith.addf %48, %50 : vector<64x128xf32>
    %52 = arith.addf %37, %51 : vector<64x128xf32>
    %cst_22 = arith.constant dense<0.000000e+00> : vector<64xf32>
    %53 = vector.multi_reduction <add>, %52, %cst_22 [1] : vector<64x128xf32> to vector<64xf32>
    %54 = vector.shape_cast %53 : vector<64xf32> to vector<64x1xf32>
    %cst_23 = arith.constant 0.00999999977 : f32
    %55 = vector.broadcast %cst_23 : f32 to vector<64x1xf32>
    %56 = arith.mulf %54, %55 : vector<64x1xf32>
    %57 = vector.broadcast %56 : vector<64x1xf32> to vector<64x128xf32>
    %58 = arith.subf %52, %57 : vector<64x128xf32>
    %59 = arith.mulf %58, %7 : vector<64x128xf32>
    %60 = arith.mulf %59, %59 : vector<64x128xf32>
    %cst_24 = arith.constant dense<0.000000e+00> : vector<64xf32>
    %61 = vector.multi_reduction <add>, %60, %cst_24 [1] : vector<64x128xf32> to vector<64xf32>
    %62 = vector.shape_cast %61 : vector<64xf32> to vector<64x1xf32>
    %cst_25 = arith.constant 0.00999999977 : f32
    %63 = vector.broadcast %cst_25 : f32 to vector<64x1xf32>
    %64 = arith.mulf %62, %63 : vector<64x1xf32>
    %cst_26 = arith.constant 9.99999974E-6 : f32
    %65 = vector.broadcast %cst_26 : f32 to vector<64x1xf32>
    %66 = arith.addf %64, %65 : vector<64x1xf32>
    %67 = math.rsqrt %66 : vector<64x1xf32>
    %68 = vector.broadcast %67 : vector<64x1xf32> to vector<64x128xf32>
    %69 = arith.mulf %59, %68 : vector<64x128xf32>
    %70 = vector.extract_strided_slice %1 {offsets = [4, 0], sizes = [1, 128], strides = [1, 1]} : vector<16x128xf32> to vector<1x128xf32>
    %71 = vector.broadcast %70 : vector<1x128xf32> to vector<64x128xf32>
    %72 = arith.mulf %69, %71 : vector<64x128xf32>
    %73 = vector.extract_strided_slice %1 {offsets = [5, 0], sizes = [1, 128], strides = [1, 1]} : vector<16x128xf32> to vector<1x128xf32>
    %74 = vector.broadcast %73 : vector<1x128xf32> to vector<64x128xf32>
    %75 = arith.addf %72, %74 : vector<64x128xf32>
    %cst_27 = arith.constant dense<0.000000e+00> : vector<64xf32>
    %76 = vector.multi_reduction <add>, %75, %cst_27 [1] : vector<64x128xf32> to vector<64xf32>
    %77 = vector.shape_cast %76 : vector<64xf32> to vector<64x1xf32>
    %cst_28 = arith.constant 0.00999999977 : f32
    %78 = vector.broadcast %cst_28 : f32 to vector<64x1xf32>
    %79 = arith.mulf %77, %78 : vector<64x1xf32>
    %80 = vector.broadcast %79 : vector<64x1xf32> to vector<64x128xf32>
    %81 = arith.subf %75, %80 : vector<64x128xf32>
    %82 = arith.mulf %81, %7 : vector<64x128xf32>
    %83 = arith.mulf %82, %82 : vector<64x128xf32>
    %cst_29 = arith.constant dense<0.000000e+00> : vector<64xf32>
    %84 = vector.multi_reduction <add>, %83, %cst_29 [1] : vector<64x128xf32> to vector<64xf32>
    %85 = vector.shape_cast %84 : vector<64xf32> to vector<64x1xf32>
    %cst_30 = arith.constant 0.00999999977 : f32
    %86 = vector.broadcast %cst_30 : f32 to vector<64x1xf32>
    %87 = arith.mulf %85, %86 : vector<64x1xf32>
    %cst_31 = arith.constant 9.99999974E-6 : f32
    %88 = vector.broadcast %cst_31 : f32 to vector<64x1xf32>
    %89 = arith.addf %87, %88 : vector<64x1xf32>
    %90 = math.rsqrt %89 : vector<64x1xf32>
    %91 = vector.broadcast %90 : vector<64x1xf32> to vector<64x128xf32>
    %92 = arith.mulf %82, %91 : vector<64x128xf32>
    %c1 = arith.constant 1 : index
    %c0_32 = arith.constant 0 : index
    %c0_33 = arith.constant 0 : index
    %93 = vector.load %arg1[%c1, %c0_32, %c0_33] : memref<4x128x128xf32, #tpu.memory_space<vmem>>, vector<1x128x128xf32>
    %94 = vector.shape_cast %93 : vector<1x128x128xf32> to vector<128x128xf32>
    %cst_34 = arith.constant dense<0.000000e+00> : vector<64x128xf32>
    %95 = tpu.matmul %0, %94, %cst_34 {dimension_numbers = #tpu.dot_dimension_numbers<[1], [0], [0], [1], [0, 0, 1, 1], [], []>} : vector<64x128xf32>, vector<128x128xf32>, vector<64x128xf32> -> vector<64x128xf32>
    %96 = vector.extract_strided_slice %1 {offsets = [6, 0], sizes = [1, 128], strides = [1, 1]} : vector<16x128xf32> to vector<1x128xf32>
    %97 = vector.broadcast %96 : vector<1x128xf32> to vector<64x128xf32>
    %98 = arith.addf %95, %97 : vector<64x128xf32>
    %99 = arith.addf %0, %98 : vector<64x128xf32>
    %cst_35 = arith.constant dense<0.000000e+00> : vector<64xf32>
    %100 = vector.multi_reduction <add>, %99, %cst_35 [1] : vector<64x128xf32> to vector<64xf32>
    %101 = vector.shape_cast %100 : vector<64xf32> to vector<64x1xf32>
    %cst_36 = arith.constant 0.00999999977 : f32
    %102 = vector.broadcast %cst_36 : f32 to vector<64x1xf32>
    %103 = arith.mulf %101, %102 : vector<64x1xf32>
    %104 = vector.broadcast %103 : vector<64x1xf32> to vector<64x128xf32>
    %105 = arith.subf %99, %104 : vector<64x128xf32>
    %106 = arith.mulf %105, %7 : vector<64x128xf32>
    %107 = arith.mulf %106, %106 : vector<64x128xf32>
    %cst_37 = arith.constant dense<0.000000e+00> : vector<64xf32>
    %108 = vector.multi_reduction <add>, %107, %cst_37 [1] : vector<64x128xf32> to vector<64xf32>
    %109 = vector.shape_cast %108 : vector<64xf32> to vector<64x1xf32>
    %cst_38 = arith.constant 0.00999999977 : f32
    %110 = vector.broadcast %cst_38 : f32 to vector<64x1xf32>
    %111 = arith.mulf %109, %110 : vector<64x1xf32>
    %cst_39 = arith.constant 9.99999974E-6 : f32
    %112 = vector.broadcast %cst_39 : f32 to vector<64x1xf32>
    %113 = arith.addf %111, %112 : vector<64x1xf32>
    %114 = math.rsqrt %113 : vector<64x1xf32>
    %115 = vector.broadcast %114 : vector<64x1xf32> to vector<64x128xf32>
    %116 = arith.mulf %106, %115 : vector<64x128xf32>
    %117 = vector.extract_strided_slice %1 {offsets = [7, 0], sizes = [1, 128], strides = [1, 1]} : vector<16x128xf32> to vector<1x128xf32>
    %118 = vector.broadcast %117 : vector<1x128xf32> to vector<64x128xf32>
    %119 = arith.mulf %116, %118 : vector<64x128xf32>
    %120 = vector.extract_strided_slice %1 {offsets = [8, 0], sizes = [1, 128], strides = [1, 1]} : vector<16x128xf32> to vector<1x128xf32>
    %121 = vector.broadcast %120 : vector<1x128xf32> to vector<64x128xf32>
    %122 = arith.addf %119, %121 : vector<64x128xf32>
    %c2 = arith.constant 2 : index
    %c0_40 = arith.constant 0 : index
    %c0_41 = arith.constant 0 : index
    %123 = vector.load %arg1[%c2, %c0_40, %c0_41] : memref<4x128x128xf32, #tpu.memory_space<vmem>>, vector<1x128x128xf32>
    %124 = vector.shape_cast %123 : vector<1x128x128xf32> to vector<128x128xf32>
    %cst_42 = arith.constant dense<0.000000e+00> : vector<64x128xf32>
    %125 = tpu.matmul %92, %124, %cst_42 {dimension_numbers = #tpu.dot_dimension_numbers<[1], [0], [0], [1], [0, 0, 1, 1], [], []>} : vector<64x128xf32>, vector<128x128xf32>, vector<64x128xf32> -> vector<64x128xf32>
    %126 = vector.extract_strided_slice %1 {offsets = [9, 0], sizes = [1, 128], strides = [1, 1]} : vector<16x128xf32> to vector<1x128xf32>
    %127 = vector.broadcast %126 : vector<1x128xf32> to vector<64x128xf32>
    %128 = arith.addf %125, %127 : vector<64x128xf32>
    %129 = arith.addf %122, %128 : vector<64x128xf32>
    %cst_43 = arith.constant dense<0.000000e+00> : vector<64xf32>
    %130 = vector.multi_reduction <add>, %129, %cst_43 [1] : vector<64x128xf32> to vector<64xf32>
    %131 = vector.shape_cast %130 : vector<64xf32> to vector<64x1xf32>
    %cst_44 = arith.constant 0.00999999977 : f32
    %132 = vector.broadcast %cst_44 : f32 to vector<64x1xf32>
    %133 = arith.mulf %131, %132 : vector<64x1xf32>
    %134 = vector.broadcast %133 : vector<64x1xf32> to vector<64x128xf32>
    %135 = arith.subf %129, %134 : vector<64x128xf32>
    %136 = arith.mulf %135, %7 : vector<64x128xf32>
    %137 = arith.mulf %136, %136 : vector<64x128xf32>
    %cst_45 = arith.constant dense<0.000000e+00> : vector<64xf32>
    %138 = vector.multi_reduction <add>, %137, %cst_45 [1] : vector<64x128xf32> to vector<64xf32>
    %139 = vector.shape_cast %138 : vector<64xf32> to vector<64x1xf32>
    %cst_46 = arith.constant 0.00999999977 : f32
    %140 = vector.broadcast %cst_46 : f32 to vector<64x1xf32>
    %141 = arith.mulf %139, %140 : vector<64x1xf32>
    %cst_47 = arith.constant 9.99999974E-6 : f32
    %142 = vector.broadcast %cst_47 : f32 to vector<64x1xf32>
    %143 = arith.addf %141, %142 : vector<64x1xf32>
    %144 = math.rsqrt %143 : vector<64x1xf32>
    %145 = vector.broadcast %144 : vector<64x1xf32> to vector<64x128xf32>
    %146 = arith.mulf %136, %145 : vector<64x128xf32>
    %147 = vector.extract_strided_slice %1 {offsets = [10, 0], sizes = [1, 128], strides = [1, 1]} : vector<16x128xf32> to vector<1x128xf32>
    %148 = vector.broadcast %147 : vector<1x128xf32> to vector<64x128xf32>
    %149 = arith.mulf %146, %148 : vector<64x128xf32>
    %150 = vector.extract_strided_slice %1 {offsets = [11, 0], sizes = [1, 128], strides = [1, 1]} : vector<16x128xf32> to vector<1x128xf32>
    %151 = vector.broadcast %150 : vector<1x128xf32> to vector<64x128xf32>
    %152 = arith.addf %149, %151 : vector<64x128xf32>
    %c1_48 = arith.constant 1 : index
    %c0_49 = arith.constant 0 : index
    %c0_50 = arith.constant 0 : index
    %153 = vector.load %arg2[%c1_48, %c0_49, %c0_50] : memref<2x128x2048xbf16, #tpu.memory_space<vmem>>, vector<1x128x2048xbf16>
    %154 = vector.shape_cast %153 : vector<1x128x2048xbf16> to vector<128x2048xbf16>
    %cst_51 = arith.constant dense<0.000000e+00> : vector<64x2048xf32>
    %155 = tpu.matmul %152, %154, %cst_51 {dimension_numbers = #tpu.dot_dimension_numbers<[1], [0], [0], [1], [0, 0, 1, 1], [], []>} : vector<64x128xf32>, vector<128x2048xbf16>, vector<64x2048xf32> -> vector<64x2048xf32>
    %156 = vector.extract_strided_slice %2 {offsets = [1, 0], sizes = [1, 2048], strides = [1, 1]} : vector<2x2048xf32> to vector<1x2048xf32>
    %157 = vector.broadcast %156 : vector<1x2048xf32> to vector<64x2048xf32>
    %158 = arith.addf %155, %157 : vector<64x2048xf32>
    %cst_52 = arith.constant 0.000000e+00 : f32
    %159 = vector.broadcast %cst_52 : f32 to vector<64x2048xf32>
    %160 = arith.maximumf %158, %159 : vector<64x2048xf32>
    %c1_53 = arith.constant 1 : index
    %c0_54 = arith.constant 0 : index
    %c0_55 = arith.constant 0 : index
    %161 = vector.load %arg3[%c1_53, %c0_54, %c0_55] : memref<2x2048x128xbf16, #tpu.memory_space<vmem>>, vector<1x2048x128xbf16>
    %162 = vector.shape_cast %161 : vector<1x2048x128xbf16> to vector<2048x128xbf16>
    %cst_56 = arith.constant dense<0.000000e+00> : vector<64x128xf32>
    %163 = tpu.matmul %160, %162, %cst_56 {dimension_numbers = #tpu.dot_dimension_numbers<[1], [0], [0], [1], [0, 0, 1, 1], [], []>} : vector<64x2048xf32>, vector<2048x128xbf16>, vector<64x128xf32> -> vector<64x128xf32>
    %164 = vector.extract_strided_slice %1 {offsets = [12, 0], sizes = [1, 128], strides = [1, 1]} : vector<16x128xf32> to vector<1x128xf32>
    %165 = vector.broadcast %164 : vector<1x128xf32> to vector<64x128xf32>
    %166 = arith.addf %163, %165 : vector<64x128xf32>
    %167 = arith.addf %152, %166 : vector<64x128xf32>
    %cst_57 = arith.constant dense<0.000000e+00> : vector<64xf32>
    %168 = vector.multi_reduction <add>, %167, %cst_57 [1] : vector<64x128xf32> to vector<64xf32>
    %169 = vector.shape_cast %168 : vector<64xf32> to vector<64x1xf32>
    %cst_58 = arith.constant 0.00999999977 : f32
    %170 = vector.broadcast %cst_58 : f32 to vector<64x1xf32>
    %171 = arith.mulf %169, %170 : vector<64x1xf32>
    %172 = vector.broadcast %171 : vector<64x1xf32> to vector<64x128xf32>
    %173 = arith.subf %167, %172 : vector<64x128xf32>
    %174 = arith.mulf %173, %7 : vector<64x128xf32>
    %175 = arith.mulf %174, %174 : vector<64x128xf32>
    %cst_59 = arith.constant dense<0.000000e+00> : vector<64xf32>
    %176 = vector.multi_reduction <add>, %175, %cst_59 [1] : vector<64x128xf32> to vector<64xf32>
    %177 = vector.shape_cast %176 : vector<64xf32> to vector<64x1xf32>
    %cst_60 = arith.constant 0.00999999977 : f32
    %178 = vector.broadcast %cst_60 : f32 to vector<64x1xf32>
    %179 = arith.mulf %177, %178 : vector<64x1xf32>
    %cst_61 = arith.constant 9.99999974E-6 : f32
    %180 = vector.broadcast %cst_61 : f32 to vector<64x1xf32>
    %181 = arith.addf %179, %180 : vector<64x1xf32>
    %182 = math.rsqrt %181 : vector<64x1xf32>
    %183 = vector.broadcast %182 : vector<64x1xf32> to vector<64x128xf32>
    %184 = arith.mulf %174, %183 : vector<64x128xf32>
    %185 = vector.extract_strided_slice %1 {offsets = [13, 0], sizes = [1, 128], strides = [1, 1]} : vector<16x128xf32> to vector<1x128xf32>
    %186 = vector.broadcast %185 : vector<1x128xf32> to vector<64x128xf32>
    %187 = arith.mulf %184, %186 : vector<64x128xf32>
    %188 = vector.extract_strided_slice %1 {offsets = [14, 0], sizes = [1, 128], strides = [1, 1]} : vector<16x128xf32> to vector<1x128xf32>
    %189 = vector.broadcast %188 : vector<1x128xf32> to vector<64x128xf32>
    %190 = arith.addf %187, %189 : vector<64x128xf32>
    %cst_62 = arith.constant dense<0.000000e+00> : vector<64xf32>
    %191 = vector.multi_reduction <add>, %190, %cst_62 [1] : vector<64x128xf32> to vector<64xf32>
    %192 = vector.shape_cast %191 : vector<64xf32> to vector<64x1xf32>
    %cst_63 = arith.constant 0.00999999977 : f32
    %193 = vector.broadcast %cst_63 : f32 to vector<64x1xf32>
    %194 = arith.mulf %192, %193 : vector<64x1xf32>
    %195 = vector.broadcast %194 : vector<64x1xf32> to vector<64x128xf32>
    %196 = arith.subf %190, %195 : vector<64x128xf32>
    %197 = arith.mulf %196, %7 : vector<64x128xf32>
    %198 = arith.mulf %197, %197 : vector<64x128xf32>
    %cst_64 = arith.constant dense<0.000000e+00> : vector<64xf32>
    %199 = vector.multi_reduction <add>, %198, %cst_64 [1] : vector<64x128xf32> to vector<64xf32>
    %200 = vector.shape_cast %199 : vector<64xf32> to vector<64x1xf32>
    %cst_65 = arith.constant 0.00999999977 : f32
    %201 = vector.broadcast %cst_65 : f32 to vector<64x1xf32>
    %202 = arith.mulf %200, %201 : vector<64x1xf32>
    %cst_66 = arith.constant 9.99999974E-6 : f32
    %203 = vector.broadcast %cst_66 : f32 to vector<64x1xf32>
    %204 = arith.addf %202, %203 : vector<64x1xf32>
    %205 = math.rsqrt %204 : vector<64x1xf32>
    %206 = vector.broadcast %205 : vector<64x1xf32> to vector<64x128xf32>
    %207 = arith.mulf %197, %206 : vector<64x128xf32>
    %c3 = arith.constant 3 : index
    %c0_67 = arith.constant 0 : index
    %c0_68 = arith.constant 0 : index
    %208 = vector.load %arg1[%c3, %c0_67, %c0_68] : memref<4x128x128xf32, #tpu.memory_space<vmem>>, vector<1x128x128xf32>
    %209 = vector.shape_cast %208 : vector<1x128x128xf32> to vector<128x128xf32>
    %cst_69 = arith.constant dense<0.000000e+00> : vector<64x128xf32>
    %210 = tpu.matmul %207, %209, %cst_69 {dimension_numbers = #tpu.dot_dimension_numbers<[1], [0], [0], [1], [0, 0, 1, 1], [], []>} : vector<64x128xf32>, vector<128x128xf32>, vector<64x128xf32> -> vector<64x128xf32>
    %211 = vector.extract_strided_slice %1 {offsets = [15, 0], sizes = [1, 128], strides = [1, 1]} : vector<16x128xf32> to vector<1x128xf32>
    %212 = vector.broadcast %211 : vector<1x128xf32> to vector<64x128xf32>
    %213 = arith.addf %210, %212 : vector<64x128xf32>
    %c0_70 = arith.constant 0 : index
    %c0_71 = arith.constant 0 : index
    %214 = vector.load %arg6[%c0_70, %c0_71] : memref<64x128xf32, #tpu.memory_space<vmem>>, vector<64x128xf32>
    tpu.vector_store %arg6[%c0_70, %c0_71], %213 {strides = array<i32>} : memref<64x128xf32, #tpu.memory_space<vmem>>, vector<64x128xf32>,
    return
  }
}

</mosaic_0001>

<bundles_post_ra>
// kernel: encoder_forward.1
= control target key start
LH: loop header
LB: loop body
LE: loop exit
PB: predicated region body
PF: predicated region fallthrough
CT: control target
= control target key end

     0   :  { %11 = vsyncpa [#allocation3], 0  ;;  %s11687_s0 = inlined_call_operand.vmem [shape: f32[64,128], index: 0, kind: input, shape index: {}]   ;;  %s11688_s1 = inlined_call_operand.hbm [shape: f32[4,128,128], index: 1, kind: input, shape index: {}]   ;;  %s11689_s2 = inlined_call_operand.hbm [shape: bf16[2,128,2048], index: 2, kind: input, shape index: {}]   ;;  %s11690_s3 = inlined_call_operand.hbm [shape: bf16[2,2048,128], index: 3, kind: input, shape index: {}]   ;;  %s11691_s4 = inlined_call_operand.vmem [shape: f32[16,128], index: 4, kind: input, shape index: {}]   ;;  %s11692_s5 = inlined_call_operand.vmem [shape: f32[2,2048], index: 5, kind: input, shape index: {}]   ;;  %s11693_s6 = inlined_call_operand.vmem [shape: f32[64,128], index: 6, kind: output, shape index: {}]  }
   0x1   :  { %12 = vsyncpa [#allocation5], 0  ;;  %s10057_s21 = smov [#allocation4]   ;;  %s9987_s25 = scalar_lea.hbm %s11689_s2, 32768 }
   0x2   :  { %s32_s22 = sshll.u32 %s10057_s21, 4  ;;  %p9988_p0 = scmp.ne.s32.totalorder %s11689_s2, %s9987_s25  ;;  %s33_s22 = int_to_ptr.vmem [resolvable:$true] %s32_s22 }
   0x3   :  { %p9991_p1 = scmp.lt.u32.totalorder %s9987_s25, %s11689_s2 }
   0x5   :  { %p9993_p2 = pnand %p9991_p1, %p9988_p0 }
   0x7   :  { %9996 = shalt.err (!%p9993_p2)
}
   0x8   :  { %s9997_s30 = scalar_lea.vmem %s33_s22, 32768  ;;  %p10002_p4 = scmp.lt.s32.totalorder %s33_s22, %s33_s22 }
   0x9   :  { %p9998_p3 = scmp.ne.s32.totalorder %s33_s22, %s9997_s30  ;;  %p10003_p5 = scmp.lt.s32.totalorder %s9997_s30, %s9997_s30 }
   0xb   :  { %p10004_p6 = por %p10003_p5, %p10002_p4 }
   0xd   :  { %p10005_p7 = pnand %p10004_p6, %p9998_p3 }
   0xf   :  { %10008 = shalt.err (!%p10005_p7)
}
  0x10   :  { %s10058_s7 = smov 1024   ;;  %s10059_s8 = smov 64  }
  0x11   :  { %38 = dma.hbm_to_vmem [thread:$0]  %s11689_s2, 32768, %s33_s22, [#allocation5], %s10058_s7, %s10058_s7, %s10059_s8  }
  0x12   :  { %s10060_s11 = smov [#allocation2]   ;;  %s10009_s15 = scalar_lea.hbm %s11688_s1, 8192 }
  0x13   :  { %s20_s12 = sshll.u32 %s10060_s11, 4  ;;  %p10010_p8 = scmp.ne.s32.totalorder %s11688_s1, %s10009_s15  ;;  %s21_s12 = int_to_ptr.vmem [resolvable:$true] %s20_s12 }
  0x14   :  { %p10013_p9 = scmp.lt.u32.totalorder %s10009_s15, %s11688_s1 }
  0x16   :  { %p10015_p10 = pnand %p10013_p9, %p10010_p8 }
  0x18   :  { %10018 = shalt.err (!%p10015_p10)
}
  0x19   :  { %s10019_s20 = scalar_lea.vmem %s21_s12, 8192  ;;  %p10024_p12 = scmp.lt.s32.totalorder %s21_s12, %s21_s12 }
  0x1a   :  { %p10020_p11 = scmp.ne.s32.totalorder %s21_s12, %s10019_s20  ;;  %p10025_p13 = scmp.lt.s32.totalorder %s10019_s20, %s10019_s20 }
  0x1c   :  { %p10026_p0 = por %p10025_p13, %p10024_p12 }
  0x1e   :  { %p10027_p1 = pnand %p10026_p0, %p10020_p11 }
  0x20   :  { %10030 = shalt.err (!%p10027_p1)
}
  0x21   :  { %s10061_s2 = smov 128   ;;  %s10062_s21 = smov 8  }
  0x22   :  { %26 = dma.hbm_to_vmem [thread:$0]  %s11688_s1, 8192, %s21_s12, [#allocation3], %s10061_s2, %s10061_s2, %s10062_s21  }
  0x23   :  { %s10063_s24 = smov [#allocation6]   ;;  %s10031_s28 = scalar_lea.hbm %s11690_s3, 32768 }
  0x24   :  { %s44_s25 = sshll.u32 %s10063_s24, 4  ;;  %p10032_p2 = scmp.ne.s32.totalorder %s11690_s3, %s10031_s28  ;;  %s45_s25 = int_to_ptr.vmem [resolvable:$true] %s44_s25 }
  0x25   :  { %p10035_p3 = scmp.lt.u32.totalorder %s10031_s28, %s11690_s3 }
  0x27   :  { %p10037_p4 = pnand %p10035_p3, %p10032_p2 }
  0x29   :  { %10040 = shalt.err (!%p10037_p4)
}
  0x2a   :  { %s10041_s10 = scalar_lea.vmem %s45_s25, 32768  ;;  %p10046_p6 = scmp.lt.s32.totalorder %s45_s25, %s45_s25 }
  0x2b   :  { %p10042_p5 = scmp.ne.s32.totalorder %s45_s25, %s10041_s10  ;;  %p10047_p7 = scmp.lt.s32.totalorder %s10041_s10, %s10041_s10 }
  0x2d   :  { %p10048_p8 = por %p10047_p7, %p10046_p6 }
  0x2f   :  { %p10049_p9 = pnand %p10048_p8, %p10042_p5 }
  0x31   :  { %10052 = shalt.err (!%p10049_p9)
}
  0x32   :  { %s10064_s1 = smov 4  }
  0x33   :  { %50 = dma.hbm_to_vmem [thread:$0]  %s11690_s3, 32768, %s45_s25, [#allocation5], %s10059_s8, %s10059_s8, %s10064_s1  }
  0x34   :  { %10053 = dma.done.wait [#allocation3], 8192  }
  0x35   :  { %10054 = vsyncadd [#allocation3], 4294959104 }
  0x36   :  { %10055 = dma.done.wait [#allocation5], 65536  }
  0x37   :  { %10056 = vsyncadd [#allocation5], 4294901760  ;;  %v84_v0 = vld [vmem:[#allocation2] sm:$0xff]  ;;  %v85_v1 = vld [vmem:[#allocation2 + $0x8] sm:$0xff]  ;;  %v10065_v32 = vmov 0.0   ;;  %v79_v33 = vlaneseq }
  0x38   :  { %v86_v2 = vld [vmem:[#allocation2 + $0x10] sm:$0xff]  ;;  %v9464_v3 = vpack.c.bf16 %v85_v1, %v84_v0  ;;  %v87_v4 = vld [vmem:[#allocation2 + $0x18] sm:$0xff]  ;;  %v88_v6 = vld [vmem:[#allocation2 + $0x20] sm:$0xff]  ;;  %1285 = vmatprep.mubr.f32.mxu1 %v10065_v32 }
  0x39   :  { %v9468_v5 = vpack.c.bf16 %v87_v4, %v86_v2  ;;  %v89_v7 = vld [vmem:[#allocation2 + $0x28] sm:$0xff]  ;;  %v65_v9 = vld [vmem:[%s11687_s0] sm:$0xff]  ;;  %v90_v10 = vld [vmem:[#allocation2 + $0x30] sm:$0xff]  ;;  %v10167_v34 = vshrl.u32 %v79_v33, 7 }
  0x3a   :  { %9465 = vmatprep.subr.bf16.mxu0 %v9464_v3  ;;  %v9472_v8 = vpack.c.bf16 %v89_v7, %v88_v6  ;;  %v91_v11 = vld [vmem:[#allocation2 + $0x38] sm:$0xff]  ;;  %9320 = vmatprep.mubr.f32.mxu0 %v65_v9  ;;  %v92_v12 = vld [vmem:[#allocation2 + $0x40] sm:$0xff]  ;;  %v93_v13 = vld [vmem:[#allocation2 + $0x48] sm:$0xff] }
  0x3b   :  { %9467 = vmatpush3.bf16.msra.mxu0 %v9464_v3  ;;  %v9476_v14 = vpack.c.bf16 %v91_v11, %v90_v10  ;;  %v94_v15 = vld [vmem:[#allocation2 + $0x50] sm:$0xff]  ;;  %v95_v16 = vld [vmem:[#allocation2 + $0x58] sm:$0xff]  ;;  %v9480_v17 = vpack.c.bf16 %v93_v13, %v92_v12  ;;  %v96_v18 = vld [vmem:[#allocation2 + $0x60] sm:$0xff]  ;;  %v10170_v35 = vsub.s32 0, %v10167_v34 }
  0x3c   :  { %9469 = vmatprep.subr.bf16.mxu0 %v9468_v5  ;;  %v97_v19 = vld [vmem:[#allocation2 + $0x68] sm:$0xff]  ;;  %v9484_v20 = vpack.c.bf16 %v95_v16, %v94_v15  ;;  %v98_v21 = vld [vmem:[#allocation2 + $0x70] sm:$0xff]  ;;  %v99_v22 = vld [vmem:[#allocation2 + $0x78] sm:$0xff] }
  0x3d   :  { %v9488_v23 = vpack.c.bf16 %v97_v19, %v96_v18  ;;  %v9492_v24 = vpack.c.bf16 %v99_v22, %v98_v21  ;;  %v66_v25 = vld [vmem:[%s11687_s0 + $0x8] sm:$0xff]  ;;  %v67_v26 = vld [vmem:[%s11687_s0 + $0x10] sm:$0xff]  ;;  %v68_v27 = vld [vmem:[%s11687_s0 + $0x18] sm:$0xff] }
  0x3e   :  { %v69_v28 = vld [vmem:[%s11687_s0 + $0x20] sm:$0xff]  ;;  %v70_v29 = vld [vmem:[%s11687_s0 + $0x28] sm:$0xff]  ;;  %v71_v30 = vld [vmem:[%s11687_s0 + $0x30] sm:$0xff] }
  0x3f   :  { %9471 = vmatpush3.bf16.msra.mxu0 %v9468_v5  ;;  %v72_v31 = vld [vmem:[%s11687_s0 + $0x38] sm:$0xff]  ;;  %v10175_v36 = vld [vmem:[%s11691_s4] sm:$0xff]  ;;  %v338_v1 = vld [vmem:[#allocation4 + $0x8] sm:$0xff] }
  0x40   :  { %9473 = vmatprep.subr.bf16.mxu0 %v9472_v8  ;;  %v103_v37 = vrot.slane %v10175_v36, %v10170_v35  ;;  %v9969_v42 = vld [vmem:[%s11687_s0] sm:$0xff]  ;;  %v346_v4 = vld [vmem:[#allocation4 + $0x48] sm:$0xff] }
  0x41   :  { %v337_v63 = vld [vmem:[#allocation4] sm:$0xff]  ;;  %v8042_v7 = vcombine.low %v338_v1, %v346_v4  ;;  %v354_v10 = vld [vmem:[#allocation4 + $0x88] sm:$0xff] }
  0x42   :  { %v345_v0 = vld [vmem:[#allocation4 + $0x40] sm:$0xff]  ;;  %v362_v11 = vld [vmem:[#allocation4 + $0xc8] sm:$0xff] }
  0x43   :  { %9475 = vmatpush3.bf16.msra.mxu0 %v9472_v8  ;;  %v8041_v2 = vcombine.high %v337_v63, %v345_v0  ;;  %v8040_v3 = vcombine.low %v337_v63, %v345_v0  ;;  %v353_v5 = vld [vmem:[#allocation4 + $0x80] sm:$0xff]  ;;  %v8043_v8 = vcombine.high %v338_v1, %v346_v4  ;;  %v8059_v13 = vcombine.high %v354_v10, %v362_v11  ;;  %v370_v15 = vld [vmem:[#allocation4 + $0x108] sm:$0xff] }
  0x44   :  { %9477 = vmatprep.subr.bf16.mxu0 %v9476_v14  ;;  %v361_v6 = vld [vmem:[#allocation4 + $0xc0] sm:$0xff]  ;;  %v378_v16 = vld [vmem:[#allocation4 + $0x148] sm:$0xff]  ;;  %v8058_v18 = vcombine.low %v354_v10, %v362_v11 }
  0x45   :  { %v8057_v9 = vcombine.high %v353_v5, %v361_v6  ;;  %v369_v12 = vld [vmem:[#allocation4 + $0x100] sm:$0xff]  ;;  %1253 = vmatprep.subr.bf16.mxu1 %v8041_v2  ;;  %v8074_v22 = vcombine.low %v370_v15, %v378_v16 }
  0x46   :  { %1254 = vmatpush1.bf16.msra.mxu1 %v8040_v3 }
  0x47   :  { %9479 = vmatpush3.bf16.msra.mxu0 %v9476_v14  ;;  %v377_v14 = vld [vmem:[#allocation4 + $0x140] sm:$0xff]  ;;  %1255 = vmatprep.subr.bf16.mxu1 %v8057_v9  ;;  %v394_v9 = vld [vmem:[#allocation4 + $0x1c8] sm:$0xff] }
  0x48   :  { %9481 = vmatprep.subr.bf16.mxu0 %v9480_v17  ;;  %v8073_v19 = vcombine.high %v369_v12, %v377_v14  ;;  %v8072_v21 = vcombine.low %v369_v12, %v377_v14  ;;  %v409_v14 = vld [vmem:[#allocation4 + $0x240] sm:$0xff] }
  0x4b   :  { %9483 = vmatpush3.bf16.msra.mxu0 %v9480_v17  ;;  %v8056_v17 = vcombine.low %v353_v5, %v361_v6  ;;  %v385_v5 = vld [vmem:[#allocation4 + $0x180] sm:$0xff] }
  0x4c   :  { %9485 = vmatprep.subr.bf16.mxu0 %v9484_v20  ;;  %v393_v6 = vld [vmem:[#allocation4 + $0x1c0] sm:$0xff] }
  0x4d   :  { %1256 = vmatpush1.bf16.msra.mxu1 %v8056_v17  ;;  %v410_v17 = vld [vmem:[#allocation4 + $0x248] sm:$0xff] }
  0x4e   :  { %1257 = vmatprep.subr.bf16.mxu1 %v8073_v19 }
  0x4f   :  { %9487 = vmatpush3.bf16.msra.mxu0 %v9484_v20  ;;  %v8075_v20 = vcombine.high %v370_v15, %v378_v16  ;;  %v402_v15 = vld [vmem:[#allocation4 + $0x208] sm:$0xff] }
  0x50   :  { %9489 = vmatprep.subr.bf16.mxu0 %v9488_v23  ;;  %v8106_v19 = vcombine.low %v402_v15, %v410_v17 }
  0x51   :  { %1258 = vmatpush1.bf16.msra.mxu1 %v8072_v21  ;;  %v417_v21 = vld [vmem:[#allocation4 + $0x280] sm:$0xff] }
  0x53   :  { %9491 = vmatpush3.bf16.msra.mxu0 %v9488_v23  ;;  %v80_v23 = vand.u32 127, %v79_v33 }
  0x54   :  { %9493 = vmatprep.subr.bf16.mxu0 %v9492_v24 }
  0x55   :  { %vm81_vm0 = vcmp.lt.s32.totalorder %v80_v23, 100  ;;  %v418_v23 = vld [vmem:[#allocation4 + $0x288] sm:$0xff] }
  0x57   :  { %9495 = vmatpush3.bf16.msra.mxu0 %v9492_v24 }
  0x58   :  { %1334 = vmatprep.subr.bf16.mxu0 %v8043_v8  ;;  %v8089_v8 = vcombine.high %v385_v5, %v393_v6 }
  0x5a   :  { %9321 = vmatmul.mubr.f32.vlgmr.msra.gmra.mrb[0].mxu0 %v66_v25  ;;  %1259 = vmatprep.subr.bf16.mxu1 %v8089_v8 }
  0x5b   :  { %9323 = vmatprep.mubr.f32.mxu0 %v67_v26  ;;  %1335 = vmatpush1.bf16.msra.mxu0 %v8042_v7  ;;  %v386_v7 = vld [vmem:[#allocation4 + $0x188] sm:$0xff] }
  0x5c   :  { %1336 = vmatprep.subr.bf16.mxu0 %v8059_v13  ;;  %v8090_v11 = vcombine.low %v386_v7, %v394_v9  ;;  %v8091_v12 = vcombine.high %v386_v7, %v394_v9  ;;  %v401_v13 = vld [vmem:[#allocation4 + $0x200] sm:$0xff] }
  0x5d   :  { %v8105_v16 = vcombine.high %v401_v13, %v409_v14 }
  0x5e   :  { %9324 = vmatmul.mubr.f32.gmra.mrb[2].mxu0 %v68_v27 }
  0x5f   :  { %9326 = vmatprep.mubr.f32.mxu0 %v69_v28  ;;  %1337 = vmatpush1.bf16.msra.mxu0 %v8058_v18  ;;  %v8104_v18 = vcombine.low %v401_v13, %v409_v14 }
  0x60   :  { %1338 = vmatprep.subr.bf16.mxu0 %v8075_v20  ;;  %v8107_v20 = vcombine.high %v402_v15, %v410_v17  ;;  %v10275_v15 = vsub.s32 1, %v10167_v34 }
  0x62   :  { %9327 = vmatmul.mubr.f32.gmra.mrb[4].mxu0 %v70_v29 }
  0x63   :  { %9329 = vmatprep.mubr.f32.mxu0 %v71_v30  ;;  %1339 = vmatpush1.bf16.msra.mxu0 %v8074_v22  ;;  %v425_v22 = vld [vmem:[#allocation4 + $0x2c0] sm:$0xff] }
  0x64   :  { %1340 = vmatprep.subr.bf16.mxu0 %v8091_v12 }
  0x66   :  { %9330 = vmatmul.mubr.f32.gmra.mrb[6].mxu0 %v72_v31 }
  0x67   :  { %1366 = vmatprep.mubr.f32.mxu0 %v10065_v32  ;;  %1341 = vmatpush1.bf16.msra.mxu0 %v8090_v11 }
  0x68   :  { %1342 = vmatprep.subr.bf16.mxu0 %v8107_v20 }
  0x6b   :  { %1343 = vmatpush1.bf16.msra.mxu0 %v8106_v19 }
 0x12d   :  { %v9322_v38 = vpop.f32.mrb[0].mxu0 }
 0x12e   :  { %v170_v39 = vpop.f32.mrb[1].mxu0  ;;  %v176_v44 = vadd.f32 %v9322_v38, %v103_v37 }
 0x12f   :  { %v171_v40 = vadd.f32 %v170_v39, %v103_v37 }
 0x130   :  { %v10187_v50 = vadd.f32 %v176_v44, %v66_v25 }
 0x131   :  { %v9325_v41 = vpop.f32.mrb[2].mxu0  ;;  %v10182_v43 = vadd.f32 %v9969_v42, %v171_v40 }
 0x132   :  { %v180_v45 = vpop.f32.mrb[3].mxu0  ;;  %v186_v47 = vadd.f32 %v9325_v41, %v103_v37 }
 0x133   :  { %217 = vadd.xlane.f32.xlu0 %v10182_v43  ;;  %v181_v46 = vadd.f32 %v180_v45, %v103_v37 }
 0x134   :  { %v10191_v52 = vadd.f32 %v186_v47, %v68_v27 }
 0x135   :  { %v9328_v48 = vpop.f32.mrb[4].mxu0  ;;  %v10185_v49 = vadd.f32 %v181_v46, %v67_v26  ;;  %v10208_v26 = vsel %vm81_vm0, 1.0, %v10065_v32 }
 0x136   :  { %v190_v51 = vpop.f32.mrb[5].mxu0  ;;  %v196_v54 = vadd.f32 %v9328_v48, %v103_v37 }
 0x137   :  { %221 = vadd.xlane.f32.xlu1 %v10185_v49  ;;  %219 = vadd.xlane.f32.xlu0 %v10187_v50  ;;  %v191_v53 = vadd.f32 %v190_v51, %v103_v37 }
 0x138   :  { %v10197_v58 = vadd.f32 %v196_v54, %v70_v29 }
 0x139   :  { %v9331_v55 = vpop.f32.mrb[6].mxu0  ;;  %v10193_v56 = vadd.f32 %v191_v53, %v69_v28 }
 0x13a   :  { %v200_v57 = vpop.f32.mrb[7].mxu0  ;;  %v206_v60 = vadd.f32 %v9331_v55, %v103_v37 }
 0x13b   :  { %223 = vadd.xlane.f32.xlu1 %v10191_v52  ;;  %225 = vadd.xlane.f32.xlu0 %v10193_v56  ;;  %v201_v59 = vadd.f32 %v200_v57, %v103_v37 }
 0x13c   :  { %v10203_v62 = vadd.f32 %v206_v60, %v72_v31 }
 0x13d   :  { %v10199_v61 = vadd.f32 %v201_v59, %v71_v30 }
 0x13f   :  { %227 = vadd.xlane.f32.xlu1 %v10197_v58  ;;  %229 = vadd.xlane.f32.xlu0 %v10199_v61 }
 0x143   :  { %231 = vadd.xlane.f32.xlu1 %v10203_v62 }
 0x1c0   :  { %v218_v24 = vpop.xlane.xlu0 %217 }
 0x1c1   :  { %v233_v25 = vmul.f32 0.01, %v218_v24  ;;  %v8121_v24 = vcombine.high %v417_v21, %v425_v22 }
 0x1c3   :  { %v241_v27 = vsub.f32 %v10182_v43, %v233_v25  ;;  %v426_v25 = vld [vmem:[#allocation4 + $0x2c8] sm:$0xff] }
 0x1c4   :  { %v222_v28 = vpop.xlane.xlu1 %221  ;;  %v220_v29 = vpop.xlane.xlu0 %219 }
 0x1c5   :  { %v235_v30 = vmul.f32 0.01, %v222_v28  ;;  %v234_v31 = vmul.f32 0.01, %v220_v29  ;;  %v10212_v37 = vmul.f32 %v10208_v26, %v241_v27  ;;  %v8120_v27 = vcombine.low %v417_v21, %v425_v22 }
 0x1c6   :  { %v8122_v28 = vcombine.low %v418_v23, %v426_v25  ;;  %v8123_v29 = vcombine.high %v418_v23, %v426_v25  ;;  %v10282_v22 = vrot.slane %v10175_v36, %v10275_v15 }
 0x1c7   :  { %v243_v38 = vsub.f32 %v10185_v49, %v235_v30  ;;  %v242_v39 = vsub.f32 %v10187_v50, %v234_v31  ;;  %v257_v33 = vmul.f32 %v10212_v37, %v10212_v37  ;;  %v433_v30 = vld [vmem:[#allocation4 + $0x300] sm:$0xff] }
 0x1c8   :  { %v224_v40 = vpop.xlane.xlu1 %223  ;;  %v226_v41 = vpop.xlane.xlu0 %225  ;;  %1344 = vmatprep.subr.bf16.mxu0 %v8123_v29  ;;  %v441_v31 = vld [vmem:[#allocation4 + $0x340] sm:$0xff] }
 0x1c9   :  { %v236_v42 = vmul.f32 0.01, %v224_v40  ;;  %v237_v44 = vmul.f32 0.01, %v226_v41  ;;  %265 = vadd.xlane.f32.xlu0 %v257_v33  ;;  %v10219_v43 = vmul.f32 %v10208_v26, %v243_v38  ;;  %v10222_v45 = vmul.f32 %v10208_v26, %v242_v39  ;;  %v434_v38 = vld [vmem:[#allocation4 + $0x308] sm:$0xff]  ;;  %1345 = vmatpush1.bf16.msra.mxu0 %v8122_v28 }
 0x1ca   :  { %v8137_v39 = vcombine.high %v433_v30, %v441_v31  ;;  %v442_v33 = vld [vmem:[#allocation4 + $0x348] sm:$0xff]  ;;  %v8136_v40 = vcombine.low %v433_v30, %v441_v31  ;;  %v355_v30 = vld [vmem:[#allocation4 + $0x90] sm:$0xff] }
 0x1cb   :  { %v244_v46 = vsub.f32 %v10191_v52, %v236_v42  ;;  %v245_v47 = vsub.f32 %v10193_v56, %v237_v44  ;;  %v259_v48 = vmul.f32 %v10219_v43, %v10219_v43  ;;  %v258_v49 = vmul.f32 %v10222_v45, %v10222_v45  ;;  %v449_v44 = vld [vmem:[#allocation4 + $0x380] sm:$0xff] }
 0x1cc   :  { %v228_v50 = vpop.xlane.xlu1 %227  ;;  %v230_v51 = vpop.xlane.xlu0 %229  ;;  %v8138_v41 = vcombine.low %v434_v38, %v442_v33  ;;  %v8139_v42 = vcombine.high %v434_v38, %v442_v33  ;;  %v363_v38 = vld [vmem:[#allocation4 + $0xd0] sm:$0xff]  ;;  %v364_v33 = vld [vmem:[#allocation4 + $0xd8] sm:$0xff] }
 0x1cd   :  { %v238_v53 = vmul.f32 0.01, %v228_v50  ;;  %v239_v54 = vmul.f32 0.01, %v230_v51  ;;  %269 = vadd.xlane.f32.xlu0 %v259_v48  ;;  %267 = vadd.xlane.f32.xlu1 %v258_v49  ;;  %v10231_v55 = vmul.f32 %v10208_v26, %v244_v46  ;;  %v10234_v57 = vmul.f32 %v10208_v26, %v245_v47  ;;  %v457_v46 = vld [vmem:[#allocation4 + $0x3c0] sm:$0xff]  ;;  %v450_v47 = vld [vmem:[#allocation4 + $0x388] sm:$0xff] }
 0x1ce   :  { %1346 = vmatprep.subr.bf16.mxu0 %v8139_v42  ;;  %v8153_v48 = vcombine.high %v449_v44, %v457_v46  ;;  %v458_v49 = vld [vmem:[#allocation4 + $0x3c8] sm:$0xff]  ;;  %v8152_v50 = vcombine.low %v449_v44, %v457_v46 }
 0x1cf   :  { %v246_v52 = vsub.f32 %v10197_v58, %v238_v53  ;;  %v247_v56 = vsub.f32 %v10199_v61, %v239_v54  ;;  %v260_v59 = vmul.f32 %v10231_v55, %v10231_v55  ;;  %v261_v60 = vmul.f32 %v10234_v57, %v10234_v57  ;;  %1347 = vmatpush1.bf16.msra.mxu0 %v8138_v41  ;;  %v10258_v54 = vld [vmem:[#allocation4 + $0x10] sm:$0xff] }
 0x1d0   :  { %v232_v63 = vpop.xlane.xlu1 %231  ;;  %v8154_v51 = vcombine.low %v450_v47, %v458_v49  ;;  %v8155_v53 = vcombine.high %v450_v47, %v458_v49  ;;  %v371_v49 = vld [vmem:[#allocation4 + $0x110] sm:$0xff] }
 0x1d1   :  { %v240_v0 = vmul.f32 0.01, %v232_v63  ;;  %271 = vadd.xlane.f32.xlu1 %v260_v59  ;;  %273 = vadd.xlane.f32.xlu0 %v261_v60  ;;  %v10243_v1 = vmul.f32 %v10208_v26, %v246_v52  ;;  %v10246_v2 = vmul.f32 %v10208_v26, %v247_v56  ;;  %v10260_v52 = vld [vmem:[#allocation4 + $0x50] sm:$0xff]  ;;  %v10262_v56 = vld [vmem:[#allocation4 + $0x18] sm:$0xff] }
 0x1d2   :  { %1348 = vmatprep.subr.bf16.mxu0 %v8155_v53  ;;  %v8045_v59 = vcombine.high %v10258_v54, %v10260_v52  ;;  %v10266_v60 = vld [vmem:[#allocation4 + $0x58] sm:$0xff]  ;;  %v8044_v63 = vcombine.low %v10258_v54, %v10260_v52 }
 0x1d3   :  { %v248_v58 = vsub.f32 %v10203_v62, %v240_v0  ;;  %v262_v61 = vmul.f32 %v10243_v1, %v10243_v1  ;;  %v263_v3 = vmul.f32 %v10246_v2, %v10246_v2  ;;  %v8088_v62 = vcombine.low %v385_v5, %v393_v6  ;;  %1349 = vmatpush1.bf16.msra.mxu0 %v8154_v51  ;;  %v379_v51 = vld [vmem:[#allocation4 + $0x150] sm:$0xff]  ;;  %v372_v53 = vld [vmem:[#allocation4 + $0x118] sm:$0xff] }
 0x1d4   :  { %v8046_v0 = vcombine.low %v10262_v56, %v10266_v60  ;;  %v380_v54 = vld [vmem:[#allocation4 + $0x158] sm:$0xff] }
 0x1d5   :  { %275 = vadd.xlane.f32.xlu1 %v262_v61  ;;  %277 = vadd.xlane.f32.xlu0 %v263_v3  ;;  %v10254_v4 = vmul.f32 %v10208_v26, %v248_v58  ;;  %v8047_v58 = vcombine.high %v10262_v56, %v10266_v60 }
 0x1d6   :  { %1260 = vmatpush1.bf16.msra.mxu1 %v8088_v62 }
 0x1d7   :  { %v264_v10 = vmul.f32 %v10254_v4, %v10254_v4  ;;  %1261 = vmatprep.subr.bf16.mxu1 %v8105_v16  ;;  %1496 = vmatprep.subr.bf16.mxu0 %v8047_v58 }
 0x1d9   :  { %279 = vadd.xlane.f32.xlu1 %v264_v10 }
 0x1da   :  { %1262 = vmatpush1.bf16.msra.mxu1 %v8104_v18  ;;  %v10278_v18 = vsub.s32 2, %v10167_v34 }
 0x1db   :  { %1263 = vmatprep.subr.bf16.mxu1 %v8121_v24 }
 0x1de   :  { %1264 = vmatpush1.bf16.msra.mxu1 %v8120_v27  ;;  %v10286_v27 = vrot.slane %v10175_v36, %v10278_v18 }
 0x1df   :  { %1265 = vmatprep.subr.bf16.mxu1 %v8137_v39  ;;  %v356_v39 = vld [vmem:[#allocation4 + $0x98] sm:$0xff] }
 0x1e2   :  { %1266 = vmatpush1.bf16.msra.mxu1 %v8136_v40 }
 0x1e3   :  { %1267 = vmatprep.subr.bf16.mxu1 %v8153_v48  ;;  %v8063_v48 = vcombine.high %v356_v39, %v364_v33 }
 0x1e6   :  { %1268 = vmatpush1.bf16.msra.mxu1 %v8152_v50 }
 0x1e7   :  { %1415 = vmatprep.subr.bf16.mxu1 %v8045_v59  ;;  %v8062_v59 = vcombine.low %v356_v39, %v364_v33  ;;  %v428_v39 = vld [vmem:[#allocation4 + $0x2d8] sm:$0xff] }
 0x256   :  { %v266_v61 = vpop.xlane.xlu0 %265 }
 0x257   :  { %v281_v3 = vmul.f32 0.01, %v266_v61 }
 0x259   :  { %v289_v5 = vadd.f32 1e-05, %v281_v3  ;;  %v8077_v3 = vcombine.high %v371_v49, %v379_v51 }
 0x25a   :  { %v268_v6 = vpop.xlane.xlu1 %267  ;;  %v270_v7 = vpop.xlane.xlu0 %269 }
 0x25b   :  { %9857 = vrsqrt.f32 %v289_v5  ;;  %v282_v8 = vmul.f32 0.01, %v268_v6  ;;  %v283_v9 = vmul.f32 0.01, %v270_v7  ;;  %v8079_v5 = vcombine.high %v372_v53, %v380_v54  ;;  %v388_v6 = vld [vmem:[#allocation4 + $0x198] sm:$0xff] }
 0x25c   :  { %v396_v7 = vld [vmem:[#allocation4 + $0x1d8] sm:$0xff] }
 0x25d   :  { %v290_v10 = vadd.f32 1e-05, %v282_v8  ;;  %v291_v62 = vadd.f32 1e-05, %v283_v9  ;;  %v8078_v8 = vcombine.low %v372_v53, %v380_v54 }
 0x25e   :  { %v272_v11 = vpop.xlane.xlu1 %271  ;;  %v274_v12 = vpop.xlane.xlu0 %273 }
 0x25f   :  { %9859 = vrsqrt.f32 %v290_v10  ;;  %v284_v13 = vmul.f32 0.01, %v272_v11  ;;  %v285_v14 = vmul.f32 0.01, %v274_v12 }
 0x260   :  { %9861 = vrsqrt.f32 %v291_v62 }
 0x261   :  { %v292_v16 = vadd.f32 1e-05, %v284_v13  ;;  %v293_v17 = vadd.f32 1e-05, %v285_v14  ;;  %v8095_v13 = vcombine.high %v388_v6, %v396_v7  ;;  %v403_v14 = vld [vmem:[#allocation4 + $0x210] sm:$0xff] }
 0x262   :  { %v276_v19 = vpop.xlane.xlu1 %275  ;;  %v278_v20 = vpop.xlane.xlu0 %277 }
 0x263   :  { %9863 = vrsqrt.f32 %v292_v16  ;;  %v286_v21 = vmul.f32 0.01, %v276_v19  ;;  %v287_v25 = vmul.f32 0.01, %v278_v20  ;;  %v411_v16 = vld [vmem:[#allocation4 + $0x250] sm:$0xff]  ;;  %v412_v19 = vld [vmem:[#allocation4 + $0x258] sm:$0xff]  ;;  %v8094_v20 = vcombine.low %v388_v6, %v396_v7 }
 0x264   :  { %9865 = vrsqrt.f32 %v293_v17  ;;  %v404_v17 = vld [vmem:[#allocation4 + $0x218] sm:$0xff]  ;;  %v341_v7 = vld [vmem:[#allocation4 + $0x20] sm:$0xff] }
 0x265   :  { %v9858_v23 = vpop.eup %9857  ;;  %v294_v24 = vadd.f32 1e-05, %v286_v21  ;;  %v295_v41 = vadd.f32 1e-05, %v287_v25  ;;  %v8110_v33 = vcombine.low %v404_v17, %v412_v19 }
 0x266   :  { %v305_v28 = vmul.f32 %v9858_v23, %v10212_v37  ;;  %v280_v29 = vpop.xlane.xlu1 %279  ;;  %v8061_v37 = vcombine.high %v355_v30, %v363_v38 }
 0x267   :  { %9867 = vrsqrt.f32 %v294_v24  ;;  %v288_v42 = vmul.f32 0.01, %v280_v29  ;;  %v8111_v29 = vcombine.high %v404_v17, %v412_v19  ;;  %v358_v17 = vld [vmem:[#allocation4 + $0xa8] sm:$0xff] }
 0x268   :  { %v317_v31 = vmul.f32 %v10282_v22, %v305_v28  ;;  %9869 = vrsqrt.f32 %v295_v41  ;;  %v8109_v28 = vcombine.high %v403_v14, %v411_v16  ;;  %v366_v19 = vld [vmem:[#allocation4 + $0xe8] sm:$0xff] }
 0x269   :  { %v9860_v40 = vpop.eup %9859  ;;  %v296_v56 = vadd.f32 1e-05, %v288_v42 }
 0x26a   :  { %v9862_v44 = vpop.eup %9861  ;;  %v10291_v46 = vadd.f32 %v10286_v27, %v317_v31  ;;  %v306_v36 = vmul.f32 %v9860_v40, %v10222_v45  ;;  %v8060_v45 = vcombine.low %v355_v30, %v363_v38  ;;  %v419_v30 = vld [vmem:[#allocation4 + $0x290] sm:$0xff]  ;;  %v420_v38 = vld [vmem:[#allocation4 + $0x298] sm:$0xff] }
 0x26b   :  { %v307_v47 = vmul.f32 %v9862_v44, %v10219_v43  ;;  %9871 = vrsqrt.f32 %v296_v56  ;;  %v427_v31 = vld [vmem:[#allocation4 + $0x2d0] sm:$0xff] }
 0x26c   :  { %v318_v50 = vmul.f32 %v10282_v22, %v306_v36  ;;  %1286 = vmatmul.mubr.f32.vlgmr.msra.gmra.mrb[0].mxu1 %v10291_v46  ;;  %1367 = vmatmul.mubr.f32.vlgmr.msra.gmra.mrb[8].mxu0 %v10291_v46  ;;  %v8125_v36 = vcombine.high %v419_v30, %v427_v31 }
 0x26d   :  { %v9864_v52 = vpop.eup %9863  ;;  %1416 = vmatpush1.bf16.msra.mxu1 %v8044_v63  ;;  %1497 = vmatpush1.bf16.msra.mxu0 %v8046_v0  ;;  %v319_v60 = vmul.f32 %v10282_v22, %v307_v47  ;;  %v387_v63 = vld [vmem:[#allocation4 + $0x190] sm:$0xff]  ;;  %v8127_v47 = vcombine.high %v420_v38, %v428_v39 }
 0x26e   :  { %v10299_v43 = vadd.f32 %v10286_v27, %v318_v50  ;;  %v308_v58 = vmul.f32 %v9864_v52, %v10231_v55  ;;  %1291 = vmatprep.mubr.f32.mxu1 %v10065_v32  ;;  %1372 = vmatprep.mubr.f32.mxu0 %v10065_v32  ;;  %v9866_v61 = vpop.eup %9865  ;;  %v395_v0 = vld [vmem:[#allocation4 + $0x1d0] sm:$0xff]  ;;  %v8076_v55 = vcombine.low %v371_v49, %v379_v51  ;;  %v436_v49 = vld [vmem:[#allocation4 + $0x318] sm:$0xff] }
 0x26f   :  { %1417 = vmatprep.subr.bf16.mxu1 %v8061_v37  ;;  %1498 = vmatprep.subr.bf16.mxu0 %v8063_v48  ;;  %v10308_v9 = vadd.f32 %v10286_v27, %v319_v60  ;;  %v309_v62 = vmul.f32 %v9866_v61, %v10234_v57  ;;  %v8093_v12 = vcombine.high %v387_v63, %v395_v0  ;;  %v435_v37 = vld [vmem:[#allocation4 + $0x310] sm:$0xff]  ;;  %v444_v50 = vld [vmem:[#allocation4 + $0x358] sm:$0xff] }
 0x270   :  { %1292 = vmatmul.mubr.f32.gmra.mrb[2].mxu1 %v10299_v43  ;;  %1373 = vmatmul.mubr.f32.gmra.mrb[10].mxu0 %v10299_v43  ;;  %v320_v10 = vmul.f32 %v10282_v22, %v308_v58  ;;  %v8092_v57 = vcombine.low %v387_v63, %v395_v0  ;;  %v443_v48 = vld [vmem:[#allocation4 + $0x350] sm:$0xff]  ;;  %v8126_v51 = vcombine.low %v420_v38, %v428_v39  ;;  %v452_v58 = vld [vmem:[#allocation4 + $0x398] sm:$0xff] }
 0x271   :  { %1418 = vmatpush1.bf16.msra.mxu1 %v8060_v45  ;;  %1499 = vmatpush1.bf16.msra.mxu0 %v8062_v59  ;;  %v9868_v11 = vpop.eup %9867  ;;  %v321_v23 = vmul.f32 %v10282_v22, %v309_v62  ;;  %v8141_v56 = vcombine.high %v435_v37, %v443_v48  ;;  %v8143_v45 = vcombine.high %v436_v49, %v444_v50  ;;  %v451_v59 = vld [vmem:[#allocation4 + $0x390] sm:$0xff]  ;;  %v460_v61 = vld [vmem:[#allocation4 + $0x3d8] sm:$0xff] }
 0x272   :  { %1297 = vmatprep.mubr.f32.mxu1 %v10065_v32  ;;  %1378 = vmatprep.mubr.f32.mxu0 %v10065_v32  ;;  %v10317_v21 = vadd.f32 %v10286_v27, %v320_v10  ;;  %v310_v24 = vmul.f32 %v9868_v11, %v10243_v1  ;;  %v9870_v25 = vpop.eup %9869  ;;  %v8108_v1 = vcombine.low %v403_v14, %v411_v16  ;;  %v459_v60 = vld [vmem:[#allocation4 + $0x3d0] sm:$0xff]  ;;  %v350_v10 = vld [vmem:[#allocation4 + $0x68] sm:$0xff]  ;;  %v357_v14 = vld [vmem:[#allocation4 + $0xa0] sm:$0xff] }
 0x273   :  { %1419 = vmatprep.subr.bf16.mxu1 %v8077_v3  ;;  %1500 = vmatprep.subr.bf16.mxu0 %v8079_v5  ;;  %v10326_v40 = vadd.f32 %v10286_v27, %v321_v23  ;;  %v311_v42 = vmul.f32 %v9870_v25, %v10246_v2  ;;  %v8124_v2 = vcombine.low %v419_v30, %v427_v31  ;;  %v365_v16 = vld [vmem:[#allocation4 + $0xe0] sm:$0xff] }
 0x274   :  { %1298 = vmatmul.mubr.f32.gmra.mrb[4].mxu1 %v10308_v9  ;;  %1379 = vmatmul.mubr.f32.gmra.mrb[12].mxu0 %v10308_v9  ;;  %v322_v41 = vmul.f32 %v10282_v22, %v310_v24  ;;  %v8140_v3 = vcombine.low %v435_v37, %v443_v48  ;;  %v8157_v0 = vcombine.high %v451_v59, %v459_v60  ;;  %v373_v24 = vld [vmem:[#allocation4 + $0x120] sm:$0xff] }
 0x275   :  { %1420 = vmatpush1.bf16.msra.mxu1 %v8076_v55  ;;  %1501 = vmatpush1.bf16.msra.mxu0 %v8078_v8  ;;  %v9872_v44 = vpop.eup %9871  ;;  %v323_v54 = vmul.f32 %v10282_v22, %v311_v42  ;;  %v8159_v6 = vcombine.high %v452_v58, %v460_v61  ;;  %v349_v55 = vld [vmem:[#allocation4 + $0x60] sm:$0xff]  ;;  %v342_v8 = vld [vmem:[#allocation4 + $0x28] sm:$0xff]  ;;  %v8156_v62 = vcombine.low %v451_v59, %v459_v60 }
 0x276   :  { %1303 = vmatprep.mubr.f32.mxu1 %v10065_v32  ;;  %1384 = vmatprep.mubr.f32.mxu0 %v10065_v32  ;;  %v10335_v53 = vadd.f32 %v10286_v27, %v322_v41  ;;  %v312_v52 = vmul.f32 %v9872_v44, %v10254_v4  ;;  %v8142_v4 = vcombine.low %v436_v49, %v444_v50  ;;  %v381_v25 = vld [vmem:[#allocation4 + $0x160] sm:$0xff]  ;;  %v390_v41 = vld [vmem:[#allocation4 + $0x1a8] sm:$0xff] }
 0x277   :  { %1421 = vmatprep.subr.bf16.mxu1 %v8093_v12  ;;  %1502 = vmatprep.subr.bf16.mxu0 %v8095_v13  ;;  %v10344_v5 = vadd.f32 %v10286_v27, %v323_v54  ;;  %v8049_v12 = vcombine.high %v341_v7, %v349_v55  ;;  %v8051_v13 = vcombine.high %v342_v8, %v350_v10  ;;  %v398_v42 = vld [vmem:[#allocation4 + $0x1e8] sm:$0xff]  ;;  %v405_v48 = vld [vmem:[#allocation4 + $0x220] sm:$0xff] }
 0x278   :  { %1304 = vmatmul.mubr.f32.gmra.mrb[6].mxu1 %v10317_v21  ;;  %1385 = vmatmul.mubr.f32.gmra.mrb[14].mxu0 %v10317_v21  ;;  %v324_v63 = vmul.f32 %v10282_v22, %v312_v52  ;;  %v8158_v22 = vcombine.low %v452_v58, %v460_v61  ;;  %v8067_v23 = vcombine.high %v358_v17, %v366_v19  ;;  %v413_v49 = vld [vmem:[#allocation4 + $0x260] sm:$0xff]  ;;  %v406_v50 = vld [vmem:[#allocation4 + $0x228] sm:$0xff] }
 0x279   :  { %1422 = vmatpush1.bf16.msra.mxu1 %v8092_v57  ;;  %1503 = vmatpush1.bf16.msra.mxu0 %v8094_v20  ;;  %v8050_v57 = vcombine.low %v342_v8, %v350_v10  ;;  %v8065_v20 = vcombine.high %v357_v14, %v365_v16  ;;  %v8064_v30 = vcombine.low %v357_v14, %v365_v16  ;;  %v429_v59 = vld [vmem:[#allocation4 + $0x2e0] sm:$0xff]  ;;  %v422_v60 = vld [vmem:[#allocation4 + $0x2a8] sm:$0xff] }
 0x27a   :  { %1309 = vmatprep.mubr.f32.mxu1 %v10065_v32  ;;  %1390 = vmatprep.mubr.f32.mxu0 %v10065_v32  ;;  %v10352_v11 = vadd.f32 %v10286_v27, %v324_v63  ;;  %v8048_v27 = vcombine.low %v341_v7, %v349_v55  ;;  %v8066_v31 = vcombine.low %v358_v17, %v366_v19  ;;  %v430_v58 = vld [vmem:[#allocation4 + $0x2e8] sm:$0xff] }
 0x27b   :  { %1423 = vmatprep.subr.bf16.mxu1 %v8109_v28  ;;  %1504 = vmatprep.subr.bf16.mxu0 %v8111_v29  ;;  %v374_v28 = vld [vmem:[#allocation4 + $0x128] sm:$0xff]  ;;  %v8081_v38 = vcombine.high %v373_v24, %v381_v25  ;;  %v8080_v44 = vcombine.low %v373_v24, %v381_v25  ;;  %v8099_v37 = vcombine.high %v390_v41, %v398_v42  ;;  %v344_v24 = vld [vmem:[#allocation4 + $0x38] sm:$0xff] }
 0x27c   :  { %1310 = vmatmul.mubr.f32.gmra.mrb[8].mxu1 %v10326_v40  ;;  %1391 = vmatmul.mubr.f32.gmra.mrb[16].mxu0 %v10326_v40  ;;  %v382_v29 = vld [vmem:[#allocation4 + $0x168] sm:$0xff]  ;;  %v8098_v54 = vcombine.low %v390_v41, %v398_v42  ;;  %v8113_v52 = vcombine.high %v405_v48, %v413_v49  ;;  %v8112_v61 = vcombine.low %v405_v48, %v413_v49  ;;  %v352_v25 = vld [vmem:[#allocation4 + $0x78] sm:$0xff] }
 0x27d   :  { %1424 = vmatpush1.bf16.msra.mxu1 %v8108_v1  ;;  %1505 = vmatpush1.bf16.msra.mxu0 %v8110_v33  ;;  %v8083_v39 = vcombine.high %v374_v28, %v382_v29  ;;  %v389_v1 = vld [vmem:[#allocation4 + $0x1a0] sm:$0xff]  ;;  %v8131_v63 = vcombine.high %v422_v60, %v430_v58  ;;  %v438_v7 = vld [vmem:[#allocation4 + $0x328] sm:$0xff]  ;;  %v8130_v10 = vcombine.low %v422_v60, %v430_v58  ;;  %v376_v48 = vld [vmem:[#allocation4 + $0x138] sm:$0xff] }
 0x27e   :  { %1315 = vmatprep.mubr.f32.mxu1 %v10065_v32  ;;  %1396 = vmatprep.mubr.f32.mxu0 %v10065_v32  ;;  %v397_v33 = vld [vmem:[#allocation4 + $0x1e0] sm:$0xff]  ;;  %v446_v55 = vld [vmem:[#allocation4 + $0x368] sm:$0xff]  ;;  %v8054_v42 = vcombine.low %v344_v24, %v352_v25  ;;  %v384_v49 = vld [vmem:[#allocation4 + $0x178] sm:$0xff] }
 0x27f   :  { %1425 = vmatprep.subr.bf16.mxu1 %v8125_v36  ;;  %1506 = vmatprep.subr.bf16.mxu0 %v8127_v47  ;;  %v8082_v36 = vcombine.low %v374_v28, %v382_v29  ;;  %v8097_v47 = vcombine.high %v389_v1, %v397_v33  ;;  %v454_v14 = vld [vmem:[#allocation4 + $0x3a8] sm:$0xff]  ;;  %v8146_v19 = vcombine.low %v438_v7, %v446_v55 }
 0x280   :  { %1316 = vmatmul.mubr.f32.gmra.mrb[10].mxu1 %v10335_v53  ;;  %1397 = vmatmul.mubr.f32.gmra.mrb[18].mxu0 %v10335_v53  ;;  %v462_v16 = vld [vmem:[#allocation4 + $0x3e8] sm:$0xff]  ;;  %v8086_v58 = vcombine.low %v376_v48, %v384_v49 }
 0x281   :  { %1426 = vmatpush1.bf16.msra.mxu1 %v8124_v2  ;;  %1507 = vmatpush1.bf16.msra.mxu0 %v8126_v51  ;;  %v414_v2 = vld [vmem:[#allocation4 + $0x268] sm:$0xff]  ;;  %v8096_v51 = vcombine.low %v389_v1, %v397_v33  ;;  %v8162_v29 = vcombine.low %v454_v14, %v462_v16  ;;  %v360_v1 = vld [vmem:[#allocation4 + $0xb8] sm:$0xff] }
 0x282   :  { %1321 = vmatprep.mubr.f32.mxu1 %v10065_v32  ;;  %1402 = vmatprep.mubr.f32.mxu0 %v10065_v32  ;;  %v368_v33 = vld [vmem:[#allocation4 + $0xf8] sm:$0xff] }
 0x283   :  { %1427 = vmatprep.subr.bf16.mxu1 %v8141_v56  ;;  %1508 = vmatprep.subr.bf16.mxu0 %v8143_v45  ;;  %v8115_v56 = vcombine.high %v406_v50, %v414_v2  ;;  %v421_v45 = vld [vmem:[#allocation4 + $0x2a0] sm:$0xff] }
 0x284   :  { %1322 = vmatmul.mubr.f32.gmra.mrb[12].mxu1 %v10344_v5  ;;  %1403 = vmatmul.mubr.f32.gmra.mrb[20].mxu0 %v10344_v5  ;;  %v8128_v8 = vcombine.low %v421_v45, %v429_v59 }
 0x285   :  { %1428 = vmatpush1.bf16.msra.mxu1 %v8140_v3  ;;  %1509 = vmatpush1.bf16.msra.mxu0 %v8142_v4  ;;  %v8114_v3 = vcombine.low %v406_v50, %v414_v2  ;;  %v8129_v4 = vcombine.high %v421_v45, %v429_v59  ;;  %v8070_v2 = vcombine.low %v360_v1, %v368_v33  ;;  %v392_v45 = vld [vmem:[#allocation4 + $0x1b8] sm:$0xff] }
 0x286   :  { %1327 = vmatprep.mubr.f32.mxu1 %v10065_v32  ;;  %1408 = vmatprep.mubr.f32.mxu0 %v10065_v32  ;;  %v400_v59 = vld [vmem:[#allocation4 + $0x1f8] sm:$0xff] }
 0x287   :  { %1429 = vmatprep.subr.bf16.mxu1 %v8157_v0  ;;  %1510 = vmatprep.subr.bf16.mxu0 %v8159_v6  ;;  %v437_v0 = vld [vmem:[#allocation4 + $0x320] sm:$0xff] }
 0x288   :  { %1328 = vmatmul.mubr.f32.gmra.mrb[14].mxu1 %v10352_v11  ;;  %1409 = vmatmul.mubr.f32.gmra.mrb[22].mxu0 %v10352_v11  ;;  %v445_v6 = vld [vmem:[#allocation4 + $0x360] sm:$0xff] }
 0x289   :  { %1430 = vmatpush1.bf16.msra.mxu1 %v8156_v62  ;;  %1511 = vmatpush1.bf16.msra.mxu0 %v8158_v22  ;;  %v8145_v62 = vcombine.high %v437_v0, %v445_v6  ;;  %v8147_v22 = vcombine.high %v438_v7, %v446_v55  ;;  %v8144_v17 = vcombine.low %v437_v0, %v445_v6  ;;  %v408_v0 = vld [vmem:[#allocation4 + $0x238] sm:$0xff] }
 0x28a   :  { %1447 = vmatprep.mubr.f32.mxu1 %v10065_v32  ;;  %1528 = vmatprep.mubr.f32.mxu0 %v10065_v32  ;;  %v416_v6 = vld [vmem:[#allocation4 + $0x278] sm:$0xff]  ;;  %v8102_v55 = vcombine.low %v392_v45, %v400_v59 }
 0x28b   :  { %1577 = vmatprep.subr.bf16.mxu1 %v8049_v12  ;;  %1658 = vmatprep.subr.bf16.mxu0 %v8051_v13  ;;  %v453_v12 = vld [vmem:[#allocation4 + $0x3a0] sm:$0xff] }
 0x28c   :  { %1448 = vmatmul.mubr.f32.vlgmr.msra.gmra.mrb[16].mxu1 %v10291_v46  ;;  %1529 = vmatmul.mubr.f32.vlgmr.msra.gmra.mrb[24].mxu0 %v10291_v46  ;;  %v461_v13 = vld [vmem:[#allocation4 + $0x3e0] sm:$0xff] }
 0x28d   :  { %1578 = vmatpush1.bf16.msra.mxu1 %v8048_v27  ;;  %1659 = vmatpush1.bf16.msra.mxu0 %v8050_v57  ;;  %v8161_v27 = vcombine.high %v453_v12, %v461_v13  ;;  %v8163_v57 = vcombine.high %v454_v14, %v462_v16  ;;  %v8160_v28 = vcombine.low %v453_v12, %v461_v13  ;;  %v424_v12 = vld [vmem:[#allocation4 + $0x2b8] sm:$0xff] }
 0x28e   :  { %1453 = vmatprep.mubr.f32.mxu1 %v10065_v32  ;;  %1534 = vmatprep.mubr.f32.mxu0 %v10065_v32  ;;  %v432_v13 = vld [vmem:[#allocation4 + $0x2f8] sm:$0xff]  ;;  %v8118_v16 = vcombine.low %v408_v0, %v416_v6 }
 0x28f   :  { %1579 = vmatprep.subr.bf16.mxu1 %v8065_v20  ;;  %1660 = vmatprep.subr.bf16.mxu0 %v8067_v23  ;;  %v343_v20 = vld [vmem:[#allocation4 + $0x30] sm:$0xff] }
 0x290   :  { %1454 = vmatmul.mubr.f32.gmra.mrb[18].mxu1 %v10299_v43  ;;  %1535 = vmatmul.mubr.f32.gmra.mrb[26].mxu0 %v10299_v43  ;;  %v351_v23 = vld [vmem:[#allocation4 + $0x70] sm:$0xff] }
 0x291   :  { %1580 = vmatpush1.bf16.msra.mxu1 %v8064_v30  ;;  %1661 = vmatpush1.bf16.msra.mxu0 %v8066_v31  ;;  %v8053_v30 = vcombine.high %v343_v20, %v351_v23  ;;  %v8055_v31 = vcombine.high %v344_v24, %v352_v25  ;;  %v8052_v41 = vcombine.low %v343_v20, %v351_v23  ;;  %v440_v20 = vld [vmem:[#allocation4 + $0x338] sm:$0xff] }
 0x292   :  { %1459 = vmatprep.mubr.f32.mxu1 %v10065_v32  ;;  %1540 = vmatprep.mubr.f32.mxu0 %v10065_v32  ;;  %v448_v23 = vld [vmem:[#allocation4 + $0x378] sm:$0xff]  ;;  %v8134_v25 = vcombine.low %v424_v12, %v432_v13 }
 0x293   :  { %1581 = vmatprep.subr.bf16.mxu1 %v8081_v38  ;;  %1662 = vmatprep.subr.bf16.mxu0 %v8083_v39  ;;  %v359_v38 = vld [vmem:[#allocation4 + $0xb0] sm:$0xff] }
 0x294   :  { %1460 = vmatmul.mubr.f32.gmra.mrb[20].mxu1 %v10308_v9  ;;  %1541 = vmatmul.mubr.f32.gmra.mrb[28].mxu0 %v10308_v9  ;;  %v367_v39 = vld [vmem:[#allocation4 + $0xf0] sm:$0xff] }
 0x295   :  { %1582 = vmatpush1.bf16.msra.mxu1 %v8080_v44  ;;  %1663 = vmatpush1.bf16.msra.mxu0 %v8082_v36  ;;  %v8069_v44 = vcombine.high %v359_v38, %v367_v39  ;;  %v8071_v36 = vcombine.high %v360_v1, %v368_v33  ;;  %v8068_v50 = vcombine.low %v359_v38, %v367_v39  ;;  %v456_v38 = vld [vmem:[#allocation4 + $0x3b8] sm:$0xff] }
 0x296   :  { %1465 = vmatprep.mubr.f32.mxu1 %v10065_v32  ;;  %1546 = vmatprep.mubr.f32.mxu0 %v10065_v32  ;;  %v464_v39 = vld [vmem:[#allocation4 + $0x3f8] sm:$0xff]  ;;  %v8150_v33 = vcombine.low %v440_v20, %v448_v23 }
 0x297   :  { %1583 = vmatprep.subr.bf16.mxu1 %v8097_v47  ;;  %1664 = vmatprep.subr.bf16.mxu0 %v8099_v37  ;;  %v375_v47 = vld [vmem:[#allocation4 + $0x130] sm:$0xff] }
 0x298   :  { %1466 = vmatmul.mubr.f32.gmra.mrb[22].mxu1 %v10317_v21  ;;  %1547 = vmatmul.mubr.f32.gmra.mrb[30].mxu0 %v10317_v21  ;;  %v383_v37 = vld [vmem:[#allocation4 + $0x170] sm:$0xff] }
 0x299   :  { %1584 = vmatpush1.bf16.msra.mxu1 %v8096_v51  ;;  %1665 = vmatpush1.bf16.msra.mxu0 %v8098_v54  ;;  %v8085_v51 = vcombine.high %v375_v47, %v383_v37  ;;  %v8087_v54 = vcombine.high %v376_v48, %v384_v49  ;;  %v8084_v60 = vcombine.low %v375_v47, %v383_v37  ;;  %v9601_v47 = vld [vmem:[#allocation6 + $0x40] sm:$0xff]  }
 0x29a   :  { %1471 = vmatprep.mubr.f32.mxu1 %v10065_v32  ;;  %1552 = vmatprep.mubr.f32.mxu0 %v10065_v32  ;;  %v9603_v37 = vld [vmem:[#allocation6 + $0xc0] sm:$0xff]  }
 0x29b   :  { %1585 = vmatprep.subr.bf16.mxu1 %v8113_v52  ;;  %1666 = vmatprep.subr.bf16.mxu0 %v8115_v56  ;;  %v391_v52 = vld [vmem:[#allocation4 + $0x1b0] sm:$0xff]  ;;  %v9602_v48 = vld [vmem:[#allocation6] sm:$0xff]  }
 0x29c   :  { %1472 = vmatmul.mubr.f32.gmra.mrb[24].mxu1 %v10326_v40  ;;  %1553 = vmatmul.mubr.f32.gmra.mrb[32].mxu0 %v10326_v40  ;;  %v399_v56 = vld [vmem:[#allocation4 + $0x1f0] sm:$0xff]  ;;  %v9604_v49 = vld [vmem:[#allocation6 + $0x80] sm:$0xff]  }
 0x29d   :  { %1586 = vmatpush1.bf16.msra.mxu1 %v8112_v61  ;;  %1667 = vmatpush1.bf16.msra.mxu0 %v8114_v3  ;;  %v8101_v61 = vcombine.high %v391_v52, %v399_v56  ;;  %v8103_v3 = vcombine.high %v392_v45, %v400_v59  ;;  %v8100_v7 = vcombine.low %v391_v52, %v399_v56  ;;  %v9609_v52 = vld [vmem:[#allocation6 + $0x50] sm:$0xff]  }
 0x29e   :  { %1477 = vmatprep.mubr.f32.mxu1 %v10065_v32  ;;  %1558 = vmatprep.mubr.f32.mxu0 %v10065_v32  ;;  %v9611_v56 = vld [vmem:[#allocation6 + $0xd0] sm:$0xff]  }
 0x29f   :  { %1587 = vmatprep.subr.bf16.mxu1 %v8129_v4  ;;  %1668 = vmatprep.subr.bf16.mxu0 %v8131_v63  ;;  %v407_v4 = vld [vmem:[#allocation4 + $0x230] sm:$0xff] }
 0x2a0   :  { %1478 = vmatmul.mubr.f32.gmra.mrb[26].mxu1 %v10335_v53  ;;  %1559 = vmatmul.mubr.f32.gmra.mrb[34].mxu0 %v10335_v53  ;;  %v415_v63 = vld [vmem:[#allocation4 + $0x270] sm:$0xff] }
 0x2a1   :  { %1588 = vmatpush1.bf16.msra.mxu1 %v8128_v8  ;;  %1669 = vmatpush1.bf16.msra.mxu0 %v8130_v10  ;;  %v8117_v8 = vcombine.high %v407_v4, %v415_v63  ;;  %v8119_v10 = vcombine.high %v408_v0, %v416_v6  ;;  %v8116_v14 = vcombine.low %v407_v4, %v415_v63  ;;  %v9610_v45 = vld [vmem:[#allocation6 + $0x10] sm:$0xff]   ;;  %v9617_v4 = vld [vmem:[#allocation6 + $0x60] sm:$0xff]  }
 0x2a2   :  { %1483 = vmatprep.mubr.f32.mxu1 %v10065_v32  ;;  %1564 = vmatprep.mubr.f32.mxu0 %v10065_v32  ;;  %v9612_v59 = vld [vmem:[#allocation6 + $0x90] sm:$0xff]   ;;  %v9619_v63 = vld [vmem:[#allocation6 + $0xe0] sm:$0xff]  }
 0x2a3   :  { %1589 = vmatprep.subr.bf16.mxu1 %v8145_v62  ;;  %1670 = vmatprep.subr.bf16.mxu0 %v8147_v22  ;;  %v423_v62 = vld [vmem:[#allocation4 + $0x2b0] sm:$0xff]  ;;  %v9618_v0 = vld [vmem:[#allocation6 + $0x20] sm:$0xff]  }
 0x2a4   :  { %1484 = vmatmul.mubr.f32.gmra.mrb[28].mxu1 %v10344_v5  ;;  %1565 = vmatmul.mubr.f32.gmra.mrb[36].mxu0 %v10344_v5  ;;  %v431_v22 = vld [vmem:[#allocation4 + $0x2f0] sm:$0xff]  ;;  %v9620_v6 = vld [vmem:[#allocation6 + $0xa0] sm:$0xff]  }
 0x2a5   :  { %1590 = vmatpush1.bf16.msra.mxu1 %v8144_v17  ;;  %1671 = vmatpush1.bf16.msra.mxu0 %v8146_v19  ;;  %v8133_v17 = vcombine.high %v423_v62, %v431_v22  ;;  %v8135_v19 = vcombine.high %v424_v12, %v432_v13  ;;  %v8132_v24 = vcombine.low %v423_v62, %v431_v22  ;;  %v9625_v62 = vld [vmem:[#allocation6 + $0x70] sm:$0xff]  }
 0x2a6   :  { %1489 = vmatprep.mubr.f32.mxu1 %v10065_v32  ;;  %1570 = vmatprep.mubr.f32.mxu0 %v10065_v32  ;;  %v9627_v22 = vld [vmem:[#allocation6 + $0xf0] sm:$0xff]  }
 0x2a7   :  { %1591 = vmatprep.subr.bf16.mxu1 %v8161_v27  ;;  %1672 = vmatprep.subr.bf16.mxu0 %v8163_v57  ;;  %v439_v27 = vld [vmem:[#allocation4 + $0x330] sm:$0xff] }
 0x2a8   :  { %1490 = vmatmul.mubr.f32.gmra.mrb[30].mxu1 %v10352_v11  ;;  %1571 = vmatmul.mubr.f32.gmra.mrb[38].mxu0 %v10352_v11  ;;  %v447_v57 = vld [vmem:[#allocation4 + $0x370] sm:$0xff] }
 0x2a9   :  { %1592 = vmatpush1.bf16.msra.mxu1 %v8160_v28  ;;  %1673 = vmatpush1.bf16.msra.mxu0 %v8162_v29  ;;  %v8149_v28 = vcombine.high %v439_v27, %v447_v57  ;;  %v8151_v29 = vcombine.high %v440_v20, %v448_v23  ;;  %v8148_v1 = vcombine.low %v439_v27, %v447_v57  ;;  %v9626_v12 = vld [vmem:[#allocation6 + $0x30] sm:$0xff]   ;;  %v9633_v27 = vld [vmem:[#allocation6 + $0x140] sm:$0xff]   ;;  %v10455_v20 = vsub.s32 4, %v10167_v34 }
 0x2aa   :  { %1609 = vmatprep.mubr.f32.mxu1 %v10065_v32  ;;  %1690 = vmatprep.mubr.f32.mxu0 %v10065_v32  ;;  %v9628_v13 = vld [vmem:[#allocation6 + $0xb0] sm:$0xff]   ;;  %v9635_v57 = vld [vmem:[#allocation6 + $0x1c0] sm:$0xff]  }
 0x2ab   :  { %1739 = vmatprep.subr.bf16.mxu1 %v8053_v30  ;;  %1820 = vmatprep.subr.bf16.mxu0 %v8055_v31  ;;  %v455_v30 = vld [vmem:[#allocation4 + $0x3b0] sm:$0xff]  ;;  %v75_v23 = vld [vmem:[%s11692_s5] sm:$0xff] }
 0x2ac   :  { %1610 = vmatmul.mubr.f32.vlgmr.msra.gmra.mrb[32].mxu1 %v10291_v46  ;;  %1691 = vmatmul.mubr.f32.vlgmr.msra.gmra.mrb[40].mxu0 %v10291_v46  ;;  %v463_v31 = vld [vmem:[#allocation4 + $0x3f0] sm:$0xff] }
 0x2ad   :  { %1740 = vmatpush1.bf16.msra.mxu1 %v8052_v41  ;;  %1821 = vmatpush1.bf16.msra.mxu0 %v8054_v42  ;;  %v8165_v41 = vcombine.high %v455_v30, %v463_v31  ;;  %v8167_v42 = vcombine.high %v456_v38, %v464_v39 }
 0x2ae   :  { %1615 = vmatprep.mubr.f32.mxu1 %v10065_v32  ;;  %1696 = vmatprep.mubr.f32.mxu0 %v10065_v32 }
 0x2af   :  { %1741 = vmatprep.subr.bf16.mxu1 %v8069_v44  ;;  %1822 = vmatprep.subr.bf16.mxu0 %v8071_v36  ;;  %v8164_v44 = vcombine.low %v455_v30, %v463_v31  ;;  %v8166_v36 = vcombine.low %v456_v38, %v464_v39 }
 0x2b0   :  { %1616 = vmatmul.mubr.f32.gmra.mrb[34].mxu1 %v10299_v43  ;;  %1697 = vmatmul.mubr.f32.gmra.mrb[42].mxu0 %v10299_v43 }
 0x2b1   :  { %1742 = vmatpush1.bf16.msra.mxu1 %v8068_v50  ;;  %1823 = vmatpush1.bf16.msra.mxu0 %v8070_v2  ;;  %v9605_v50 = vld [vmem:[#allocation6 + $0x48] sm:$0xff]  }
 0x2b2   :  { %1621 = vmatprep.mubr.f32.mxu1 %v10065_v32  ;;  %1702 = vmatprep.mubr.f32.mxu0 %v10065_v32  ;;  %v9607_v2 = vld [vmem:[#allocation6 + $0xc8] sm:$0xff]  }
 0x2b3   :  { %1743 = vmatprep.subr.bf16.mxu1 %v8085_v51  ;;  %1824 = vmatprep.subr.bf16.mxu0 %v8087_v54  ;;  %v9606_v51 = vld [vmem:[#allocation6 + $0x8] sm:$0xff]  }
 0x2b4   :  { %1622 = vmatmul.mubr.f32.gmra.mrb[36].mxu1 %v10308_v9  ;;  %1703 = vmatmul.mubr.f32.gmra.mrb[44].mxu0 %v10308_v9  ;;  %v9608_v54 = vld [vmem:[#allocation6 + $0x88] sm:$0xff]  }
 0x2b5   :  { %1744 = vmatpush1.bf16.msra.mxu1 %v8084_v60  ;;  %1825 = vmatpush1.bf16.msra.mxu0 %v8086_v58  ;;  %v9613_v60 = vld [vmem:[#allocation6 + $0x58] sm:$0xff]  }
 0x2b6   :  { %1627 = vmatprep.mubr.f32.mxu1 %v10065_v32  ;;  %1708 = vmatprep.mubr.f32.mxu0 %v10065_v32  ;;  %v9615_v58 = vld [vmem:[#allocation6 + $0xd8] sm:$0xff]  }
 0x2b7   :  { %1745 = vmatprep.subr.bf16.mxu1 %v8101_v61  ;;  %1826 = vmatprep.subr.bf16.mxu0 %v8103_v3  ;;  %v9614_v61 = vld [vmem:[#allocation6 + $0x18] sm:$0xff]  }
 0x2b8   :  { %1628 = vmatmul.mubr.f32.gmra.mrb[38].mxu1 %v10317_v21  ;;  %1709 = vmatmul.mubr.f32.gmra.mrb[46].mxu0 %v10317_v21  ;;  %v9616_v3 = vld [vmem:[#allocation6 + $0x98] sm:$0xff]  }
 0x2b9   :  { %1746 = vmatpush1.bf16.msra.mxu1 %v8100_v7  ;;  %1827 = vmatpush1.bf16.msra.mxu0 %v8102_v55  ;;  %v9621_v7 = vld [vmem:[#allocation6 + $0x68] sm:$0xff]  }
 0x2ba   :  { %1633 = vmatprep.mubr.f32.mxu1 %v10065_v32  ;;  %1714 = vmatprep.mubr.f32.mxu0 %v10065_v32  ;;  %v9623_v55 = vld [vmem:[#allocation6 + $0xe8] sm:$0xff]  }
 0x2bb   :  { %1747 = vmatprep.subr.bf16.mxu1 %v8117_v8  ;;  %1828 = vmatprep.subr.bf16.mxu0 %v8119_v10  ;;  %v9622_v8 = vld [vmem:[#allocation6 + $0x28] sm:$0xff]  }
 0x2bc   :  { %1634 = vmatmul.mubr.f32.gmra.mrb[40].mxu1 %v10326_v40  ;;  %1715 = vmatmul.mubr.f32.gmra.mrb[48].mxu0 %v10326_v40  ;;  %v9624_v10 = vld [vmem:[#allocation6 + $0xa8] sm:$0xff]  }
 0x2bd   :  { %1748 = vmatpush1.bf16.msra.mxu1 %v8116_v14  ;;  %1829 = vmatpush1.bf16.msra.mxu0 %v8118_v16  ;;  %v9629_v14 = vld [vmem:[#allocation6 + $0x78] sm:$0xff]  }
 0x2be   :  { %1639 = vmatprep.mubr.f32.mxu1 %v10065_v32  ;;  %1720 = vmatprep.mubr.f32.mxu0 %v10065_v32  ;;  %v9631_v16 = vld [vmem:[#allocation6 + $0xf8] sm:$0xff]  }
 0x2bf   :  { %1749 = vmatprep.subr.bf16.mxu1 %v8133_v17  ;;  %1830 = vmatprep.subr.bf16.mxu0 %v8135_v19  ;;  %v9630_v17 = vld [vmem:[#allocation6 + $0x38] sm:$0xff]  }
 0x2c0   :  { %1640 = vmatmul.mubr.f32.gmra.mrb[42].mxu1 %v10335_v53  ;;  %1721 = vmatmul.mubr.f32.gmra.mrb[50].mxu0 %v10335_v53  ;;  %v9632_v19 = vld [vmem:[#allocation6 + $0xb8] sm:$0xff]  }
 0x2c1   :  { %1750 = vmatpush1.bf16.msra.mxu1 %v8132_v24  ;;  %1831 = vmatpush1.bf16.msra.mxu0 %v8134_v25  ;;  %v10461_v24 = vsub.s32 6, %v10167_v34  ;;  %v472_v25 = vrot.slane %v75_v23, %v10170_v35 }
 0x2c2   :  { %1645 = vmatprep.mubr.f32.mxu1 %v10065_v32  ;;  %1726 = vmatprep.mubr.f32.mxu0 %v10065_v32 }
 0x2c3   :  { %1751 = vmatprep.subr.bf16.mxu1 %v8149_v28  ;;  %1832 = vmatprep.subr.bf16.mxu0 %v8151_v29  ;;  %v480_v28 = vrot.slane %v75_v23, %v10455_v20  ;;  %v476_v29 = vrot.slane %v75_v23, %v10278_v18  ;;  %v484_v30 = vrot.slane %v75_v23, %v10461_v24 }
 0x2c4   :  { %1646 = vmatmul.mubr.f32.gmra.mrb[44].mxu1 %v10344_v5  ;;  %1727 = vmatmul.mubr.f32.gmra.mrb[52].mxu0 %v10344_v5  ;;  %v10468_v31 = vrot.slane %v472_v25, %v10170_v35 }
 0x2c5   :  { %1752 = vmatpush1.bf16.msra.mxu1 %v8148_v1  ;;  %1833 = vmatpush1.bf16.msra.mxu0 %v8150_v33  ;;  %v10471_v38 = vrot.slane %v480_v28, %v10170_v35  ;;  %v10474_v39 = vrot.slane %v476_v29, %v10170_v35  ;;  %v10477_v1 = vrot.slane %v484_v30, %v10170_v35 }
 0x2c6   :  { %1651 = vmatprep.mubr.f32.mxu1 %v10065_v32  ;;  %1732 = vmatprep.mubr.f32.mxu0 %v10065_v32 }
 0x2c7   :  { %1753 = vmatprep.subr.bf16.mxu1 %v8165_v41  ;;  %1834 = vmatprep.subr.bf16.mxu0 %v8167_v42 }
 0x2c8   :  { %1652 = vmatmul.mubr.f32.gmra.mrb[46].mxu1 %v10352_v11  ;;  %1733 = vmatmul.mubr.f32.gmra.mrb[54].mxu0 %v10352_v11 }
 0x2c9   :  { %1754 = vmatpush1.bf16.msra.mxu1 %v8164_v44  ;;  %1835 = vmatpush1.bf16.msra.mxu0 %v8166_v36 }
 0x2ca   :  { %1771 = vmatprep.mubr.f32.mxu1 %v10065_v32  ;;  %1852 = vmatprep.mubr.f32.mxu0 %v10065_v32 }
 0x2cb   :  { %8576 = vmatprep.subr.bf16.mxu1 %v9601_v47  ;;  %8616 = vmatprep.subr.bf16.mxu0 %v9603_v37 }
 0x2cc   :  { %1772 = vmatmul.mubr.f32.vlgmr.msra.gmra.mrb[48].mxu1 %v10291_v46  ;;  %1853 = vmatmul.mubr.f32.vlgmr.msra.gmra.mrb[56].mxu0 %v10291_v46 }
 0x2cd   :  { %1777 = vmatprep.mubr.f32.mxu1 %v10065_v32  ;;  %1858 = vmatprep.mubr.f32.mxu0 %v10065_v32 }
 0x2ce   :  { %8577 = vmatpush3.bf16.msra.mxu1 %v9602_v48  ;;  %8617 = vmatpush3.bf16.msra.mxu0 %v9604_v49 }
 0x2cf   :  { %8578 = vmatprep.subr.bf16.mxu1 %v9605_v50  ;;  %8618 = vmatprep.subr.bf16.mxu0 %v9607_v2 }
 0x2d0   :  { %1778 = vmatmul.mubr.f32.gmra.mrb[50].mxu1 %v10299_v43  ;;  %1859 = vmatmul.mubr.f32.gmra.mrb[58].mxu0 %v10299_v43 }
 0x2d1   :  { %1783 = vmatprep.mubr.f32.mxu1 %v10065_v32  ;;  %1864 = vmatprep.mubr.f32.mxu0 %v10065_v32 }
 0x2d2   :  { %8579 = vmatpush3.bf16.msra.mxu1 %v9606_v51  ;;  %8619 = vmatpush3.bf16.msra.mxu0 %v9608_v54  ;;  %v9634_v54 = vld [vmem:[#allocation6 + $0x100] sm:$0xff]  }
 0x2d3   :  { %8580 = vmatprep.subr.bf16.mxu1 %v9609_v52  ;;  %8620 = vmatprep.subr.bf16.mxu0 %v9611_v56  ;;  %v9636_v52 = vld [vmem:[#allocation6 + $0x180] sm:$0xff]  }
 0x2d4   :  { %1784 = vmatmul.mubr.f32.gmra.mrb[52].mxu1 %v10308_v9  ;;  %1865 = vmatmul.mubr.f32.gmra.mrb[60].mxu0 %v10308_v9 }
 0x2d5   :  { %1789 = vmatprep.mubr.f32.mxu1 %v10065_v32  ;;  %1870 = vmatprep.mubr.f32.mxu0 %v10065_v32 }
 0x2d6   :  { %8581 = vmatpush3.bf16.msra.mxu1 %v9610_v45  ;;  %8621 = vmatpush3.bf16.msra.mxu0 %v9612_v59 }
 0x2d7   :  { %8582 = vmatprep.subr.bf16.mxu1 %v9613_v60  ;;  %8622 = vmatprep.subr.bf16.mxu0 %v9615_v58 }
 0x2d8   :  { %1790 = vmatmul.mubr.f32.gmra.mrb[54].mxu1 %v10317_v21  ;;  %1871 = vmatmul.mubr.f32.gmra.mrb[62].mxu0 %v10317_v21 }
 0x2d9   :  { %1795 = vmatprep.mubr.f32.mxu1 %v10065_v32  ;;  %1876 = vmatprep.mubr.f32.mxu0 %v10065_v32 }
 0x2da   :  { %8583 = vmatpush3.bf16.msra.mxu1 %v9614_v61  ;;  %8623 = vmatpush3.bf16.msra.mxu0 %v9616_v3  ;;  %v9637_v3 = vld [vmem:[#allocation6 + $0x148] sm:$0xff]  }
 0x2db   :  { %8584 = vmatprep.subr.bf16.mxu1 %v9617_v4  ;;  %8624 = vmatprep.subr.bf16.mxu0 %v9619_v63  ;;  %v9639_v4 = vld [vmem:[#allocation6 + $0x1c8] sm:$0xff]  }
 0x2dc   :  { %1796 = vmatmul.mubr.f32.gmra.mrb[56].mxu1 %v10326_v40  ;;  %1877 = vmatmul.mubr.f32.gmra.mrb[64].mxu0 %v10326_v40 }
 0x2dd   :  { %1801 = vmatprep.mubr.f32.mxu1 %v10065_v32  ;;  %1882 = vmatprep.mubr.f32.mxu0 %v10065_v32 }
 0x2de   :  { %8585 = vmatpush3.bf16.msra.mxu1 %v9618_v0  ;;  %8625 = vmatpush3.bf16.msra.mxu0 %v9620_v6 }
 0x2df   :  { %8586 = vmatprep.subr.bf16.mxu1 %v9621_v7  ;;  %8626 = vmatprep.subr.bf16.mxu0 %v9623_v55 }
 0x2e0   :  { %1802 = vmatmul.mubr.f32.gmra.mrb[58].mxu1 %v10335_v53  ;;  %1883 = vmatmul.mubr.f32.gmra.mrb[66].mxu0 %v10335_v53 }
 0x2e1   :  { %1807 = vmatprep.mubr.f32.mxu1 %v10065_v32  ;;  %1888 = vmatprep.mubr.f32.mxu0 %v10065_v32 }
 0x2e2   :  { %8587 = vmatpush3.bf16.msra.mxu1 %v9622_v8  ;;  %8627 = vmatpush3.bf16.msra.mxu0 %v9624_v10  ;;  %v9638_v10 = vld [vmem:[#allocation6 + $0x108] sm:$0xff]  }
 0x2e3   :  { %8588 = vmatprep.subr.bf16.mxu1 %v9625_v62  ;;  %8628 = vmatprep.subr.bf16.mxu0 %v9627_v22  ;;  %v9640_v62 = vld [vmem:[#allocation6 + $0x188] sm:$0xff]  }
 0x2e4   :  { %1808 = vmatmul.mubr.f32.gmra.mrb[60].mxu1 %v10344_v5  ;;  %1889 = vmatmul.mubr.f32.gmra.mrb[68].mxu0 %v10344_v5 }
 0x2e5   :  { %1813 = vmatprep.mubr.f32.mxu1 %v10065_v32  ;;  %1894 = vmatprep.mubr.f32.mxu0 %v10065_v32 }
 0x2e6   :  { %8589 = vmatpush3.bf16.msra.mxu1 %v9626_v12  ;;  %8629 = vmatpush3.bf16.msra.mxu0 %v9628_v13 }
 0x2e7   :  { %8590 = vmatprep.subr.bf16.mxu1 %v9629_v14  ;;  %8630 = vmatprep.subr.bf16.mxu0 %v9631_v16 }
 0x2e8   :  { %1814 = vmatmul.mubr.f32.gmra.mrb[62].mxu1 %v10352_v11  ;;  %1895 = vmatmul.mubr.f32.gmra.mrb[70].mxu0 %v10352_v11 }
 0x2ea   :  { %8591 = vmatpush3.bf16.msra.mxu1 %v9630_v17  ;;  %8631 = vmatpush3.bf16.msra.mxu0 %v9632_v19  ;;  %v9641_v19 = vld [vmem:[#allocation6 + $0x150] sm:$0xff]  }
 0x2eb   :  { %8656 = vmatprep.subr.bf16.mxu1 %v9633_v27  ;;  %8696 = vmatprep.subr.bf16.mxu0 %v9635_v57  ;;  %v9643_v27 = vld [vmem:[#allocation6 + $0x1d0] sm:$0xff]  }
 0x33f   :  { %v1287_v33 = vpop.f32.mrb[0].mxu1  ;;  %v1368_v41 = vpop.f32.mrb[8].mxu0 }
 0x340   :  { %v1288_v42 = vadd.f32 %v1287_v33, %v10468_v31  ;;  %v1369_v44 = vadd.f32 %v1368_v41, %v10471_v38  ;;  %v1289_v36 = vpop.f32.mrb[1].mxu1  ;;  %v1370_v47 = vpop.f32.mrb[9].mxu0  ;;  %v9642_v33 = vld [vmem:[#allocation6 + $0x110] sm:$0xff]  }
 0x341   :  { %v1290_v37 = vadd.f32 %v1289_v36, %v10474_v39  ;;  %v1371_v48 = vadd.f32 %v1370_v47, %v10477_v1  ;;  %v9644_v41 = vld [vmem:[#allocation6 + $0x190] sm:$0xff]  }
 0x342   :  { %v1901_v56 = vmax.f32 %v1288_v42, 0.0  ;;  %v1903_v45 = vmax.f32 %v1369_v44, 0.0 }
 0x343   :  { %v1293_v49 = vpop.f32.mrb[2].mxu1  ;;  %v1374_v50 = vpop.f32.mrb[10].mxu0  ;;  %v1902_v2 = vmax.f32 %v1290_v37, 0.0  ;;  %v1904_v51 = vmax.f32 %v1371_v48, 0.0 }
 0x344   :  { %v1294_v59 = vadd.f32 %v1293_v49, %v10468_v31  ;;  %v1375_v60 = vadd.f32 %v1374_v50, %v10471_v38  ;;  %v1295_v58 = vpop.f32.mrb[3].mxu1  ;;  %v1376_v61 = vpop.f32.mrb[11].mxu0  ;;  %v9645_v49 = vld [vmem:[#allocation6 + $0x158] sm:$0xff]  }
 0x345   :  { %v1296_v63 = vadd.f32 %v1295_v58, %v10474_v39  ;;  %v1377_v0 = vadd.f32 %v1376_v61, %v10477_v1  ;;  %3089 = vmatprep.mubr.f32.mxu1 %v1902_v2  ;;  %3162 = vmatprep.mubr.f32.mxu0 %v1904_v51  ;;  %v9647_v50 = vld [vmem:[#allocation6 + $0x1d8] sm:$0xff]  }
 0x346   :  { %3090 = vmatmul.mubr.f32.vlgmr.msra.gmra.mrb[64].mxu1 %v1901_v56  ;;  %3163 = vmatmul.mubr.f32.vlgmr.msra.gmra.mrb[72].mxu0 %v1903_v45  ;;  %v1917_v16 = vmax.f32 %v1294_v59, 0.0  ;;  %v1919_v17 = vmax.f32 %v1375_v60, 0.0  ;;  %v9646_v59 = vld [vmem:[#allocation6 + $0x118] sm:$0xff]  }
 0x347   :  { %8657 = vmatpush3.bf16.msra.mxu1 %v9634_v54  ;;  %v1299_v6 = vpop.f32.mrb[4].mxu1  ;;  %v1380_v7 = vpop.f32.mrb[12].mxu0  ;;  %8697 = vmatpush3.bf16.msra.mxu0 %v9636_v52  ;;  %v1918_v55 = vmax.f32 %v1296_v63, 0.0  ;;  %v1920_v8 = vmax.f32 %v1377_v0, 0.0  ;;  %v9648_v60 = vld [vmem:[#allocation6 + $0x198] sm:$0xff]  }
 0x348   :  { %v1300_v22 = vadd.f32 %v1299_v6, %v10468_v31  ;;  %v1381_v12 = vadd.f32 %v1380_v7, %v10471_v38  ;;  %v1301_v13 = vpop.f32.mrb[5].mxu1  ;;  %v1382_v14 = vpop.f32.mrb[13].mxu0  ;;  %8658 = vmatprep.subr.bf16.mxu1 %v9637_v3  ;;  %8698 = vmatprep.subr.bf16.mxu0 %v9639_v4  ;;  %v9649_v6 = vld [vmem:[#allocation6 + $0x160] sm:$0xff]  }
 0x349   :  { %v1302_v57 = vadd.f32 %v1301_v13, %v10474_v39  ;;  %v1383_v23 = vadd.f32 %v1382_v14, %v10477_v1  ;;  %3094 = vmatprep.mubr.f32.mxu1 %v1918_v55  ;;  %3167 = vmatprep.mubr.f32.mxu0 %v1920_v8  ;;  %v9651_v7 = vld [vmem:[#allocation6 + $0x1e0] sm:$0xff]  }
 0x34a   :  { %3095 = vmatmul.mubr.f32.gmra.mrb[66].mxu1 %v1917_v16  ;;  %3168 = vmatmul.mubr.f32.gmra.mrb[74].mxu0 %v1919_v17  ;;  %v1933_v37 = vmax.f32 %v1300_v22, 0.0  ;;  %v1935_v48 = vmax.f32 %v1381_v12, 0.0  ;;  %v9652_v14 = vld [vmem:[#allocation6 + $0x1a0] sm:$0xff]   ;;  %v10502_v16 = vld [vmem:[%s11692_s5 + $0x8] sm:$0xff] }
 0x34b   :  { %8659 = vmatpush3.bf16.msra.mxu1 %v9638_v10  ;;  %v1305_v25 = vpop.f32.mrb[6].mxu1  ;;  %v1386_v28 = vpop.f32.mrb[14].mxu0  ;;  %8699 = vmatpush3.bf16.msra.mxu0 %v9640_v62  ;;  %v1934_v29 = vmax.f32 %v1302_v57, 0.0  ;;  %v1936_v30 = vmax.f32 %v1383_v23, 0.0  ;;  %v9650_v10 = vld [vmem:[#allocation6 + $0x120] sm:$0xff]  }
 0x34c   :  { %v1306_v42 = vadd.f32 %v1305_v25, %v10468_v31  ;;  %v1387_v44 = vadd.f32 %v1386_v28, %v10471_v38  ;;  %v1307_v36 = vpop.f32.mrb[7].mxu1  ;;  %v1388_v47 = vpop.f32.mrb[15].mxu0  ;;  %8660 = vmatprep.subr.bf16.mxu1 %v9641_v19  ;;  %8700 = vmatprep.subr.bf16.mxu0 %v9643_v27  ;;  %v9653_v28 = vld [vmem:[#allocation6 + $0x168] sm:$0xff]  }
 0x34d   :  { %v1308_v2 = vadd.f32 %v1307_v36, %v10474_v39  ;;  %v1389_v51 = vadd.f32 %v1388_v47, %v10477_v1  ;;  %3099 = vmatprep.mubr.f32.mxu1 %v1934_v29  ;;  %3172 = vmatprep.mubr.f32.mxu0 %v1936_v30  ;;  %v9655_v29 = vld [vmem:[#allocation6 + $0x1e8] sm:$0xff]  }
 0x34e   :  { %3100 = vmatmul.mubr.f32.gmra.mrb[68].mxu1 %v1933_v37  ;;  %3173 = vmatmul.mubr.f32.gmra.mrb[76].mxu0 %v1935_v48  ;;  %v1949_v63 = vmax.f32 %v1306_v42, 0.0  ;;  %v1951_v0 = vmax.f32 %v1387_v44, 0.0  ;;  %v9654_v37 = vld [vmem:[#allocation6 + $0x128] sm:$0xff]  }
 0x34f   :  { %8661 = vmatpush3.bf16.msra.mxu1 %v9642_v33  ;;  %v1311_v54 = vpop.f32.mrb[8].mxu1  ;;  %v1392_v52 = vpop.f32.mrb[16].mxu0  ;;  %8701 = vmatpush3.bf16.msra.mxu0 %v9644_v41  ;;  %v1950_v56 = vmax.f32 %v1308_v2, 0.0  ;;  %v1952_v45 = vmax.f32 %v1389_v51, 0.0  ;;  %v488_v41 = vrot.slane %v10502_v16, %v10170_v35  ;;  %v9656_v48 = vld [vmem:[#allocation6 + $0x1a8] sm:$0xff]  }
 0x350   :  { %v1312_v58 = vadd.f32 %v1311_v54, %v10468_v31  ;;  %v1393_v61 = vadd.f32 %v1392_v52, %v10471_v38  ;;  %v1313_v3 = vpop.f32.mrb[9].mxu1  ;;  %v1394_v4 = vpop.f32.mrb[17].mxu0  ;;  %8662 = vmatprep.subr.bf16.mxu1 %v9645_v49  ;;  %8702 = vmatprep.subr.bf16.mxu0 %v9647_v50  ;;  %v496_v49 = vrot.slane %v10502_v16, %v10455_v20 }
 0x351   :  { %v1314_v55 = vadd.f32 %v1313_v3, %v10474_v39  ;;  %v1395_v8 = vadd.f32 %v1394_v4, %v10477_v1  ;;  %3104 = vmatprep.mubr.f32.mxu1 %v1950_v56  ;;  %3177 = vmatprep.mubr.f32.mxu0 %v1952_v45  ;;  %v492_v50 = vrot.slane %v10502_v16, %v10278_v18 }
 0x352   :  { %3105 = vmatmul.mubr.f32.gmra.mrb[70].mxu1 %v1949_v63  ;;  %3178 = vmatmul.mubr.f32.gmra.mrb[78].mxu0 %v1951_v0  ;;  %v1967_v17 = vmax.f32 %v1393_v61, 0.0  ;;  %v1965_v25 = vmax.f32 %v1312_v58, 0.0  ;;  %v500_v3 = vrot.slane %v10502_v16, %v10461_v24  ;;  %v10521_v4 = vrot.slane %v488_v41, %v10170_v35 }
 0x353   :  { %v1968_v62 = vmax.f32 %v1395_v8, 0.0  ;;  %8663 = vmatpush3.bf16.msra.mxu1 %v9646_v59  ;;  %v1317_v22 = vpop.f32.mrb[10].mxu1  ;;  %v1398_v12 = vpop.f32.mrb[18].mxu0  ;;  %8703 = vmatpush3.bf16.msra.mxu0 %v9648_v60  ;;  %v1966_v13 = vmax.f32 %v1314_v55, 0.0  ;;  %v9657_v59 = vld [vmem:[#allocation6 + $0x170] sm:$0xff]   ;;  %v10524_v8 = vrot.slane %v496_v49, %v10170_v35 }
 0x354   :  { %v1318_v19 = vadd.f32 %v1317_v22, %v10468_v31  ;;  %v1399_v27 = vadd.f32 %v1398_v12, %v10471_v38  ;;  %v1319_v57 = vpop.f32.mrb[11].mxu1  ;;  %v1400_v23 = vpop.f32.mrb[19].mxu0  ;;  %8664 = vmatprep.subr.bf16.mxu1 %v9649_v6  ;;  %8704 = vmatprep.subr.bf16.mxu0 %v9651_v7  ;;  %v9659_v60 = vld [vmem:[#allocation6 + $0x1f0] sm:$0xff]  }
 0x355   :  { %v1320_v30 = vadd.f32 %v1319_v57, %v10474_v39  ;;  %v1401_v33 = vadd.f32 %v1400_v23, %v10477_v1  ;;  %3109 = vmatprep.mubr.f32.mxu1 %v1966_v13  ;;  %3182 = vmatprep.mubr.f32.mxu0 %v1968_v62  ;;  %v9658_v55 = vld [vmem:[#allocation6 + $0x130] sm:$0xff]   ;;  %v10527_v62 = vrot.slane %v492_v50, %v10170_v35 }
 0x356   :  { %3110 = vmatmul.mubr.f32.gmra.mrb[72].mxu1 %v1965_v25  ;;  %3183 = vmatmul.mubr.f32.gmra.mrb[80].mxu0 %v1967_v17  ;;  %v1983_v2 = vmax.f32 %v1399_v27, 0.0  ;;  %v1981_v45 = vmax.f32 %v1318_v19, 0.0  ;;  %v9661_v19 = vld [vmem:[#allocation6 + $0x178] sm:$0xff]   ;;  %v10534_v25 = vrot.slane %v500_v3, %v10170_v35 }
 0x357   :  { %v1984_v42 = vmax.f32 %v1401_v33, 0.0  ;;  %8665 = vmatpush3.bf16.msra.mxu1 %v9650_v10  ;;  %v1323_v44 = vpop.f32.mrb[12].mxu1  ;;  %v1404_v36 = vpop.f32.mrb[20].mxu0  ;;  %8705 = vmatpush3.bf16.msra.mxu0 %v9652_v14  ;;  %v1982_v47 = vmax.f32 %v1320_v30, 0.0  ;;  %v9660_v10 = vld [vmem:[#allocation6 + $0x1b0] sm:$0xff]   ;;  %v9663_v27 = vld [vmem:[#allocation6 + $0x1f8] sm:$0xff]  }
 0x358   :  { %v1324_v51 = vadd.f32 %v1323_v44, %v10468_v31  ;;  %v1405_v54 = vadd.f32 %v1404_v36, %v10471_v38  ;;  %v1325_v52 = vpop.f32.mrb[13].mxu1  ;;  %v1406_v56 = vpop.f32.mrb[21].mxu0  ;;  %8666 = vmatprep.subr.bf16.mxu1 %v9653_v28  ;;  %8706 = vmatprep.subr.bf16.mxu0 %v9655_v29  ;;  %v9662_v30 = vld [vmem:[#allocation6 + $0x138] sm:$0xff]  }
 0x359   :  { %v1326_v58 = vadd.f32 %v1325_v52, %v10474_v39  ;;  %v1407_v61 = vadd.f32 %v1406_v56, %v10477_v1  ;;  %3114 = vmatprep.mubr.f32.mxu1 %v1982_v47  ;;  %3187 = vmatprep.mubr.f32.mxu0 %v1984_v42  ;;  %v9664_v33 = vld [vmem:[#allocation6 + $0x1b8] sm:$0xff]   ;;  %v9665_v47 = vld [vmem:[#allocation6 + $0x240] sm:$0xff]  }
 0x35a   :  { %3115 = vmatmul.mubr.f32.gmra.mrb[74].mxu1 %v1981_v45  ;;  %3188 = vmatmul.mubr.f32.gmra.mrb[82].mxu0 %v1983_v2  ;;  %v1999_v22 = vmax.f32 %v1405_v54, 0.0  ;;  %v1997_v17 = vmax.f32 %v1324_v51, 0.0  ;;  %v9666_v52 = vld [vmem:[#allocation6 + $0x200] sm:$0xff]  }
 0x35b   :  { %v2000_v63 = vmax.f32 %v1407_v61, 0.0  ;;  %8667 = vmatpush3.bf16.msra.mxu1 %v9654_v37  ;;  %v1329_v0 = vpop.f32.mrb[14].mxu1  ;;  %v1410_v6 = vpop.f32.mrb[22].mxu0  ;;  %8707 = vmatpush3.bf16.msra.mxu0 %v9656_v48  ;;  %v1998_v7 = vmax.f32 %v1326_v58, 0.0  ;;  %v9667_v37 = vld [vmem:[#allocation6 + $0x2c0] sm:$0xff]  }
 0x35c   :  { %v1330_v12 = vadd.f32 %v1329_v0, %v10468_v31  ;;  %v1411_v13 = vadd.f32 %v1410_v6, %v10471_v38  ;;  %v1331_v14 = vpop.f32.mrb[15].mxu1  ;;  %v1412_v16 = vpop.f32.mrb[23].mxu0  ;;  %8668 = vmatprep.subr.bf16.mxu1 %v9657_v59  ;;  %8708 = vmatprep.subr.bf16.mxu0 %v9659_v60  ;;  %v9668_v56 = vld [vmem:[#allocation6 + $0x280] sm:$0xff]   ;;  %v9671_v0 = vld [vmem:[#allocation6 + $0x2c8] sm:$0xff]  }
 0x35d   :  { %v1332_v57 = vadd.f32 %v1331_v14, %v10474_v39  ;;  %v1413_v23 = vadd.f32 %v1412_v16, %v10477_v1  ;;  %3119 = vmatprep.mubr.f32.mxu1 %v1998_v7  ;;  %3192 = vmatprep.mubr.f32.mxu0 %v2000_v63  ;;  %v9669_v63 = vld [vmem:[#allocation6 + $0x248] sm:$0xff]  }
 0x35e   :  { %3120 = vmatmul.mubr.f32.gmra.mrb[76].mxu1 %v1997_v17  ;;  %3193 = vmatmul.mubr.f32.gmra.mrb[84].mxu0 %v1999_v22  ;;  %v2015_v41 = vmax.f32 %v1411_v13, 0.0  ;;  %v2013_v36 = vmax.f32 %v1330_v12, 0.0  ;;  %v9670_v13 = vld [vmem:[#allocation6 + $0x208] sm:$0xff]  }
 0x35f   :  { %v2016_v31 = vmax.f32 %v1413_v23, 0.0  ;;  %8669 = vmatpush3.bf16.msra.mxu1 %v9658_v55  ;;  %v1449_v38 = vpop.f32.mrb[16].mxu1  ;;  %v1530_v28 = vpop.f32.mrb[24].mxu0  ;;  %8709 = vmatpush3.bf16.msra.mxu0 %v9660_v10  ;;  %v2014_v29 = vmax.f32 %v1332_v57, 0.0  ;;  %v9672_v14 = vld [vmem:[#allocation6 + $0x288] sm:$0xff]  }
 0x360   :  { %v1450_v39 = vadd.f32 %v1449_v38, %v10521_v4  ;;  %v1531_v1 = vadd.f32 %v1530_v28, %v10524_v8  ;;  %v1451_v42 = vpop.f32.mrb[17].mxu1  ;;  %v1532_v44 = vpop.f32.mrb[25].mxu0  ;;  %8670 = vmatprep.subr.bf16.mxu1 %v9661_v19  ;;  %8710 = vmatprep.subr.bf16.mxu0 %v9663_v27  ;;  %v9675_v38 = vld [vmem:[#allocation6 + $0x2d0] sm:$0xff]  }
 0x361   :  { %v1452_v48 = vadd.f32 %v1451_v42, %v10527_v62  ;;  %v1533_v49 = vadd.f32 %v1532_v44, %v10534_v25  ;;  %3124 = vmatprep.mubr.f32.mxu1 %v2014_v29  ;;  %3197 = vmatprep.mubr.f32.mxu0 %v2016_v31  ;;  %v9673_v31 = vld [vmem:[#allocation6 + $0x250] sm:$0xff]  }
 0x362   :  { %3125 = vmatmul.mubr.f32.gmra.mrb[78].mxu1 %v2013_v36  ;;  %3198 = vmatmul.mubr.f32.gmra.mrb[86].mxu0 %v2015_v41  ;;  %v1905_v45 = vmax.f32 %v1450_v39, 0.0  ;;  %v1907_v59 = vmax.f32 %v1531_v1, 0.0  ;;  %v9674_v1 = vld [vmem:[#allocation6 + $0x210] sm:$0xff]  }
 0x363   :  { %v1906_v50 = vmax.f32 %v1452_v48, 0.0  ;;  %v1908_v2 = vmax.f32 %v1533_v49, 0.0  ;;  %8671 = vmatpush3.bf16.msra.mxu1 %v9662_v30  ;;  %v1455_v51 = vpop.f32.mrb[18].mxu1  ;;  %v1536_v54 = vpop.f32.mrb[26].mxu0  ;;  %8711 = vmatpush3.bf16.msra.mxu0 %v9664_v33  ;;  %v9676_v42 = vld [vmem:[#allocation6 + $0x290] sm:$0xff]  }
 0x364   :  { %v1456_v60 = vadd.f32 %v1455_v51, %v10521_v4  ;;  %v1537_v58 = vadd.f32 %v1536_v54, %v10524_v8  ;;  %v1457_v61 = vpop.f32.mrb[19].mxu1  ;;  %v1538_v3 = vpop.f32.mrb[27].mxu0  ;;  %8736 = vmatprep.subr.bf16.mxu1 %v9665_v47  ;;  %8776 = vmatprep.subr.bf16.mxu0 %v9667_v37 }
 0x365   :  { %v1458_v6 = vadd.f32 %v1457_v61, %v10527_v62  ;;  %v1539_v7 = vadd.f32 %v1538_v3, %v10534_v25  ;;  %3235 = vmatprep.mubr.f32.mxu1 %v1906_v50  ;;  %3308 = vmatprep.mubr.f32.mxu0 %v1908_v2  ;;  %v9677_v50 = vld [vmem:[#allocation6 + $0x258] sm:$0xff]  }
 0x366   :  { %3236 = vmatmul.mubr.f32.vlgmr.msra.gmra.mrb[80].mxu1 %v1905_v45  ;;  %3309 = vmatmul.mubr.f32.vlgmr.msra.gmra.mrb[88].mxu0 %v1907_v59  ;;  %v1921_v16 = vmax.f32 %v1456_v60, 0.0  ;;  %v1923_v17 = vmax.f32 %v1537_v58, 0.0  ;;  %v9679_v2 = vld [vmem:[#allocation6 + $0x2d8] sm:$0xff]  }
 0x367   :  { %v1922_v55 = vmax.f32 %v1458_v6, 0.0  ;;  %v1924_v10 = vmax.f32 %v1539_v7, 0.0  ;;  %8737 = vmatpush3.bf16.msra.mxu1 %v9666_v52  ;;  %v1461_v22 = vpop.f32.mrb[20].mxu1  ;;  %v1542_v12 = vpop.f32.mrb[28].mxu0  ;;  %8777 = vmatpush3.bf16.msra.mxu0 %v9668_v56  ;;  %v9678_v60 = vld [vmem:[#allocation6 + $0x218] sm:$0xff]  }
 0x368   :  { %v1462_v19 = vadd.f32 %v1461_v22, %v10521_v4  ;;  %v1543_v27 = vadd.f32 %v1542_v12, %v10524_v8  ;;  %v1463_v57 = vpop.f32.mrb[21].mxu1  ;;  %v1544_v23 = vpop.f32.mrb[29].mxu0  ;;  %8738 = vmatprep.subr.bf16.mxu1 %v9669_v63  ;;  %8778 = vmatprep.subr.bf16.mxu0 %v9671_v0  ;;  %v9680_v58 = vld [vmem:[#allocation6 + $0x298] sm:$0xff]  }
 0x369   :  { %v1464_v28 = vadd.f32 %v1463_v57, %v10527_v62  ;;  %v1545_v29 = vadd.f32 %v1544_v23, %v10534_v25  ;;  %3240 = vmatprep.mubr.f32.mxu1 %v1922_v55  ;;  %3313 = vmatprep.mubr.f32.mxu0 %v1924_v10  ;;  %v9681_v55 = vld [vmem:[#allocation6 + $0x260] sm:$0xff]   ;;  %v10559_v57 = vld [vmem:[%s11692_s5 + $0x10] sm:$0xff] }
 0x36a   :  { %3241 = vmatmul.mubr.f32.gmra.mrb[82].mxu1 %v1921_v16  ;;  %3314 = vmatmul.mubr.f32.gmra.mrb[90].mxu0 %v1923_v17  ;;  %v1937_v44 = vmax.f32 %v1462_v19, 0.0  ;;  %v1939_v36 = vmax.f32 %v1543_v27, 0.0  ;;  %v9683_v10 = vld [vmem:[#allocation6 + $0x2e0] sm:$0xff]  }
 0x36b   :  { %v1938_v30 = vmax.f32 %v1464_v28, 0.0  ;;  %v1940_v33 = vmax.f32 %v1545_v29, 0.0  ;;  %8739 = vmatpush3.bf16.msra.mxu1 %v9670_v13  ;;  %v1467_v41 = vpop.f32.mrb[22].mxu1  ;;  %v1548_v39 = vpop.f32.mrb[30].mxu0  ;;  %8779 = vmatpush3.bf16.msra.mxu0 %v9672_v14  ;;  %v9682_v13 = vld [vmem:[#allocation6 + $0x220] sm:$0xff]  }
 0x36c   :  { %v1468_v47 = vadd.f32 %v1467_v41, %v10521_v4  ;;  %v1549_v37 = vadd.f32 %v1548_v39, %v10524_v8  ;;  %v1469_v48 = vpop.f32.mrb[23].mxu1  ;;  %v1550_v49 = vpop.f32.mrb[31].mxu0  ;;  %8740 = vmatprep.subr.bf16.mxu1 %v9673_v31  ;;  %8780 = vmatprep.subr.bf16.mxu0 %v9675_v38  ;;  %v9684_v27 = vld [vmem:[#allocation6 + $0x2a0] sm:$0xff]   ;;  %v9687_v41 = vld [vmem:[#allocation6 + $0x2e8] sm:$0xff]  }
 0x36d   :  { %v1470_v51 = vadd.f32 %v1469_v48, %v10527_v62  ;;  %v1551_v54 = vadd.f32 %v1550_v49, %v10534_v25  ;;  %3245 = vmatprep.mubr.f32.mxu1 %v1938_v30  ;;  %3318 = vmatprep.mubr.f32.mxu0 %v1940_v33  ;;  %v9685_v33 = vld [vmem:[#allocation6 + $0x268] sm:$0xff]  }
 0x36e   :  { %3246 = vmatmul.mubr.f32.gmra.mrb[84].mxu1 %v1937_v44  ;;  %3319 = vmatmul.mubr.f32.gmra.mrb[92].mxu0 %v1939_v36  ;;  %v1953_v61 = vmax.f32 %v1468_v47, 0.0  ;;  %v1955_v3 = vmax.f32 %v1549_v37, 0.0  ;;  %v9686_v48 = vld [vmem:[#allocation6 + $0x228] sm:$0xff]  }
 0x36f   :  { %v1954_v52 = vmax.f32 %v1470_v51, 0.0  ;;  %v1956_v56 = vmax.f32 %v1551_v54, 0.0  ;;  %8741 = vmatpush3.bf16.msra.mxu1 %v9674_v1  ;;  %v1473_v45 = vpop.f32.mrb[24].mxu1  ;;  %v1554_v59 = vpop.f32.mrb[32].mxu0  ;;  %8781 = vmatpush3.bf16.msra.mxu0 %v9676_v42  ;;  %v504_v42 = vrot.slane %v10559_v57, %v10170_v35  ;;  %v9688_v49 = vld [vmem:[#allocation6 + $0x2a8] sm:$0xff]  }
 0x370   :  { %v1474_v63 = vadd.f32 %v1473_v45, %v10521_v4  ;;  %v1555_v0 = vadd.f32 %v1554_v59, %v10524_v8  ;;  %v1475_v6 = vpop.f32.mrb[25].mxu1  ;;  %v1556_v7 = vpop.f32.mrb[33].mxu0  ;;  %8742 = vmatprep.subr.bf16.mxu1 %v9677_v50  ;;  %8782 = vmatprep.subr.bf16.mxu0 %v9679_v2  ;;  %v512_v50 = vrot.slane %v10559_v57, %v10455_v20 }
 0x371   :  { %v1476_v22 = vadd.f32 %v1475_v6, %v10527_v62  ;;  %v1557_v12 = vadd.f32 %v1556_v7, %v10534_v25  ;;  %3250 = vmatprep.mubr.f32.mxu1 %v1954_v52  ;;  %3323 = vmatprep.mubr.f32.mxu0 %v1956_v56  ;;  %v508_v2 = vrot.slane %v10559_v57, %v10278_v18 }
 0x372   :  { %3251 = vmatmul.mubr.f32.gmra.mrb[86].mxu1 %v1953_v61  ;;  %3324 = vmatmul.mubr.f32.gmra.mrb[94].mxu0 %v1955_v3  ;;  %v1969_v23 = vmax.f32 %v1474_v63, 0.0  ;;  %v1971_v31 = vmax.f32 %v1555_v0, 0.0  ;;  %v516_v63 = vrot.slane %v10559_v57, %v10461_v24  ;;  %v10578_v0 = vrot.slane %v504_v42, %v10170_v35 }
 0x373   :  { %v1970_v14 = vmax.f32 %v1476_v22, 0.0  ;;  %v1972_v16 = vmax.f32 %v1557_v12, 0.0  ;;  %8743 = vmatpush3.bf16.msra.mxu1 %v9678_v60  ;;  %v1479_v17 = vpop.f32.mrb[26].mxu1  ;;  %v1560_v19 = vpop.f32.mrb[34].mxu0  ;;  %8783 = vmatpush3.bf16.msra.mxu0 %v9680_v58  ;;  %v9689_v60 = vld [vmem:[#allocation6 + $0x270] sm:$0xff]   ;;  %v10581_v12 = vrot.slane %v512_v50, %v10170_v35 }
 0x374   :  { %v1480_v38 = vadd.f32 %v1479_v17, %v10521_v4  ;;  %v1561_v28 = vadd.f32 %v1560_v19, %v10524_v8  ;;  %v1481_v29 = vpop.f32.mrb[27].mxu1  ;;  %v1562_v30 = vpop.f32.mrb[35].mxu0  ;;  %8744 = vmatprep.subr.bf16.mxu1 %v9681_v55  ;;  %8784 = vmatprep.subr.bf16.mxu0 %v9683_v10  ;;  %v9691_v58 = vld [vmem:[#allocation6 + $0x2f0] sm:$0xff]  }
 0x375   :  { %v1482_v39 = vadd.f32 %v1481_v29, %v10527_v62  ;;  %v1563_v1 = vadd.f32 %v1562_v30, %v10534_v25  ;;  %3255 = vmatprep.mubr.f32.mxu1 %v1970_v14  ;;  %3328 = vmatprep.mubr.f32.mxu0 %v1972_v16  ;;  %v9690_v22 = vld [vmem:[#allocation6 + $0x230] sm:$0xff]   ;;  %v10584_v14 = vrot.slane %v508_v2, %v10170_v35 }
 0x376   :  { %3256 = vmatmul.mubr.f32.gmra.mrb[88].mxu1 %v1969_v23  ;;  %3329 = vmatmul.mubr.f32.gmra.mrb[96].mxu0 %v1971_v31  ;;  %v1985_v51 = vmax.f32 %v1480_v38, 0.0  ;;  %v1987_v54 = vmax.f32 %v1561_v28, 0.0  ;;  %v9693_v31 = vld [vmem:[#allocation6 + $0x278] sm:$0xff]   ;;  %v10591_v30 = vrot.slane %v516_v63, %v10170_v35 }
 0x377   :  { %v1986_v44 = vmax.f32 %v1482_v39, 0.0  ;;  %v1988_v36 = vmax.f32 %v1563_v1, 0.0  ;;  %8745 = vmatpush3.bf16.msra.mxu1 %v9682_v13  ;;  %v1485_v47 = vpop.f32.mrb[28].mxu1  ;;  %v1566_v37 = vpop.f32.mrb[36].mxu0  ;;  %8785 = vmatpush3.bf16.msra.mxu0 %v9684_v27  ;;  %v9692_v13 = vld [vmem:[#allocation6 + $0x2b0] sm:$0xff]   ;;  %v9695_v38 = vld [vmem:[#allocation6 + $0x2f8] sm:$0xff]  }
 0x378   :  { %v1486_v52 = vadd.f32 %v1485_v47, %v10521_v4  ;;  %v1567_v56 = vadd.f32 %v1566_v37, %v10524_v8  ;;  %v1487_v45 = vpop.f32.mrb[29].mxu1  ;;  %v1568_v59 = vpop.f32.mrb[37].mxu0  ;;  %8746 = vmatprep.subr.bf16.mxu1 %v9685_v33  ;;  %8786 = vmatprep.subr.bf16.mxu0 %v9687_v41  ;;  %v9694_v39 = vld [vmem:[#allocation6 + $0x238] sm:$0xff]   ;;  %v9697_v37 = vld [vmem:[#allocation6 + $0x340] sm:$0xff]  }
 0x379   :  { %v1488_v61 = vadd.f32 %v1487_v45, %v10527_v62  ;;  %v1569_v3 = vadd.f32 %v1568_v59, %v10534_v25  ;;  %3260 = vmatprep.mubr.f32.mxu1 %v1986_v44  ;;  %3333 = vmatprep.mubr.f32.mxu0 %v1988_v36  ;;  %v9696_v1 = vld [vmem:[#allocation6 + $0x2b8] sm:$0xff]   ;;  %v9700_v45 = vld [vmem:[#allocation6 + $0x380] sm:$0xff]  }
 0x37a   :  { %3261 = vmatmul.mubr.f32.gmra.mrb[90].mxu1 %v1985_v51  ;;  %3334 = vmatmul.mubr.f32.gmra.mrb[98].mxu0 %v1987_v54  ;;  %v2001_v16 = vmax.f32 %v1486_v52, 0.0  ;;  %v2003_v17 = vmax.f32 %v1567_v56, 0.0  ;;  %v9698_v56 = vld [vmem:[#allocation6 + $0x300] sm:$0xff]  }
 0x37b   :  { %v2002_v6 = vmax.f32 %v1488_v61, 0.0  ;;  %v2004_v7 = vmax.f32 %v1569_v3, 0.0  ;;  %8747 = vmatpush3.bf16.msra.mxu1 %v9686_v48  ;;  %v1491_v55 = vpop.f32.mrb[30].mxu1  ;;  %v1572_v10 = vpop.f32.mrb[38].mxu0  ;;  %8787 = vmatpush3.bf16.msra.mxu0 %v9688_v49  ;;  %v9699_v48 = vld [vmem:[#allocation6 + $0x3c0] sm:$0xff]  }
 0x37c   :  { %v1492_v19 = vadd.f32 %v1491_v55, %v10521_v4  ;;  %v1573_v27 = vadd.f32 %v1572_v10, %v10524_v8  ;;  %v1493_v57 = vpop.f32.mrb[31].mxu1  ;;  %v1574_v23 = vpop.f32.mrb[39].mxu0  ;;  %8748 = vmatprep.subr.bf16.mxu1 %v9689_v60  ;;  %8788 = vmatprep.subr.bf16.mxu0 %v9691_v58 }
 0x37d   :  { %v1494_v28 = vadd.f32 %v1493_v57, %v10527_v62  ;;  %v1575_v29 = vadd.f32 %v1574_v23, %v10534_v25  ;;  %3265 = vmatprep.mubr.f32.mxu1 %v2002_v6  ;;  %3338 = vmatprep.mubr.f32.mxu0 %v2004_v7  ;;  %v9701_v6 = vld [vmem:[#allocation6 + $0x348] sm:$0xff]  }
 0x37e   :  { %3266 = vmatmul.mubr.f32.gmra.mrb[92].mxu1 %v2001_v16  ;;  %3339 = vmatmul.mubr.f32.gmra.mrb[100].mxu0 %v2003_v17  ;;  %v2017_v42 = vmax.f32 %v1492_v19, 0.0  ;;  %v2019_v44 = vmax.f32 %v1573_v27, 0.0  ;;  %v9703_v7 = vld [vmem:[#allocation6 + $0x3c8] sm:$0xff]  }
 0x37f   :  { %v2018_v4 = vmax.f32 %v1494_v28, 0.0  ;;  %v2020_v33 = vmax.f32 %v1575_v29, 0.0  ;;  %8749 = vmatpush3.bf16.msra.mxu1 %v9690_v22  ;;  %v1611_v8 = vpop.f32.mrb[32].mxu1  ;;  %v1692_v41 = vpop.f32.mrb[40].mxu0  ;;  %8789 = vmatpush3.bf16.msra.mxu0 %v9692_v13  ;;  %v9702_v19 = vld [vmem:[#allocation6 + $0x308] sm:$0xff]  }
 0x380   :  { %v1612_v62 = vadd.f32 %v1611_v8, %v10578_v0  ;;  %v1693_v25 = vadd.f32 %v1692_v41, %v10581_v12  ;;  %v1613_v36 = vpop.f32.mrb[33].mxu1  ;;  %v1694_v47 = vpop.f32.mrb[41].mxu0  ;;  %8750 = vmatprep.subr.bf16.mxu1 %v9693_v31  ;;  %8790 = vmatprep.subr.bf16.mxu0 %v9695_v38  ;;  %v9704_v27 = vld [vmem:[#allocation6 + $0x388] sm:$0xff]  }
 0x381   :  { %v1614_v49 = vadd.f32 %v1613_v36, %v10584_v14  ;;  %v1695_v50 = vadd.f32 %v1694_v47, %v10591_v30  ;;  %3270 = vmatprep.mubr.f32.mxu1 %v2018_v4  ;;  %3343 = vmatprep.mubr.f32.mxu0 %v2020_v33  ;;  %v9705_v4 = vld [vmem:[#allocation6 + $0x350] sm:$0xff]  }
 0x382   :  { %3271 = vmatmul.mubr.f32.gmra.mrb[94].mxu1 %v2017_v42  ;;  %3344 = vmatmul.mubr.f32.gmra.mrb[102].mxu0 %v2019_v44  ;;  %v1909_v59 = vmax.f32 %v1612_v62, 0.0  ;;  %v1911_v60 = vmax.f32 %v1693_v25, 0.0  ;;  %v9707_v33 = vld [vmem:[#allocation6 + $0x3d0] sm:$0xff]  }
 0x383   :  { %v1910_v2 = vmax.f32 %v1614_v49, 0.0  ;;  %v1912_v51 = vmax.f32 %v1695_v50, 0.0  ;;  %8751 = vmatpush3.bf16.msra.mxu1 %v9694_v39  ;;  %v1617_v54 = vpop.f32.mrb[34].mxu1  ;;  %v1698_v52 = vpop.f32.mrb[42].mxu0  ;;  %8791 = vmatpush3.bf16.msra.mxu0 %v9696_v1  ;;  %v9706_v62 = vld [vmem:[#allocation6 + $0x310] sm:$0xff]  }
 0x384   :  { %v1618_v58 = vadd.f32 %v1617_v54, %v10578_v0  ;;  %v1699_v61 = vadd.f32 %v1698_v52, %v10581_v12  ;;  %v1619_v3 = vpop.f32.mrb[35].mxu1  ;;  %v1700_v63 = vpop.f32.mrb[43].mxu0  ;;  %8816 = vmatprep.subr.bf16.mxu1 %v9697_v37  ;;  %8856 = vmatprep.subr.bf16.mxu0 %v9699_v48  ;;  %v9708_v25 = vld [vmem:[#allocation6 + $0x390] sm:$0xff]  }
 0x385   :  { %v1620_v55 = vadd.f32 %v1619_v3, %v10584_v14  ;;  %v1701_v10 = vadd.f32 %v1700_v63, %v10591_v30  ;;  %3381 = vmatprep.mubr.f32.mxu1 %v1910_v2  ;;  %3454 = vmatprep.mubr.f32.mxu0 %v1912_v51  ;;  %v9709_v2 = vld [vmem:[#allocation6 + $0x358] sm:$0xff]  }
 0x386   :  { %3382 = vmatmul.mubr.f32.vlgmr.msra.gmra.mrb[96].mxu1 %v1909_v59  ;;  %3455 = vmatmul.mubr.f32.vlgmr.msra.gmra.mrb[104].mxu0 %v1911_v60  ;;  %v1925_v57 = vmax.f32 %v1618_v58, 0.0  ;;  %v1927_v23 = vmax.f32 %v1699_v61, 0.0  ;;  %v9711_v51 = vld [vmem:[#allocation6 + $0x3d8] sm:$0xff]  }
 0x387   :  { %v1926_v22 = vmax.f32 %v1620_v55, 0.0  ;;  %v1928_v13 = vmax.f32 %v1701_v10, 0.0  ;;  %8817 = vmatpush3.bf16.msra.mxu1 %v9698_v56  ;;  %v1623_v16 = vpop.f32.mrb[36].mxu1  ;;  %v1704_v17 = vpop.f32.mrb[44].mxu0  ;;  %8857 = vmatpush3.bf16.msra.mxu0 %v9700_v45  ;;  %v9710_v58 = vld [vmem:[#allocation6 + $0x318] sm:$0xff]  }
 0x388   :  { %v1624_v31 = vadd.f32 %v1623_v16, %v10578_v0  ;;  %v1705_v38 = vadd.f32 %v1704_v17, %v10581_v12  ;;  %v1625_v28 = vpop.f32.mrb[37].mxu1  ;;  %v1706_v29 = vpop.f32.mrb[45].mxu0  ;;  %8818 = vmatprep.subr.bf16.mxu1 %v9701_v6  ;;  %8858 = vmatprep.subr.bf16.mxu0 %v9703_v7  ;;  %v9712_v61 = vld [vmem:[#allocation6 + $0x398] sm:$0xff]  }
 0x389   :  { %v1626_v8 = vadd.f32 %v1625_v28, %v10584_v14  ;;  %v1707_v41 = vadd.f32 %v1706_v29, %v10591_v30  ;;  %3386 = vmatprep.mubr.f32.mxu1 %v1926_v22  ;;  %3459 = vmatprep.mubr.f32.mxu0 %v1928_v13  ;;  %v9713_v22 = vld [vmem:[#allocation6 + $0x360] sm:$0xff]   ;;  %v10616_v28 = vld [vmem:[%s11692_s5 + $0x18] sm:$0xff] }
 0x38a   :  { %3387 = vmatmul.mubr.f32.gmra.mrb[98].mxu1 %v1925_v57  ;;  %3460 = vmatmul.mubr.f32.gmra.mrb[106].mxu0 %v1927_v23  ;;  %v1941_v36 = vmax.f32 %v1624_v31, 0.0  ;;  %v1943_v47 = vmax.f32 %v1705_v38, 0.0  ;;  %v9715_v13 = vld [vmem:[#allocation6 + $0x3e0] sm:$0xff]  }
 0x38b   :  { %v1942_v39 = vmax.f32 %v1626_v8, 0.0  ;;  %v1944_v1 = vmax.f32 %v1707_v41, 0.0  ;;  %8819 = vmatpush3.bf16.msra.mxu1 %v9702_v19  ;;  %v1629_v42 = vpop.f32.mrb[38].mxu1  ;;  %v1710_v44 = vpop.f32.mrb[46].mxu0  ;;  %8859 = vmatpush3.bf16.msra.mxu0 %v9704_v27  ;;  %v9714_v19 = vld [vmem:[#allocation6 + $0x320] sm:$0xff]  }
 0x38c   :  { %v1630_v37 = vadd.f32 %v1629_v42, %v10578_v0  ;;  %v1711_v48 = vadd.f32 %v1710_v44, %v10581_v12  ;;  %v1631_v49 = vpop.f32.mrb[39].mxu1  ;;  %v1712_v50 = vpop.f32.mrb[47].mxu0  ;;  %8820 = vmatprep.subr.bf16.mxu1 %v9705_v4  ;;  %8860 = vmatprep.subr.bf16.mxu0 %v9707_v33  ;;  %v9716_v38 = vld [vmem:[#allocation6 + $0x3a0] sm:$0xff]   ;;  %v9719_v42 = vld [vmem:[#allocation6 + $0x3e8] sm:$0xff]  }
 0x38d   :  { %v1632_v54 = vadd.f32 %v1631_v49, %v10584_v14  ;;  %v1713_v52 = vadd.f32 %v1712_v50, %v10591_v30  ;;  %3391 = vmatprep.mubr.f32.mxu1 %v1942_v39  ;;  %3464 = vmatprep.mubr.f32.mxu0 %v1944_v1  ;;  %v9717_v1 = vld [vmem:[#allocation6 + $0x368] sm:$0xff]  }
 0x38e   :  { %3392 = vmatmul.mubr.f32.gmra.mrb[100].mxu1 %v1941_v36  ;;  %3465 = vmatmul.mubr.f32.gmra.mrb[108].mxu0 %v1943_v47  ;;  %v1957_v3 = vmax.f32 %v1630_v37, 0.0  ;;  %v1959_v63 = vmax.f32 %v1711_v48, 0.0  ;;  %v9718_v49 = vld [vmem:[#allocation6 + $0x328] sm:$0xff]  }
 0x38f   :  { %v1958_v56 = vmax.f32 %v1632_v54, 0.0  ;;  %v1960_v45 = vmax.f32 %v1713_v52, 0.0  ;;  %8821 = vmatpush3.bf16.msra.mxu1 %v9706_v62  ;;  %v1635_v59 = vpop.f32.mrb[40].mxu1  ;;  %v1716_v60 = vpop.f32.mrb[48].mxu0  ;;  %8861 = vmatpush3.bf16.msra.mxu0 %v9708_v25  ;;  %v520_v25 = vrot.slane %v10616_v28, %v10170_v35  ;;  %v9720_v50 = vld [vmem:[#allocation6 + $0x3a8] sm:$0xff]  }
 0x390   :  { %v1636_v6 = vadd.f32 %v1635_v59, %v10578_v0  ;;  %v1717_v7 = vadd.f32 %v1716_v60, %v10581_v12  ;;  %v1637_v55 = vpop.f32.mrb[41].mxu1  ;;  %v1718_v10 = vpop.f32.mrb[49].mxu0  ;;  %8822 = vmatprep.subr.bf16.mxu1 %v9709_v2  ;;  %8862 = vmatprep.subr.bf16.mxu0 %v9711_v51  ;;  %v528_v2 = vrot.slane %v10616_v28, %v10455_v20 }
 0x391   :  { %v1638_v16 = vadd.f32 %v1637_v55, %v10584_v14  ;;  %v1719_v17 = vadd.f32 %v1718_v10, %v10591_v30  ;;  %3396 = vmatprep.mubr.f32.mxu1 %v1958_v56  ;;  %3469 = vmatprep.mubr.f32.mxu0 %v1960_v45  ;;  %v524_v51 = vrot.slane %v10616_v28, %v10278_v18 }
 0x392   :  { %3397 = vmatmul.mubr.f32.gmra.mrb[102].mxu1 %v1957_v3  ;;  %3470 = vmatmul.mubr.f32.gmra.mrb[110].mxu0 %v1959_v63  ;;  %v1973_v29 = vmax.f32 %v1636_v6, 0.0  ;;  %v1975_v4 = vmax.f32 %v1717_v7, 0.0  ;;  %v532_v6 = vrot.slane %v10616_v28, %v10461_v24  ;;  %v10635_v7 = vrot.slane %v520_v25, %v10170_v35 }
 0x393   :  { %v1974_v27 = vmax.f32 %v1638_v16, 0.0  ;;  %v1976_v57 = vmax.f32 %v1719_v17, 0.0  ;;  %8823 = vmatpush3.bf16.msra.mxu1 %v9710_v58  ;;  %v1641_v23 = vpop.f32.mrb[42].mxu1  ;;  %v1722_v31 = vpop.f32.mrb[50].mxu0  ;;  %8863 = vmatpush3.bf16.msra.mxu0 %v9712_v61  ;;  %v9721_v58 = vld [vmem:[#allocation6 + $0x370] sm:$0xff]   ;;  %v10638_v17 = vrot.slane %v528_v2, %v10170_v35 }
 0x394   :  { %v1642_v33 = vadd.f32 %v1641_v23, %v10578_v0  ;;  %v1723_v8 = vadd.f32 %v1722_v31, %v10581_v12  ;;  %v1643_v41 = vpop.f32.mrb[43].mxu1  ;;  %v1724_v39 = vpop.f32.mrb[51].mxu0  ;;  %8824 = vmatprep.subr.bf16.mxu1 %v9713_v22  ;;  %8864 = vmatprep.subr.bf16.mxu0 %v9715_v13  ;;  %v9723_v61 = vld [vmem:[#allocation6 + $0x3f0] sm:$0xff]  }
 0x395   :  { %v1644_v44 = vadd.f32 %v1643_v41, %v10584_v14  ;;  %v1725_v62 = vadd.f32 %v1724_v39, %v10591_v30  ;;  %3401 = vmatprep.mubr.f32.mxu1 %v1974_v27  ;;  %3474 = vmatprep.mubr.f32.mxu0 %v1976_v57  ;;  %v9722_v16 = vld [vmem:[#allocation6 + $0x330] sm:$0xff]   ;;  %v10641_v27 = vrot.slane %v524_v51, %v10170_v35 }
 0x396   :  { %3402 = vmatmul.mubr.f32.gmra.mrb[104].mxu1 %v1973_v29  ;;  %3475 = vmatmul.mubr.f32.gmra.mrb[112].mxu0 %v1975_v4  ;;  %v1989_v54 = vmax.f32 %v1642_v33, 0.0  ;;  %v1991_v52 = vmax.f32 %v1723_v8, 0.0  ;;  %v9725_v4 = vld [vmem:[#allocation6 + $0x378] sm:$0xff]   ;;  %v10648_v39 = vrot.slane %v532_v6, %v10170_v35 }
 0x397   :  { %v1990_v36 = vmax.f32 %v1644_v44, 0.0  ;;  %v1992_v47 = vmax.f32 %v1725_v62, 0.0  ;;  %8825 = vmatpush3.bf16.msra.mxu1 %v9714_v19  ;;  %v1647_v37 = vpop.f32.mrb[44].mxu1  ;;  %v1728_v48 = vpop.f32.mrb[52].mxu0  ;;  %8865 = vmatpush3.bf16.msra.mxu0 %v9716_v38  ;;  %v9724_v19 = vld [vmem:[#allocation6 + $0x3b0] sm:$0xff]   ;;  %v9727_v33 = vld [vmem:[#allocation6 + $0x3f8] sm:$0xff]  }
 0x398   :  { %v1648_v56 = vadd.f32 %v1647_v37, %v10578_v0  ;;  %v1729_v45 = vadd.f32 %v1728_v48, %v10581_v12  ;;  %v1649_v59 = vpop.f32.mrb[45].mxu1  ;;  %v1730_v60 = vpop.f32.mrb[53].mxu0  ;;  %8826 = vmatprep.subr.bf16.mxu1 %v9717_v1  ;;  %8866 = vmatprep.subr.bf16.mxu0 %v9719_v42  ;;  %v9726_v44 = vld [vmem:[#allocation6 + $0x338] sm:$0xff]  }
 0x399   :  { %v1650_v3 = vadd.f32 %v1649_v59, %v10584_v14  ;;  %v1731_v63 = vadd.f32 %v1730_v60, %v10591_v30  ;;  %3406 = vmatprep.mubr.f32.mxu1 %v1990_v36  ;;  %3479 = vmatprep.mubr.f32.mxu0 %v1992_v47  ;;  %v9728_v62 = vld [vmem:[#allocation6 + $0x3b8] sm:$0xff]  }
 0x39a   :  { %3407 = vmatmul.mubr.f32.gmra.mrb[106].mxu1 %v1989_v54  ;;  %3480 = vmatmul.mubr.f32.gmra.mrb[114].mxu0 %v1991_v52  ;;  %v2005_v57 = vmax.f32 %v1648_v56, 0.0  ;;  %v2007_v23 = vmax.f32 %v1729_v45, 0.0 }
 0x39b   :  { %v2006_v55 = vmax.f32 %v1650_v3, 0.0  ;;  %v2008_v10 = vmax.f32 %v1731_v63, 0.0  ;;  %8827 = vmatpush3.bf16.msra.mxu1 %v9718_v49  ;;  %v1653_v22 = vpop.f32.mrb[46].mxu1  ;;  %v1734_v13 = vpop.f32.mrb[54].mxu0  ;;  %8867 = vmatpush3.bf16.msra.mxu0 %v9720_v50 }
 0x39c   :  { %v1654_v31 = vadd.f32 %v1653_v22, %v10578_v0  ;;  %v1735_v38 = vadd.f32 %v1734_v13, %v10581_v12  ;;  %v1655_v28 = vpop.f32.mrb[47].mxu1  ;;  %v1736_v29 = vpop.f32.mrb[55].mxu0  ;;  %8828 = vmatprep.subr.bf16.mxu1 %v9721_v58  ;;  %8868 = vmatprep.subr.bf16.mxu0 %v9723_v61 }
 0x39d   :  { %v1656_v8 = vadd.f32 %v1655_v28, %v10584_v14  ;;  %v1737_v41 = vadd.f32 %v1736_v29, %v10591_v30  ;;  %3411 = vmatprep.mubr.f32.mxu1 %v2006_v55  ;;  %3484 = vmatprep.mubr.f32.mxu0 %v2008_v10 }
 0x39e   :  { %3412 = vmatmul.mubr.f32.gmra.mrb[108].mxu1 %v2005_v57  ;;  %3485 = vmatmul.mubr.f32.gmra.mrb[116].mxu0 %v2007_v23  ;;  %v2021_v25 = vmax.f32 %v1654_v31, 0.0  ;;  %v2023_v36 = vmax.f32 %v1735_v38, 0.0 }
 0x39f   :  { %v2022_v0 = vmax.f32 %v1656_v8, 0.0  ;;  %v2024_v1 = vmax.f32 %v1737_v41, 0.0  ;;  %8829 = vmatpush3.bf16.msra.mxu1 %v9722_v16  ;;  %v1773_v12 = vpop.f32.mrb[48].mxu1  ;;  %v1854_v42 = vpop.f32.mrb[56].mxu0  ;;  %8869 = vmatpush3.bf16.msra.mxu0 %v9724_v19 }
 0x3a0   :  { %v1774_v14 = vadd.f32 %v1773_v12, %v10635_v7  ;;  %v1855_v30 = vadd.f32 %v1854_v42, %v10638_v17  ;;  %v1775_v47 = vpop.f32.mrb[49].mxu1  ;;  %v1856_v37 = vpop.f32.mrb[57].mxu0  ;;  %8830 = vmatprep.subr.bf16.mxu1 %v9725_v4  ;;  %8870 = vmatprep.subr.bf16.mxu0 %v9727_v33 }
 0x3a1   :  { %v1776_v48 = vadd.f32 %v1775_v47, %v10641_v27  ;;  %v1857_v49 = vadd.f32 %v1856_v37, %v10648_v39  ;;  %3416 = vmatprep.mubr.f32.mxu1 %v2022_v0  ;;  %3489 = vmatprep.mubr.f32.mxu0 %v2024_v1 }
 0x3a2   :  { %3417 = vmatmul.mubr.f32.gmra.mrb[110].mxu1 %v2021_v25  ;;  %3490 = vmatmul.mubr.f32.gmra.mrb[118].mxu0 %v2023_v36  ;;  %v1913_v52 = vmax.f32 %v1774_v14, 0.0  ;;  %v1915_v56 = vmax.f32 %v1855_v30, 0.0 }
 0x3a3   :  { %v1914_v50 = vmax.f32 %v1776_v48, 0.0  ;;  %v1916_v2 = vmax.f32 %v1857_v49, 0.0  ;;  %8831 = vmatpush3.bf16.msra.mxu1 %v9726_v44  ;;  %v1779_v51 = vpop.f32.mrb[50].mxu1  ;;  %v1860_v54 = vpop.f32.mrb[58].mxu0  ;;  %8871 = vmatpush3.bf16.msra.mxu0 %v9728_v62 }
 0x3a4   :  { %v1780_v45 = vadd.f32 %v1779_v51, %v10635_v7  ;;  %v1861_v59 = vadd.f32 %v1860_v54, %v10638_v17  ;;  %v1781_v60 = vpop.f32.mrb[51].mxu1  ;;  %v1862_v58 = vpop.f32.mrb[59].mxu0 }
 0x3a5   :  { %v1782_v61 = vadd.f32 %v1781_v60, %v10641_v27  ;;  %v1863_v3 = vadd.f32 %v1862_v58, %v10648_v39  ;;  %3527 = vmatprep.mubr.f32.mxu1 %v1914_v50  ;;  %3600 = vmatprep.mubr.f32.mxu0 %v1916_v2 }
 0x3a6   :  { %3528 = vmatmul.mubr.f32.vlgmr.msra.gmra.mrb[112].mxu1 %v1913_v52  ;;  %3601 = vmatmul.mubr.f32.vlgmr.msra.gmra.mrb[120].mxu0 %v1915_v56  ;;  %v1929_v22 = vmax.f32 %v1780_v45, 0.0  ;;  %v1931_v13 = vmax.f32 %v1861_v59, 0.0 }
 0x3a7   :  { %v1930_v63 = vmax.f32 %v1782_v61, 0.0  ;;  %v1932_v6 = vmax.f32 %v1863_v3, 0.0  ;;  %v1785_v55 = vpop.f32.mrb[52].mxu1  ;;  %v1866_v10 = vpop.f32.mrb[60].mxu0 }
 0x3a8   :  { %v1786_v16 = vadd.f32 %v1785_v55, %v10635_v7  ;;  %v1867_v19 = vadd.f32 %v1866_v10, %v10638_v17  ;;  %v1787_v57 = vpop.f32.mrb[53].mxu1  ;;  %v1868_v23 = vpop.f32.mrb[61].mxu0 }
 0x3a9   :  { %v1788_v31 = vadd.f32 %v1787_v57, %v10641_v27  ;;  %v1869_v38 = vadd.f32 %v1868_v23, %v10648_v39  ;;  %3532 = vmatprep.mubr.f32.mxu1 %v1930_v63  ;;  %3605 = vmatprep.mubr.f32.mxu0 %v1932_v6 }
 0x3aa   :  { %3533 = vmatmul.mubr.f32.gmra.mrb[114].mxu1 %v1929_v22  ;;  %3606 = vmatmul.mubr.f32.gmra.mrb[122].mxu0 %v1931_v13  ;;  %v1945_v8 = vmax.f32 %v1786_v16, 0.0  ;;  %v1947_v41 = vmax.f32 %v1867_v19, 0.0 }
 0x3ab   :  { %v1946_v28 = vmax.f32 %v1788_v31, 0.0  ;;  %v1948_v29 = vmax.f32 %v1869_v38, 0.0  ;;  %v1791_v4 = vpop.f32.mrb[54].mxu1  ;;  %v1872_v33 = vpop.f32.mrb[62].mxu0 }
 0x3ac   :  { %v1792_v0 = vadd.f32 %v1791_v4, %v10635_v7  ;;  %v1873_v1 = vadd.f32 %v1872_v33, %v10638_v17  ;;  %v1793_v12 = vpop.f32.mrb[55].mxu1  ;;  %v1874_v42 = vpop.f32.mrb[63].mxu0 }
 0x3ad   :  { %v1794_v44 = vadd.f32 %v1793_v12, %v10641_v27  ;;  %v1875_v62 = vadd.f32 %v1874_v42, %v10648_v39  ;;  %3537 = vmatprep.mubr.f32.mxu1 %v1946_v28  ;;  %3610 = vmatprep.mubr.f32.mxu0 %v1948_v29 }
 0x3ae   :  { %3538 = vmatmul.mubr.f32.gmra.mrb[116].mxu1 %v1945_v8  ;;  %3611 = vmatmul.mubr.f32.gmra.mrb[124].mxu0 %v1947_v41  ;;  %v1961_v47 = vmax.f32 %v1792_v0, 0.0  ;;  %v1963_v37 = vmax.f32 %v1873_v1, 0.0 }
 0x3af   :  { %v1962_v25 = vmax.f32 %v1794_v44, 0.0  ;;  %v1964_v36 = vmax.f32 %v1875_v62, 0.0  ;;  %v1797_v14 = vpop.f32.mrb[56].mxu1  ;;  %v1878_v30 = vpop.f32.mrb[64].mxu0 }
 0x3b0   :  { %v1798_v48 = vadd.f32 %v1797_v14, %v10635_v7  ;;  %v1879_v49 = vadd.f32 %v1878_v30, %v10638_v17  ;;  %v1799_v50 = vpop.f32.mrb[57].mxu1  ;;  %v1880_v2 = vpop.f32.mrb[65].mxu0 }
 0x3b1   :  { %v1800_v51 = vadd.f32 %v1799_v50, %v10641_v27  ;;  %v1881_v54 = vadd.f32 %v1880_v2, %v10648_v39  ;;  %3542 = vmatprep.mubr.f32.mxu1 %v1962_v25  ;;  %3615 = vmatprep.mubr.f32.mxu0 %v1964_v36  ;;  %v10691_v50 = vld [vmem:[%s11691_s4] sm:$0xff] }
 0x3b2   :  { %3543 = vmatmul.mubr.f32.gmra.mrb[118].mxu1 %v1961_v47  ;;  %3616 = vmatmul.mubr.f32.gmra.mrb[126].mxu0 %v1963_v37  ;;  %v1977_v60 = vmax.f32 %v1798_v48, 0.0  ;;  %v1979_v58 = vmax.f32 %v1879_v49, 0.0 }
 0x3b3   :  { %v1978_v52 = vmax.f32 %v1800_v51, 0.0  ;;  %v1980_v56 = vmax.f32 %v1881_v54, 0.0  ;;  %v1803_v45 = vpop.f32.mrb[58].mxu1  ;;  %v1884_v59 = vpop.f32.mrb[66].mxu0 }
 0x3b4   :  { %v1804_v61 = vadd.f32 %v1803_v45, %v10635_v7  ;;  %v1885_v3 = vadd.f32 %v1884_v59, %v10638_v17  ;;  %v1805_v63 = vpop.f32.mrb[59].mxu1  ;;  %v1886_v6 = vpop.f32.mrb[67].mxu0 }
 0x3b5   :  { %v1806_v55 = vadd.f32 %v1805_v63, %v10641_v27  ;;  %v1887_v10 = vadd.f32 %v1886_v6, %v10648_v39  ;;  %3547 = vmatprep.mubr.f32.mxu1 %v1978_v52  ;;  %3620 = vmatprep.mubr.f32.mxu0 %v1980_v56 }
 0x3b6   :  { %3548 = vmatmul.mubr.f32.gmra.mrb[120].mxu1 %v1977_v60  ;;  %3621 = vmatmul.mubr.f32.gmra.mrb[128].mxu0 %v1979_v58  ;;  %v1993_v57 = vmax.f32 %v1804_v61, 0.0  ;;  %v1995_v23 = vmax.f32 %v1885_v3, 0.0 }
 0x3b7   :  { %v1994_v22 = vmax.f32 %v1806_v55, 0.0  ;;  %v1996_v13 = vmax.f32 %v1887_v10, 0.0  ;;  %v1809_v16 = vpop.f32.mrb[60].mxu1  ;;  %v1890_v19 = vpop.f32.mrb[68].mxu0 }
 0x3b8   :  { %v1810_v31 = vadd.f32 %v1809_v16, %v10635_v7  ;;  %v1891_v38 = vadd.f32 %v1890_v19, %v10638_v17  ;;  %v1811_v28 = vpop.f32.mrb[61].mxu1  ;;  %v1892_v29 = vpop.f32.mrb[69].mxu0 }
 0x3b9   :  { %v1812_v4 = vadd.f32 %v1811_v28, %v10641_v27  ;;  %v1893_v33 = vadd.f32 %v1892_v29, %v10648_v39  ;;  %3552 = vmatprep.mubr.f32.mxu1 %v1994_v22  ;;  %3625 = vmatprep.mubr.f32.mxu0 %v1996_v13 }
 0x3ba   :  { %3553 = vmatmul.mubr.f32.gmra.mrb[122].mxu1 %v1993_v57  ;;  %3626 = vmatmul.mubr.f32.gmra.mrb[130].mxu0 %v1995_v23  ;;  %v2009_v12 = vmax.f32 %v1810_v31, 0.0  ;;  %v2011_v42 = vmax.f32 %v1891_v38, 0.0 }
 0x3bb   :  { %v2010_v8 = vmax.f32 %v1812_v4, 0.0  ;;  %v2012_v41 = vmax.f32 %v1893_v33, 0.0  ;;  %v1815_v0 = vpop.f32.mrb[62].mxu1  ;;  %v1896_v1 = vpop.f32.mrb[70].mxu0 }
 0x3bc   :  { %v1816_v44 = vadd.f32 %v1815_v0, %v10635_v7  ;;  %v1897_v62 = vadd.f32 %v1896_v1, %v10638_v17  ;;  %v1817_v25 = vpop.f32.mrb[63].mxu1  ;;  %v1898_v36 = vpop.f32.mrb[71].mxu0  ;;  %v9970_v7 = vld [vmem:[%s11687_s0] sm:$0xff]  ;;  %v10686_v17 = vsub.s32 3, %v10167_v34 }
 0x3bd   :  { %v1818_v14 = vadd.f32 %v1817_v25, %v10641_v27  ;;  %v1899_v30 = vadd.f32 %v1898_v36, %v10648_v39  ;;  %3557 = vmatprep.mubr.f32.mxu1 %v2010_v8  ;;  %3630 = vmatprep.mubr.f32.mxu0 %v2012_v41 }
 0x3be   :  { %3558 = vmatmul.mubr.f32.gmra.mrb[124].mxu1 %v2009_v12  ;;  %3631 = vmatmul.mubr.f32.gmra.mrb[132].mxu0 %v2011_v42  ;;  %v2025_v48 = vmax.f32 %v1816_v44, 0.0  ;;  %v2027_v49 = vmax.f32 %v1897_v62, 0.0  ;;  %v2288_v2 = vrot.slane %v10691_v50, %v10686_v17 }
 0x3bf   :  { %v2026_v47 = vmax.f32 %v1818_v14, 0.0  ;;  %v2028_v37 = vmax.f32 %v1899_v30, 0.0 }
 0x3c1   :  { %3562 = vmatprep.mubr.f32.mxu1 %v2026_v47  ;;  %3635 = vmatprep.mubr.f32.mxu0 %v2028_v37 }
 0x3c2   :  { %3563 = vmatmul.mubr.f32.gmra.mrb[126].mxu1 %v2025_v48  ;;  %3636 = vmatmul.mubr.f32.gmra.mrb[134].mxu0 %v2027_v49 }
 0x3c3   :  { %9364 = vmatprep.mubr.f32.mxu1 %v9970_v7 }
 0x419   :  { %v8592_v27 = vpop.f32.mrb[64].mxu1  ;;  %v8632_v39 = vpop.f32.mrb[72].mxu0 }
 0x41a   :  { %v8593_v51 = vpop.f32.mrb[65].mxu1  ;;  %v8633_v54 = vpop.f32.mrb[73].mxu0 }
 0x41b   :  { %v8594_v52 = vadd.f32 %v8593_v51, %v8592_v27  ;;  %v8634_v56 = vadd.f32 %v8633_v54, %v8632_v39 }
 0x41d   :  { %v3092_v45 = vadd.f32 %v8594_v52, %v2288_v2  ;;  %v8595_v59 = vpop.f32.mrb[66].mxu1  ;;  %v8635_v60 = vpop.f32.mrb[74].mxu0 }
 0x41e   :  { %v8596_v58 = vpop.f32.mrb[67].mxu1  ;;  %v8636_v61 = vpop.f32.mrb[75].mxu0 }
 0x41f   :  { %v3165_v3 = vadd.f32 %v8634_v56, %v3092_v45  ;;  %v8597_v63 = vadd.f32 %v8596_v58, %v8595_v59  ;;  %v8637_v6 = vadd.f32 %v8636_v61, %v8635_v60 }
 0x421   :  { %v3097_v55 = vadd.f32 %v8597_v63, %v2288_v2  ;;  %v8598_v10 = vpop.f32.mrb[68].mxu1  ;;  %v8638_v22 = vpop.f32.mrb[76].mxu0 }
 0x422   :  { %v8599_v13 = vpop.f32.mrb[69].mxu1  ;;  %v8639_v16 = vpop.f32.mrb[77].mxu0 }
 0x423   :  { %v3170_v19 = vadd.f32 %v8637_v6, %v3097_v55  ;;  %v8600_v57 = vadd.f32 %v8599_v13, %v8598_v10  ;;  %v8640_v23 = vadd.f32 %v8639_v16, %v8638_v22 }
 0x425   :  { %v3102_v31 = vadd.f32 %v8600_v57, %v2288_v2  ;;  %v8601_v38 = vpop.f32.mrb[70].mxu1  ;;  %v8641_v28 = vpop.f32.mrb[78].mxu0 }
 0x426   :  { %v8602_v29 = vpop.f32.mrb[71].mxu1  ;;  %v8642_v4 = vpop.f32.mrb[79].mxu0 }
 0x427   :  { %v3175_v33 = vadd.f32 %v8640_v23, %v3102_v31  ;;  %v8603_v8 = vadd.f32 %v8602_v29, %v8601_v38  ;;  %v8643_v41 = vadd.f32 %v8642_v4, %v8641_v28 }
 0x429   :  { %v3107_v0 = vadd.f32 %v8603_v8, %v2288_v2  ;;  %v8604_v1 = vpop.f32.mrb[72].mxu1  ;;  %v8644_v12 = vpop.f32.mrb[80].mxu0 }
 0x42a   :  { %v8605_v42 = vpop.f32.mrb[73].mxu1  ;;  %v8645_v44 = vpop.f32.mrb[81].mxu0 }
 0x42b   :  { %v3180_v62 = vadd.f32 %v8643_v41, %v3107_v0  ;;  %v8606_v25 = vadd.f32 %v8605_v42, %v8604_v1  ;;  %v8646_v36 = vadd.f32 %v8645_v44, %v8644_v12 }
 0x42d   :  { %v3112_v14 = vadd.f32 %v8606_v25, %v2288_v2  ;;  %v8607_v30 = vpop.f32.mrb[74].mxu1  ;;  %v8647_v47 = vpop.f32.mrb[82].mxu0 }
 0x42e   :  { %v8608_v37 = vpop.f32.mrb[75].mxu1  ;;  %v8648_v48 = vpop.f32.mrb[83].mxu0 }
 0x42f   :  { %v3185_v49 = vadd.f32 %v8646_v36, %v3112_v14  ;;  %v8609_v7 = vadd.f32 %v8608_v37, %v8607_v30  ;;  %v8649_v27 = vadd.f32 %v8648_v48, %v8647_v47 }
 0x431   :  { %v3117_v39 = vadd.f32 %v8609_v7, %v2288_v2  ;;  %v8610_v51 = vpop.f32.mrb[76].mxu1  ;;  %v8650_v54 = vpop.f32.mrb[84].mxu0 }
 0x432   :  { %v8611_v52 = vpop.f32.mrb[77].mxu1  ;;  %v8651_v56 = vpop.f32.mrb[85].mxu0 }
 0x433   :  { %v3190_v45 = vadd.f32 %v8649_v27, %v3117_v39  ;;  %v8612_v59 = vadd.f32 %v8611_v52, %v8610_v51  ;;  %v8652_v60 = vadd.f32 %v8651_v56, %v8650_v54 }
 0x435   :  { %v3122_v58 = vadd.f32 %v8612_v59, %v2288_v2  ;;  %v8613_v61 = vpop.f32.mrb[78].mxu1  ;;  %v8653_v63 = vpop.f32.mrb[86].mxu0 }
 0x436   :  { %v8614_v6 = vpop.f32.mrb[79].mxu1  ;;  %v8654_v55 = vpop.f32.mrb[87].mxu0 }
 0x437   :  { %v3195_v10 = vadd.f32 %v8652_v60, %v3122_v58  ;;  %v8615_v22 = vadd.f32 %v8614_v6, %v8613_v61  ;;  %v8655_v13 = vadd.f32 %v8654_v55, %v8653_v63 }
 0x439   :  { %v3127_v16 = vadd.f32 %v8615_v22, %v2288_v2  ;;  %v8672_v57 = vpop.f32.mrb[80].mxu1  ;;  %v8712_v23 = vpop.f32.mrb[88].mxu0 }
 0x43a   :  { %v8673_v31 = vpop.f32.mrb[81].mxu1  ;;  %v8713_v38 = vpop.f32.mrb[89].mxu0 }
 0x43b   :  { %v3200_v28 = vadd.f32 %v8655_v13, %v3127_v16  ;;  %v8674_v29 = vadd.f32 %v8673_v31, %v8672_v57  ;;  %v8714_v4 = vadd.f32 %v8713_v38, %v8712_v23 }
 0x43d   :  { %v3238_v8 = vadd.f32 %v8674_v29, %v3165_v3  ;;  %v8675_v41 = vpop.f32.mrb[82].mxu1  ;;  %v8715_v0 = vpop.f32.mrb[90].mxu0 }
 0x43e   :  { %v8676_v1 = vpop.f32.mrb[83].mxu1  ;;  %v8716_v12 = vpop.f32.mrb[91].mxu0 }
 0x43f   :  { %v3311_v42 = vadd.f32 %v8714_v4, %v3238_v8  ;;  %v8677_v44 = vadd.f32 %v8676_v1, %v8675_v41  ;;  %v8717_v25 = vadd.f32 %v8716_v12, %v8715_v0 }
 0x441   :  { %v3243_v36 = vadd.f32 %v8677_v44, %v3170_v19  ;;  %v8678_v14 = vpop.f32.mrb[84].mxu1  ;;  %v8718_v30 = vpop.f32.mrb[92].mxu0 }
 0x442   :  { %v8679_v47 = vpop.f32.mrb[85].mxu1  ;;  %v8719_v2 = vpop.f32.mrb[93].mxu0 }
 0x443   :  { %v3316_v37 = vadd.f32 %v8717_v25, %v3243_v36  ;;  %v8680_v48 = vadd.f32 %v8679_v47, %v8678_v14  ;;  %v8720_v7 = vadd.f32 %v8719_v2, %v8718_v30 }
 0x445   :  { %v3248_v27 = vadd.f32 %v8680_v48, %v3175_v33  ;;  %v8681_v39 = vpop.f32.mrb[86].mxu1  ;;  %v8721_v51 = vpop.f32.mrb[94].mxu0 }
 0x446   :  { %v8682_v54 = vpop.f32.mrb[87].mxu1  ;;  %v8722_v3 = vpop.f32.mrb[95].mxu0 }
 0x447   :  { %v3321_v52 = vadd.f32 %v8720_v7, %v3248_v27  ;;  %v8683_v56 = vadd.f32 %v8682_v54, %v8681_v39  ;;  %v8723_v59 = vadd.f32 %v8722_v3, %v8721_v51 }
 0x449   :  { %v3253_v60 = vadd.f32 %v8683_v56, %v3180_v62  ;;  %v8684_v58 = vpop.f32.mrb[88].mxu1  ;;  %v8724_v61 = vpop.f32.mrb[96].mxu0 }
 0x44a   :  { %v8685_v63 = vpop.f32.mrb[89].mxu1  ;;  %v8725_v19 = vpop.f32.mrb[97].mxu0 }
 0x44b   :  { %v3326_v6 = vadd.f32 %v8723_v59, %v3253_v60  ;;  %v8686_v55 = vadd.f32 %v8685_v63, %v8684_v58  ;;  %v8726_v22 = vadd.f32 %v8725_v19, %v8724_v61 }
 0x44d   :  { %v3258_v13 = vadd.f32 %v8686_v55, %v3185_v49  ;;  %v8687_v16 = vpop.f32.mrb[90].mxu1  ;;  %v8727_v57 = vpop.f32.mrb[98].mxu0 }
 0x44e   :  { %v8688_v23 = vpop.f32.mrb[91].mxu1  ;;  %v8728_v33 = vpop.f32.mrb[99].mxu0 }
 0x44f   :  { %v3331_v31 = vadd.f32 %v8726_v22, %v3258_v13  ;;  %v8689_v38 = vadd.f32 %v8688_v23, %v8687_v16  ;;  %v8729_v29 = vadd.f32 %v8728_v33, %v8727_v57 }
 0x451   :  { %v3263_v4 = vadd.f32 %v8689_v38, %v3190_v45  ;;  %v8690_v8 = vpop.f32.mrb[92].mxu1  ;;  %v8730_v41 = vpop.f32.mrb[100].mxu0 }
 0x452   :  { %v8691_v0 = vpop.f32.mrb[93].mxu1  ;;  %v8731_v62 = vpop.f32.mrb[101].mxu0 }
 0x453   :  { %v3336_v1 = vadd.f32 %v8729_v29, %v3263_v4  ;;  %v8692_v12 = vadd.f32 %v8691_v0, %v8690_v8  ;;  %v8732_v44 = vadd.f32 %v8731_v62, %v8730_v41 }
 0x455   :  { %v3268_v25 = vadd.f32 %v8692_v12, %v3195_v10  ;;  %v8693_v36 = vpop.f32.mrb[94].mxu1  ;;  %v8733_v14 = vpop.f32.mrb[102].mxu0 }
 0x456   :  { %v8694_v30 = vpop.f32.mrb[95].mxu1  ;;  %v8734_v49 = vpop.f32.mrb[103].mxu0 }
 0x457   :  { %v3341_v47 = vadd.f32 %v8732_v44, %v3268_v25  ;;  %v8695_v2 = vadd.f32 %v8694_v30, %v8693_v36  ;;  %v8735_v48 = vadd.f32 %v8734_v49, %v8733_v14 }
 0x459   :  { %v3273_v7 = vadd.f32 %v8695_v2, %v3200_v28  ;;  %v8752_v27 = vpop.f32.mrb[96].mxu1  ;;  %v8792_v39 = vpop.f32.mrb[104].mxu0 }
 0x45a   :  { %v8753_v51 = vpop.f32.mrb[97].mxu1  ;;  %v8793_v45 = vpop.f32.mrb[105].mxu0 }
 0x45b   :  { %v3346_v54 = vadd.f32 %v8735_v48, %v3273_v7  ;;  %v8754_v3 = vadd.f32 %v8753_v51, %v8752_v27  ;;  %v8794_v56 = vadd.f32 %v8793_v45, %v8792_v39 }
 0x45d   :  { %v3384_v59 = vadd.f32 %v8754_v3, %v3311_v42  ;;  %v8755_v60 = vpop.f32.mrb[98].mxu1  ;;  %v8795_v58 = vpop.f32.mrb[106].mxu0 }
 0x45e   :  { %v8756_v61 = vpop.f32.mrb[99].mxu1  ;;  %v8796_v10 = vpop.f32.mrb[107].mxu0 }
 0x45f   :  { %v3457_v63 = vadd.f32 %v8794_v56, %v3384_v59  ;;  %v8757_v19 = vadd.f32 %v8756_v61, %v8755_v60  ;;  %v8797_v55 = vadd.f32 %v8796_v10, %v8795_v58 }
 0x461   :  { %v3389_v22 = vadd.f32 %v8757_v19, %v3316_v37  ;;  %v8758_v13 = vpop.f32.mrb[100].mxu1  ;;  %v8798_v16 = vpop.f32.mrb[108].mxu0 }
 0x462   :  { %v8759_v57 = vpop.f32.mrb[101].mxu1  ;;  %v8799_v28 = vpop.f32.mrb[109].mxu0 }
 0x463   :  { %v3462_v23 = vadd.f32 %v8797_v55, %v3389_v22  ;;  %v8760_v33 = vadd.f32 %v8759_v57, %v8758_v13  ;;  %v8800_v38 = vadd.f32 %v8799_v28, %v8798_v16 }
 0x465   :  { %v3394_v29 = vadd.f32 %v8760_v33, %v3321_v52  ;;  %v8761_v4 = vpop.f32.mrb[102].mxu1  ;;  %v8801_v8 = vpop.f32.mrb[110].mxu0 }
 0x466   :  { %v8762_v41 = vpop.f32.mrb[103].mxu1  ;;  %v8802_v42 = vpop.f32.mrb[111].mxu0 }
 0x467   :  { %v3467_v0 = vadd.f32 %v8800_v38, %v3394_v29  ;;  %v8763_v62 = vadd.f32 %v8762_v41, %v8761_v4  ;;  %v8803_v12 = vadd.f32 %v8802_v42, %v8801_v8 }
 0x469   :  { %v3399_v44 = vadd.f32 %v8763_v62, %v3326_v6  ;;  %v8764_v25 = vpop.f32.mrb[104].mxu1  ;;  %v8804_v36 = vpop.f32.mrb[112].mxu0 }
 0x46a   :  { %v8765_v14 = vpop.f32.mrb[105].mxu1  ;;  %v8805_v37 = vpop.f32.mrb[113].mxu0 }
 0x46b   :  { %v10695_v30 = vadd.f32 %v8803_v12, %v3399_v44  ;;  %v8766_v49 = vadd.f32 %v8765_v14, %v8764_v25  ;;  %v8806_v2 = vadd.f32 %v8805_v37, %v8804_v36 }
 0x46d   :  { %v3404_v48 = vadd.f32 %v8766_v49, %v3331_v31  ;;  %v8767_v7 = vpop.f32.mrb[106].mxu1  ;;  %v8807_v27 = vpop.f32.mrb[114].mxu0 }
 0x46e   :  { %v8768_v52 = vpop.f32.mrb[107].mxu1  ;;  %v8808_v39 = vpop.f32.mrb[115].mxu0 }
 0x46f   :  { %v10697_v51 = vadd.f32 %v8806_v2, %v3404_v48  ;;  %v8769_v45 = vadd.f32 %v8768_v52, %v8767_v7  ;;  %v8809_v3 = vadd.f32 %v8808_v39, %v8807_v27 }
 0x471   :  { %v3409_v56 = vadd.f32 %v8769_v45, %v3336_v1  ;;  %v8770_v59 = vpop.f32.mrb[108].mxu1  ;;  %v8810_v6 = vpop.f32.mrb[116].mxu0 }
 0x472   :  { %v8771_v60 = vpop.f32.mrb[109].mxu1  ;;  %v8811_v58 = vpop.f32.mrb[117].mxu0 }
 0x473   :  { %v10699_v61 = vadd.f32 %v8809_v3, %v3409_v56  ;;  %v8772_v10 = vadd.f32 %v8771_v60, %v8770_v59  ;;  %v8812_v19 = vadd.f32 %v8811_v58, %v8810_v6 }
 0x475   :  { %v3414_v55 = vadd.f32 %v8772_v10, %v3341_v47  ;;  %v8773_v22 = vpop.f32.mrb[110].mxu1  ;;  %v8813_v31 = vpop.f32.mrb[118].mxu0 }
 0x476   :  { %v8774_v13 = vpop.f32.mrb[111].mxu1  ;;  %v8814_v16 = vpop.f32.mrb[119].mxu0 }
 0x477   :  { %v10701_v57 = vadd.f32 %v8812_v19, %v3414_v55  ;;  %v8775_v28 = vadd.f32 %v8774_v13, %v8773_v22  ;;  %v8815_v33 = vadd.f32 %v8814_v16, %v8813_v31 }
 0x479   :  { %v3419_v38 = vadd.f32 %v8775_v28, %v3346_v54  ;;  %v8832_v29 = vpop.f32.mrb[112].mxu1  ;;  %v8872_v1 = vpop.f32.mrb[120].mxu0 }
 0x47a   :  { %v8833_v4 = vpop.f32.mrb[113].mxu1  ;;  %v8873_v8 = vpop.f32.mrb[121].mxu0 }
 0x47b   :  { %v10703_v41 = vadd.f32 %v8815_v33, %v3419_v38  ;;  %v8834_v42 = vadd.f32 %v8833_v4, %v8832_v29  ;;  %v8874_v62 = vadd.f32 %v8873_v8, %v8872_v1 }
 0x47d   :  { %v3530_v12 = vadd.f32 %v8834_v42, %v3457_v63  ;;  %v8835_v44 = vpop.f32.mrb[114].mxu1  ;;  %v8875_v47 = vpop.f32.mrb[122].mxu0 }
 0x47e   :  { %v8836_v25 = vpop.f32.mrb[115].mxu1  ;;  %v8876_v36 = vpop.f32.mrb[123].mxu0 }
 0x47f   :  { %v3603_v14 = vadd.f32 %v8874_v62, %v3530_v12  ;;  %v8837_v37 = vadd.f32 %v8836_v25, %v8835_v44  ;;  %v8877_v49 = vadd.f32 %v8876_v36, %v8875_v47 }
 0x481   :  { %v3535_v2 = vadd.f32 %v8837_v37, %v3462_v23  ;;  %v8838_v48 = vpop.f32.mrb[116].mxu1  ;;  %v8878_v7 = vpop.f32.mrb[124].mxu0  ;;  %v10706_v54 = vadd.f32 %v3603_v14, %v10291_v46 }
 0x482   :  { %v8839_v27 = vpop.f32.mrb[117].mxu1  ;;  %v8879_v52 = vpop.f32.mrb[125].mxu0 }
 0x483   :  { %v3608_v39 = vadd.f32 %v8877_v49, %v3535_v2  ;;  %v8840_v45 = vadd.f32 %v8839_v27, %v8838_v48  ;;  %v8880_v3 = vadd.f32 %v8879_v52, %v8878_v7  ;;  %3649 = vadd.xlane.f32.xlu0 %v10706_v54 }
 0x485   :  { %v3540_v63 = vadd.f32 %v8840_v45, %v3467_v0  ;;  %v8841_v56 = vpop.f32.mrb[118].mxu1  ;;  %v8881_v59 = vpop.f32.mrb[126].mxu0  ;;  %v10710_v6 = vadd.f32 %v3608_v39, %v10299_v43 }
 0x486   :  { %v8842_v60 = vpop.f32.mrb[119].mxu1  ;;  %v8882_v23 = vpop.f32.mrb[127].mxu0 }
 0x487   :  { %v3613_v58 = vadd.f32 %v8880_v3, %v3540_v63  ;;  %v8843_v10 = vadd.f32 %v8842_v60, %v8841_v56  ;;  %v8883_v19 = vadd.f32 %v8882_v23, %v8881_v59  ;;  %3651 = vadd.xlane.f32.xlu1 %v10710_v6  ;;  %v3867_v63 = vld [vmem:[#allocation2 + $0x88] sm:$0xff]  ;;  %v3868_v56 = vld [vmem:[#allocation2 + $0x90] sm:$0xff]  ;;  %v3869_v60 = vld [vmem:[#allocation2 + $0x98] sm:$0xff] }
 0x488   :  { %v9500_v23 = vpack.c.bf16 %v3869_v60, %v3868_v56 }
 0x489   :  { %v3545_v46 = vadd.f32 %v8843_v10, %v10695_v30  ;;  %v8844_v55 = vpop.f32.mrb[120].mxu1  ;;  %v8884_v22 = vpop.f32.mrb[128].mxu0  ;;  %v10715_v31 = vadd.f32 %v3613_v58, %v10308_v9  ;;  %v3870_v58 = vld [vmem:[#allocation2 + $0xa0] sm:$0xff]  ;;  %v3871_v10 = vld [vmem:[#allocation2 + $0xa8] sm:$0xff] }
 0x48a   :  { %v8845_v0 = vpop.f32.mrb[121].mxu1  ;;  %v8885_v13 = vpop.f32.mrb[129].mxu0 }
 0x48b   :  { %v3618_v16 = vadd.f32 %v8883_v19, %v3545_v46  ;;  %v8846_v28 = vadd.f32 %v8845_v0, %v8844_v55  ;;  %v8886_v43 = vadd.f32 %v8885_v13, %v8884_v22  ;;  %3653 = vadd.xlane.f32.xlu0 %v10715_v31  ;;  %v3873_v19 = vld [vmem:[#allocation2 + $0xb8] sm:$0xff]  ;;  %v3874_v46 = vld [vmem:[#allocation2 + $0xc0] sm:$0xff]  ;;  %v3875_v55 = vld [vmem:[#allocation2 + $0xc8] sm:$0xff] }
 0x48c   :  { %v9512_v22 = vpack.c.bf16 %v3875_v55, %v3874_v46  ;;  %v3876_v0 = vld [vmem:[#allocation2 + $0xd0] sm:$0xff]  ;;  %v3877_v13 = vld [vmem:[#allocation2 + $0xd8] sm:$0xff] }
 0x48d   :  { %v3550_v33 = vadd.f32 %v8846_v28, %v10697_v51  ;;  %v8847_v38 = vpop.f32.mrb[122].mxu1  ;;  %v8887_v29 = vpop.f32.mrb[130].mxu0  ;;  %v10720_v1 = vadd.f32 %v3618_v16, %v10317_v21  ;;  %v9516_v16 = vpack.c.bf16 %v3877_v13, %v3876_v0  ;;  %v3878_v28 = vld [vmem:[#allocation2 + $0xe0] sm:$0xff] }
 0x48e   :  { %v8848_v30 = vpop.f32.mrb[123].mxu1  ;;  %v8888_v4 = vpop.f32.mrb[131].mxu0 }
 0x48f   :  { %v3623_v8 = vadd.f32 %v8886_v43, %v3550_v33  ;;  %v8849_v42 = vadd.f32 %v8848_v30, %v8847_v38  ;;  %v8889_v9 = vadd.f32 %v8888_v4, %v8887_v29  ;;  %3655 = vadd.xlane.f32.xlu1 %v10720_v1  ;;  %v3879_v43 = vld [vmem:[#allocation2 + $0xe8] sm:$0xff]  ;;  %v3880_v38 = vld [vmem:[#allocation2 + $0xf0] sm:$0xff]  ;;  %v3881_v29 = vld [vmem:[#allocation2 + $0xf8] sm:$0xff] }
 0x490   :  { %v9520_v33 = vpack.c.bf16 %v3879_v43, %v3878_v28  ;;  %v9524_v30 = vpack.c.bf16 %v3881_v29, %v3880_v38  ;;  %v10745_v4 = vld [vmem:[%s11687_s0 + $0x8] sm:$0xff] }
 0x491   :  { %v3555_v62 = vadd.f32 %v8849_v42, %v10699_v61  ;;  %v8850_v12 = vpop.f32.mrb[124].mxu1  ;;  %v8890_v44 = vpop.f32.mrb[132].mxu0  ;;  %v10725_v47 = vadd.f32 %v3623_v8, %v10326_v40  ;;  %v10751_v8 = vld [vmem:[%s11687_s0 + $0x10] sm:$0xff]  ;;  %v10757_v42 = vld [vmem:[%s11687_s0 + $0x18] sm:$0xff] }
 0x492   :  { %v8851_v51 = vpop.f32.mrb[125].mxu1  ;;  %v8891_v25 = vpop.f32.mrb[133].mxu0 }
 0x493   :  { %v3628_v36 = vadd.f32 %v8889_v9, %v3555_v62  ;;  %v8852_v14 = vadd.f32 %v8851_v51, %v8850_v12  ;;  %v8892_v21 = vadd.f32 %v8891_v25, %v8890_v44  ;;  %3657 = vadd.xlane.f32.xlu0 %v10725_v47  ;;  %v10763_v9 = vld [vmem:[%s11687_s0 + $0x20] sm:$0xff]  ;;  %v10769_v62 = vld [vmem:[%s11687_s0 + $0x28] sm:$0xff]  ;;  %v10775_v12 = vld [vmem:[%s11687_s0 + $0x30] sm:$0xff] }
 0x494   :  { %v10781_v44 = vld [vmem:[%s11687_s0 + $0x38] sm:$0xff] }
 0x495   :  { %v3560_v37 = vadd.f32 %v8852_v14, %v10701_v57  ;;  %v8853_v49 = vpop.f32.mrb[126].mxu1  ;;  %v8893_v2 = vpop.f32.mrb[134].mxu0  ;;  %v10730_v48 = vadd.f32 %v3628_v36, %v10335_v53  ;;  %v3866_v53 = vld [vmem:[#allocation2 + $0x80] sm:$0xff] }
 0x496   :  { %v8854_v61 = vpop.f32.mrb[127].mxu1  ;;  %v8894_v7 = vpop.f32.mrb[135].mxu0  ;;  %v9496_v59 = vpack.c.bf16 %v3867_v63, %v3866_v53 }
 0x497   :  { %v3633_v27 = vadd.f32 %v8892_v21, %v3560_v37  ;;  %v8855_v52 = vadd.f32 %v8854_v61, %v8853_v49  ;;  %v8895_v40 = vadd.f32 %v8894_v7, %v8893_v2  ;;  %3659 = vadd.xlane.f32.xlu1 %v10730_v48 }
 0x498   :  { %9497 = vmatprep.subr.bf16.mxu1 %v9496_v59 }
 0x499   :  { %v3565_v39 = vadd.f32 %v8855_v52, %v10703_v41  ;;  %v10735_v45 = vadd.f32 %v3633_v27, %v10344_v5  ;;  %9499 = vmatpush3.bf16.msra.mxu1 %v9496_v59  ;;  %v9504_v5 = vpack.c.bf16 %v3871_v10, %v3870_v58  ;;  %v3872_v41 = vld [vmem:[#allocation2 + $0xb0] sm:$0xff] }
 0x49a   :  { %9501 = vmatprep.subr.bf16.mxu1 %v9500_v23 }
 0x49b   :  { %v3638_v3 = vadd.f32 %v8895_v40, %v3565_v39  ;;  %3661 = vadd.xlane.f32.xlu0 %v10735_v45 }
 0x49d   :  { %v10739_v57 = vadd.f32 %v3638_v3, %v10352_v11  ;;  %9503 = vmatpush3.bf16.msra.mxu1 %v9500_v23  ;;  %v9508_v11 = vpack.c.bf16 %v3873_v19, %v3872_v41 }
 0x49e   :  { %9505 = vmatprep.subr.bf16.mxu1 %v9504_v5 }
 0x49f   :  { %3663 = vadd.xlane.f32.xlu1 %v10739_v57 }
 0x4a1   :  { %9507 = vmatpush3.bf16.msra.mxu1 %v9504_v5 }
 0x4a2   :  { %9509 = vmatprep.subr.bf16.mxu1 %v9508_v11 }
 0x4a5   :  { %9511 = vmatpush3.bf16.msra.mxu1 %v9508_v11 }
 0x4a6   :  { %9513 = vmatprep.subr.bf16.mxu1 %v9512_v22 }
 0x4a9   :  { %9515 = vmatpush3.bf16.msra.mxu1 %v9512_v22 }
 0x4aa   :  { %9517 = vmatprep.subr.bf16.mxu1 %v9516_v16 }
 0x4ad   :  { %9519 = vmatpush3.bf16.msra.mxu1 %v9516_v16 }
 0x4ae   :  { %9521 = vmatprep.subr.bf16.mxu1 %v9520_v33 }
 0x4b1   :  { %9523 = vmatpush3.bf16.msra.mxu1 %v9520_v33 }
 0x4b2   :  { %9525 = vmatprep.subr.bf16.mxu1 %v9524_v30 }
 0x4b5   :  { %9527 = vmatpush3.bf16.msra.mxu1 %v9524_v30 }
 0x4b8   :  { %9365 = vmatmul.mubr.f32.vlgmr.msra.gmra.mrb[128].mxu1 %v10745_v4 }
 0x4b9   :  { %9367 = vmatprep.mubr.f32.mxu1 %v10751_v8 }
 0x4bc   :  { %9368 = vmatmul.mubr.f32.gmra.mrb[130].mxu1 %v10757_v42 }
 0x4bd   :  { %9370 = vmatprep.mubr.f32.mxu1 %v10763_v9 }
 0x4c0   :  { %9371 = vmatmul.mubr.f32.gmra.mrb[132].mxu1 %v10769_v62 }
 0x4c1   :  { %9373 = vmatprep.mubr.f32.mxu1 %v10775_v12 }
 0x4c4   :  { %9374 = vmatmul.mubr.f32.gmra.mrb[134].mxu1 %v10781_v44 }
 0x4c5   :  { %5318 = vmatprep.mubr.f32.mxu1 %v10065_v32 }
 0x510   :  { %v3650_v51 = vpop.xlane.xlu0 %3649 }
 0x511   :  { %v3665_v25 = vmul.f32 0.01, %v3650_v51 }
 0x513   :  { %v3673_v36 = vsub.f32 %v10706_v54, %v3665_v25 }
 0x514   :  { %v3652_v14 = vpop.xlane.xlu1 %3651 }
 0x515   :  { %v3666_v21 = vmul.f32 0.01, %v3652_v14  ;;  %v3681_v37 = vmul.f32 %v10208_v26, %v3673_v36  ;;  %v10830_v14 = vsub.s32 5, %v10167_v34 }
 0x517   :  { %v3674_v49 = vsub.f32 %v10710_v6, %v3666_v21  ;;  %v3689_v2 = vmul.f32 %v3681_v37, %v3681_v37 }
 0x518   :  { %v3654_v61 = vpop.xlane.xlu0 %3653 }
 0x519   :  { %v3667_v7 = vmul.f32 0.01, %v3654_v61  ;;  %3697 = vadd.xlane.f32.xlu0 %v3689_v2  ;;  %v10789_v27 = vmul.f32 %v10208_v26, %v3674_v49  ;;  %v3748_v49 = vrot.slane %v10691_v50, %v10455_v20 }
 0x51b   :  { %v3675_v52 = vsub.f32 %v10715_v31, %v3667_v7  ;;  %v3690_v40 = vmul.f32 %v10789_v27, %v10789_v27 }
 0x51c   :  { %v3656_v39 = vpop.xlane.xlu1 %3655 }
 0x51d   :  { %v3668_v54 = vmul.f32 0.01, %v3656_v39  ;;  %3699 = vadd.xlane.f32.xlu1 %v3690_v40  ;;  %v10795_v3 = vmul.f32 %v10208_v26, %v3675_v52  ;;  %v3760_v40 = vrot.slane %v10691_v50, %v10830_v14 }
 0x51f   :  { %v3676_v6 = vsub.f32 %v10720_v1, %v3668_v54  ;;  %v3691_v53 = vmul.f32 %v10795_v3, %v10795_v3 }
 0x520   :  { %v3658_v63 = vpop.xlane.xlu0 %3657 }
 0x521   :  { %v3669_v56 = vmul.f32 0.01, %v3658_v63  ;;  %3701 = vadd.xlane.f32.xlu0 %v3691_v53  ;;  %v10801_v59 = vmul.f32 %v10208_v26, %v3676_v6 }
 0x523   :  { %v3677_v31 = vsub.f32 %v10725_v47, %v3669_v56  ;;  %v3692_v60 = vmul.f32 %v10801_v59, %v10801_v59 }
 0x524   :  { %v3660_v23 = vpop.xlane.xlu1 %3659 }
 0x525   :  { %v3670_v58 = vmul.f32 0.01, %v3660_v23  ;;  %3703 = vadd.xlane.f32.xlu1 %v3692_v60  ;;  %v10807_v10 = vmul.f32 %v10208_v26, %v3677_v31 }
 0x527   :  { %v3678_v1 = vsub.f32 %v10730_v48, %v3670_v58  ;;  %v3693_v5 = vmul.f32 %v10807_v10, %v10807_v10 }
 0x528   :  { %v3662_v41 = vpop.xlane.xlu0 %3661 }
 0x529   :  { %v3671_v19 = vmul.f32 0.01, %v3662_v41  ;;  %3705 = vadd.xlane.f32.xlu0 %v3693_v5  ;;  %v10813_v11 = vmul.f32 %v10208_v26, %v3678_v1 }
 0x52b   :  { %v3679_v47 = vsub.f32 %v10735_v45, %v3671_v19  ;;  %v3694_v46 = vmul.f32 %v10813_v11, %v10813_v11 }
 0x52c   :  { %v3664_v55 = vpop.xlane.xlu1 %3663 }
 0x52d   :  { %v3672_v22 = vmul.f32 0.01, %v3664_v55  ;;  %3707 = vadd.xlane.f32.xlu1 %v3694_v46  ;;  %v10819_v0 = vmul.f32 %v10208_v26, %v3679_v47 }
 0x52f   :  { %v3680_v48 = vsub.f32 %v10739_v57, %v3672_v22  ;;  %v3695_v13 = vmul.f32 %v10819_v0, %v10819_v0 }
 0x531   :  { %3709 = vadd.xlane.f32.xlu0 %v3695_v13  ;;  %v10825_v16 = vmul.f32 %v10208_v26, %v3680_v48 }
 0x533   :  { %v3696_v45 = vmul.f32 %v10825_v16, %v10825_v16 }
 0x535   :  { %3711 = vadd.xlane.f32.xlu1 %v3696_v45 }
 0x5a6   :  { %v3698_v28 = vpop.xlane.xlu0 %3697 }
 0x5a7   :  { %v3713_v43 = vmul.f32 0.01, %v3698_v28 }
 0x5a9   :  { %v3721_v33 = vadd.f32 1e-05, %v3713_v43 }
 0x5aa   :  { %v3700_v38 = vpop.xlane.xlu1 %3699 }
 0x5ab   :  { %9873 = vrsqrt.f32 %v3721_v33  ;;  %v3714_v29 = vmul.f32 0.01, %v3700_v38 }
 0x5ad   :  { %v3722_v30 = vadd.f32 1e-05, %v3714_v29 }
 0x5ae   :  { %v3702_v51 = vpop.xlane.xlu0 %3701 }
 0x5af   :  { %9875 = vrsqrt.f32 %v3722_v30  ;;  %v3715_v57 = vmul.f32 0.01, %v3702_v51 }
 0x5b1   :  { %v3723_v25 = vadd.f32 1e-05, %v3715_v57 }
 0x5b2   :  { %v3704_v36 = vpop.xlane.xlu1 %3703 }
 0x5b3   :  { %9877 = vrsqrt.f32 %v3723_v25  ;;  %v3716_v21 = vmul.f32 0.01, %v3704_v36 }
 0x5b5   :  { %v9874_v2 = vpop.eup %9873  ;;  %v3724_v61 = vadd.f32 1e-05, %v3716_v21 }
 0x5b6   :  { %v3706_v7 = vpop.xlane.xlu0 %3705  ;;  %v3737_v52 = vmul.f32 %v9874_v2, %v3681_v37 }
 0x5b7   :  { %9879 = vrsqrt.f32 %v3724_v61  ;;  %v3717_v39 = vmul.f32 0.01, %v3706_v7 }
 0x5b8   :  { %v3749_v54 = vmul.f32 %v3748_v49, %v3737_v52  ;;  %v10867_v52 = vpop.f32.mrb[128].mxu1 }
 0x5b9   :  { %v9876_v6 = vpop.eup %9875  ;;  %v3725_v53 = vadd.f32 1e-05, %v3717_v39  ;;  %v10869_v39 = vpop.f32.mrb[129].mxu1 }
 0x5ba   :  { %v3708_v63 = vpop.xlane.xlu1 %3707  ;;  %v10836_v56 = vadd.f32 %v3760_v40, %v3749_v54  ;;  %v3738_v31 = vmul.f32 %v9876_v6, %v10789_v27 }
 0x5bb   :  { %9881 = vrsqrt.f32 %v3725_v53  ;;  %v3718_v60 = vmul.f32 0.01, %v3708_v63 }
 0x5bc   :  { %3769 = vadd.xlane.f32.xlu0 %v10836_v56  ;;  %v3750_v23 = vmul.f32 %v3748_v49, %v3738_v31  ;;  %v4122_v31 = vld [vmem:[#allocation2 + $0x110] sm:$0xff] }
 0x5bd   :  { %v9878_v58 = vpop.eup %9877  ;;  %v3726_v37 = vadd.f32 1e-05, %v3718_v60 }
 0x5be   :  { %v3710_v1 = vpop.xlane.xlu0 %3709  ;;  %v10840_v5 = vadd.f32 %v3760_v40, %v3750_v23  ;;  %v3739_v41 = vmul.f32 %v9878_v58, %v10795_v3  ;;  %v4123_v23 = vld [vmem:[#allocation2 + $0x118] sm:$0xff] }
 0x5bf   :  { %9883 = vrsqrt.f32 %v3726_v37  ;;  %v3719_v19 = vmul.f32 0.01, %v3710_v1  ;;  %v9532_v58 = vpack.c.bf16 %v4123_v23, %v4122_v31  ;;  %v4124_v37 = vld [vmem:[#allocation2 + $0x120] sm:$0xff]  ;;  %v4125_v1 = vld [vmem:[#allocation2 + $0x128] sm:$0xff]  ;;  %v4127_v31 = vld [vmem:[#allocation2 + $0x138] sm:$0xff] }
 0x5c0   :  { %3771 = vadd.xlane.f32.xlu1 %v10840_v5  ;;  %v3751_v47 = vmul.f32 %v3748_v49, %v3739_v41  ;;  %v9536_v41 = vpack.c.bf16 %v4125_v1, %v4124_v37 }
 0x5c1   :  { %v9880_v46 = vpop.eup %9879  ;;  %v3727_v55 = vadd.f32 1e-05, %v3719_v19 }
 0x5c2   :  { %v3712_v27 = vpop.xlane.xlu1 %3711  ;;  %v10844_v22 = vadd.f32 %v3760_v40, %v3751_v47  ;;  %v3740_v48 = vmul.f32 %v9880_v46, %v10801_v59 }
 0x5c3   :  { %9885 = vrsqrt.f32 %v3727_v55  ;;  %v3720_v13 = vmul.f32 0.01, %v3712_v27 }
 0x5c4   :  { %3773 = vadd.xlane.f32.xlu0 %v10844_v22  ;;  %v3752_v45 = vmul.f32 %v3748_v49, %v3740_v48 }
 0x5c5   :  { %v9882_v28 = vpop.eup %9881  ;;  %v3728_v43 = vadd.f32 1e-05, %v3720_v13 }
 0x5c6   :  { %v10848_v3 = vadd.f32 %v3760_v40, %v3752_v45  ;;  %v3741_v33 = vmul.f32 %v9882_v28, %v10807_v10 }
 0x5c7   :  { %9887 = vrsqrt.f32 %v3728_v43 }
 0x5c8   :  { %3775 = vadd.xlane.f32.xlu1 %v10848_v3  ;;  %v3753_v38 = vmul.f32 %v3748_v49, %v3741_v33 }
 0x5c9   :  { %v9884_v29 = vpop.eup %9883 }
 0x5ca   :  { %v10852_v30 = vadd.f32 %v3760_v40, %v3753_v38  ;;  %v3742_v59 = vmul.f32 %v9884_v29, %v10813_v11 }
 0x5cc   :  { %3777 = vadd.xlane.f32.xlu0 %v10852_v30  ;;  %v3754_v51 = vmul.f32 %v3748_v49, %v3742_v59 }
 0x5cd   :  { %v9886_v57 = vpop.eup %9885 }
 0x5ce   :  { %v10856_v25 = vadd.f32 %v3760_v40, %v3754_v51  ;;  %v3743_v36 = vmul.f32 %v9886_v57, %v10819_v0  ;;  %v10871_v0 = vpop.f32.mrb[130].mxu1 }
 0x5cf   :  { %v10873_v54 = vpop.f32.mrb[131].mxu1 }
 0x5d0   :  { %3779 = vadd.xlane.f32.xlu1 %v10856_v25  ;;  %v3755_v10 = vmul.f32 %v3748_v49, %v3743_v36  ;;  %v10875_v6 = vpop.f32.mrb[132].mxu1 }
 0x5d1   :  { %v9888_v21 = vpop.eup %9887  ;;  %v10877_v53 = vpop.f32.mrb[133].mxu1 }
 0x5d2   :  { %v10860_v2 = vadd.f32 %v3760_v40, %v3755_v10  ;;  %v3744_v61 = vmul.f32 %v9888_v21, %v10825_v16  ;;  %v10879_v16 = vpop.f32.mrb[134].mxu1 }
 0x5d3   :  { %v10881_v63 = vpop.f32.mrb[135].mxu1 }
 0x5d4   :  { %3781 = vadd.xlane.f32.xlu0 %v10860_v2  ;;  %v3756_v7 = vmul.f32 %v3748_v49, %v3744_v61  ;;  %v4120_v49 = vld [vmem:[#allocation2 + $0x100] sm:$0xff] }
 0x5d6   :  { %v10864_v11 = vadd.f32 %v3760_v40, %v3756_v7  ;;  %v4121_v40 = vld [vmem:[#allocation2 + $0x108] sm:$0xff] }
 0x5d7   :  { %v9528_v60 = vpack.c.bf16 %v4121_v40, %v4120_v49 }
 0x5d8   :  { %3783 = vadd.xlane.f32.xlu1 %v10864_v11 }
 0x5d9   :  { %9529 = vmatprep.subr.bf16.mxu0 %v9528_v60 }
 0x5da   :  { %9531 = vmatpush3.bf16.msra.mxu0 %v9528_v60 }
 0x5db   :  { %9533 = vmatprep.subr.bf16.mxu0 %v9532_v58 }
 0x5de   :  { %9535 = vmatpush3.bf16.msra.mxu0 %v9532_v58 }
 0x5df   :  { %9537 = vmatprep.subr.bf16.mxu0 %v9536_v41 }
 0x5e2   :  { %9539 = vmatpush3.bf16.msra.mxu0 %v9536_v41  ;;  %v3885_v41 = vrot.slane %v10691_v50, %v10461_v24  ;;  %v4130_v50 = vld [vmem:[#allocation2 + $0x150] sm:$0xff] }
 0x649   :  { %v3770_v19 = vpop.xlane.xlu0 %3769 }
 0x64a   :  { %v3785_v47 = vmul.f32 0.01, %v3770_v19  ;;  %v4128_v19 = vld [vmem:[#allocation2 + $0x140] sm:$0xff] }
 0x64c   :  { %v3793_v46 = vsub.f32 %v10836_v56, %v3785_v47  ;;  %v4129_v47 = vld [vmem:[#allocation2 + $0x148] sm:$0xff] }
 0x64d   :  { %v3772_v55 = vpop.xlane.xlu1 %3771 }
 0x64e   :  { %v3786_v27 = vmul.f32 0.01, %v3772_v55  ;;  %v10885_v48 = vmul.f32 %v10208_v26, %v3793_v46  ;;  %v9544_v55 = vpack.c.bf16 %v4129_v47, %v4128_v19 }
 0x650   :  { %v3794_v13 = vsub.f32 %v10840_v5, %v3786_v27  ;;  %v3809_v45 = vmul.f32 %v10885_v48, %v10885_v48 }
 0x651   :  { %v3774_v28 = vpop.xlane.xlu0 %3773 }
 0x652   :  { %v3787_v43 = vmul.f32 0.01, %v3774_v28  ;;  %3817 = vadd.xlane.f32.xlu0 %v3809_v45  ;;  %v10891_v33 = vmul.f32 %v10208_v26, %v3794_v13  ;;  %v3953_v45 = vadd.f32 %v10869_v39, %v3885_v41 }
 0x654   :  { %v3795_v38 = vsub.f32 %v10844_v22, %v3787_v43  ;;  %v3810_v56 = vmul.f32 %v10891_v33, %v10891_v33  ;;  %v4131_v43 = vld [vmem:[#allocation2 + $0x158] sm:$0xff] }
 0x655   :  { %v3776_v29 = vpop.xlane.xlu1 %3775 }
 0x656   :  { %v3788_v59 = vmul.f32 0.01, %v3776_v29  ;;  %3819 = vadd.xlane.f32.xlu1 %v3810_v56  ;;  %v10897_v51 = vmul.f32 %v10208_v26, %v3795_v38  ;;  %v9548_v56 = vpack.c.bf16 %v4131_v43, %v4130_v50  ;;  %v3958_v29 = vadd.f32 %v10867_v52, %v3885_v41 }
 0x658   :  { %v3796_v5 = vsub.f32 %v10848_v3, %v3788_v59  ;;  %v3811_v57 = vmul.f32 %v10897_v51, %v10897_v51  ;;  %v4126_v3 = vld [vmem:[#allocation2 + $0x130] sm:$0xff]  ;;  %v3963_v59 = vadd.f32 %v10873_v54, %v3885_v41  ;;  %v3973_v54 = vadd.f32 %v10877_v53, %v3885_v41 }
 0x659   :  { %v3778_v36 = vpop.xlane.xlu0 %3777  ;;  %v9540_v58 = vpack.c.bf16 %v4127_v31, %v4126_v3  ;;  %v4135_v3 = vld [vmem:[#allocation2 + $0x178] sm:$0xff] }
 0x65a   :  { %v3789_v10 = vmul.f32 0.01, %v3778_v36  ;;  %3821 = vadd.xlane.f32.xlu0 %v3811_v57  ;;  %v10903_v21 = vmul.f32 %v10208_v26, %v3796_v5  ;;  %v9979_v5 = vld [vmem:[%s11687_s0] sm:$0xff]  ;;  %v4133_v36 = vld [vmem:[#allocation2 + $0x168] sm:$0xff] }
 0x65b   :  { %9541 = vmatprep.subr.bf16.mxu0 %v9540_v58  ;;  %v10937_v57 = vadd.f32 %v9979_v5, %v3953_v45 }
 0x65c   :  { %v3797_v22 = vsub.f32 %v10852_v30, %v3789_v10  ;;  %v3812_v61 = vmul.f32 %v10903_v21, %v10903_v21  ;;  %9543 = vmatpush3.bf16.msra.mxu0 %v9540_v58 }
 0x65d   :  { %v3780_v7 = vpop.xlane.xlu1 %3779  ;;  %9545 = vmatprep.subr.bf16.mxu0 %v9544_v55 }
 0x65e   :  { %v3790_v49 = vmul.f32 0.01, %v3780_v7  ;;  %3823 = vadd.xlane.f32.xlu1 %v3812_v61  ;;  %v10909_v40 = vmul.f32 %v10208_v26, %v3797_v22  ;;  %v3968_v22 = vadd.f32 %v10871_v0, %v3885_v41  ;;  %v10945_v61 = vadd.f32 %v10745_v4, %v3958_v29 }
 0x65f   :  { %v10948_v7 = vadd.f32 %v10751_v8, %v3963_v59  ;;  %v3983_v0 = vadd.f32 %v10881_v63, %v3885_v41  ;;  %v10958_v4 = vadd.f32 %v10763_v9, %v3973_v54  ;;  %v3988_v8 = vadd.f32 %v10879_v16, %v3885_v41 }
 0x660   :  { %v3798_v60 = vsub.f32 %v10856_v25, %v3790_v49  ;;  %v3813_v23 = vmul.f32 %v10909_v40, %v10909_v40  ;;  %9547 = vmatpush3.bf16.msra.mxu0 %v9544_v55  ;;  %v4134_v49 = vld [vmem:[#allocation2 + $0x170] sm:$0xff]  ;;  %v10955_v53 = vadd.f32 %v10757_v42, %v3968_v22 }
 0x661   :  { %v3782_v37 = vpop.xlane.xlu0 %3781  ;;  %9549 = vmatprep.subr.bf16.mxu0 %v9548_v56  ;;  %v9556_v31 = vpack.c.bf16 %v4135_v3, %v4134_v49  ;;  %v10972_v42 = vadd.f32 %v10781_v44, %v3988_v8 }
 0x662   :  { %v3791_v1 = vmul.f32 0.01, %v3782_v37  ;;  %3825 = vadd.xlane.f32.xlu0 %v3813_v23  ;;  %v10915_v30 = vmul.f32 %v10208_v26, %v3798_v60  ;;  %v3978_v60 = vadd.f32 %v10875_v6, %v3885_v41  ;;  %v10967_v23 = vadd.f32 %v10775_v12, %v3983_v0 }
 0x664   :  { %v3799_v46 = vsub.f32 %v10860_v2, %v3791_v1  ;;  %v3814_v25 = vmul.f32 %v10915_v30, %v10915_v30  ;;  %9551 = vmatpush3.bf16.msra.mxu0 %v9548_v56  ;;  %v10964_v6 = vadd.f32 %v10769_v62, %v3978_v60 }
 0x665   :  { %v3784_v27 = vpop.xlane.xlu1 %3783 }
 0x666   :  { %v3792_v13 = vmul.f32 0.01, %v3784_v27  ;;  %3827 = vadd.xlane.f32.xlu1 %v3814_v25  ;;  %v10924_v28 = vmul.f32 %v10208_v26, %v3799_v46 }
 0x668   :  { %v3800_v38 = vsub.f32 %v10864_v11, %v3792_v13  ;;  %v3815_v2 = vmul.f32 %v10924_v28, %v10924_v28  ;;  %v4132_v11 = vld [vmem:[#allocation2 + $0x160] sm:$0xff] }
 0x669   :  { %v9552_v52 = vpack.c.bf16 %v4133_v36, %v4132_v11 }
 0x66a   :  { %3829 = vadd.xlane.f32.xlu0 %v3815_v2  ;;  %v10932_v39 = vmul.f32 %v10208_v26, %v3800_v38 }
 0x66b   :  { %9553 = vmatprep.subr.bf16.mxu0 %v9552_v52 }
 0x66c   :  { %v3816_v10 = vmul.f32 %v10932_v39, %v10932_v39  ;;  %9555 = vmatpush3.bf16.msra.mxu0 %v9552_v52 }
 0x66d   :  { %9557 = vmatprep.subr.bf16.mxu0 %v9556_v31 }
 0x66e   :  { %3831 = vadd.xlane.f32.xlu1 %v3816_v10  ;;  %3999 = vadd.xlane.f32.xlu0 %v10937_v57 }
 0x670   :  { %9559 = vmatpush3.bf16.msra.mxu0 %v9556_v31 }
 0x672   :  { %4001 = vadd.xlane.f32.xlu1 %v10945_v61  ;;  %4003 = vadd.xlane.f32.xlu0 %v10948_v7 }
 0x676   :  { %4005 = vadd.xlane.f32.xlu1 %v10955_v53  ;;  %4007 = vadd.xlane.f32.xlu0 %v10958_v4 }
 0x67a   :  { %4009 = vadd.xlane.f32.xlu1 %v10964_v6  ;;  %4011 = vadd.xlane.f32.xlu0 %v10967_v23 }
 0x67e   :  { %4013 = vadd.xlane.f32.xlu1 %v10972_v42 }
 0x6df   :  { %v3818_v9 = vpop.xlane.xlu0 %3817 }
 0x6e0   :  { %v3833_v16 = vmul.f32 0.01, %v3818_v9 }
 0x6e2   :  { %v3841_v63 = vadd.f32 1e-05, %v3833_v16 }
 0x6e3   :  { %v3820_v58 = vpop.xlane.xlu1 %3819 }
 0x6e4   :  { %9889 = vrsqrt.f32 %v3841_v63  ;;  %v3834_v37 = vmul.f32 0.01, %v3820_v58 }
 0x6e6   :  { %v3842_v62 = vadd.f32 1e-05, %v3834_v37 }
 0x6e7   :  { %v3822_v1 = vpop.xlane.xlu0 %3821 }
 0x6e8   :  { %9891 = vrsqrt.f32 %v3842_v62  ;;  %v3835_v12 = vmul.f32 0.01, %v3822_v1 }
 0x6ea   :  { %v3843_v41 = vadd.f32 1e-05, %v3835_v12 }
 0x6eb   :  { %v3824_v19 = vpop.xlane.xlu1 %3823 }
 0x6ec   :  { %9893 = vrsqrt.f32 %v3843_v41  ;;  %v3836_v47 = vmul.f32 0.01, %v3824_v19 }
 0x6ee   :  { %v9890_v46 = vpop.eup %9889  ;;  %v3844_v25 = vadd.f32 1e-05, %v3836_v47 }
 0x6ef   :  { %v3826_v44 = vpop.xlane.xlu0 %3825  ;;  %v3857_v55 = vmul.f32 %v9890_v46, %v10885_v48 }
 0x6f0   :  { %9895 = vrsqrt.f32 %v3844_v25  ;;  %v3837_v27 = vmul.f32 0.01, %v3826_v44 }
 0x6f1   :  { %9408 = vmatprep.mubr.f32.mxu0 %v3857_v55 }
 0x6f2   :  { %v9892_v13 = vpop.eup %9891  ;;  %v3845_v45 = vadd.f32 1e-05, %v3837_v27 }
 0x6f3   :  { %v3828_v50 = vpop.xlane.xlu1 %3827  ;;  %v3858_v43 = vmul.f32 %v9892_v13, %v10891_v33 }
 0x6f4   :  { %9897 = vrsqrt.f32 %v3845_v45  ;;  %v3838_v38 = vmul.f32 0.01, %v3828_v50 }
 0x6f5   :  { %9409 = vmatmul.mubr.f32.vlgmr.msra.gmra.mrb[136].mxu0 %v3858_v43 }
 0x6f6   :  { %v9894_v2 = vpop.eup %9893  ;;  %v3846_v56 = vadd.f32 1e-05, %v3838_v38 }
 0x6f7   :  { %v3830_v29 = vpop.xlane.xlu0 %3829  ;;  %v3859_v59 = vmul.f32 %v9894_v2, %v10897_v51 }
 0x6f8   :  { %9899 = vrsqrt.f32 %v3846_v56  ;;  %v3839_v5 = vmul.f32 0.01, %v3830_v29 }
 0x6f9   :  { %9411 = vmatprep.mubr.f32.mxu0 %v3859_v59 }
 0x6fa   :  { %v9896_v48 = vpop.eup %9895  ;;  %v3847_v11 = vadd.f32 1e-05, %v3839_v5 }
 0x6fb   :  { %v3832_v36 = vpop.xlane.xlu1 %3831  ;;  %v4000_v10 = vpop.xlane.xlu0 %3999  ;;  %v3860_v52 = vmul.f32 %v9896_v48, %v10903_v21 }
 0x6fc   :  { %9901 = vrsqrt.f32 %v3847_v11  ;;  %v3840_v22 = vmul.f32 0.01, %v3832_v36  ;;  %v4015_v33 = vmul.f32 0.01, %v4000_v10 }
 0x6fd   :  { %9412 = vmatmul.mubr.f32.gmra.mrb[138].mxu0 %v3860_v52 }
 0x6fe   :  { %v9898_v54 = vpop.eup %9897  ;;  %v3848_v49 = vadd.f32 1e-05, %v3840_v22  ;;  %v4023_v3 = vsub.f32 %v10937_v57, %v4015_v33 }
 0x6ff   :  { %v4002_v31 = vpop.xlane.xlu1 %4001  ;;  %v4004_v60 = vpop.xlane.xlu0 %4003  ;;  %v3861_v51 = vmul.f32 %v9898_v54, %v10909_v40 }
 0x700   :  { %9903 = vrsqrt.f32 %v3848_v49  ;;  %v4016_v0 = vmul.f32 0.01, %v4002_v31  ;;  %v4017_v8 = vmul.f32 0.01, %v4004_v60  ;;  %v10982_v9 = vmul.f32 %v10208_v26, %v4023_v3 }
 0x701   :  { %9414 = vmatprep.mubr.f32.mxu0 %v3861_v51 }
 0x702   :  { %v9900_v21 = vpop.eup %9899  ;;  %v4024_v16 = vsub.f32 %v10945_v61, %v4016_v0  ;;  %v4025_v63 = vsub.f32 %v10948_v7, %v4017_v8  ;;  %v4039_v58 = vmul.f32 %v10982_v9, %v10982_v9 }
 0x703   :  { %v4006_v57 = vpop.xlane.xlu1 %4005  ;;  %v4008_v37 = vpop.xlane.xlu0 %4007  ;;  %v3862_v62 = vmul.f32 %v9900_v21, %v10915_v30 }
 0x704   :  { %v4018_v40 = vmul.f32 0.01, %v4006_v57  ;;  %v4019_v1 = vmul.f32 0.01, %v4008_v37  ;;  %4047 = vadd.xlane.f32.xlu0 %v4039_v58  ;;  %v10990_v12 = vmul.f32 %v10208_v26, %v4024_v16  ;;  %v10993_v41 = vmul.f32 %v10208_v26, %v4025_v63 }
 0x705   :  { %9415 = vmatmul.mubr.f32.gmra.mrb[140].mxu0 %v3862_v62  ;;  %v11033_v63 = vsub.s32 7, %v10167_v34  ;;  %v11044_v34 = vld [vmem:[%s11691_s4 + $0x8] sm:$0xff] }
 0x706   :  { %v9902_v61 = vpop.eup %9901  ;;  %v4026_v7 = vsub.f32 %v10955_v53, %v4018_v40  ;;  %v4027_v19 = vsub.f32 %v10958_v4, %v4019_v1  ;;  %v4040_v47 = vmul.f32 %v10990_v12, %v10990_v12  ;;  %v4041_v30 = vmul.f32 %v10993_v41, %v10993_v41 }
 0x707   :  { %v4010_v46 = vpop.xlane.xlu1 %4009  ;;  %v4012_v25 = vpop.xlane.xlu0 %4011  ;;  %v3863_v44 = vmul.f32 %v9902_v61, %v10924_v28  ;;  %v9980_v61 = vld [vmem:[%s11691_s4] sm:$0xff] }
 0x708   :  { %v4020_v55 = vmul.f32 0.01, %v4010_v46  ;;  %v4021_v27 = vmul.f32 0.01, %v4012_v25  ;;  %4049 = vadd.xlane.f32.xlu1 %v4040_v47  ;;  %4051 = vadd.xlane.f32.xlu0 %v4041_v30  ;;  %v11003_v13 = vmul.f32 %v10208_v26, %v4026_v7  ;;  %v11006_v53 = vmul.f32 %v10208_v26, %v4027_v19 }
 0x709   :  { %9417 = vmatprep.mubr.f32.mxu0 %v3863_v44  ;;  %v4098_v7 = vrot.slane %v9980_v61, %v11033_v63  ;;  %v4110_v44 = vrot.slane %v11044_v34, %v10170_v35 }
 0x70a   :  { %v9904_v4 = vpop.eup %9903  ;;  %v4028_v45 = vsub.f32 %v10964_v6, %v4020_v55  ;;  %v4029_v50 = vsub.f32 %v10967_v23, %v4021_v27  ;;  %v4042_v43 = vmul.f32 %v11003_v13, %v11003_v13  ;;  %v4043_v28 = vmul.f32 %v11006_v53, %v11006_v53 }
 0x70b   :  { %v4014_v38 = vpop.xlane.xlu1 %4013  ;;  %v3864_v2 = vmul.f32 %v9904_v4, %v10932_v39 }
 0x70c   :  { %v4022_v56 = vmul.f32 0.01, %v4014_v38  ;;  %4053 = vadd.xlane.f32.xlu1 %v4042_v43  ;;  %4055 = vadd.xlane.f32.xlu0 %v4043_v28  ;;  %v11016_v29 = vmul.f32 %v10208_v26, %v4028_v45  ;;  %v11019_v59 = vmul.f32 %v10208_v26, %v4029_v50 }
 0x70d   :  { %9418 = vmatmul.mubr.f32.gmra.mrb[142].mxu0 %v3864_v2 }
 0x70e   :  { %v4030_v6 = vsub.f32 %v10972_v42, %v4022_v56  ;;  %v4044_v23 = vmul.f32 %v11016_v29, %v11016_v29  ;;  %v4045_v5 = vmul.f32 %v11019_v59, %v11019_v59  ;;  %5399 = vmatprep.mubr.f32.mxu0 %v10065_v32 }
 0x710   :  { %4057 = vadd.xlane.f32.xlu1 %v4044_v23  ;;  %4059 = vadd.xlane.f32.xlu0 %v4045_v5  ;;  %v11028_v39 = vmul.f32 %v10208_v26, %v4030_v6 }
 0x712   :  { %v4046_v48 = vmul.f32 %v11028_v39, %v11028_v39 }
 0x714   :  { %4061 = vadd.xlane.f32.xlu1 %v4046_v48 }
 0x791   :  { %v4048_v36 = vpop.xlane.xlu0 %4047 }
 0x792   :  { %v4063_v10 = vmul.f32 0.01, %v4048_v36 }
 0x794   :  { %v4071_v22 = vadd.f32 1e-05, %v4063_v10 }
 0x795   :  { %v4050_v11 = vpop.xlane.xlu1 %4049  ;;  %v4052_v54 = vpop.xlane.xlu0 %4051 }
 0x796   :  { %v4064_v42 = vmul.f32 0.01, %v4050_v11  ;;  %v4065_v3 = vmul.f32 0.01, %v4052_v54 }
 0x798   :  { %v4072_v52 = vadd.f32 1e-05, %v4064_v42  ;;  %v4073_v60 = vadd.f32 1e-05, %v4065_v3 }
 0x799   :  { %v4054_v33 = vpop.xlane.xlu1 %4053  ;;  %v4056_v0 = vpop.xlane.xlu0 %4055 }
 0x79a   :  { %9905 = vrsqrt.f32 %v4072_v52  ;;  %v4066_v49 = vmul.f32 0.01, %v4054_v33  ;;  %v4067_v21 = vmul.f32 0.01, %v4056_v0 }
 0x79b   :  { %9907 = vrsqrt.f32 %v4071_v22 }
 0x79c   :  { %v4074_v31 = vadd.f32 1e-05, %v4066_v49  ;;  %v4075_v37 = vadd.f32 1e-05, %v4067_v21 }
 0x79d   :  { %v4058_v51 = vpop.xlane.xlu1 %4057  ;;  %v4060_v1 = vpop.xlane.xlu0 %4059 }
 0x79e   :  { %9909 = vrsqrt.f32 %v4074_v31  ;;  %v4068_v8 = vmul.f32 0.01, %v4058_v51  ;;  %v4069_v30 = vmul.f32 0.01, %v4060_v1 }
 0x79f   :  { %9911 = vrsqrt.f32 %v4073_v60 }
 0x7a0   :  { %v4076_v57 = vadd.f32 1e-05, %v4068_v8  ;;  %v4077_v45 = vadd.f32 1e-05, %v4069_v30 }
 0x7a1   :  { %v4062_v62 = vpop.xlane.xlu1 %4061 }
 0x7a2   :  { %9913 = vrsqrt.f32 %v4076_v57  ;;  %v4070_v47 = vmul.f32 0.01, %v4062_v62 }
 0x7a3   :  { %9915 = vrsqrt.f32 %v4075_v37 }
 0x7a4   :  { %v9906_v16 = vpop.eup %9905 }
 0x7a5   :  { %v9908_v58 = vpop.eup %9907  ;;  %v4088_v40 = vmul.f32 %v9906_v16, %v10990_v12  ;;  %v4139_v12 = vrot.slane %v11044_v34, %v10275_v15 }
 0x7a6   :  { %v4087_v19 = vmul.f32 %v9908_v58, %v10982_v9  ;;  %v4078_v9 = vadd.f32 1e-05, %v4070_v47 }
 0x7a7   :  { %v4100_v46 = vmul.f32 %v4098_v7, %v4088_v40 }
 0x7a8   :  { %v9910_v25 = vpop.eup %9909  ;;  %v4099_v55 = vmul.f32 %v4098_v7, %v4087_v19  ;;  %9917 = vrsqrt.f32 %v4078_v9  ;;  %v4382_v9 = vld [vmem:[#allocation4 + $0x440] sm:$0xff] }
 0x7a9   :  { %v9912_v27 = vpop.eup %9911  ;;  %v4112_v28 = vadd.f32 %v4110_v44, %v4100_v46  ;;  %v4090_v38 = vmul.f32 %v9910_v25, %v11003_v13  ;;  %9919 = vrsqrt.f32 %v4077_v45 }
 0x7aa   :  { %v4111_v56 = vadd.f32 %v4110_v44, %v4099_v55  ;;  %v4089_v6 = vmul.f32 %v9912_v27, %v10993_v41 }
 0x7ab   :  { %v4102_v35 = vmul.f32 %v4098_v7, %v4090_v38 }
 0x7ac   :  { %v9914_v48 = vpop.eup %9913  ;;  %v4101_v11 = vmul.f32 %v4098_v7, %v4089_v6  ;;  %v4406_v6 = vld [vmem:[#allocation4 + $0x500] sm:$0xff] }
 0x7ad   :  { %v9916_v36 = vpop.eup %9915  ;;  %v4114_v52 = vadd.f32 %v4110_v44, %v4102_v35  ;;  %v4092_v41 = vmul.f32 %v9914_v48, %v11016_v29  ;;  %v4414_v48 = vld [vmem:[#allocation4 + $0x540] sm:$0xff] }
 0x7ae   :  { %v4113_v33 = vadd.f32 %v4110_v44, %v4101_v11  ;;  %v4091_v54 = vmul.f32 %v9916_v36, %v11006_v53  ;;  %v4407_v11 = vld [vmem:[#allocation4 + $0x508] sm:$0xff] }
 0x7af   :  { %v4104_v31 = vmul.f32 %v4098_v7, %v4092_v41  ;;  %v4415_v36 = vld [vmem:[#allocation4 + $0x548] sm:$0xff]  ;;  %v8328_v41 = vcombine.low %v4406_v6, %v4414_v48 }
 0x7b0   :  { %v4103_v51 = vmul.f32 %v4098_v7, %v4091_v54 }
 0x7b1   :  { %v4116_v29 = vadd.f32 %v4110_v44, %v4104_v31 }
 0x7b2   :  { %v9918_v60 = vpop.eup %9917  ;;  %v4115_v53 = vadd.f32 %v4110_v44, %v4103_v51 }
 0x7b3   :  { %v9920_v0 = vpop.eup %9919  ;;  %v4094_v58 = vmul.f32 %v9918_v60, %v11028_v39 }
 0x7b4   :  { %v4093_v37 = vmul.f32 %v9920_v0, %v11019_v59  ;;  %v4374_v59 = vld [vmem:[#allocation4 + $0x400] sm:$0xff] }
 0x7b5   :  { %v4106_v1 = vmul.f32 %v4098_v7, %v4094_v58  ;;  %v8296_v45 = vcombine.low %v4374_v59, %v4382_v9 }
 0x7b6   :  { %v4105_v61 = vmul.f32 %v4098_v7, %v4093_v37  ;;  %v4383_v7 = vld [vmem:[#allocation4 + $0x448] sm:$0xff] }
 0x7b7   :  { %v4118_v46 = vadd.f32 %v4110_v44, %v4106_v1 }
 0x7b8   :  { %v4117_v39 = vadd.f32 %v4110_v44, %v4105_v61  ;;  %v4391_v44 = vld [vmem:[#allocation4 + $0x488] sm:$0xff] }
 0x7c8   :  { %v9410_v4 = vpop.f32.mrb[136].mxu0 }
 0x7c9   :  { %v4212_v50 = vadd.f32 %v9410_v4, %v4139_v12  ;;  %v4206_v43 = vpop.f32.mrb[137].mxu0  ;;  %v4375_v4 = vld [vmem:[#allocation4 + $0x408] sm:$0xff] }
 0x7ca   :  { %v4207_v2 = vadd.f32 %v4206_v43, %v4139_v12  ;;  %v4390_v43 = vld [vmem:[#allocation4 + $0x480] sm:$0xff]  ;;  %v8298_v38 = vcombine.low %v4375_v4, %v4383_v7 }
 0x7cb   :  { %v11052_v23 = vadd.f32 %v4212_v50, %v4112_v28  ;;  %v8297_v50 = vcombine.high %v4374_v59, %v4382_v9  ;;  %v4398_v28 = vld [vmem:[#allocation4 + $0x4c0] sm:$0xff] }
 0x7cc   :  { %v11054_v5 = vadd.f32 %v4207_v2, %v4111_v56  ;;  %v8299_v2 = vcombine.high %v4375_v4, %v4383_v7  ;;  %v4399_v56 = vld [vmem:[#allocation4 + $0x4c8] sm:$0xff] }
 0x7cd   :  { %4255 = vadd.xlane.f32.xlu1 %v11052_v23  ;;  %5286 = vmatprep.subr.bf16.mxu1 %v8297_v50  ;;  %v8315_v35 = vcombine.high %v4391_v44, %v4399_v56  ;;  %v4430_v50 = vld [vmem:[#allocation4 + $0x5c0] sm:$0xff]  ;;  %v4423_v7 = vld [vmem:[#allocation4 + $0x588] sm:$0xff] }
 0x7ce   :  { %4253 = vadd.xlane.f32.xlu0 %v11054_v5  ;;  %5287 = vmatpush1.bf16.msra.mxu1 %v8296_v45  ;;  %v4422_v45 = vld [vmem:[#allocation4 + $0x580] sm:$0xff] }
 0x7cf   :  { %5367 = vmatprep.subr.bf16.mxu0 %v8299_v2 }
 0x7d0   :  { %v9413_v42 = vpop.f32.mrb[138].mxu0  ;;  %5368 = vmatpush1.bf16.msra.mxu0 %v8298_v38  ;;  %v8345_v38 = vcombine.high %v4422_v45, %v4430_v50 }
 0x7d1   :  { %v4222_v13 = vadd.f32 %v9413_v42, %v4139_v12  ;;  %v4216_v10 = vpop.f32.mrb[139].mxu0  ;;  %v8312_v42 = vcombine.low %v4390_v43, %v4398_v28  ;;  %5369 = vmatprep.subr.bf16.mxu0 %v8315_v35 }
 0x7d2   :  { %v4217_v22 = vadd.f32 %v4216_v10, %v4139_v12  ;;  %v8329_v10 = vcombine.high %v4406_v6, %v4414_v48  ;;  %v4438_v48 = vld [vmem:[#allocation4 + $0x600] sm:$0xff] }
 0x7d3   :  { %v11060_v49 = vadd.f32 %v4222_v13, %v4114_v52  ;;  %v8314_v13 = vcombine.low %v4391_v44, %v4399_v56  ;;  %v8331_v52 = vcombine.high %v4407_v11, %v4415_v36 }
 0x7d4   :  { %v11062_v3 = vadd.f32 %v4217_v22, %v4113_v33  ;;  %v8330_v22 = vcombine.low %v4407_v11, %v4415_v36  ;;  %v4446_v11 = vld [vmem:[#allocation4 + $0x640] sm:$0xff]  ;;  %v4439_v36 = vld [vmem:[#allocation4 + $0x608] sm:$0xff] }
 0x7d5   :  { %4259 = vadd.xlane.f32.xlu1 %v11060_v49  ;;  %5370 = vmatpush1.bf16.msra.mxu0 %v8314_v13  ;;  %v8361_v13 = vcombine.high %v4438_v48, %v4446_v11 }
 0x7d6   :  { %4257 = vadd.xlane.f32.xlu0 %v11062_v3  ;;  %5371 = vmatprep.subr.bf16.mxu0 %v8331_v52 }
 0x7d8   :  { %v9416_v8 = vpop.f32.mrb[140].mxu0 }
 0x7d9   :  { %v4232_v21 = vadd.f32 %v9416_v8, %v4139_v12  ;;  %v4226_v16 = vpop.f32.mrb[141].mxu0  ;;  %5372 = vmatpush1.bf16.msra.mxu0 %v8330_v22 }
 0x7da   :  { %v4227_v57 = vadd.f32 %v4226_v16, %v4139_v12 }
 0x7db   :  { %v11068_v62 = vadd.f32 %v4232_v21, %v4116_v29 }
 0x7dc   :  { %v11070_v40 = vadd.f32 %v4227_v57, %v4115_v53 }
 0x7dd   :  { %4263 = vadd.xlane.f32.xlu1 %v11068_v62 }
 0x7de   :  { %4261 = vadd.xlane.f32.xlu0 %v11070_v40 }
 0x7e0   :  { %v9419_v19 = vpop.f32.mrb[142].mxu0 }
 0x7e1   :  { %v4242_v47 = vadd.f32 %v9419_v19, %v4139_v12  ;;  %v4236_v30 = vpop.f32.mrb[143].mxu0 }
 0x7e2   :  { %v4237_v25 = vadd.f32 %v4236_v30, %v4139_v12  ;;  %v8313_v12 = vcombine.high %v4390_v43, %v4398_v28 }
 0x7e3   :  { %v11074_v55 = vadd.f32 %v4242_v47, %v4118_v46 }
 0x7e4   :  { %v11076_v27 = vadd.f32 %v4237_v25, %v4117_v39  ;;  %5288 = vmatprep.subr.bf16.mxu1 %v8313_v12  ;;  %v8344_v12 = vcombine.low %v4422_v45, %v4430_v50 }
 0x7e5   :  { %4267 = vadd.xlane.f32.xlu1 %v11074_v55  ;;  %5289 = vmatpush1.bf16.msra.mxu1 %v8312_v42 }
 0x7e6   :  { %4265 = vadd.xlane.f32.xlu0 %v11076_v27  ;;  %5290 = vmatprep.subr.bf16.mxu1 %v8329_v10  ;;  %v4447_v10 = vld [vmem:[#allocation4 + $0x648] sm:$0xff] }
 0x7e7   :  { %v8362_v22 = vcombine.low %v4439_v36, %v4447_v10 }
 0x7e9   :  { %5291 = vmatpush1.bf16.msra.mxu1 %v8328_v41  ;;  %v8360_v41 = vcombine.low %v4438_v48, %v4446_v11 }
 0x7ea   :  { %5292 = vmatprep.subr.bf16.mxu1 %v8345_v38  ;;  %v4377_v38 = vld [vmem:[#allocation4 + $0x418] sm:$0xff] }
 0x7ed   :  { %5293 = vmatpush1.bf16.msra.mxu1 %v8344_v12 }
 0x7ee   :  { %5294 = vmatprep.subr.bf16.mxu1 %v8361_v13 }
 0x7f1   :  { %5295 = vmatpush1.bf16.msra.mxu1 %v8360_v41 }
 0x85a   :  { %v4256_v33 = vpop.xlane.xlu1 %4255 }
 0x85b   :  { %v4270_v54 = vmul.f32 0.01, %v4256_v33  ;;  %v4254_v31 = vpop.xlane.xlu0 %4253  ;;  %v8363_v33 = vcombine.high %v4439_v36, %v4447_v10 }
 0x85c   :  { %v4269_v60 = vmul.f32 0.01, %v4254_v31  ;;  %v4454_v31 = vld [vmem:[#allocation4 + $0x680] sm:$0xff] }
 0x85d   :  { %v4278_v51 = vsub.f32 %v11052_v23, %v4270_v54 }
 0x85e   :  { %v4277_v0 = vsub.f32 %v11054_v5, %v4269_v60  ;;  %v4455_v60 = vld [vmem:[#allocation4 + $0x688] sm:$0xff] }
 0x85f   :  { %v11083_v8 = vmul.f32 %v10208_v26, %v4278_v51 }
 0x860   :  { %v11086_v21 = vmul.f32 %v10208_v26, %v4277_v0 }
 0x861   :  { %v4294_v16 = vmul.f32 %v11083_v8, %v11083_v8 }
 0x862   :  { %v4260_v29 = vpop.xlane.xlu1 %4259  ;;  %v4293_v58 = vmul.f32 %v11086_v21, %v11086_v21 }
 0x863   :  { %v4272_v57 = vmul.f32 0.01, %v4260_v29  ;;  %4303 = vadd.xlane.f32.xlu1 %v4294_v16  ;;  %v4258_v53 = vpop.xlane.xlu0 %4257  ;;  %v4463_v16 = vld [vmem:[#allocation4 + $0x6c8] sm:$0xff] }
 0x864   :  { %v4271_v37 = vmul.f32 0.01, %v4258_v53  ;;  %4301 = vadd.xlane.f32.xlu0 %v4293_v58  ;;  %v8378_v58 = vcombine.low %v4455_v60, %v4463_v16  ;;  %v4470_v53 = vld [vmem:[#allocation4 + $0x700] sm:$0xff] }
 0x865   :  { %v4280_v23 = vsub.f32 %v11060_v49, %v4272_v57  ;;  %v8379_v57 = vcombine.high %v4455_v60, %v4463_v16 }
 0x866   :  { %v4279_v5 = vsub.f32 %v11062_v3, %v4271_v37  ;;  %v4478_v37 = vld [vmem:[#allocation4 + $0x740] sm:$0xff] }
 0x867   :  { %v11095_v1 = vmul.f32 %v10208_v26, %v4280_v23  ;;  %v4471_v23 = vld [vmem:[#allocation4 + $0x708] sm:$0xff] }
 0x868   :  { %v11098_v61 = vmul.f32 %v10208_v26, %v4279_v5  ;;  %v8393_v5 = vcombine.high %v4470_v53, %v4478_v37 }
 0x869   :  { %v4296_v19 = vmul.f32 %v11095_v1, %v11095_v1 }
 0x86a   :  { %v4264_v47 = vpop.xlane.xlu1 %4263  ;;  %v4295_v30 = vmul.f32 %v11098_v61, %v11098_v61 }
 0x86b   :  { %v4274_v46 = vmul.f32 0.01, %v4264_v47  ;;  %4307 = vadd.xlane.f32.xlu1 %v4296_v19  ;;  %v4262_v25 = vpop.xlane.xlu0 %4261  ;;  %v4479_v19 = vld [vmem:[#allocation4 + $0x748] sm:$0xff]  ;;  %v8392_v47 = vcombine.low %v4470_v53, %v4478_v37  ;;  %v4392_v53 = vld [vmem:[#allocation4 + $0x490] sm:$0xff] }
 0x86c   :  { %v4273_v39 = vmul.f32 0.01, %v4262_v25  ;;  %4305 = vadd.xlane.f32.xlu0 %v4295_v30  ;;  %v8394_v30 = vcombine.low %v4471_v23, %v4479_v19  ;;  %v4486_v25 = vld [vmem:[#allocation4 + $0x780] sm:$0xff] }
 0x86d   :  { %v4282_v49 = vsub.f32 %v11068_v62, %v4274_v46  ;;  %v4431_v62 = vld [vmem:[#allocation4 + $0x5c8] sm:$0xff]  ;;  %v8395_v46 = vcombine.high %v4471_v23, %v4479_v19  ;;  %v4401_v19 = vld [vmem:[#allocation4 + $0x4d8] sm:$0xff] }
 0x86e   :  { %v4281_v3 = vsub.f32 %v11070_v40, %v4273_v39  ;;  %v8346_v44 = vcombine.low %v4423_v7, %v4431_v62  ;;  %v8347_v56 = vcombine.high %v4423_v7, %v4431_v62  ;;  %v4494_v39 = vld [vmem:[#allocation4 + $0x7c0] sm:$0xff] }
 0x86f   :  { %v11107_v59 = vmul.f32 %v10208_v26, %v4282_v49  ;;  %v4487_v49 = vld [vmem:[#allocation4 + $0x788] sm:$0xff]  ;;  %v8408_v45 = vcombine.low %v4486_v25, %v4494_v39 }
 0x870   :  { %v11110_v9 = vmul.f32 %v10208_v26, %v4281_v3  ;;  %5373 = vmatprep.subr.bf16.mxu0 %v8347_v56  ;;  %v8409_v3 = vcombine.high %v4486_v25, %v4494_v39  ;;  %v4416_v39 = vld [vmem:[#allocation4 + $0x550] sm:$0xff] }
 0x871   :  { %v4298_v4 = vmul.f32 %v11107_v59, %v11107_v59  ;;  %5374 = vmatpush1.bf16.msra.mxu0 %v8346_v44 }
 0x872   :  { %v4268_v43 = vpop.xlane.xlu1 %4267  ;;  %v4297_v28 = vmul.f32 %v11110_v9, %v11110_v9  ;;  %5375 = vmatprep.subr.bf16.mxu0 %v8363_v33 }
 0x873   :  { %v4276_v2 = vmul.f32 0.01, %v4268_v43  ;;  %4311 = vadd.xlane.f32.xlu1 %v4298_v4  ;;  %v4266_v40 = vpop.xlane.xlu0 %4265  ;;  %v4495_v4 = vld [vmem:[#allocation4 + $0x7c8] sm:$0xff]  ;;  %v4376_v43 = vld [vmem:[#allocation4 + $0x410] sm:$0xff] }
 0x874   :  { %v4275_v6 = vmul.f32 0.01, %v4266_v40  ;;  %4309 = vadd.xlane.f32.xlu0 %v4297_v28  ;;  %v8410_v50 = vcombine.low %v4487_v49, %v4495_v4  ;;  %v8411_v7 = vcombine.high %v4487_v49, %v4495_v4  ;;  %v4384_v28 = vld [vmem:[#allocation4 + $0x450] sm:$0xff]  ;;  %v4409_v49 = vld [vmem:[#allocation4 + $0x518] sm:$0xff] }
 0x875   :  { %v4284_v35 = vsub.f32 %v11074_v55, %v4276_v2  ;;  %5376 = vmatpush1.bf16.msra.mxu0 %v8362_v22  ;;  %v8301_v62 = vcombine.high %v4376_v43, %v4384_v28  ;;  %v4385_v2 = vld [vmem:[#allocation4 + $0x458] sm:$0xff]  ;;  %v8300_v40 = vcombine.low %v4376_v43, %v4384_v28 }
 0x876   :  { %v4283_v42 = vsub.f32 %v11076_v27, %v4275_v6  ;;  %v4462_v27 = vld [vmem:[#allocation4 + $0x6c0] sm:$0xff]  ;;  %5377 = vmatprep.subr.bf16.mxu0 %v8379_v57  ;;  %v8302_v12 = vcombine.low %v4377_v38, %v4385_v2  ;;  %v8303_v44 = vcombine.high %v4377_v38, %v4385_v2 }
 0x877   :  { %v11119_v52 = vmul.f32 %v10208_v26, %v4284_v35  ;;  %v8377_v0 = vcombine.high %v4454_v31, %v4462_v27  ;;  %v8376_v29 = vcombine.low %v4454_v31, %v4462_v27  ;;  %v11130_v31 = vrot.slane %v11044_v34, %v10278_v18  ;;  %v4393_v18 = vld [vmem:[#allocation4 + $0x498] sm:$0xff] }
 0x878   :  { %v11122_v54 = vmul.f32 %v10208_v26, %v4283_v42 }
 0x879   :  { %v4300_v55 = vmul.f32 %v11119_v52, %v11119_v52  ;;  %5296 = vmatprep.subr.bf16.mxu1 %v8377_v0  ;;  %5378 = vmatpush1.bf16.msra.mxu0 %v8378_v58 }
 0x87a   :  { %v4299_v51 = vmul.f32 %v11122_v54, %v11122_v54  ;;  %5297 = vmatpush1.bf16.msra.mxu1 %v8376_v29  ;;  %5379 = vmatprep.subr.bf16.mxu0 %v8395_v46  ;;  %v4408_v46 = vld [vmem:[#allocation4 + $0x510] sm:$0xff] }
 0x87b   :  { %4315 = vadd.xlane.f32.xlu1 %v4300_v55  ;;  %5298 = vmatprep.subr.bf16.mxu1 %v8393_v5  ;;  %v4400_v5 = vld [vmem:[#allocation4 + $0x4d0] sm:$0xff] }
 0x87c   :  { %4313 = vadd.xlane.f32.xlu0 %v4299_v51  ;;  %v11134_v51 = vrot.slane %v11044_v34, %v10686_v17 }
 0x87d   :  { %5380 = vmatpush1.bf16.msra.mxu0 %v8394_v30 }
 0x87e   :  { %5299 = vmatpush1.bf16.msra.mxu1 %v8392_v47  ;;  %5381 = vmatprep.subr.bf16.mxu0 %v8411_v7  ;;  %v8318_v7 = vcombine.low %v4393_v18, %v4401_v19 }
 0x87f   :  { %5300 = vmatprep.subr.bf16.mxu1 %v8409_v3  ;;  %v4417_v3 = vld [vmem:[#allocation4 + $0x558] sm:$0xff] }
 0x881   :  { %5382 = vmatpush1.bf16.msra.mxu0 %v8410_v50  ;;  %v8316_v50 = vcombine.low %v4392_v53, %v4400_v5 }
 0x882   :  { %5301 = vmatpush1.bf16.msra.mxu1 %v8408_v45  ;;  %5529 = vmatprep.subr.bf16.mxu0 %v8303_v44 }
 0x883   :  { %5448 = vmatprep.subr.bf16.mxu1 %v8301_v62 }
 0x8f0   :  { %v4304_v56 = vpop.xlane.xlu1 %4303 }
 0x8f1   :  { %v4318_v6 = vmul.f32 0.01, %v4304_v56  ;;  %v4302_v35 = vpop.xlane.xlu0 %4301  ;;  %v4424_v56 = vld [vmem:[#allocation4 + $0x590] sm:$0xff] }
 0x8f2   :  { %v4317_v48 = vmul.f32 0.01, %v4302_v35 }
 0x8f3   :  { %v4326_v11 = vadd.f32 1e-05, %v4318_v6 }
 0x8f4   :  { %v4325_v36 = vadd.f32 1e-05, %v4317_v48  ;;  %v4433_v48 = vld [vmem:[#allocation4 + $0x5d8] sm:$0xff] }
 0x8f5   :  { %9921 = vrsqrt.f32 %v4326_v11 }
 0x8f6   :  { %9923 = vrsqrt.f32 %v4325_v36  ;;  %v8332_v36 = vcombine.low %v4408_v46, %v4416_v39 }
 0x8f8   :  { %v4308_v42 = vpop.xlane.xlu1 %4307 }
 0x8f9   :  { %v4320_v13 = vmul.f32 0.01, %v4308_v42  ;;  %v4306_v10 = vpop.xlane.xlu0 %4305  ;;  %v8334_v42 = vcombine.low %v4409_v49, %v4417_v3 }
 0x8fa   :  { %v4319_v41 = vmul.f32 0.01, %v4306_v10 }
 0x8fb   :  { %v4328_v22 = vadd.f32 1e-05, %v4320_v13 }
 0x8fc   :  { %v4327_v33 = vadd.f32 1e-05, %v4319_v41 }
 0x8fd   :  { %9925 = vrsqrt.f32 %v4328_v22 }
 0x8fe   :  { %9927 = vrsqrt.f32 %v4327_v33  ;;  %v4440_v33 = vld [vmem:[#allocation4 + $0x610] sm:$0xff] }
 0x8ff   :  { %v9922_v55 = vpop.eup %9921 }
 0x900   :  { %v9924_v27 = vpop.eup %9923  ;;  %v4312_v60 = vpop.xlane.xlu1 %4311  ;;  %v4342_v0 = vmul.f32 %v9922_v55, %v11083_v8  ;;  %v8317_v8 = vcombine.high %v4392_v53, %v4400_v5 }
 0x901   :  { %v4341_v16 = vmul.f32 %v9924_v27, %v11086_v21  ;;  %v4322_v29 = vmul.f32 0.01, %v4312_v60  ;;  %v4310_v58 = vpop.xlane.xlu0 %4309  ;;  %v8319_v21 = vcombine.high %v4393_v18, %v4401_v19  ;;  %v4448_v27 = vld [vmem:[#allocation4 + $0x650] sm:$0xff]  ;;  %v4441_v60 = vld [vmem:[#allocation4 + $0x618] sm:$0xff] }
 0x902   :  { %v4321_v57 = vmul.f32 0.01, %v4310_v58  ;;  %v4354_v30 = vmul.f32 %v11130_v31, %v4342_v0  ;;  %v4449_v0 = vld [vmem:[#allocation4 + $0x658] sm:$0xff]  ;;  %v4456_v18 = vld [vmem:[#allocation4 + $0x690] sm:$0xff] }
 0x903   :  { %v4353_v37 = vmul.f32 %v11130_v31, %v4341_v16  ;;  %v4330_v23 = vadd.f32 1e-05, %v4322_v29  ;;  %v8367_v5 = vcombine.high %v4441_v60, %v4449_v0 }
 0x904   :  { %v4329_v47 = vadd.f32 1e-05, %v4321_v57  ;;  %v11146_v43 = vadd.f32 %v11134_v51, %v4354_v30  ;;  %v4457_v30 = vld [vmem:[#allocation4 + $0x698] sm:$0xff] }
 0x905   :  { %v11141_v34 = vadd.f32 %v11134_v51, %v4353_v37  ;;  %9929 = vrsqrt.f32 %v4330_v23  ;;  %v8365_v23 = vcombine.high %v4440_v33, %v4448_v27 }
 0x906   :  { %9931 = vrsqrt.f32 %v4329_v47  ;;  %v4464_v47 = vld [vmem:[#allocation4 + $0x6d0] sm:$0xff] }
 0x907   :  { %v9926_v25 = vpop.eup %9925  ;;  %5319 = vmatmul.mubr.f32.vlgmr.msra.gmra.mrb[136].mxu1 %v11141_v34  ;;  %5400 = vmatmul.mubr.f32.vlgmr.msra.gmra.mrb[144].mxu0 %v11141_v34 }
 0x908   :  { %v9928_v4 = vpop.eup %9927  ;;  %5449 = vmatpush1.bf16.msra.mxu1 %v8300_v40  ;;  %v4316_v45 = vpop.xlane.xlu1 %4315  ;;  %5530 = vmatpush1.bf16.msra.mxu0 %v8302_v12  ;;  %v4344_v28 = vmul.f32 %v9926_v25, %v11095_v1  ;;  %v8333_v40 = vcombine.high %v4408_v46, %v4416_v39  ;;  %v8335_v12 = vcombine.high %v4409_v49, %v4417_v3  ;;  %v4432_v1 = vld [vmem:[#allocation4 + $0x5d0] sm:$0xff] }
 0x909   :  { %v4343_v38 = vmul.f32 %v9928_v4, %v11098_v61  ;;  %v4324_v62 = vmul.f32 0.01, %v4316_v45  ;;  %v4314_v2 = vpop.xlane.xlu0 %4313  ;;  %5324 = vmatprep.mubr.f32.mxu1 %v10065_v32  ;;  %5405 = vmatprep.mubr.f32.mxu0 %v10065_v32  ;;  %v4425_v61 = vld [vmem:[#allocation4 + $0x598] sm:$0xff]  ;;  %v8349_v41 = vcombine.high %v4424_v56, %v4432_v1  ;;  %v8348_v29 = vcombine.low %v4424_v56, %v4432_v1  ;;  %v4472_v49 = vld [vmem:[#allocation4 + $0x710] sm:$0xff] }
 0x90a   :  { %v4323_v44 = vmul.f32 0.01, %v4314_v2  ;;  %5450 = vmatprep.subr.bf16.mxu1 %v8317_v8  ;;  %5531 = vmatprep.subr.bf16.mxu0 %v8319_v21  ;;  %v4356_v13 = vmul.f32 %v11130_v31, %v4344_v28  ;;  %v8351_v22 = vcombine.high %v4425_v61, %v4433_v48  ;;  %v8350_v58 = vcombine.low %v4425_v61, %v4433_v48  ;;  %v4480_v4 = vld [vmem:[#allocation4 + $0x750] sm:$0xff]  ;;  %v4473_v45 = vld [vmem:[#allocation4 + $0x718] sm:$0xff] }
 0x90b   :  { %v4355_v6 = vmul.f32 %v11130_v31, %v4343_v38  ;;  %v4332_v35 = vadd.f32 1e-05, %v4324_v62  ;;  %5325 = vmatmul.mubr.f32.gmra.mrb[138].mxu1 %v11146_v43  ;;  %5406 = vmatmul.mubr.f32.gmra.mrb[146].mxu0 %v11146_v43  ;;  %v8366_v8 = vcombine.low %v4441_v60, %v4449_v0  ;;  %v8381_v25 = vcombine.high %v4456_v18, %v4464_v47  ;;  %v4488_v56 = vld [vmem:[#allocation4 + $0x790] sm:$0xff]  ;;  %v4489_v1 = vld [vmem:[#allocation4 + $0x798] sm:$0xff] }
 0x90c   :  { %v4331_v11 = vadd.f32 1e-05, %v4323_v44  ;;  %5451 = vmatpush1.bf16.msra.mxu1 %v8316_v50  ;;  %5532 = vmatpush1.bf16.msra.mxu0 %v8318_v7  ;;  %v11164_v57 = vadd.f32 %v11134_v51, %v4356_v13  ;;  %v4481_v50 = vld [vmem:[#allocation4 + $0x758] sm:$0xff]  ;;  %v8380_v28 = vcombine.low %v4456_v18, %v4464_v47  ;;  %v4378_v13 = vld [vmem:[#allocation4 + $0x420] sm:$0xff]  ;;  %v4411_v47 = vld [vmem:[#allocation4 + $0x528] sm:$0xff] }
 0x90d   :  { %v11157_v10 = vadd.f32 %v11134_v51, %v4355_v6  ;;  %9933 = vrsqrt.f32 %v4332_v35  ;;  %5330 = vmatprep.mubr.f32.mxu1 %v10065_v32  ;;  %5411 = vmatprep.mubr.f32.mxu0 %v10065_v32  ;;  %v4496_v35 = vld [vmem:[#allocation4 + $0x7d0] sm:$0xff]  ;;  %v8398_v61 = vcombine.low %v4473_v45, %v4481_v50  ;;  %v4410_v18 = vld [vmem:[#allocation4 + $0x520] sm:$0xff] }
 0x90e   :  { %9935 = vrsqrt.f32 %v4331_v11  ;;  %5452 = vmatprep.subr.bf16.mxu1 %v8333_v40  ;;  %5533 = vmatprep.subr.bf16.mxu0 %v8335_v12  ;;  %v8397_v40 = vcombine.high %v4472_v49, %v4480_v4  ;;  %v8399_v12 = vcombine.high %v4473_v45, %v4481_v50 }
 0x90f   :  { %v9930_v55 = vpop.eup %9929  ;;  %5331 = vmatmul.mubr.f32.gmra.mrb[140].mxu1 %v11157_v10  ;;  %5412 = vmatmul.mubr.f32.gmra.mrb[148].mxu0 %v11157_v10 }
 0x910   :  { %v9932_v16 = vpop.eup %9931  ;;  %5453 = vmatpush1.bf16.msra.mxu1 %v8332_v36  ;;  %5534 = vmatpush1.bf16.msra.mxu0 %v8334_v42  ;;  %v4346_v53 = vmul.f32 %v9930_v55, %v11107_v59  ;;  %v4465_v59 = vld [vmem:[#allocation4 + $0x6d8] sm:$0xff]  ;;  %v8413_v36 = vcombine.high %v4488_v56, %v4496_v35 }
 0x911   :  { %v4345_v37 = vmul.f32 %v9932_v16, %v11110_v9  ;;  %5336 = vmatprep.mubr.f32.mxu1 %v10065_v32  ;;  %5417 = vmatprep.mubr.f32.mxu0 %v10065_v32  ;;  %v8364_v9 = vcombine.low %v4440_v33, %v4448_v27  ;;  %v8383_v39 = vcombine.high %v4457_v30, %v4465_v59  ;;  %v4387_v33 = vld [vmem:[#allocation4 + $0x468] sm:$0xff]  ;;  %v4394_v16 = vld [vmem:[#allocation4 + $0x4a0] sm:$0xff] }
 0x912   :  { %5454 = vmatprep.subr.bf16.mxu1 %v8349_v41  ;;  %5535 = vmatprep.subr.bf16.mxu0 %v8351_v22  ;;  %v4358_v21 = vmul.f32 %v11130_v31, %v4346_v53  ;;  %v8382_v38 = vcombine.low %v4457_v30, %v4465_v59  ;;  %v4386_v41 = vld [vmem:[#allocation4 + $0x460] sm:$0xff]  ;;  %v4379_v22 = vld [vmem:[#allocation4 + $0x428] sm:$0xff] }
 0x913   :  { %v4357_v19 = vmul.f32 %v11130_v31, %v4345_v37  ;;  %5337 = vmatmul.mubr.f32.gmra.mrb[142].mxu1 %v11164_v57  ;;  %5418 = vmatmul.mubr.f32.gmra.mrb[150].mxu0 %v11164_v57  ;;  %v8305_v60 = vcombine.high %v4378_v13, %v4386_v41  ;;  %v8307_v0 = vcombine.high %v4379_v22, %v4387_v33  ;;  %v4403_v53 = vld [vmem:[#allocation4 + $0x4e8] sm:$0xff] }
 0x914   :  { %5455 = vmatpush1.bf16.msra.mxu1 %v8348_v29  ;;  %5536 = vmatpush1.bf16.msra.mxu0 %v8350_v58  ;;  %v11182_v62 = vadd.f32 %v11134_v51, %v4358_v21  ;;  %v4402_v29 = vld [vmem:[#allocation4 + $0x4e0] sm:$0xff]  ;;  %v4395_v58 = vld [vmem:[#allocation4 + $0x4a8] sm:$0xff]  ;;  %v8306_v37 = vcombine.low %v4379_v22, %v4387_v33 }
 0x915   :  { %v11175_v46 = vadd.f32 %v11134_v51, %v4357_v19  ;;  %5342 = vmatprep.mubr.f32.mxu1 %v10065_v32  ;;  %5423 = vmatprep.mubr.f32.mxu0 %v10065_v32  ;;  %v4418_v19 = vld [vmem:[#allocation4 + $0x560] sm:$0xff]  ;;  %v4419_v30 = vld [vmem:[#allocation4 + $0x568] sm:$0xff]  ;;  %v8320_v59 = vcombine.low %v4394_v16, %v4402_v29 }
 0x916   :  { %5456 = vmatprep.subr.bf16.mxu1 %v8365_v23  ;;  %5537 = vmatprep.subr.bf16.mxu0 %v8367_v5  ;;  %v8321_v23 = vcombine.high %v4394_v16, %v4402_v29  ;;  %v8323_v5 = vcombine.high %v4395_v58, %v4403_v53  ;;  %v8339_v21 = vcombine.high %v4411_v47, %v4419_v30  ;;  %v4475_v22 = vld [vmem:[#allocation4 + $0x728] sm:$0xff]  ;;  %v4490_v16 = vld [vmem:[#allocation4 + $0x7a0] sm:$0xff] }
 0x917   :  { %v9934_v3 = vpop.eup %9933  ;;  %5343 = vmatmul.mubr.f32.gmra.mrb[144].mxu1 %v11175_v46  ;;  %5424 = vmatmul.mubr.f32.gmra.mrb[152].mxu0 %v11175_v46  ;;  %v8338_v45 = vcombine.low %v4411_v47, %v4419_v30  ;;  %v4483_v33 = vld [vmem:[#allocation4 + $0x768] sm:$0xff]  ;;  %v4498_v29 = vld [vmem:[#allocation4 + $0x7e0] sm:$0xff]  ;;  %v4381_v47 = vld [vmem:[#allocation4 + $0x438] sm:$0xff] }
 0x918   :  { %v9936_v7 = vpop.eup %9935  ;;  %5457 = vmatpush1.bf16.msra.mxu1 %v8364_v9  ;;  %5538 = vmatpush1.bf16.msra.mxu0 %v8366_v8  ;;  %v4348_v2 = vmul.f32 %v9934_v3, %v11119_v52  ;;  %v4497_v52 = vld [vmem:[#allocation4 + $0x7d8] sm:$0xff]  ;;  %v8322_v9 = vcombine.low %v4395_v58, %v4403_v53  ;;  %v8337_v8 = vcombine.high %v4410_v18, %v4418_v19  ;;  %v4435_v3 = vld [vmem:[#allocation4 + $0x5e8] sm:$0xff] }
 0x919   :  { %v4347_v44 = vmul.f32 %v9936_v7, %v11122_v54  ;;  %5348 = vmatprep.mubr.f32.mxu1 %v10065_v32  ;;  %5429 = vmatprep.mubr.f32.mxu0 %v10065_v32  ;;  %v8396_v54 = vcombine.low %v4472_v49, %v4480_v4  ;;  %v8415_v42 = vcombine.high %v4489_v1, %v4497_v52  ;;  %v4427_v49 = vld [vmem:[#allocation4 + $0x5a8] sm:$0xff]  ;;  %v4389_v30 = vld [vmem:[#allocation4 + $0x478] sm:$0xff] }
 0x91a   :  { %5458 = vmatprep.subr.bf16.mxu1 %v8381_v25  ;;  %5539 = vmatprep.subr.bf16.mxu0 %v8383_v39  ;;  %v4360_v48 = vmul.f32 %v11130_v31, %v4348_v2  ;;  %v8414_v55 = vcombine.low %v4489_v1, %v4497_v52  ;;  %v4426_v25 = vld [vmem:[#allocation4 + $0x5a0] sm:$0xff]  ;;  %v8336_v4 = vcombine.low %v4410_v18, %v4418_v19  ;;  %v4443_v2 = vld [vmem:[#allocation4 + $0x628] sm:$0xff]  ;;  %v4380_v18 = vld [vmem:[#allocation4 + $0x430] sm:$0xff] }
 0x91b   :  { %v4359_v6 = vmul.f32 %v11130_v31, %v4347_v44  ;;  %5349 = vmatmul.mubr.f32.gmra.mrb[146].mxu1 %v11182_v62  ;;  %5430 = vmatmul.mubr.f32.gmra.mrb[154].mxu0 %v11182_v62  ;;  %v8412_v31 = vcombine.low %v4488_v56, %v4496_v35  ;;  %v4434_v39 = vld [vmem:[#allocation4 + $0x5e0] sm:$0xff]  ;;  %v8355_v7 = vcombine.high %v4427_v49, %v4435_v3  ;;  %v4451_v44 = vld [vmem:[#allocation4 + $0x668] sm:$0xff]  ;;  %v4388_v19 = vld [vmem:[#allocation4 + $0x470] sm:$0xff] }
 0x91c   :  { %5459 = vmatpush1.bf16.msra.mxu1 %v8380_v28  ;;  %5540 = vmatpush1.bf16.msra.mxu0 %v8382_v38  ;;  %v11200_v27 = vadd.f32 %v11134_v51, %v4360_v48  ;;  %v8353_v50 = vcombine.high %v4426_v25, %v4434_v39  ;;  %v4442_v28 = vld [vmem:[#allocation4 + $0x620] sm:$0xff]  ;;  %v4459_v52 = vld [vmem:[#allocation4 + $0x6a8] sm:$0xff]  ;;  %v8370_v48 = vcombine.low %v4443_v2, %v4451_v44 }
 0x91d   :  { %v11193_v11 = vadd.f32 %v11134_v51, %v4359_v6  ;;  %5354 = vmatprep.mubr.f32.mxu1 %v10065_v32  ;;  %5435 = vmatprep.mubr.f32.mxu0 %v10065_v32  ;;  %v8304_v51 = vcombine.low %v4378_v13, %v4386_v41  ;;  %v4450_v38 = vld [vmem:[#allocation4 + $0x660] sm:$0xff]  ;;  %v8371_v6 = vcombine.high %v4443_v2, %v4451_v44  ;;  %v4491_v58 = vld [vmem:[#allocation4 + $0x7a8] sm:$0xff]  ;;  %v4413_v2 = vld [vmem:[#allocation4 + $0x538] sm:$0xff] }
 0x91e   :  { %5460 = vmatprep.subr.bf16.mxu1 %v8397_v40  ;;  %5541 = vmatprep.subr.bf16.mxu0 %v8399_v12  ;;  %v8352_v40 = vcombine.low %v4426_v25, %v4434_v39  ;;  %v8354_v12 = vcombine.low %v4427_v49, %v4435_v3  ;;  %v8369_v56 = vcombine.high %v4442_v28, %v4450_v38  ;;  %v4458_v35 = vld [vmem:[#allocation4 + $0x6a0] sm:$0xff]  ;;  %v4499_v53 = vld [vmem:[#allocation4 + $0x7e8] sm:$0xff]  ;;  %v4396_v25 = vld [vmem:[#allocation4 + $0x4b0] sm:$0xff] }
 0x91f   :  { %5355 = vmatmul.mubr.f32.gmra.mrb[148].mxu1 %v11193_v11  ;;  %5436 = vmatmul.mubr.f32.gmra.mrb[156].mxu0 %v11193_v11  ;;  %v4466_v1 = vld [vmem:[#allocation4 + $0x6e0] sm:$0xff]  ;;  %v4404_v39 = vld [vmem:[#allocation4 + $0x4f0] sm:$0xff]  ;;  %v4397_v49 = vld [vmem:[#allocation4 + $0x4b8] sm:$0xff] }
 0x920   :  { %5461 = vmatpush1.bf16.msra.mxu1 %v8396_v54  ;;  %5542 = vmatpush1.bf16.msra.mxu0 %v8398_v61  ;;  %v4467_v54 = vld [vmem:[#allocation4 + $0x6e8] sm:$0xff]  ;;  %v8368_v61 = vcombine.low %v4442_v28, %v4450_v38  ;;  %v4474_v13 = vld [vmem:[#allocation4 + $0x720] sm:$0xff]  ;;  %v4405_v3 = vld [vmem:[#allocation4 + $0x4f8] sm:$0xff] }
 0x921   :  { %5360 = vmatprep.mubr.f32.mxu1 %v10065_v32  ;;  %5441 = vmatprep.mubr.f32.mxu0 %v10065_v32  ;;  %v4482_v41 = vld [vmem:[#allocation4 + $0x760] sm:$0xff]  ;;  %v4412_v28 = vld [vmem:[#allocation4 + $0x530] sm:$0xff]  ;;  %v4421_v44 = vld [vmem:[#allocation4 + $0x578] sm:$0xff] }
 0x922   :  { %5462 = vmatprep.subr.bf16.mxu1 %v8413_v36  ;;  %5543 = vmatprep.subr.bf16.mxu0 %v8415_v42  ;;  %v8385_v36 = vcombine.high %v4458_v35, %v4466_v1  ;;  %v8387_v42 = vcombine.high %v4459_v52, %v4467_v54  ;;  %v4420_v38 = vld [vmem:[#allocation4 + $0x570] sm:$0xff] }
 0x923   :  { %5361 = vmatmul.mubr.f32.gmra.mrb[150].mxu1 %v11200_v27  ;;  %5442 = vmatmul.mubr.f32.gmra.mrb[158].mxu0 %v11200_v27 }
 0x924   :  { %5463 = vmatpush1.bf16.msra.mxu1 %v8412_v31  ;;  %5544 = vmatpush1.bf16.msra.mxu0 %v8414_v55  ;;  %v8384_v31 = vcombine.low %v4458_v35, %v4466_v1  ;;  %v8386_v55 = vcombine.low %v4459_v52, %v4467_v54  ;;  %v4428_v35 = vld [vmem:[#allocation4 + $0x5b0] sm:$0xff]  ;;  %v4429_v52 = vld [vmem:[#allocation4 + $0x5b8] sm:$0xff] }
 0x925   :  { %5480 = vmatprep.mubr.f32.mxu1 %v10065_v32  ;;  %5561 = vmatprep.mubr.f32.mxu0 %v10065_v32  ;;  %v4436_v1 = vld [vmem:[#allocation4 + $0x5f0] sm:$0xff]  ;;  %v4437_v54 = vld [vmem:[#allocation4 + $0x5f8] sm:$0xff] }
 0x926   :  { %5610 = vmatprep.subr.bf16.mxu1 %v8305_v60  ;;  %5691 = vmatprep.subr.bf16.mxu0 %v8307_v0  ;;  %v8401_v60 = vcombine.high %v4474_v13, %v4482_v41  ;;  %v8403_v0 = vcombine.high %v4475_v22, %v4483_v33 }
 0x927   :  { %5481 = vmatmul.mubr.f32.vlgmr.msra.gmra.mrb[152].mxu1 %v11141_v34  ;;  %5562 = vmatmul.mubr.f32.vlgmr.msra.gmra.mrb[160].mxu0 %v11141_v34 }
 0x928   :  { %5611 = vmatpush1.bf16.msra.mxu1 %v8304_v51  ;;  %5692 = vmatpush1.bf16.msra.mxu0 %v8306_v37  ;;  %v8400_v51 = vcombine.low %v4474_v13, %v4482_v41  ;;  %v8402_v37 = vcombine.low %v4475_v22, %v4483_v33  ;;  %v4444_v13 = vld [vmem:[#allocation4 + $0x630] sm:$0xff]  ;;  %v4445_v22 = vld [vmem:[#allocation4 + $0x638] sm:$0xff] }
 0x929   :  { %5486 = vmatprep.mubr.f32.mxu1 %v10065_v32  ;;  %5567 = vmatprep.mubr.f32.mxu0 %v10065_v32  ;;  %v4452_v41 = vld [vmem:[#allocation4 + $0x670] sm:$0xff]  ;;  %v4453_v33 = vld [vmem:[#allocation4 + $0x678] sm:$0xff] }
 0x92a   :  { %5612 = vmatprep.subr.bf16.mxu1 %v8321_v23  ;;  %5693 = vmatprep.subr.bf16.mxu0 %v8323_v5  ;;  %v8417_v23 = vcombine.high %v4490_v16, %v4498_v29  ;;  %v8419_v5 = vcombine.high %v4491_v58, %v4499_v53 }
 0x92b   :  { %5487 = vmatmul.mubr.f32.gmra.mrb[154].mxu1 %v11146_v43  ;;  %5568 = vmatmul.mubr.f32.gmra.mrb[162].mxu0 %v11146_v43 }
 0x92c   :  { %5613 = vmatpush1.bf16.msra.mxu1 %v8320_v59  ;;  %5694 = vmatpush1.bf16.msra.mxu0 %v8322_v9  ;;  %v8416_v59 = vcombine.low %v4490_v16, %v4498_v29  ;;  %v8418_v9 = vcombine.low %v4491_v58, %v4499_v53  ;;  %v4460_v16 = vld [vmem:[#allocation4 + $0x6b0] sm:$0xff]  ;;  %v4461_v58 = vld [vmem:[#allocation4 + $0x6b8] sm:$0xff] }
 0x92d   :  { %5492 = vmatprep.mubr.f32.mxu1 %v10065_v32  ;;  %5573 = vmatprep.mubr.f32.mxu0 %v10065_v32  ;;  %v4468_v29 = vld [vmem:[#allocation4 + $0x6f0] sm:$0xff]  ;;  %v4469_v53 = vld [vmem:[#allocation4 + $0x6f8] sm:$0xff] }
 0x92e   :  { %5614 = vmatprep.subr.bf16.mxu1 %v8337_v8  ;;  %5695 = vmatprep.subr.bf16.mxu0 %v8339_v21  ;;  %v8309_v8 = vcombine.high %v4380_v18, %v4388_v19  ;;  %v8311_v21 = vcombine.high %v4381_v47, %v4389_v30 }
 0x92f   :  { %5493 = vmatmul.mubr.f32.gmra.mrb[156].mxu1 %v11157_v10  ;;  %5574 = vmatmul.mubr.f32.gmra.mrb[164].mxu0 %v11157_v10 }
 0x930   :  { %5615 = vmatpush1.bf16.msra.mxu1 %v8336_v4  ;;  %5696 = vmatpush1.bf16.msra.mxu0 %v8338_v45  ;;  %v8308_v4 = vcombine.low %v4380_v18, %v4388_v19  ;;  %v8310_v45 = vcombine.low %v4381_v47, %v4389_v30  ;;  %v4476_v18 = vld [vmem:[#allocation4 + $0x730] sm:$0xff]  ;;  %v4477_v47 = vld [vmem:[#allocation4 + $0x738] sm:$0xff] }
 0x931   :  { %5498 = vmatprep.mubr.f32.mxu1 %v10065_v32  ;;  %5579 = vmatprep.mubr.f32.mxu0 %v10065_v32  ;;  %v4484_v19 = vld [vmem:[#allocation4 + $0x770] sm:$0xff]  ;;  %v4485_v30 = vld [vmem:[#allocation4 + $0x778] sm:$0xff] }
 0x932   :  { %5616 = vmatprep.subr.bf16.mxu1 %v8353_v50  ;;  %5697 = vmatprep.subr.bf16.mxu0 %v8355_v7  ;;  %v8325_v50 = vcombine.high %v4396_v25, %v4404_v39  ;;  %v8327_v7 = vcombine.high %v4397_v49, %v4405_v3 }
 0x933   :  { %5499 = vmatmul.mubr.f32.gmra.mrb[158].mxu1 %v11164_v57  ;;  %5580 = vmatmul.mubr.f32.gmra.mrb[166].mxu0 %v11164_v57 }
 0x934   :  { %5617 = vmatpush1.bf16.msra.mxu1 %v8352_v40  ;;  %5698 = vmatpush1.bf16.msra.mxu0 %v8354_v12  ;;  %v8324_v40 = vcombine.low %v4396_v25, %v4404_v39  ;;  %v8326_v12 = vcombine.low %v4397_v49, %v4405_v3  ;;  %v4492_v25 = vld [vmem:[#allocation4 + $0x7b0] sm:$0xff]  ;;  %v4493_v49 = vld [vmem:[#allocation4 + $0x7b8] sm:$0xff] }
 0x935   :  { %5504 = vmatprep.mubr.f32.mxu1 %v10065_v32  ;;  %5585 = vmatprep.mubr.f32.mxu0 %v10065_v32  ;;  %v4500_v39 = vld [vmem:[#allocation4 + $0x7f0] sm:$0xff]  ;;  %v4501_v3 = vld [vmem:[#allocation4 + $0x7f8] sm:$0xff] }
 0x936   :  { %5618 = vmatprep.subr.bf16.mxu1 %v8369_v56  ;;  %5699 = vmatprep.subr.bf16.mxu0 %v8371_v6  ;;  %v8341_v56 = vcombine.high %v4412_v28, %v4420_v38  ;;  %v8343_v6 = vcombine.high %v4413_v2, %v4421_v44 }
 0x937   :  { %5505 = vmatmul.mubr.f32.gmra.mrb[160].mxu1 %v11175_v46  ;;  %5586 = vmatmul.mubr.f32.gmra.mrb[168].mxu0 %v11175_v46 }
 0x938   :  { %5619 = vmatpush1.bf16.msra.mxu1 %v8368_v61  ;;  %5700 = vmatpush1.bf16.msra.mxu0 %v8370_v48  ;;  %v8340_v61 = vcombine.low %v4412_v28, %v4420_v38  ;;  %v8342_v48 = vcombine.low %v4413_v2, %v4421_v44  ;;  %v8420_v28 = vcombine.low %v4492_v25, %v4500_v39  ;;  %v9729_v2 = vld [vmem:[#allocation6 + $0x440] sm:$0xff]  }
 0x939   :  { %5510 = vmatprep.mubr.f32.mxu1 %v10065_v32  ;;  %5591 = vmatprep.mubr.f32.mxu0 %v10065_v32  ;;  %v8422_v38 = vcombine.low %v4493_v49, %v4501_v3  ;;  %v9731_v44 = vld [vmem:[#allocation6 + $0x4c0] sm:$0xff]  }
 0x93a   :  { %5620 = vmatprep.subr.bf16.mxu1 %v8385_v36  ;;  %5701 = vmatprep.subr.bf16.mxu0 %v8387_v42  ;;  %v8357_v36 = vcombine.high %v4428_v35, %v4436_v1  ;;  %v8359_v42 = vcombine.high %v4429_v52, %v4437_v54 }
 0x93b   :  { %5511 = vmatmul.mubr.f32.gmra.mrb[162].mxu1 %v11182_v62  ;;  %5592 = vmatmul.mubr.f32.gmra.mrb[170].mxu0 %v11182_v62 }
 0x93c   :  { %5621 = vmatpush1.bf16.msra.mxu1 %v8384_v31  ;;  %5702 = vmatpush1.bf16.msra.mxu0 %v8386_v55  ;;  %v8356_v31 = vcombine.low %v4428_v35, %v4436_v1  ;;  %v8358_v55 = vcombine.low %v4429_v52, %v4437_v54  ;;  %v9734_v35 = vld [vmem:[#allocation6 + $0x408] sm:$0xff]   ;;  %v9737_v52 = vld [vmem:[#allocation6 + $0x450] sm:$0xff]  }
 0x93d   :  { %5516 = vmatprep.mubr.f32.mxu1 %v10065_v32  ;;  %5597 = vmatprep.mubr.f32.mxu0 %v10065_v32  ;;  %v9736_v1 = vld [vmem:[#allocation6 + $0x488] sm:$0xff]   ;;  %v9739_v54 = vld [vmem:[#allocation6 + $0x4d0] sm:$0xff]  }
 0x93e   :  { %5622 = vmatprep.subr.bf16.mxu1 %v8401_v60  ;;  %5703 = vmatprep.subr.bf16.mxu0 %v8403_v0  ;;  %v8373_v60 = vcombine.high %v4444_v13, %v4452_v41  ;;  %v8375_v0 = vcombine.high %v4445_v22, %v4453_v33 }
 0x93f   :  { %5517 = vmatmul.mubr.f32.gmra.mrb[164].mxu1 %v11193_v11  ;;  %5598 = vmatmul.mubr.f32.gmra.mrb[172].mxu0 %v11193_v11 }
 0x940   :  { %5623 = vmatpush1.bf16.msra.mxu1 %v8400_v51  ;;  %5704 = vmatpush1.bf16.msra.mxu0 %v8402_v37  ;;  %v8372_v51 = vcombine.low %v4444_v13, %v4452_v41  ;;  %v8374_v37 = vcombine.low %v4445_v22, %v4453_v33  ;;  %v9742_v13 = vld [vmem:[#allocation6 + $0x418] sm:$0xff]   ;;  %v9745_v22 = vld [vmem:[#allocation6 + $0x460] sm:$0xff]  }
 0x941   :  { %5522 = vmatprep.mubr.f32.mxu1 %v10065_v32  ;;  %5603 = vmatprep.mubr.f32.mxu0 %v10065_v32  ;;  %v9744_v41 = vld [vmem:[#allocation6 + $0x498] sm:$0xff]   ;;  %v9747_v33 = vld [vmem:[#allocation6 + $0x4e0] sm:$0xff]  }
 0x942   :  { %5624 = vmatprep.subr.bf16.mxu1 %v8417_v23  ;;  %5705 = vmatprep.subr.bf16.mxu0 %v8419_v5  ;;  %v8389_v23 = vcombine.high %v4460_v16, %v4468_v29  ;;  %v8391_v5 = vcombine.high %v4461_v58, %v4469_v53 }
 0x943   :  { %5523 = vmatmul.mubr.f32.gmra.mrb[166].mxu1 %v11200_v27  ;;  %5604 = vmatmul.mubr.f32.gmra.mrb[174].mxu0 %v11200_v27 }
 0x944   :  { %5625 = vmatpush1.bf16.msra.mxu1 %v8416_v59  ;;  %5706 = vmatpush1.bf16.msra.mxu0 %v8418_v9  ;;  %v8388_v59 = vcombine.low %v4460_v16, %v4468_v29  ;;  %v8390_v9 = vcombine.low %v4461_v58, %v4469_v53  ;;  %v9750_v16 = vld [vmem:[#allocation6 + $0x428] sm:$0xff]   ;;  %v9753_v58 = vld [vmem:[#allocation6 + $0x470] sm:$0xff]  }
 0x945   :  { %5642 = vmatprep.mubr.f32.mxu1 %v10065_v32  ;;  %5723 = vmatprep.mubr.f32.mxu0 %v10065_v32  ;;  %v9752_v29 = vld [vmem:[#allocation6 + $0x4a8] sm:$0xff]   ;;  %v9755_v53 = vld [vmem:[#allocation6 + $0x4f0] sm:$0xff]  }
 0x946   :  { %5772 = vmatprep.subr.bf16.mxu1 %v8309_v8  ;;  %5853 = vmatprep.subr.bf16.mxu0 %v8311_v21  ;;  %v8405_v8 = vcombine.high %v4476_v18, %v4484_v19  ;;  %v8407_v21 = vcombine.high %v4477_v47, %v4485_v30 }
 0x947   :  { %5643 = vmatmul.mubr.f32.vlgmr.msra.gmra.mrb[168].mxu1 %v11141_v34  ;;  %5724 = vmatmul.mubr.f32.vlgmr.msra.gmra.mrb[176].mxu0 %v11141_v34 }
 0x948   :  { %5773 = vmatpush1.bf16.msra.mxu1 %v8308_v4  ;;  %5854 = vmatpush1.bf16.msra.mxu0 %v8310_v45  ;;  %v8404_v4 = vcombine.low %v4476_v18, %v4484_v19  ;;  %v8406_v45 = vcombine.low %v4477_v47, %v4485_v30  ;;  %v9758_v18 = vld [vmem:[#allocation6 + $0x438] sm:$0xff]   ;;  %v9761_v47 = vld [vmem:[#allocation6 + $0x540] sm:$0xff]  }
 0x949   :  { %5648 = vmatprep.mubr.f32.mxu1 %v10065_v32  ;;  %5729 = vmatprep.mubr.f32.mxu0 %v10065_v32  ;;  %v9760_v19 = vld [vmem:[#allocation6 + $0x4b8] sm:$0xff]   ;;  %v9763_v30 = vld [vmem:[#allocation6 + $0x5c0] sm:$0xff]  }
 0x94a   :  { %5774 = vmatprep.subr.bf16.mxu1 %v8325_v50  ;;  %5855 = vmatprep.subr.bf16.mxu0 %v8327_v7  ;;  %v8421_v50 = vcombine.high %v4492_v25, %v4500_v39  ;;  %v8423_v7 = vcombine.high %v4493_v49, %v4501_v3 }
 0x94b   :  { %5649 = vmatmul.mubr.f32.gmra.mrb[170].mxu1 %v11146_v43  ;;  %5730 = vmatmul.mubr.f32.gmra.mrb[178].mxu0 %v11146_v43 }
 0x94c   :  { %5775 = vmatpush1.bf16.msra.mxu1 %v8324_v40  ;;  %5856 = vmatpush1.bf16.msra.mxu0 %v8326_v12  ;;  %v9730_v40 = vld [vmem:[#allocation6 + $0x400] sm:$0xff]  }
 0x94d   :  { %5654 = vmatprep.mubr.f32.mxu1 %v10065_v32  ;;  %5735 = vmatprep.mubr.f32.mxu0 %v10065_v32  ;;  %v9732_v12 = vld [vmem:[#allocation6 + $0x480] sm:$0xff]  }
 0x94e   :  { %5776 = vmatprep.subr.bf16.mxu1 %v8341_v56  ;;  %5857 = vmatprep.subr.bf16.mxu0 %v8343_v6  ;;  %v9733_v56 = vld [vmem:[#allocation6 + $0x448] sm:$0xff]  }
 0x94f   :  { %5655 = vmatmul.mubr.f32.gmra.mrb[172].mxu1 %v11157_v10  ;;  %5736 = vmatmul.mubr.f32.gmra.mrb[180].mxu0 %v11157_v10  ;;  %v9735_v6 = vld [vmem:[#allocation6 + $0x4c8] sm:$0xff]  }
 0x950   :  { %5777 = vmatpush1.bf16.msra.mxu1 %v8340_v61  ;;  %5858 = vmatpush1.bf16.msra.mxu0 %v8342_v48  ;;  %v9738_v61 = vld [vmem:[#allocation6 + $0x410] sm:$0xff]  }
 0x951   :  { %5660 = vmatprep.mubr.f32.mxu1 %v10065_v32  ;;  %5741 = vmatprep.mubr.f32.mxu0 %v10065_v32  ;;  %v9740_v48 = vld [vmem:[#allocation6 + $0x490] sm:$0xff]  }
 0x952   :  { %5778 = vmatprep.subr.bf16.mxu1 %v8357_v36  ;;  %5859 = vmatprep.subr.bf16.mxu0 %v8359_v42  ;;  %v9741_v36 = vld [vmem:[#allocation6 + $0x458] sm:$0xff]  }
 0x953   :  { %5661 = vmatmul.mubr.f32.gmra.mrb[174].mxu1 %v11164_v57  ;;  %5742 = vmatmul.mubr.f32.gmra.mrb[182].mxu0 %v11164_v57  ;;  %v9743_v42 = vld [vmem:[#allocation6 + $0x4d8] sm:$0xff]  }
 0x954   :  { %5779 = vmatpush1.bf16.msra.mxu1 %v8356_v31  ;;  %5860 = vmatpush1.bf16.msra.mxu0 %v8358_v55  ;;  %v9746_v31 = vld [vmem:[#allocation6 + $0x420] sm:$0xff]  }
 0x955   :  { %5666 = vmatprep.mubr.f32.mxu1 %v10065_v32  ;;  %5747 = vmatprep.mubr.f32.mxu0 %v10065_v32  ;;  %v9748_v55 = vld [vmem:[#allocation6 + $0x4a0] sm:$0xff]  }
 0x956   :  { %5780 = vmatprep.subr.bf16.mxu1 %v8373_v60  ;;  %5861 = vmatprep.subr.bf16.mxu0 %v8375_v0  ;;  %v9749_v60 = vld [vmem:[#allocation6 + $0x468] sm:$0xff]  }
 0x957   :  { %5667 = vmatmul.mubr.f32.gmra.mrb[176].mxu1 %v11175_v46  ;;  %5748 = vmatmul.mubr.f32.gmra.mrb[184].mxu0 %v11175_v46  ;;  %v9751_v0 = vld [vmem:[#allocation6 + $0x4e8] sm:$0xff]  }
 0x958   :  { %5781 = vmatpush1.bf16.msra.mxu1 %v8372_v51  ;;  %5862 = vmatpush1.bf16.msra.mxu0 %v8374_v37  ;;  %v9754_v51 = vld [vmem:[#allocation6 + $0x430] sm:$0xff]  }
 0x959   :  { %5672 = vmatprep.mubr.f32.mxu1 %v10065_v32  ;;  %5753 = vmatprep.mubr.f32.mxu0 %v10065_v32  ;;  %v9756_v37 = vld [vmem:[#allocation6 + $0x4b0] sm:$0xff]  }
 0x95a   :  { %5782 = vmatprep.subr.bf16.mxu1 %v8389_v23  ;;  %5863 = vmatprep.subr.bf16.mxu0 %v8391_v5  ;;  %v9757_v23 = vld [vmem:[#allocation6 + $0x478] sm:$0xff]  }
 0x95b   :  { %5673 = vmatmul.mubr.f32.gmra.mrb[178].mxu1 %v11182_v62  ;;  %5754 = vmatmul.mubr.f32.gmra.mrb[186].mxu0 %v11182_v62  ;;  %v9759_v5 = vld [vmem:[#allocation6 + $0x4f8] sm:$0xff]  }
 0x95c   :  { %5783 = vmatpush1.bf16.msra.mxu1 %v8388_v59  ;;  %5864 = vmatpush1.bf16.msra.mxu0 %v8390_v9 }
 0x95d   :  { %5678 = vmatprep.mubr.f32.mxu1 %v10065_v32  ;;  %5759 = vmatprep.mubr.f32.mxu0 %v10065_v32 }
 0x95e   :  { %5784 = vmatprep.subr.bf16.mxu1 %v8405_v8  ;;  %5865 = vmatprep.subr.bf16.mxu0 %v8407_v21 }
 0x95f   :  { %5679 = vmatmul.mubr.f32.gmra.mrb[180].mxu1 %v11193_v11  ;;  %5760 = vmatmul.mubr.f32.gmra.mrb[188].mxu0 %v11193_v11 }
 0x960   :  { %5785 = vmatpush1.bf16.msra.mxu1 %v8404_v4  ;;  %5866 = vmatpush1.bf16.msra.mxu0 %v8406_v45 }
 0x961   :  { %5684 = vmatprep.mubr.f32.mxu1 %v10065_v32  ;;  %5765 = vmatprep.mubr.f32.mxu0 %v10065_v32 }
 0x962   :  { %5786 = vmatprep.subr.bf16.mxu1 %v8421_v50  ;;  %5867 = vmatprep.subr.bf16.mxu0 %v8423_v7 }
 0x963   :  { %5685 = vmatmul.mubr.f32.gmra.mrb[182].mxu1 %v11200_v27  ;;  %5766 = vmatmul.mubr.f32.gmra.mrb[190].mxu0 %v11200_v27 }
 0x964   :  { %5787 = vmatpush1.bf16.msra.mxu1 %v8420_v28  ;;  %5868 = vmatpush1.bf16.msra.mxu0 %v8422_v38 }
 0x965   :  { %5804 = vmatprep.mubr.f32.mxu1 %v10065_v32  ;;  %5885 = vmatprep.mubr.f32.mxu0 %v10065_v32 }
 0x966   :  { %8944 = vmatprep.subr.bf16.mxu1 %v9729_v2  ;;  %8984 = vmatprep.subr.bf16.mxu0 %v9731_v44 }
 0x967   :  { %5805 = vmatmul.mubr.f32.vlgmr.msra.gmra.mrb[184].mxu1 %v11141_v34  ;;  %5886 = vmatmul.mubr.f32.vlgmr.msra.gmra.mrb[192].mxu0 %v11141_v34 }
 0x968   :  { %5810 = vmatprep.mubr.f32.mxu1 %v10065_v32  ;;  %5891 = vmatprep.mubr.f32.mxu0 %v10065_v32 }
 0x969   :  { %8945 = vmatpush3.bf16.msra.mxu1 %v9730_v40  ;;  %8985 = vmatpush3.bf16.msra.mxu0 %v9732_v12 }
 0x96a   :  { %8946 = vmatprep.subr.bf16.mxu1 %v9733_v56  ;;  %8986 = vmatprep.subr.bf16.mxu0 %v9735_v6 }
 0x96b   :  { %5811 = vmatmul.mubr.f32.gmra.mrb[186].mxu1 %v11146_v43  ;;  %5892 = vmatmul.mubr.f32.gmra.mrb[194].mxu0 %v11146_v43 }
 0x96c   :  { %5816 = vmatprep.mubr.f32.mxu1 %v10065_v32  ;;  %5897 = vmatprep.mubr.f32.mxu0 %v10065_v32 }
 0x96d   :  { %8947 = vmatpush3.bf16.msra.mxu1 %v9734_v35  ;;  %8987 = vmatpush3.bf16.msra.mxu0 %v9736_v1  ;;  %v9762_v35 = vld [vmem:[#allocation6 + $0x500] sm:$0xff]  }
 0x96e   :  { %8948 = vmatprep.subr.bf16.mxu1 %v9737_v52  ;;  %8988 = vmatprep.subr.bf16.mxu0 %v9739_v54  ;;  %v9764_v1 = vld [vmem:[#allocation6 + $0x580] sm:$0xff]  }
 0x96f   :  { %5817 = vmatmul.mubr.f32.gmra.mrb[188].mxu1 %v11157_v10  ;;  %5898 = vmatmul.mubr.f32.gmra.mrb[196].mxu0 %v11157_v10 }
 0x970   :  { %5822 = vmatprep.mubr.f32.mxu1 %v10065_v32  ;;  %5903 = vmatprep.mubr.f32.mxu0 %v10065_v32 }
 0x971   :  { %8949 = vmatpush3.bf16.msra.mxu1 %v9738_v61  ;;  %8989 = vmatpush3.bf16.msra.mxu0 %v9740_v48 }
 0x972   :  { %8950 = vmatprep.subr.bf16.mxu1 %v9741_v36  ;;  %8990 = vmatprep.subr.bf16.mxu0 %v9743_v42 }
 0x973   :  { %5823 = vmatmul.mubr.f32.gmra.mrb[190].mxu1 %v11164_v57  ;;  %5904 = vmatmul.mubr.f32.gmra.mrb[198].mxu0 %v11164_v57 }
 0x974   :  { %5828 = vmatprep.mubr.f32.mxu1 %v10065_v32  ;;  %5909 = vmatprep.mubr.f32.mxu0 %v10065_v32 }
 0x975   :  { %8951 = vmatpush3.bf16.msra.mxu1 %v9742_v13  ;;  %8991 = vmatpush3.bf16.msra.mxu0 %v9744_v41  ;;  %v9765_v13 = vld [vmem:[#allocation6 + $0x548] sm:$0xff]  }
 0x976   :  { %8952 = vmatprep.subr.bf16.mxu1 %v9745_v22  ;;  %8992 = vmatprep.subr.bf16.mxu0 %v9747_v33  ;;  %v9767_v41 = vld [vmem:[#allocation6 + $0x5c8] sm:$0xff]  }
 0x977   :  { %5829 = vmatmul.mubr.f32.gmra.mrb[192].mxu1 %v11175_v46  ;;  %5910 = vmatmul.mubr.f32.gmra.mrb[200].mxu0 %v11175_v46 }
 0x978   :  { %5834 = vmatprep.mubr.f32.mxu1 %v10065_v32  ;;  %5915 = vmatprep.mubr.f32.mxu0 %v10065_v32 }
 0x979   :  { %8953 = vmatpush3.bf16.msra.mxu1 %v9746_v31  ;;  %8993 = vmatpush3.bf16.msra.mxu0 %v9748_v55 }
 0x97a   :  { %8954 = vmatprep.subr.bf16.mxu1 %v9749_v60  ;;  %8994 = vmatprep.subr.bf16.mxu0 %v9751_v0 }
 0x97b   :  { %5835 = vmatmul.mubr.f32.gmra.mrb[194].mxu1 %v11182_v62  ;;  %5916 = vmatmul.mubr.f32.gmra.mrb[202].mxu0 %v11182_v62 }
 0x97c   :  { %5840 = vmatprep.mubr.f32.mxu1 %v10065_v32  ;;  %5921 = vmatprep.mubr.f32.mxu0 %v10065_v32 }
 0x97d   :  { %8955 = vmatpush3.bf16.msra.mxu1 %v9750_v16  ;;  %8995 = vmatpush3.bf16.msra.mxu0 %v9752_v29  ;;  %v9766_v16 = vld [vmem:[#allocation6 + $0x508] sm:$0xff]  }
 0x97e   :  { %8956 = vmatprep.subr.bf16.mxu1 %v9753_v58  ;;  %8996 = vmatprep.subr.bf16.mxu0 %v9755_v53  ;;  %v9768_v29 = vld [vmem:[#allocation6 + $0x588] sm:$0xff]  }
 0x97f   :  { %5841 = vmatmul.mubr.f32.gmra.mrb[196].mxu1 %v11193_v11  ;;  %5922 = vmatmul.mubr.f32.gmra.mrb[204].mxu0 %v11193_v11 }
 0x980   :  { %5846 = vmatprep.mubr.f32.mxu1 %v10065_v32  ;;  %5927 = vmatprep.mubr.f32.mxu0 %v10065_v32  ;;  %v9981_v32 = vld [vmem:[%s11692_s5] sm:$0xff] }
 0x981   :  { %8957 = vmatpush3.bf16.msra.mxu1 %v9754_v51  ;;  %8997 = vmatpush3.bf16.msra.mxu0 %v9756_v37  ;;  %v4505_v59 = vrot.slane %v9981_v32, %v10275_v15  ;;  %v4513_v9 = vrot.slane %v9981_v32, %v10830_v14  ;;  %v4509_v8 = vrot.slane %v9981_v32, %v10686_v17 }
 0x982   :  { %8958 = vmatprep.subr.bf16.mxu1 %v9757_v23  ;;  %8998 = vmatprep.subr.bf16.mxu0 %v9759_v5  ;;  %v4517_v21 = vrot.slane %v9981_v32, %v11033_v63 }
 0x983   :  { %5847 = vmatmul.mubr.f32.gmra.mrb[198].mxu1 %v11200_v27  ;;  %5928 = vmatmul.mubr.f32.gmra.mrb[206].mxu0 %v11200_v27  ;;  %v11310_v25 = vrot.slane %v4505_v59, %v10275_v15  ;;  %v11313_v39 = vrot.slane %v4513_v9, %v10275_v15  ;;  %v11316_v49 = vrot.slane %v4509_v8, %v10275_v15 }
 0x984   :  { %v11319_v3 = vrot.slane %v4517_v21, %v10275_v15  ;;  %v9770_v21 = vld [vmem:[#allocation6 + $0x510] sm:$0xff]  }
 0x985   :  { %8959 = vmatpush3.bf16.msra.mxu1 %v9758_v18  ;;  %8999 = vmatpush3.bf16.msra.mxu0 %v9760_v19  ;;  %v9769_v18 = vld [vmem:[#allocation6 + $0x550] sm:$0xff]  }
 0x986   :  { %9024 = vmatprep.subr.bf16.mxu1 %v9761_v47  ;;  %9064 = vmatprep.subr.bf16.mxu0 %v9763_v30  ;;  %v9771_v19 = vld [vmem:[#allocation6 + $0x5d0] sm:$0xff]  }
 0x9da   :  { %v5320_v4 = vpop.f32.mrb[136].mxu1  ;;  %v5401_v45 = vpop.f32.mrb[144].mxu0 }
 0x9db   :  { %v5321_v50 = vadd.f32 %v5320_v4, %v11310_v25  ;;  %v5402_v7 = vadd.f32 %v5401_v45, %v11313_v39  ;;  %v5322_v28 = vpop.f32.mrb[137].mxu1  ;;  %v5403_v38 = vpop.f32.mrb[145].mxu0  ;;  %v9772_v4 = vld [vmem:[#allocation6 + $0x590] sm:$0xff]  }
 0x9dc   :  { %v5323_v2 = vadd.f32 %v5322_v28, %v11316_v49  ;;  %v5404_v44 = vadd.f32 %v5403_v38, %v11319_v3 }
 0x9dd   :  { %v5934_v52 = vmax.f32 %v5321_v50, 0.0  ;;  %v5936_v54 = vmax.f32 %v5402_v7, 0.0 }
 0x9de   :  { %v5935_v40 = vmax.f32 %v5323_v2, 0.0  ;;  %v5937_v12 = vmax.f32 %v5404_v44, 0.0  ;;  %v5326_v56 = vpop.f32.mrb[138].mxu1  ;;  %v5407_v6 = vpop.f32.mrb[146].mxu0  ;;  %v9773_v44 = vld [vmem:[#allocation6 + $0x558] sm:$0xff]  }
 0x9df   :  { %v5327_v61 = vadd.f32 %v5326_v56, %v11310_v25  ;;  %v5408_v48 = vadd.f32 %v5407_v6, %v11313_v39  ;;  %v5328_v36 = vpop.f32.mrb[139].mxu1  ;;  %v5409_v42 = vpop.f32.mrb[147].mxu0 }
 0x9e0   :  { %v5329_v22 = vadd.f32 %v5328_v36, %v11316_v49  ;;  %v5410_v33 = vadd.f32 %v5409_v42, %v11319_v3  ;;  %7123 = vmatprep.mubr.f32.mxu1 %v5935_v40  ;;  %7196 = vmatprep.mubr.f32.mxu0 %v5937_v12  ;;  %v9775_v40 = vld [vmem:[#allocation6 + $0x5d8] sm:$0xff]  }
 0x9e1   :  { %7124 = vmatmul.mubr.f32.vlgmr.msra.gmra.mrb[200].mxu1 %v5934_v52  ;;  %7197 = vmatmul.mubr.f32.vlgmr.msra.gmra.mrb[208].mxu0 %v5936_v54  ;;  %v5950_v58 = vmax.f32 %v5327_v61, 0.0  ;;  %v5952_v53 = vmax.f32 %v5408_v48, 0.0  ;;  %v9774_v54 = vld [vmem:[#allocation6 + $0x518] sm:$0xff]  }
 0x9e2   :  { %v5951_v31 = vmax.f32 %v5329_v22, 0.0  ;;  %v5953_v55 = vmax.f32 %v5410_v33, 0.0  ;;  %9025 = vmatpush3.bf16.msra.mxu1 %v9762_v35  ;;  %v5332_v60 = vpop.f32.mrb[140].mxu1  ;;  %v5413_v0 = vpop.f32.mrb[148].mxu0  ;;  %9065 = vmatpush3.bf16.msra.mxu0 %v9764_v1  ;;  %v9776_v61 = vld [vmem:[#allocation6 + $0x598] sm:$0xff]   ;;  %v9777_v33 = vld [vmem:[#allocation6 + $0x560] sm:$0xff]  }
 0x9e3   :  { %v5333_v51 = vadd.f32 %v5332_v60, %v11310_v25  ;;  %v5414_v37 = vadd.f32 %v5413_v0, %v11313_v39  ;;  %v5334_v23 = vpop.f32.mrb[141].mxu1  ;;  %v5415_v5 = vpop.f32.mrb[149].mxu0  ;;  %9026 = vmatprep.subr.bf16.mxu1 %v9765_v13  ;;  %9066 = vmatprep.subr.bf16.mxu0 %v9767_v41 }
 0x9e4   :  { %v5335_v47 = vadd.f32 %v5334_v23, %v11316_v49  ;;  %v5416_v30 = vadd.f32 %v5415_v5, %v11319_v3  ;;  %7128 = vmatprep.mubr.f32.mxu1 %v5951_v31  ;;  %7201 = vmatprep.mubr.f32.mxu0 %v5953_v55  ;;  %v9779_v31 = vld [vmem:[#allocation6 + $0x5e0] sm:$0xff]  }
 0x9e5   :  { %7129 = vmatmul.mubr.f32.gmra.mrb[202].mxu1 %v5950_v58  ;;  %7202 = vmatmul.mubr.f32.gmra.mrb[210].mxu0 %v5952_v53  ;;  %v5966_v45 = vmax.f32 %v5333_v51, 0.0  ;;  %v5968_v50 = vmax.f32 %v5414_v37, 0.0  ;;  %v9778_v53 = vld [vmem:[#allocation6 + $0x520] sm:$0xff]  }
 0x9e6   :  { %v5967_v32 = vmax.f32 %v5335_v47, 0.0  ;;  %v5969_v59 = vmax.f32 %v5416_v30, 0.0  ;;  %9027 = vmatpush3.bf16.msra.mxu1 %v9766_v16  ;;  %v5338_v9 = vpop.f32.mrb[142].mxu1  ;;  %v5419_v8 = vpop.f32.mrb[150].mxu0  ;;  %9067 = vmatpush3.bf16.msra.mxu0 %v9768_v29  ;;  %v9780_v51 = vld [vmem:[#allocation6 + $0x5a0] sm:$0xff]   ;;  %v9781_v30 = vld [vmem:[#allocation6 + $0x568] sm:$0xff]  }
 0x9e7   :  { %v5339_v7 = vadd.f32 %v5338_v9, %v11310_v25  ;;  %v5420_v28 = vadd.f32 %v5419_v8, %v11313_v39  ;;  %v5340_v38 = vpop.f32.mrb[143].mxu1  ;;  %v5421_v2 = vpop.f32.mrb[151].mxu0  ;;  %9028 = vmatprep.subr.bf16.mxu1 %v9769_v18  ;;  %9068 = vmatprep.subr.bf16.mxu0 %v9771_v19  ;;  %v9982_v8 = vld [vmem:[%s11692_s5 + $0x8] sm:$0xff] }
 0x9e8   :  { %v5341_v12 = vadd.f32 %v5340_v38, %v11316_v49  ;;  %v5422_v56 = vadd.f32 %v5421_v2, %v11319_v3  ;;  %7133 = vmatprep.mubr.f32.mxu1 %v5967_v32  ;;  %7206 = vmatprep.mubr.f32.mxu0 %v5969_v59  ;;  %v9783_v32 = vld [vmem:[#allocation6 + $0x5e8] sm:$0xff]   ;;  %v4529_v2 = vrot.slane %v9982_v8, %v10830_v14 }
 0x9e9   :  { %7134 = vmatmul.mubr.f32.gmra.mrb[204].mxu1 %v5966_v45  ;;  %7207 = vmatmul.mubr.f32.gmra.mrb[212].mxu0 %v5968_v50  ;;  %v5982_v48 = vmax.f32 %v5339_v7, 0.0  ;;  %v5984_v36 = vmax.f32 %v5420_v28, 0.0  ;;  %v9782_v28 = vld [vmem:[#allocation6 + $0x528] sm:$0xff]  }
 0x9ea   :  { %v5983_v6 = vmax.f32 %v5341_v12, 0.0  ;;  %v5985_v35 = vmax.f32 %v5422_v56, 0.0  ;;  %9029 = vmatpush3.bf16.msra.mxu1 %v9770_v21  ;;  %v5344_v1 = vpop.f32.mrb[144].mxu1  ;;  %v5425_v52 = vpop.f32.mrb[152].mxu0  ;;  %9069 = vmatpush3.bf16.msra.mxu0 %v9772_v4  ;;  %v4521_v21 = vrot.slane %v9982_v8, %v10275_v15  ;;  %v9784_v38 = vld [vmem:[#allocation6 + $0x5a8] sm:$0xff]  }
 0x9eb   :  { %v5345_v42 = vadd.f32 %v5344_v1, %v11310_v25  ;;  %v5426_v13 = vadd.f32 %v5425_v52, %v11313_v39  ;;  %v5346_v41 = vpop.f32.mrb[145].mxu1  ;;  %v5427_v22 = vpop.f32.mrb[153].mxu0  ;;  %9030 = vmatprep.subr.bf16.mxu1 %v9773_v44  ;;  %9070 = vmatprep.subr.bf16.mxu0 %v9775_v40  ;;  %v4525_v44 = vrot.slane %v9982_v8, %v10686_v17  ;;  %v9785_v52 = vld [vmem:[#allocation6 + $0x570] sm:$0xff]  }
 0x9ec   :  { %v5347_v55 = vadd.f32 %v5346_v41, %v11316_v49  ;;  %v5428_v60 = vadd.f32 %v5427_v22, %v11319_v3  ;;  %7138 = vmatprep.mubr.f32.mxu1 %v5983_v6  ;;  %7211 = vmatprep.mubr.f32.mxu0 %v5985_v35 }
 0x9ed   :  { %7139 = vmatmul.mubr.f32.gmra.mrb[206].mxu1 %v5982_v48  ;;  %7212 = vmatmul.mubr.f32.gmra.mrb[214].mxu0 %v5984_v36  ;;  %v5998_v37 = vmax.f32 %v5345_v42, 0.0  ;;  %v6000_v23 = vmax.f32 %v5426_v13, 0.0  ;;  %v4533_v36 = vrot.slane %v9982_v8, %v11033_v63  ;;  %v11357_v42 = vrot.slane %v4521_v21, %v10275_v15 }
 0x9ee   :  { %v5999_v0 = vmax.f32 %v5347_v55, 0.0  ;;  %v6001_v16 = vmax.f32 %v5428_v60, 0.0  ;;  %9031 = vmatpush3.bf16.msra.mxu1 %v9774_v54  ;;  %v5350_v29 = vpop.f32.mrb[146].mxu1  ;;  %v5431_v58 = vpop.f32.mrb[154].mxu0  ;;  %9071 = vmatpush3.bf16.msra.mxu0 %v9776_v61  ;;  %v9787_v54 = vld [vmem:[#allocation6 + $0x5f0] sm:$0xff]   ;;  %v11360_v55 = vrot.slane %v4529_v2, %v10275_v15 }
 0x9ef   :  { %v5351_v5 = vadd.f32 %v5350_v29, %v11310_v25  ;;  %v5432_v18 = vadd.f32 %v5431_v58, %v11313_v39  ;;  %v5352_v19 = vpop.f32.mrb[147].mxu1  ;;  %v5433_v47 = vpop.f32.mrb[155].mxu0  ;;  %9032 = vmatprep.subr.bf16.mxu1 %v9777_v33  ;;  %9072 = vmatprep.subr.bf16.mxu0 %v9779_v31  ;;  %v9786_v31 = vld [vmem:[#allocation6 + $0x530] sm:$0xff]  }
 0x9f0   :  { %v5353_v59 = vadd.f32 %v5352_v19, %v11316_v49  ;;  %v5434_v9 = vadd.f32 %v5433_v47, %v11319_v3  ;;  %7143 = vmatprep.mubr.f32.mxu1 %v5999_v0  ;;  %7216 = vmatprep.mubr.f32.mxu0 %v6001_v16  ;;  %v9788_v60 = vld [vmem:[#allocation6 + $0x5b0] sm:$0xff]   ;;  %v11363_v0 = vrot.slane %v4525_v44, %v10275_v15 }
 0x9f1   :  { %7144 = vmatmul.mubr.f32.gmra.mrb[208].mxu1 %v5998_v37  ;;  %7217 = vmatmul.mubr.f32.gmra.mrb[216].mxu0 %v6000_v23  ;;  %v6014_v40 = vmax.f32 %v5351_v5, 0.0  ;;  %v6016_v12 = vmax.f32 %v5432_v18, 0.0  ;;  %v9789_v23 = vld [vmem:[#allocation6 + $0x578] sm:$0xff]   ;;  %v11370_v47 = vrot.slane %v4533_v36, %v10275_v15  ;;  %v9797_v36 = vld [vmem:[#allocation6 + $0x648] sm:$0xff]  }
 0x9f2   :  { %v6015_v4 = vmax.f32 %v5353_v59, 0.0  ;;  %v6017_v45 = vmax.f32 %v5434_v9, 0.0  ;;  %9033 = vmatpush3.bf16.msra.mxu1 %v9778_v53  ;;  %v5356_v50 = vpop.f32.mrb[148].mxu1  ;;  %v5437_v7 = vpop.f32.mrb[156].mxu0  ;;  %9073 = vmatpush3.bf16.msra.mxu0 %v9780_v51  ;;  %v9791_v5 = vld [vmem:[#allocation6 + $0x5f8] sm:$0xff]  }
 0x9f3   :  { %v5357_v56 = vadd.f32 %v5356_v50, %v11310_v25  ;;  %v5438_v6 = vadd.f32 %v5437_v7, %v11313_v39  ;;  %v5358_v35 = vpop.f32.mrb[149].mxu1  ;;  %v5439_v1 = vpop.f32.mrb[157].mxu0  ;;  %9034 = vmatprep.subr.bf16.mxu1 %v9781_v30  ;;  %9074 = vmatprep.subr.bf16.mxu0 %v9783_v32  ;;  %v9790_v59 = vld [vmem:[#allocation6 + $0x538] sm:$0xff]   ;;  %v9793_v50 = vld [vmem:[#allocation6 + $0x640] sm:$0xff]  }
 0x9f4   :  { %v5359_v61 = vadd.f32 %v5358_v35, %v11316_v49  ;;  %v5440_v48 = vadd.f32 %v5439_v1, %v11319_v3  ;;  %7148 = vmatprep.mubr.f32.mxu1 %v6015_v4  ;;  %7221 = vmatprep.mubr.f32.mxu0 %v6017_v45  ;;  %v9792_v9 = vld [vmem:[#allocation6 + $0x5b8] sm:$0xff]   ;;  %v9795_v7 = vld [vmem:[#allocation6 + $0x6c0] sm:$0xff]  }
 0x9f5   :  { %7149 = vmatmul.mubr.f32.gmra.mrb[210].mxu1 %v6014_v40  ;;  %7222 = vmatmul.mubr.f32.gmra.mrb[218].mxu0 %v6016_v12  ;;  %v6030_v16 = vmax.f32 %v5357_v56, 0.0  ;;  %v6032_v29 = vmax.f32 %v5438_v6, 0.0  ;;  %v9794_v56 = vld [vmem:[#allocation6 + $0x600] sm:$0xff]  }
 0x9f6   :  { %v6031_v13 = vmax.f32 %v5359_v61, 0.0  ;;  %v6033_v41 = vmax.f32 %v5440_v48, 0.0  ;;  %9035 = vmatpush3.bf16.msra.mxu1 %v9782_v28  ;;  %v5362_v22 = vpop.f32.mrb[150].mxu1  ;;  %v5443_v33 = vpop.f32.mrb[158].mxu0  ;;  %9075 = vmatpush3.bf16.msra.mxu0 %v9784_v38  ;;  %v9796_v6 = vld [vmem:[#allocation6 + $0x680] sm:$0xff]  }
 0x9f7   :  { %v5363_v58 = vadd.f32 %v5362_v22, %v11310_v25  ;;  %v5444_v53 = vadd.f32 %v5443_v33, %v11313_v39  ;;  %v5364_v51 = vpop.f32.mrb[151].mxu1  ;;  %v5445_v37 = vpop.f32.mrb[159].mxu0  ;;  %9036 = vmatprep.subr.bf16.mxu1 %v9785_v52  ;;  %9076 = vmatprep.subr.bf16.mxu0 %v9787_v54 }
 0x9f8   :  { %v5365_v18 = vadd.f32 %v5364_v51, %v11316_v49  ;;  %v5446_v19 = vadd.f32 %v5445_v37, %v11319_v3  ;;  %7153 = vmatprep.mubr.f32.mxu1 %v6031_v13  ;;  %7226 = vmatprep.mubr.f32.mxu0 %v6033_v41  ;;  %v9799_v13 = vld [vmem:[#allocation6 + $0x6c8] sm:$0xff]  }
 0x9f9   :  { %7154 = vmatmul.mubr.f32.gmra.mrb[212].mxu1 %v6030_v16  ;;  %7227 = vmatmul.mubr.f32.gmra.mrb[220].mxu0 %v6032_v29  ;;  %v6046_v8 = vmax.f32 %v5363_v58, 0.0  ;;  %v6048_v21 = vmax.f32 %v5444_v53, 0.0  ;;  %v9798_v29 = vld [vmem:[#allocation6 + $0x608] sm:$0xff]  }
 0x9fa   :  { %v6047_v25 = vmax.f32 %v5365_v18, 0.0  ;;  %v6049_v30 = vmax.f32 %v5446_v19, 0.0  ;;  %9037 = vmatpush3.bf16.msra.mxu1 %v9786_v31  ;;  %v5482_v39 = vpop.f32.mrb[152].mxu1  ;;  %v5563_v32 = vpop.f32.mrb[160].mxu0  ;;  %9077 = vmatpush3.bf16.msra.mxu0 %v9788_v60  ;;  %v9800_v58 = vld [vmem:[#allocation6 + $0x688] sm:$0xff]   ;;  %v9801_v19 = vld [vmem:[#allocation6 + $0x650] sm:$0xff]  }
 0x9fb   :  { %v5483_v49 = vadd.f32 %v5482_v39, %v11357_v42  ;;  %v5564_v3 = vadd.f32 %v5563_v32, %v11360_v55  ;;  %v5484_v4 = vpop.f32.mrb[153].mxu1  ;;  %v5565_v45 = vpop.f32.mrb[161].mxu0  ;;  %9038 = vmatprep.subr.bf16.mxu1 %v9789_v23  ;;  %9078 = vmatprep.subr.bf16.mxu0 %v9791_v5 }
 0x9fc   :  { %v5485_v28 = vadd.f32 %v5484_v4, %v11363_v0  ;;  %v5566_v38 = vadd.f32 %v5565_v45, %v11370_v47  ;;  %7158 = vmatprep.mubr.f32.mxu1 %v6047_v25  ;;  %7231 = vmatprep.mubr.f32.mxu0 %v6049_v30  ;;  %v9803_v25 = vld [vmem:[#allocation6 + $0x6d0] sm:$0xff]  }
 0x9fd   :  { %7159 = vmatmul.mubr.f32.gmra.mrb[214].mxu1 %v6046_v8  ;;  %7232 = vmatmul.mubr.f32.gmra.mrb[222].mxu0 %v6048_v21  ;;  %v5938_v35 = vmax.f32 %v5483_v49, 0.0  ;;  %v5940_v1 = vmax.f32 %v5564_v3, 0.0  ;;  %v9802_v21 = vld [vmem:[#allocation6 + $0x610] sm:$0xff]  }
 0x9fe   :  { %v5939_v2 = vmax.f32 %v5485_v28, 0.0  ;;  %v5941_v44 = vmax.f32 %v5566_v38, 0.0  ;;  %9039 = vmatpush3.bf16.msra.mxu1 %v9790_v59  ;;  %v5488_v40 = vpop.f32.mrb[154].mxu1  ;;  %v5569_v12 = vpop.f32.mrb[162].mxu0  ;;  %9079 = vmatpush3.bf16.msra.mxu0 %v9792_v9  ;;  %v9804_v49 = vld [vmem:[#allocation6 + $0x690] sm:$0xff]   ;;  %v9805_v38 = vld [vmem:[#allocation6 + $0x658] sm:$0xff]  }
 0x9ff   :  { %v5489_v52 = vadd.f32 %v5488_v40, %v11357_v42  ;;  %v5570_v54 = vadd.f32 %v5569_v12, %v11360_v55  ;;  %v5490_v61 = vpop.f32.mrb[155].mxu1  ;;  %v5571_v48 = vpop.f32.mrb[163].mxu0  ;;  %9104 = vmatprep.subr.bf16.mxu1 %v9793_v50  ;;  %9144 = vmatprep.subr.bf16.mxu0 %v9795_v7 }
 0xa00   :  { %v5491_v41 = vadd.f32 %v5490_v61, %v11363_v0  ;;  %v5572_v22 = vadd.f32 %v5571_v48, %v11370_v47  ;;  %7269 = vmatprep.mubr.f32.mxu1 %v5939_v2  ;;  %7342 = vmatprep.mubr.f32.mxu0 %v5941_v44  ;;  %v9807_v2 = vld [vmem:[#allocation6 + $0x6d8] sm:$0xff]  }
 0xa01   :  { %7270 = vmatmul.mubr.f32.vlgmr.msra.gmra.mrb[216].mxu1 %v5938_v35  ;;  %7343 = vmatmul.mubr.f32.vlgmr.msra.gmra.mrb[224].mxu0 %v5940_v1  ;;  %v5954_v53 = vmax.f32 %v5489_v52, 0.0  ;;  %v5956_v51 = vmax.f32 %v5570_v54, 0.0  ;;  %v9806_v1 = vld [vmem:[#allocation6 + $0x618] sm:$0xff]  }
 0xa02   :  { %v5955_v33 = vmax.f32 %v5491_v41, 0.0  ;;  %v5957_v31 = vmax.f32 %v5572_v22, 0.0  ;;  %9105 = vmatpush3.bf16.msra.mxu1 %v9794_v56  ;;  %v5494_v60 = vpop.f32.mrb[156].mxu1  ;;  %v5575_v16 = vpop.f32.mrb[164].mxu0  ;;  %9145 = vmatpush3.bf16.msra.mxu0 %v9796_v6  ;;  %v9808_v52 = vld [vmem:[#allocation6 + $0x698] sm:$0xff]   ;;  %v9809_v22 = vld [vmem:[#allocation6 + $0x660] sm:$0xff]  }
 0xa03   :  { %v5495_v37 = vadd.f32 %v5494_v60, %v11357_v42  ;;  %v5576_v23 = vadd.f32 %v5575_v16, %v11360_v55  ;;  %v5496_v5 = vpop.f32.mrb[157].mxu1  ;;  %v5577_v18 = vpop.f32.mrb[165].mxu0  ;;  %9106 = vmatprep.subr.bf16.mxu1 %v9797_v36  ;;  %9146 = vmatprep.subr.bf16.mxu0 %v9799_v13 }
 0xa04   :  { %v5497_v30 = vadd.f32 %v5496_v5, %v11363_v0  ;;  %v5578_v39 = vadd.f32 %v5577_v18, %v11370_v47  ;;  %7274 = vmatprep.mubr.f32.mxu1 %v5955_v33  ;;  %7347 = vmatprep.mubr.f32.mxu0 %v5957_v31  ;;  %v9811_v33 = vld [vmem:[#allocation6 + $0x6e0] sm:$0xff]  }
 0xa05   :  { %7275 = vmatmul.mubr.f32.gmra.mrb[218].mxu1 %v5954_v53  ;;  %7348 = vmatmul.mubr.f32.gmra.mrb[226].mxu0 %v5956_v51  ;;  %v5970_v3 = vmax.f32 %v5495_v37, 0.0  ;;  %v5972_v4 = vmax.f32 %v5576_v23, 0.0  ;;  %v9810_v51 = vld [vmem:[#allocation6 + $0x620] sm:$0xff]  }
 0xa06   :  { %v5971_v32 = vmax.f32 %v5497_v30, 0.0  ;;  %v5973_v59 = vmax.f32 %v5578_v39, 0.0  ;;  %9107 = vmatpush3.bf16.msra.mxu1 %v9798_v29  ;;  %v5500_v9 = vpop.f32.mrb[158].mxu1  ;;  %v5581_v8 = vpop.f32.mrb[166].mxu0  ;;  %9147 = vmatpush3.bf16.msra.mxu0 %v9800_v58  ;;  %v9812_v37 = vld [vmem:[#allocation6 + $0x6a0] sm:$0xff]   ;;  %v9813_v39 = vld [vmem:[#allocation6 + $0x668] sm:$0xff]  }
 0xa07   :  { %v5501_v45 = vadd.f32 %v5500_v9, %v11357_v42  ;;  %v5582_v50 = vadd.f32 %v5581_v8, %v11360_v55  ;;  %v5502_v7 = vpop.f32.mrb[159].mxu1  ;;  %v5583_v28 = vpop.f32.mrb[167].mxu0  ;;  %9108 = vmatprep.subr.bf16.mxu1 %v9801_v19  ;;  %9148 = vmatprep.subr.bf16.mxu0 %v9803_v25  ;;  %v9983_v8 = vld [vmem:[%s11692_s5 + $0x10] sm:$0xff] }
 0xa08   :  { %v5503_v44 = vadd.f32 %v5502_v7, %v11363_v0  ;;  %v5584_v40 = vadd.f32 %v5583_v28, %v11370_v47  ;;  %7279 = vmatprep.mubr.f32.mxu1 %v5971_v32  ;;  %7352 = vmatprep.mubr.f32.mxu0 %v5973_v59  ;;  %v9815_v32 = vld [vmem:[#allocation6 + $0x6e8] sm:$0xff]   ;;  %v4545_v28 = vrot.slane %v9983_v8, %v10830_v14 }
 0xa09   :  { %7280 = vmatmul.mubr.f32.gmra.mrb[220].mxu1 %v5970_v3  ;;  %7353 = vmatmul.mubr.f32.gmra.mrb[228].mxu0 %v5972_v4  ;;  %v5986_v54 = vmax.f32 %v5501_v45, 0.0  ;;  %v5988_v61 = vmax.f32 %v5582_v50, 0.0  ;;  %v9814_v50 = vld [vmem:[#allocation6 + $0x628] sm:$0xff]  }
 0xa0a   :  { %v5987_v12 = vmax.f32 %v5503_v44, 0.0  ;;  %v5989_v56 = vmax.f32 %v5584_v40, 0.0  ;;  %9109 = vmatpush3.bf16.msra.mxu1 %v9802_v21  ;;  %v5506_v6 = vpop.f32.mrb[160].mxu1  ;;  %v5587_v35 = vpop.f32.mrb[168].mxu0  ;;  %9149 = vmatpush3.bf16.msra.mxu0 %v9804_v49  ;;  %v4537_v21 = vrot.slane %v9983_v8, %v10275_v15  ;;  %v9816_v7 = vld [vmem:[#allocation6 + $0x6a8] sm:$0xff]  }
 0xa0b   :  { %v5507_v48 = vadd.f32 %v5506_v6, %v11357_v42  ;;  %v5588_v36 = vadd.f32 %v5587_v35, %v11360_v55  ;;  %v5508_v13 = vpop.f32.mrb[161].mxu1  ;;  %v5589_v41 = vpop.f32.mrb[169].mxu0  ;;  %9110 = vmatprep.subr.bf16.mxu1 %v9805_v38  ;;  %9150 = vmatprep.subr.bf16.mxu0 %v9807_v2  ;;  %v4541_v38 = vrot.slane %v9983_v8, %v10686_v17  ;;  %v9817_v35 = vld [vmem:[#allocation6 + $0x670] sm:$0xff]  }
 0xa0c   :  { %v5509_v31 = vadd.f32 %v5508_v13, %v11363_v0  ;;  %v5590_v60 = vadd.f32 %v5589_v41, %v11370_v47  ;;  %7284 = vmatprep.mubr.f32.mxu1 %v5987_v12  ;;  %7357 = vmatprep.mubr.f32.mxu0 %v5989_v56 }
 0xa0d   :  { %7285 = vmatmul.mubr.f32.gmra.mrb[222].mxu1 %v5986_v54  ;;  %7358 = vmatmul.mubr.f32.gmra.mrb[230].mxu0 %v5988_v61  ;;  %v6002_v23 = vmax.f32 %v5507_v48, 0.0  ;;  %v6004_v5 = vmax.f32 %v5588_v36, 0.0  ;;  %v4549_v61 = vrot.slane %v9983_v8, %v11033_v63  ;;  %v11408_v48 = vrot.slane %v4537_v21, %v10275_v15 }
 0xa0e   :  { %v6003_v16 = vmax.f32 %v5509_v31, 0.0  ;;  %v6005_v29 = vmax.f32 %v5590_v60, 0.0  ;;  %9111 = vmatpush3.bf16.msra.mxu1 %v9806_v1  ;;  %v5512_v58 = vpop.f32.mrb[162].mxu1  ;;  %v5593_v53 = vpop.f32.mrb[170].mxu0  ;;  %9151 = vmatpush3.bf16.msra.mxu0 %v9808_v52  ;;  %v9819_v1 = vld [vmem:[#allocation6 + $0x6f0] sm:$0xff]   ;;  %v11411_v31 = vrot.slane %v4545_v28, %v10275_v15 }
 0xa0f   :  { %v5513_v18 = vadd.f32 %v5512_v58, %v11357_v42  ;;  %v5594_v19 = vadd.f32 %v5593_v53, %v11360_v55  ;;  %v5514_v25 = vpop.f32.mrb[163].mxu1  ;;  %v5595_v30 = vpop.f32.mrb[171].mxu0  ;;  %9112 = vmatprep.subr.bf16.mxu1 %v9809_v22  ;;  %9152 = vmatprep.subr.bf16.mxu0 %v9811_v33  ;;  %v9818_v33 = vld [vmem:[#allocation6 + $0x630] sm:$0xff]  }
 0xa10   :  { %v5515_v59 = vadd.f32 %v5514_v25, %v11363_v0  ;;  %v5596_v9 = vadd.f32 %v5595_v30, %v11370_v47  ;;  %7289 = vmatprep.mubr.f32.mxu1 %v6003_v16  ;;  %7362 = vmatprep.mubr.f32.mxu0 %v6005_v29  ;;  %v9820_v60 = vld [vmem:[#allocation6 + $0x6b0] sm:$0xff]   ;;  %v11414_v16 = vrot.slane %v4541_v38, %v10275_v15 }
 0xa11   :  { %7290 = vmatmul.mubr.f32.gmra.mrb[224].mxu1 %v6002_v23  ;;  %7363 = vmatmul.mubr.f32.gmra.mrb[232].mxu0 %v6004_v5  ;;  %v6018_v2 = vmax.f32 %v5513_v18, 0.0  ;;  %v6020_v44 = vmax.f32 %v5594_v19, 0.0  ;;  %v9821_v5 = vld [vmem:[#allocation6 + $0x678] sm:$0xff]   ;;  %v11421_v30 = vrot.slane %v4549_v61, %v10275_v15  ;;  %v9829_v61 = vld [vmem:[#allocation6 + $0x748] sm:$0xff]  }
 0xa12   :  { %v6019_v49 = vmax.f32 %v5515_v59, 0.0  ;;  %v6021_v3 = vmax.f32 %v5596_v9, 0.0  ;;  %9113 = vmatpush3.bf16.msra.mxu1 %v9810_v51  ;;  %v5518_v4 = vpop.f32.mrb[164].mxu1  ;;  %v5599_v45 = vpop.f32.mrb[172].mxu0  ;;  %9153 = vmatpush3.bf16.msra.mxu0 %v9812_v37  ;;  %v9823_v18 = vld [vmem:[#allocation6 + $0x6f8] sm:$0xff]  }
 0xa13   :  { %v5519_v40 = vadd.f32 %v5518_v4, %v11357_v42  ;;  %v5600_v12 = vadd.f32 %v5599_v45, %v11360_v55  ;;  %v5520_v56 = vpop.f32.mrb[165].mxu1  ;;  %v5601_v6 = vpop.f32.mrb[173].mxu0  ;;  %9114 = vmatprep.subr.bf16.mxu1 %v9813_v39  ;;  %9154 = vmatprep.subr.bf16.mxu0 %v9815_v32  ;;  %v9822_v59 = vld [vmem:[#allocation6 + $0x638] sm:$0xff]   ;;  %v9825_v4 = vld [vmem:[#allocation6 + $0x740] sm:$0xff]  }
 0xa14   :  { %v5521_v52 = vadd.f32 %v5520_v56, %v11363_v0  ;;  %v5602_v54 = vadd.f32 %v5601_v6, %v11370_v47  ;;  %7294 = vmatprep.mubr.f32.mxu1 %v6019_v49  ;;  %7367 = vmatprep.mubr.f32.mxu0 %v6021_v3  ;;  %v9824_v9 = vld [vmem:[#allocation6 + $0x6b8] sm:$0xff]   ;;  %v9827_v45 = vld [vmem:[#allocation6 + $0x7c0] sm:$0xff]  }
 0xa15   :  { %7295 = vmatmul.mubr.f32.gmra.mrb[226].mxu1 %v6018_v2  ;;  %7368 = vmatmul.mubr.f32.gmra.mrb[234].mxu0 %v6020_v44  ;;  %v6034_v29 = vmax.f32 %v5519_v40, 0.0  ;;  %v6036_v58 = vmax.f32 %v5600_v12, 0.0  ;;  %v9826_v40 = vld [vmem:[#allocation6 + $0x700] sm:$0xff]  }
 0xa16   :  { %v6035_v36 = vmax.f32 %v5521_v52, 0.0  ;;  %v6037_v13 = vmax.f32 %v5602_v54, 0.0  ;;  %9115 = vmatpush3.bf16.msra.mxu1 %v9814_v50  ;;  %v5524_v41 = vpop.f32.mrb[166].mxu1  ;;  %v5605_v22 = vpop.f32.mrb[174].mxu0  ;;  %9155 = vmatpush3.bf16.msra.mxu0 %v9816_v7  ;;  %v9828_v12 = vld [vmem:[#allocation6 + $0x780] sm:$0xff]  }
 0xa17   :  { %v5525_v53 = vadd.f32 %v5524_v41, %v11357_v42  ;;  %v5606_v51 = vadd.f32 %v5605_v22, %v11360_v55  ;;  %v5526_v37 = vpop.f32.mrb[167].mxu1  ;;  %v5607_v23 = vpop.f32.mrb[175].mxu0  ;;  %9116 = vmatprep.subr.bf16.mxu1 %v9817_v35  ;;  %9156 = vmatprep.subr.bf16.mxu0 %v9819_v1 }
 0xa18   :  { %v5527_v19 = vadd.f32 %v5526_v37, %v11363_v0  ;;  %v5608_v25 = vadd.f32 %v5607_v23, %v11370_v47  ;;  %7299 = vmatprep.mubr.f32.mxu1 %v6035_v36  ;;  %7372 = vmatprep.mubr.f32.mxu0 %v6037_v13  ;;  %v9831_v36 = vld [vmem:[#allocation6 + $0x7c8] sm:$0xff]  }
 0xa19   :  { %7300 = vmatmul.mubr.f32.gmra.mrb[228].mxu1 %v6034_v29  ;;  %7373 = vmatmul.mubr.f32.gmra.mrb[236].mxu0 %v6036_v58  ;;  %v6050_v8 = vmax.f32 %v5525_v53, 0.0  ;;  %v6052_v21 = vmax.f32 %v5606_v51, 0.0  ;;  %v9830_v58 = vld [vmem:[#allocation6 + $0x708] sm:$0xff]  }
 0xa1a   :  { %v6051_v42 = vmax.f32 %v5527_v19, 0.0  ;;  %v6053_v39 = vmax.f32 %v5608_v25, 0.0  ;;  %9117 = vmatpush3.bf16.msra.mxu1 %v9818_v33  ;;  %v5644_v55 = vpop.f32.mrb[168].mxu1  ;;  %v5725_v32 = vpop.f32.mrb[176].mxu0  ;;  %9157 = vmatpush3.bf16.msra.mxu0 %v9820_v60  ;;  %v9832_v53 = vld [vmem:[#allocation6 + $0x788] sm:$0xff]   ;;  %v9833_v25 = vld [vmem:[#allocation6 + $0x750] sm:$0xff]  }
 0xa1b   :  { %v5645_v0 = vadd.f32 %v5644_v55, %v11408_v48  ;;  %v5726_v47 = vadd.f32 %v5725_v32, %v11411_v31  ;;  %v5646_v49 = vpop.f32.mrb[169].mxu1  ;;  %v5727_v3 = vpop.f32.mrb[177].mxu0  ;;  %9118 = vmatprep.subr.bf16.mxu1 %v9821_v5  ;;  %9158 = vmatprep.subr.bf16.mxu0 %v9823_v18 }
 0xa1c   :  { %v5647_v50 = vadd.f32 %v5646_v49, %v11414_v16  ;;  %v5728_v7 = vadd.f32 %v5727_v3, %v11421_v30  ;;  %7304 = vmatprep.mubr.f32.mxu1 %v6051_v42  ;;  %7377 = vmatprep.mubr.f32.mxu0 %v6053_v39  ;;  %v9835_v42 = vld [vmem:[#allocation6 + $0x7d0] sm:$0xff]  }
 0xa1d   :  { %7305 = vmatmul.mubr.f32.gmra.mrb[230].mxu1 %v6050_v8  ;;  %7378 = vmatmul.mubr.f32.gmra.mrb[238].mxu0 %v6052_v21  ;;  %v5942_v56 = vmax.f32 %v5645_v0, 0.0  ;;  %v5944_v6 = vmax.f32 %v5726_v47, 0.0  ;;  %v9834_v21 = vld [vmem:[#allocation6 + $0x710] sm:$0xff]  }
 0xa1e   :  { %v5943_v28 = vmax.f32 %v5647_v50, 0.0  ;;  %v5945_v38 = vmax.f32 %v5728_v7, 0.0  ;;  %9119 = vmatpush3.bf16.msra.mxu1 %v9822_v59  ;;  %v5650_v2 = vpop.f32.mrb[170].mxu1  ;;  %v5731_v44 = vpop.f32.mrb[178].mxu0  ;;  %9159 = vmatpush3.bf16.msra.mxu0 %v9824_v9  ;;  %v9836_v0 = vld [vmem:[#allocation6 + $0x790] sm:$0xff]   ;;  %v9837_v7 = vld [vmem:[#allocation6 + $0x758] sm:$0xff]  }
 0xa1f   :  { %v5651_v35 = vadd.f32 %v5650_v2, %v11408_v48  ;;  %v5732_v1 = vadd.f32 %v5731_v44, %v11411_v31  ;;  %v5652_v52 = vpop.f32.mrb[171].mxu1  ;;  %v5733_v54 = vpop.f32.mrb[179].mxu0  ;;  %9184 = vmatprep.subr.bf16.mxu1 %v9825_v4  ;;  %9224 = vmatprep.subr.bf16.mxu0 %v9827_v45 }
 0xa20   :  { %v5653_v13 = vadd.f32 %v5652_v52, %v11414_v16  ;;  %v5734_v41 = vadd.f32 %v5733_v54, %v11421_v30  ;;  %7415 = vmatprep.mubr.f32.mxu1 %v5943_v28  ;;  %7488 = vmatprep.mubr.f32.mxu0 %v5945_v38  ;;  %v9839_v28 = vld [vmem:[#allocation6 + $0x7d8] sm:$0xff]  }
 0xa21   :  { %7416 = vmatmul.mubr.f32.vlgmr.msra.gmra.mrb[232].mxu1 %v5942_v56  ;;  %7489 = vmatmul.mubr.f32.vlgmr.msra.gmra.mrb[240].mxu0 %v5944_v6  ;;  %v5958_v51 = vmax.f32 %v5651_v35, 0.0  ;;  %v5960_v37 = vmax.f32 %v5732_v1, 0.0  ;;  %v9838_v6 = vld [vmem:[#allocation6 + $0x718] sm:$0xff]  }
 0xa22   :  { %v5959_v22 = vmax.f32 %v5653_v13, 0.0  ;;  %v5961_v33 = vmax.f32 %v5734_v41, 0.0  ;;  %9185 = vmatpush3.bf16.msra.mxu1 %v9826_v40  ;;  %v5656_v60 = vpop.f32.mrb[172].mxu1  ;;  %v5737_v29 = vpop.f32.mrb[180].mxu0  ;;  %9225 = vmatpush3.bf16.msra.mxu0 %v9828_v12  ;;  %v9840_v35 = vld [vmem:[#allocation6 + $0x798] sm:$0xff]   ;;  %v9841_v41 = vld [vmem:[#allocation6 + $0x760] sm:$0xff]  }
 0xa23   :  { %v5657_v23 = vadd.f32 %v5656_v60, %v11408_v48  ;;  %v5738_v5 = vadd.f32 %v5737_v29, %v11411_v31  ;;  %v5658_v18 = vpop.f32.mrb[173].mxu1  ;;  %v5739_v19 = vpop.f32.mrb[181].mxu0  ;;  %9186 = vmatprep.subr.bf16.mxu1 %v9829_v61  ;;  %9226 = vmatprep.subr.bf16.mxu0 %v9831_v36 }
 0xa24   :  { %v5659_v39 = vadd.f32 %v5658_v18, %v11414_v16  ;;  %v5740_v55 = vadd.f32 %v5739_v19, %v11421_v30  ;;  %7420 = vmatprep.mubr.f32.mxu1 %v5959_v22  ;;  %7493 = vmatprep.mubr.f32.mxu0 %v5961_v33  ;;  %v9843_v22 = vld [vmem:[#allocation6 + $0x7e0] sm:$0xff]  }
 0xa25   :  { %7421 = vmatmul.mubr.f32.gmra.mrb[234].mxu1 %v5958_v51  ;;  %7494 = vmatmul.mubr.f32.gmra.mrb[242].mxu0 %v5960_v37  ;;  %v5974_v47 = vmax.f32 %v5657_v23, 0.0  ;;  %v5976_v49 = vmax.f32 %v5738_v5, 0.0  ;;  %v9842_v37 = vld [vmem:[#allocation6 + $0x720] sm:$0xff]  }
 0xa26   :  { %v5975_v32 = vmax.f32 %v5659_v39, 0.0  ;;  %v5977_v59 = vmax.f32 %v5740_v55, 0.0  ;;  %9187 = vmatpush3.bf16.msra.mxu1 %v9830_v58  ;;  %v5662_v9 = vpop.f32.mrb[174].mxu1  ;;  %v5743_v8 = vpop.f32.mrb[182].mxu0  ;;  %9227 = vmatpush3.bf16.msra.mxu0 %v9832_v53  ;;  %v9844_v23 = vld [vmem:[#allocation6 + $0x7a0] sm:$0xff]   ;;  %v9845_v55 = vld [vmem:[#allocation6 + $0x768] sm:$0xff]  }
 0xa27   :  { %v5663_v3 = vadd.f32 %v5662_v9, %v11408_v48  ;;  %v5744_v4 = vadd.f32 %v5743_v8, %v11411_v31  ;;  %v5664_v45 = vpop.f32.mrb[175].mxu1  ;;  %v5745_v50 = vpop.f32.mrb[183].mxu0  ;;  %9188 = vmatprep.subr.bf16.mxu1 %v9833_v25  ;;  %9228 = vmatprep.subr.bf16.mxu0 %v9835_v42  ;;  %v9984_v8 = vld [vmem:[%s11692_s5 + $0x18] sm:$0xff] }
 0xa28   :  { %v5665_v38 = vadd.f32 %v5664_v45, %v11414_v16  ;;  %v5746_v2 = vadd.f32 %v5745_v50, %v11421_v30  ;;  %7425 = vmatprep.mubr.f32.mxu1 %v5975_v32  ;;  %7498 = vmatprep.mubr.f32.mxu0 %v5977_v59  ;;  %v9847_v32 = vld [vmem:[#allocation6 + $0x7e8] sm:$0xff]   ;;  %v4561_v50 = vrot.slane %v9984_v8, %v10830_v14 }
 0xa29   :  { %7426 = vmatmul.mubr.f32.gmra.mrb[236].mxu1 %v5974_v47  ;;  %7499 = vmatmul.mubr.f32.gmra.mrb[244].mxu0 %v5976_v49  ;;  %v5990_v1 = vmax.f32 %v5663_v3, 0.0  ;;  %v5992_v52 = vmax.f32 %v5744_v4, 0.0  ;;  %v9846_v4 = vld [vmem:[#allocation6 + $0x728] sm:$0xff]  }
 0xa2a   :  { %v5991_v44 = vmax.f32 %v5665_v38, 0.0  ;;  %v5993_v40 = vmax.f32 %v5746_v2, 0.0  ;;  %9189 = vmatpush3.bf16.msra.mxu1 %v9834_v21  ;;  %v5668_v12 = vpop.f32.mrb[176].mxu1  ;;  %v5749_v56 = vpop.f32.mrb[184].mxu0  ;;  %9229 = vmatpush3.bf16.msra.mxu0 %v9836_v0  ;;  %v4553_v21 = vrot.slane %v9984_v8, %v10275_v15  ;;  %v9848_v45 = vld [vmem:[#allocation6 + $0x7a8] sm:$0xff]  }
 0xa2b   :  { %v5669_v54 = vadd.f32 %v5668_v12, %v11408_v48  ;;  %v5750_v61 = vadd.f32 %v5749_v56, %v11411_v31  ;;  %v5670_v36 = vpop.f32.mrb[177].mxu1  ;;  %v5751_v13 = vpop.f32.mrb[185].mxu0  ;;  %9190 = vmatprep.subr.bf16.mxu1 %v9837_v7  ;;  %9230 = vmatprep.subr.bf16.mxu0 %v9839_v28  ;;  %v4557_v7 = vrot.slane %v9984_v8, %v10686_v17  ;;  %v9849_v56 = vld [vmem:[#allocation6 + $0x770] sm:$0xff]  }
 0xa2c   :  { %v5671_v33 = vadd.f32 %v5670_v36, %v11414_v16  ;;  %v5752_v60 = vadd.f32 %v5751_v13, %v11421_v30  ;;  %7430 = vmatprep.mubr.f32.mxu1 %v5991_v44  ;;  %7503 = vmatprep.mubr.f32.mxu0 %v5993_v40  ;;  %v4565_v17 = vrot.slane %v9984_v8, %v11033_v63 }
 0xa2d   :  { %7431 = vmatmul.mubr.f32.gmra.mrb[238].mxu1 %v5990_v1  ;;  %7504 = vmatmul.mubr.f32.gmra.mrb[246].mxu0 %v5992_v52  ;;  %v6006_v5 = vmax.f32 %v5669_v54, 0.0  ;;  %v6008_v18 = vmax.f32 %v5750_v61, 0.0  ;;  %v11459_v52 = vrot.slane %v4553_v21, %v10275_v15 }
 0xa2e   :  { %v6007_v29 = vmax.f32 %v5671_v33, 0.0  ;;  %v6009_v58 = vmax.f32 %v5752_v60, 0.0  ;;  %9191 = vmatpush3.bf16.msra.mxu1 %v9838_v6  ;;  %v5674_v53 = vpop.f32.mrb[178].mxu1  ;;  %v5755_v51 = vpop.f32.mrb[186].mxu0  ;;  %9231 = vmatpush3.bf16.msra.mxu0 %v9840_v35  ;;  %v9851_v6 = vld [vmem:[#allocation6 + $0x7f0] sm:$0xff]   ;;  %v11465_v60 = vrot.slane %v4557_v7, %v10275_v15 }
 0xa2f   :  { %v5675_v19 = vadd.f32 %v5674_v53, %v11408_v48  ;;  %v5756_v25 = vadd.f32 %v5755_v51, %v11411_v31  ;;  %v5676_v42 = vpop.f32.mrb[179].mxu1  ;;  %v5757_v39 = vpop.f32.mrb[187].mxu0  ;;  %9192 = vmatprep.subr.bf16.mxu1 %v9841_v41  ;;  %9232 = vmatprep.subr.bf16.mxu0 %v9843_v22  ;;  %v9850_v41 = vld [vmem:[#allocation6 + $0x730] sm:$0xff]   ;;  %v11462_v22 = vrot.slane %v4561_v50, %v10275_v15 }
 0xa30   :  { %v5677_v59 = vadd.f32 %v5676_v42, %v11414_v16  ;;  %v5758_v9 = vadd.f32 %v5757_v39, %v11421_v30  ;;  %7435 = vmatprep.mubr.f32.mxu1 %v6007_v29  ;;  %7508 = vmatprep.mubr.f32.mxu0 %v6009_v58  ;;  %v9852_v33 = vld [vmem:[#allocation6 + $0x7b0] sm:$0xff]   ;;  %v11472_v42 = vrot.slane %v4565_v17, %v10275_v15 }
 0xa31   :  { %7436 = vmatmul.mubr.f32.gmra.mrb[240].mxu1 %v6006_v5  ;;  %7509 = vmatmul.mubr.f32.gmra.mrb[248].mxu0 %v6008_v18  ;;  %v6022_v28 = vmax.f32 %v5675_v19, 0.0  ;;  %v6024_v38 = vmax.f32 %v5756_v25, 0.0  ;;  %v9853_v5 = vld [vmem:[#allocation6 + $0x778] sm:$0xff]  }
 0xa32   :  { %v6023_v0 = vmax.f32 %v5677_v59, 0.0  ;;  %v6025_v47 = vmax.f32 %v5758_v9, 0.0  ;;  %9193 = vmatpush3.bf16.msra.mxu1 %v9842_v37  ;;  %v5680_v49 = vpop.f32.mrb[180].mxu1  ;;  %v5761_v3 = vpop.f32.mrb[188].mxu0  ;;  %9233 = vmatpush3.bf16.msra.mxu0 %v9844_v23  ;;  %v9855_v18 = vld [vmem:[#allocation6 + $0x7f8] sm:$0xff]  }
 0xa33   :  { %v5681_v2 = vadd.f32 %v5680_v49, %v11408_v48  ;;  %v5762_v44 = vadd.f32 %v5761_v3, %v11411_v31  ;;  %v5682_v40 = vpop.f32.mrb[181].mxu1  ;;  %v5763_v12 = vpop.f32.mrb[189].mxu0  ;;  %9194 = vmatprep.subr.bf16.mxu1 %v9845_v55  ;;  %9234 = vmatprep.subr.bf16.mxu0 %v9847_v32  ;;  %v9854_v32 = vld [vmem:[#allocation6 + $0x738] sm:$0xff]  }
 0xa34   :  { %v5683_v35 = vadd.f32 %v5682_v40, %v11414_v16  ;;  %v5764_v1 = vadd.f32 %v5763_v12, %v11421_v30  ;;  %7440 = vmatprep.mubr.f32.mxu1 %v6023_v0  ;;  %7513 = vmatprep.mubr.f32.mxu0 %v6025_v47  ;;  %v9856_v59 = vld [vmem:[#allocation6 + $0x7b8] sm:$0xff]  }
 0xa35   :  { %7441 = vmatmul.mubr.f32.gmra.mrb[242].mxu1 %v6022_v28  ;;  %7514 = vmatmul.mubr.f32.gmra.mrb[250].mxu0 %v6024_v38  ;;  %v6038_v29 = vmax.f32 %v5681_v2, 0.0  ;;  %v6040_v58 = vmax.f32 %v5762_v44, 0.0 }
 0xa36   :  { %v6039_v54 = vmax.f32 %v5683_v35, 0.0  ;;  %v6041_v61 = vmax.f32 %v5764_v1, 0.0  ;;  %9195 = vmatpush3.bf16.msra.mxu1 %v9846_v4  ;;  %v5686_v36 = vpop.f32.mrb[182].mxu1  ;;  %v5767_v13 = vpop.f32.mrb[190].mxu0  ;;  %9235 = vmatpush3.bf16.msra.mxu0 %v9848_v45 }
 0xa37   :  { %v5687_v53 = vadd.f32 %v5686_v36, %v11408_v48  ;;  %v5768_v51 = vadd.f32 %v5767_v13, %v11411_v31  ;;  %v5688_v37 = vpop.f32.mrb[183].mxu1  ;;  %v5769_v23 = vpop.f32.mrb[191].mxu0  ;;  %9196 = vmatprep.subr.bf16.mxu1 %v9849_v56  ;;  %9236 = vmatprep.subr.bf16.mxu0 %v9851_v6 }
 0xa38   :  { %v5689_v19 = vadd.f32 %v5688_v37, %v11414_v16  ;;  %v5770_v25 = vadd.f32 %v5769_v23, %v11421_v30  ;;  %7445 = vmatprep.mubr.f32.mxu1 %v6039_v54  ;;  %7518 = vmatprep.mubr.f32.mxu0 %v6041_v61 }
 0xa39   :  { %7446 = vmatmul.mubr.f32.gmra.mrb[244].mxu1 %v6038_v29  ;;  %7519 = vmatmul.mubr.f32.gmra.mrb[252].mxu0 %v6040_v58  ;;  %v6054_v9 = vmax.f32 %v5687_v53, 0.0  ;;  %v6056_v8 = vmax.f32 %v5768_v51, 0.0 }
 0xa3a   :  { %v6055_v48 = vmax.f32 %v5689_v19, 0.0  ;;  %v6057_v39 = vmax.f32 %v5770_v25, 0.0  ;;  %9197 = vmatpush3.bf16.msra.mxu1 %v9850_v41  ;;  %v5806_v31 = vpop.f32.mrb[184].mxu1  ;;  %v5887_v55 = vpop.f32.mrb[192].mxu0  ;;  %9237 = vmatpush3.bf16.msra.mxu0 %v9852_v33 }
 0xa3b   :  { %v5807_v16 = vadd.f32 %v5806_v31, %v11459_v52  ;;  %v5888_v30 = vadd.f32 %v5887_v55, %v11462_v22  ;;  %v5808_v21 = vpop.f32.mrb[185].mxu1  ;;  %v5889_v0 = vpop.f32.mrb[193].mxu0  ;;  %9198 = vmatprep.subr.bf16.mxu1 %v9853_v5  ;;  %9238 = vmatprep.subr.bf16.mxu0 %v9855_v18 }
 0xa3c   :  { %v5809_v15 = vadd.f32 %v5808_v21, %v11465_v60  ;;  %v5890_v47 = vadd.f32 %v5889_v0, %v11472_v42  ;;  %7450 = vmatprep.mubr.f32.mxu1 %v6055_v48  ;;  %7523 = vmatprep.mubr.f32.mxu0 %v6057_v39 }
 0xa3d   :  { %7451 = vmatmul.mubr.f32.gmra.mrb[246].mxu1 %v6054_v9  ;;  %7524 = vmatmul.mubr.f32.gmra.mrb[254].mxu0 %v6056_v8  ;;  %v5946_v50 = vmax.f32 %v5807_v16, 0.0  ;;  %v5948_v7 = vmax.f32 %v5888_v30, 0.0 }
 0xa3e   :  { %v5947_v49 = vmax.f32 %v5809_v15, 0.0  ;;  %v5949_v3 = vmax.f32 %v5890_v47, 0.0  ;;  %9199 = vmatpush3.bf16.msra.mxu1 %v9854_v32  ;;  %v5812_v4 = vpop.f32.mrb[186].mxu1  ;;  %v5893_v45 = vpop.f32.mrb[194].mxu0  ;;  %9239 = vmatpush3.bf16.msra.mxu0 %v9856_v59 }
 0xa3f   :  { %v5813_v28 = vadd.f32 %v5812_v4, %v11459_v52  ;;  %v5894_v38 = vadd.f32 %v5893_v45, %v11462_v22  ;;  %v5814_v2 = vpop.f32.mrb[187].mxu1  ;;  %v5895_v44 = vpop.f32.mrb[195].mxu0 }
 0xa40   :  { %v5815_v40 = vadd.f32 %v5814_v2, %v11465_v60  ;;  %v5896_v12 = vadd.f32 %v5895_v44, %v11472_v42  ;;  %7561 = vmatprep.mubr.f32.mxu1 %v5947_v49  ;;  %7634 = vmatprep.mubr.f32.mxu0 %v5949_v3 }
 0xa41   :  { %7562 = vmatmul.mubr.f32.vlgmr.msra.gmra.mrb[248].mxu1 %v5946_v50  ;;  %7635 = vmatmul.mubr.f32.vlgmr.msra.gmra.mrb[0].mxu0 %v5948_v7  ;;  %v5962_v17 = vmax.f32 %v5813_v28, 0.0  ;;  %v5964_v54 = vmax.f32 %v5894_v38, 0.0 }
 0xa42   :  { %v5963_v56 = vmax.f32 %v5815_v40, 0.0  ;;  %v5965_v6 = vmax.f32 %v5896_v12, 0.0  ;;  %v5818_v35 = vpop.f32.mrb[188].mxu1  ;;  %v5899_v1 = vpop.f32.mrb[196].mxu0 }
 0xa43   :  { %v5819_v61 = vadd.f32 %v5818_v35, %v11459_v52  ;;  %v5900_v36 = vadd.f32 %v5899_v1, %v11462_v22  ;;  %v5820_v13 = vpop.f32.mrb[189].mxu1  ;;  %v5901_v41 = vpop.f32.mrb[197].mxu0 }
 0xa44   :  { %v5821_v33 = vadd.f32 %v5820_v13, %v11465_v60  ;;  %v5902_v29 = vadd.f32 %v5901_v41, %v11472_v42  ;;  %7566 = vmatprep.mubr.f32.mxu1 %v5963_v56  ;;  %7639 = vmatprep.mubr.f32.mxu0 %v5965_v6 }
 0xa45   :  { %7567 = vmatmul.mubr.f32.gmra.mrb[250].mxu1 %v5962_v17  ;;  %7640 = vmatmul.mubr.f32.gmra.mrb[2].mxu0 %v5964_v54  ;;  %v5978_v23 = vmax.f32 %v5819_v61, 0.0  ;;  %v5980_v5 = vmax.f32 %v5900_v36, 0.0 }
 0xa46   :  { %v5979_v58 = vmax.f32 %v5821_v33, 0.0  ;;  %v5981_v53 = vmax.f32 %v5902_v29, 0.0  ;;  %v5824_v51 = vpop.f32.mrb[190].mxu1  ;;  %v5905_v37 = vpop.f32.mrb[198].mxu0 }
 0xa47   :  { %v5825_v18 = vadd.f32 %v5824_v51, %v11459_v52  ;;  %v5906_v19 = vadd.f32 %v5905_v37, %v11462_v22  ;;  %v5826_v25 = vpop.f32.mrb[191].mxu1  ;;  %v5907_v48 = vpop.f32.mrb[199].mxu0 }
 0xa48   :  { %v5827_v39 = vadd.f32 %v5826_v25, %v11465_v60  ;;  %v5908_v31 = vadd.f32 %v5907_v48, %v11472_v42  ;;  %7571 = vmatprep.mubr.f32.mxu1 %v5979_v58  ;;  %7644 = vmatprep.mubr.f32.mxu0 %v5981_v53 }
 0xa49   :  { %7572 = vmatmul.mubr.f32.gmra.mrb[252].mxu1 %v5978_v23  ;;  %7645 = vmatmul.mubr.f32.gmra.mrb[4].mxu0 %v5980_v5  ;;  %v5994_v8 = vmax.f32 %v5825_v18, 0.0  ;;  %v5996_v16 = vmax.f32 %v5906_v19, 0.0 }
 0xa4a   :  { %v5995_v55 = vmax.f32 %v5827_v39, 0.0  ;;  %v5997_v32 = vmax.f32 %v5908_v31, 0.0  ;;  %v5830_v59 = vpop.f32.mrb[192].mxu1  ;;  %v5911_v9 = vpop.f32.mrb[200].mxu0 }
 0xa4b   :  { %v5831_v30 = vadd.f32 %v5830_v59, %v11459_v52  ;;  %v5912_v21 = vadd.f32 %v5911_v9, %v11462_v22  ;;  %v5832_v0 = vpop.f32.mrb[193].mxu1  ;;  %v5913_v15 = vpop.f32.mrb[201].mxu0 }
 0xa4c   :  { %v5833_v47 = vadd.f32 %v5832_v0, %v11465_v60  ;;  %v5914_v49 = vadd.f32 %v5913_v15, %v11472_v42  ;;  %7576 = vmatprep.mubr.f32.mxu1 %v5995_v55  ;;  %7649 = vmatprep.mubr.f32.mxu0 %v5997_v32 }
 0xa4d   :  { %7577 = vmatmul.mubr.f32.gmra.mrb[254].mxu1 %v5994_v8  ;;  %7650 = vmatmul.mubr.f32.gmra.mrb[6].mxu0 %v5996_v16  ;;  %v6010_v7 = vmax.f32 %v5831_v30, 0.0  ;;  %v6012_v28 = vmax.f32 %v5912_v21, 0.0 }
 0xa4e   :  { %v6011_v3 = vmax.f32 %v5833_v47, 0.0  ;;  %v6013_v4 = vmax.f32 %v5914_v49, 0.0  ;;  %v5836_v45 = vpop.f32.mrb[194].mxu1  ;;  %v5917_v50 = vpop.f32.mrb[202].mxu0 }
 0xa4f   :  { %v5837_v38 = vadd.f32 %v5836_v45, %v11459_v52  ;;  %v5918_v2 = vadd.f32 %v5917_v50, %v11462_v22  ;;  %v5838_v44 = vpop.f32.mrb[195].mxu1  ;;  %v5919_v40 = vpop.f32.mrb[203].mxu0 }
 0xa50   :  { %v5839_v12 = vadd.f32 %v5838_v44, %v11465_v60  ;;  %v5920_v56 = vadd.f32 %v5919_v40, %v11472_v42  ;;  %7581 = vmatprep.mubr.f32.mxu1 %v6011_v3  ;;  %7654 = vmatprep.mubr.f32.mxu0 %v6013_v4 }
 0xa51   :  { %7582 = vmatmul.mubr.f32.gmra.mrb[0].mxu1 %v6010_v7  ;;  %7655 = vmatmul.mubr.f32.gmra.mrb[8].mxu0 %v6012_v28  ;;  %v6026_v54 = vmax.f32 %v5837_v38, 0.0  ;;  %v6028_v61 = vmax.f32 %v5918_v2, 0.0 }
 0xa52   :  { %v6027_v6 = vmax.f32 %v5839_v12, 0.0  ;;  %v6029_v35 = vmax.f32 %v5920_v56, 0.0  ;;  %v5842_v1 = vpop.f32.mrb[196].mxu1  ;;  %v5923_v17 = vpop.f32.mrb[204].mxu0 }
 0xa53   :  { %v5843_v36 = vadd.f32 %v5842_v1, %v11459_v52  ;;  %v5924_v13 = vadd.f32 %v5923_v17, %v11462_v22  ;;  %v5844_v41 = vpop.f32.mrb[197].mxu1  ;;  %v5925_v33 = vpop.f32.mrb[205].mxu0 }
 0xa54   :  { %v5845_v29 = vadd.f32 %v5844_v41, %v11465_v60  ;;  %v5926_v58 = vadd.f32 %v5925_v33, %v11472_v42  ;;  %7586 = vmatprep.mubr.f32.mxu1 %v6027_v6  ;;  %7659 = vmatprep.mubr.f32.mxu0 %v6029_v35 }
 0xa55   :  { %7587 = vmatmul.mubr.f32.gmra.mrb[2].mxu1 %v6026_v54  ;;  %7660 = vmatmul.mubr.f32.gmra.mrb[10].mxu0 %v6028_v61  ;;  %v6042_v5 = vmax.f32 %v5843_v36, 0.0  ;;  %v6044_v18 = vmax.f32 %v5924_v13, 0.0 }
 0xa56   :  { %v6043_v53 = vmax.f32 %v5845_v29, 0.0  ;;  %v6045_v51 = vmax.f32 %v5926_v58, 0.0  ;;  %v5848_v37 = vpop.f32.mrb[198].mxu1  ;;  %v5929_v23 = vpop.f32.mrb[206].mxu0 }
 0xa57   :  { %v5849_v19 = vadd.f32 %v5848_v37, %v11459_v52  ;;  %v5930_v25 = vadd.f32 %v5929_v23, %v11462_v22  ;;  %v5850_v48 = vpop.f32.mrb[199].mxu1  ;;  %v5931_v39 = vpop.f32.mrb[207].mxu0 }
 0xa58   :  { %v5851_v31 = vadd.f32 %v5850_v48, %v11465_v60  ;;  %v5932_v55 = vadd.f32 %v5931_v39, %v11472_v42  ;;  %7591 = vmatprep.mubr.f32.mxu1 %v6043_v53  ;;  %7664 = vmatprep.mubr.f32.mxu0 %v6045_v51  ;;  %v11509_v60 = vld [vmem:[%s11691_s4 + $0x8] sm:$0xff] }
 0xa59   :  { %7592 = vmatmul.mubr.f32.gmra.mrb[4].mxu1 %v6042_v5  ;;  %7665 = vmatmul.mubr.f32.gmra.mrb[12].mxu0 %v6044_v18  ;;  %v6058_v9 = vmax.f32 %v5849_v19, 0.0  ;;  %v6060_v8 = vmax.f32 %v5930_v25, 0.0  ;;  %v6322_v42 = vrot.slane %v11509_v60, %v10455_v20 }
 0xa5a   :  { %v6059_v32 = vmax.f32 %v5851_v31, 0.0  ;;  %v6061_v59 = vmax.f32 %v5932_v55, 0.0 }
 0xa5c   :  { %7596 = vmatprep.mubr.f32.mxu1 %v6059_v32  ;;  %7669 = vmatprep.mubr.f32.mxu0 %v6061_v59 }
 0xa5d   :  { %7597 = vmatmul.mubr.f32.gmra.mrb[6].mxu1 %v6058_v9  ;;  %7670 = vmatmul.mubr.f32.gmra.mrb[14].mxu0 %v6060_v8 }
 0xab4   :  { %v8960_v52 = vpop.f32.mrb[200].mxu1  ;;  %v9000_v22 = vpop.f32.mrb[208].mxu0 }
 0xab5   :  { %v8961_v16 = vpop.f32.mrb[201].mxu1  ;;  %v9001_v30 = vpop.f32.mrb[209].mxu0 }
 0xab6   :  { %v8962_v21 = vadd.f32 %v8961_v16, %v8960_v52  ;;  %v9002_v0 = vadd.f32 %v9001_v30, %v9000_v22 }
 0xab8   :  { %v7126_v15 = vadd.f32 %v8962_v21, %v6322_v42  ;;  %v8963_v47 = vpop.f32.mrb[202].mxu1  ;;  %v9003_v49 = vpop.f32.mrb[210].mxu0 }
 0xab9   :  { %v8964_v3 = vpop.f32.mrb[203].mxu1  ;;  %v9004_v4 = vpop.f32.mrb[211].mxu0 }
 0xaba   :  { %v7199_v45 = vadd.f32 %v9002_v0, %v7126_v15  ;;  %v8965_v50 = vadd.f32 %v8964_v3, %v8963_v47  ;;  %v9005_v7 = vadd.f32 %v9004_v4, %v9003_v49 }
 0xabc   :  { %v7131_v28 = vadd.f32 %v8965_v50, %v6322_v42  ;;  %v8966_v38 = vpop.f32.mrb[204].mxu1  ;;  %v9006_v2 = vpop.f32.mrb[212].mxu0 }
 0xabd   :  { %v8967_v44 = vpop.f32.mrb[205].mxu1  ;;  %v9007_v40 = vpop.f32.mrb[213].mxu0 }
 0xabe   :  { %v7204_v12 = vadd.f32 %v9005_v7, %v7131_v28  ;;  %v8968_v56 = vadd.f32 %v8967_v44, %v8966_v38  ;;  %v9008_v20 = vadd.f32 %v9007_v40, %v9006_v2 }
 0xac0   :  { %v7136_v6 = vadd.f32 %v8968_v56, %v6322_v42  ;;  %v8969_v35 = vpop.f32.mrb[206].mxu1  ;;  %v9009_v1 = vpop.f32.mrb[214].mxu0 }
 0xac1   :  { %v8970_v17 = vpop.f32.mrb[207].mxu1  ;;  %v9010_v54 = vpop.f32.mrb[215].mxu0 }
 0xac2   :  { %v7209_v61 = vadd.f32 %v9008_v20, %v7136_v6  ;;  %v8971_v36 = vadd.f32 %v8970_v17, %v8969_v35  ;;  %v9011_v13 = vadd.f32 %v9010_v54, %v9009_v1 }
 0xac4   :  { %v7141_v41 = vadd.f32 %v8971_v36, %v6322_v42  ;;  %v8972_v33 = vpop.f32.mrb[208].mxu1  ;;  %v9012_v29 = vpop.f32.mrb[216].mxu0 }
 0xac5   :  { %v8973_v58 = vpop.f32.mrb[209].mxu1  ;;  %v9013_v53 = vpop.f32.mrb[217].mxu0 }
 0xac6   :  { %v7214_v51 = vadd.f32 %v9011_v13, %v7141_v41  ;;  %v8974_v37 = vadd.f32 %v8973_v58, %v8972_v33  ;;  %v9014_v23 = vadd.f32 %v9013_v53, %v9012_v29 }
 0xac8   :  { %v7146_v5 = vadd.f32 %v8974_v37, %v6322_v42  ;;  %v8975_v18 = vpop.f32.mrb[210].mxu1  ;;  %v9015_v19 = vpop.f32.mrb[218].mxu0 }
 0xac9   :  { %v8976_v25 = vpop.f32.mrb[211].mxu1  ;;  %v9016_v48 = vpop.f32.mrb[219].mxu0 }
 0xaca   :  { %v7219_v39 = vadd.f32 %v9014_v23, %v7146_v5  ;;  %v8977_v31 = vadd.f32 %v8976_v25, %v8975_v18  ;;  %v9017_v55 = vadd.f32 %v9016_v48, %v9015_v19 }
 0xacc   :  { %v7151_v32 = vadd.f32 %v8977_v31, %v6322_v42  ;;  %v8978_v59 = vpop.f32.mrb[212].mxu1  ;;  %v9018_v9 = vpop.f32.mrb[220].mxu0 }
 0xacd   :  { %v8979_v8 = vpop.f32.mrb[213].mxu1  ;;  %v9019_v52 = vpop.f32.mrb[221].mxu0 }
 0xace   :  { %v7224_v22 = vadd.f32 %v9017_v55, %v7151_v32  ;;  %v8980_v16 = vadd.f32 %v8979_v8, %v8978_v59  ;;  %v9020_v30 = vadd.f32 %v9019_v52, %v9018_v9 }
 0xad0   :  { %v7156_v21 = vadd.f32 %v8980_v16, %v6322_v42  ;;  %v8981_v0 = vpop.f32.mrb[214].mxu1  ;;  %v9021_v15 = vpop.f32.mrb[222].mxu0 }
 0xad1   :  { %v8982_v47 = vpop.f32.mrb[215].mxu1  ;;  %v9022_v49 = vpop.f32.mrb[223].mxu0 }
 0xad2   :  { %v7229_v3 = vadd.f32 %v9020_v30, %v7156_v21  ;;  %v8983_v4 = vadd.f32 %v8982_v47, %v8981_v0  ;;  %v9023_v50 = vadd.f32 %v9022_v49, %v9021_v15 }
 0xad4   :  { %v7161_v7 = vadd.f32 %v8983_v4, %v6322_v42  ;;  %v9040_v28 = vpop.f32.mrb[216].mxu1  ;;  %v9080_v38 = vpop.f32.mrb[224].mxu0 }
 0xad5   :  { %v9041_v2 = vpop.f32.mrb[217].mxu1  ;;  %v9081_v44 = vpop.f32.mrb[225].mxu0 }
 0xad6   :  { %v7234_v40 = vadd.f32 %v9023_v50, %v7161_v7  ;;  %v9042_v56 = vadd.f32 %v9041_v2, %v9040_v28  ;;  %v9082_v20 = vadd.f32 %v9081_v44, %v9080_v38 }
 0xad8   :  { %v7272_v6 = vadd.f32 %v9042_v56, %v7199_v45  ;;  %v9043_v35 = vpop.f32.mrb[218].mxu1  ;;  %v9083_v1 = vpop.f32.mrb[226].mxu0 }
 0xad9   :  { %v9044_v17 = vpop.f32.mrb[219].mxu1  ;;  %v9084_v54 = vpop.f32.mrb[227].mxu0 }
 0xada   :  { %v7345_v36 = vadd.f32 %v9082_v20, %v7272_v6  ;;  %v9045_v13 = vadd.f32 %v9044_v17, %v9043_v35  ;;  %v9085_v41 = vadd.f32 %v9084_v54, %v9083_v1 }
 0xadc   :  { %v7277_v33 = vadd.f32 %v9045_v13, %v7204_v12  ;;  %v9046_v29 = vpop.f32.mrb[220].mxu1  ;;  %v9086_v58 = vpop.f32.mrb[228].mxu0 }
 0xadd   :  { %v9047_v53 = vpop.f32.mrb[221].mxu1  ;;  %v9087_v42 = vpop.f32.mrb[229].mxu0 }
 0xade   :  { %v7350_v37 = vadd.f32 %v9085_v41, %v7277_v33  ;;  %v9048_v23 = vadd.f32 %v9047_v53, %v9046_v29  ;;  %v9088_v5 = vadd.f32 %v9087_v42, %v9086_v58 }
 0xae0   :  { %v7282_v18 = vadd.f32 %v9048_v23, %v7209_v61  ;;  %v9049_v19 = vpop.f32.mrb[222].mxu1  ;;  %v9089_v25 = vpop.f32.mrb[230].mxu0 }
 0xae1   :  { %v9050_v48 = vpop.f32.mrb[223].mxu1  ;;  %v9090_v45 = vpop.f32.mrb[231].mxu0 }
 0xae2   :  { %v7355_v31 = vadd.f32 %v9088_v5, %v7282_v18  ;;  %v9051_v55 = vadd.f32 %v9050_v48, %v9049_v19  ;;  %v9091_v32 = vadd.f32 %v9090_v45, %v9089_v25 }
 0xae4   :  { %v7287_v59 = vadd.f32 %v9051_v55, %v7214_v51  ;;  %v9052_v9 = vpop.f32.mrb[224].mxu1  ;;  %v9092_v8 = vpop.f32.mrb[232].mxu0 }
 0xae5   :  { %v9053_v52 = vpop.f32.mrb[225].mxu1  ;;  %v9093_v12 = vpop.f32.mrb[233].mxu0 }
 0xae6   :  { %v7360_v16 = vadd.f32 %v9091_v32, %v7287_v59  ;;  %v9054_v30 = vadd.f32 %v9053_v52, %v9052_v9  ;;  %v9094_v21 = vadd.f32 %v9093_v12, %v9092_v8 }
 0xae8   :  { %v7292_v0 = vadd.f32 %v9054_v30, %v7219_v39  ;;  %v9055_v15 = vpop.f32.mrb[226].mxu1  ;;  %v9095_v47 = vpop.f32.mrb[234].mxu0 }
 0xae9   :  { %v9056_v49 = vpop.f32.mrb[227].mxu1  ;;  %v9096_v61 = vpop.f32.mrb[235].mxu0 }
 0xaea   :  { %v7365_v4 = vadd.f32 %v9094_v21, %v7292_v0  ;;  %v9057_v50 = vadd.f32 %v9056_v49, %v9055_v15  ;;  %v9097_v7 = vadd.f32 %v9096_v61, %v9095_v47 }
 0xaec   :  { %v7297_v28 = vadd.f32 %v9057_v50, %v7224_v22  ;;  %v9058_v38 = vpop.f32.mrb[228].mxu1  ;;  %v9098_v2 = vpop.f32.mrb[236].mxu0 }
 0xaed   :  { %v9059_v44 = vpop.f32.mrb[229].mxu1  ;;  %v9099_v51 = vpop.f32.mrb[237].mxu0 }
 0xaee   :  { %v7370_v56 = vadd.f32 %v9097_v7, %v7297_v28  ;;  %v9060_v20 = vadd.f32 %v9059_v44, %v9058_v38  ;;  %v9100_v6 = vadd.f32 %v9099_v51, %v9098_v2 }
 0xaf0   :  { %v7302_v35 = vadd.f32 %v9060_v20, %v7229_v3  ;;  %v9061_v1 = vpop.f32.mrb[230].mxu1  ;;  %v9101_v17 = vpop.f32.mrb[238].mxu0 }
 0xaf1   :  { %v9062_v54 = vpop.f32.mrb[231].mxu1  ;;  %v9102_v39 = vpop.f32.mrb[239].mxu0 }
 0xaf2   :  { %v7375_v13 = vadd.f32 %v9100_v6, %v7302_v35  ;;  %v9063_v41 = vadd.f32 %v9062_v54, %v9061_v1  ;;  %v9103_v33 = vadd.f32 %v9102_v39, %v9101_v17 }
 0xaf4   :  { %v7307_v29 = vadd.f32 %v9063_v41, %v7234_v40  ;;  %v9120_v58 = vpop.f32.mrb[232].mxu1  ;;  %v9160_v53 = vpop.f32.mrb[240].mxu0 }
 0xaf5   :  { %v9121_v42 = vpop.f32.mrb[233].mxu1  ;;  %v9161_v22 = vpop.f32.mrb[241].mxu0 }
 0xaf6   :  { %v7380_v23 = vadd.f32 %v9103_v33, %v7307_v29  ;;  %v9122_v5 = vadd.f32 %v9121_v42, %v9120_v58  ;;  %v9162_v18 = vadd.f32 %v9161_v22, %v9160_v53 }
 0xaf8   :  { %v7418_v19 = vadd.f32 %v9122_v5, %v7345_v36  ;;  %v9123_v25 = vpop.f32.mrb[234].mxu1  ;;  %v9163_v48 = vpop.f32.mrb[242].mxu0 }
 0xaf9   :  { %v9124_v45 = vpop.f32.mrb[235].mxu1  ;;  %v9164_v3 = vpop.f32.mrb[243].mxu0 }
 0xafa   :  { %v7491_v55 = vadd.f32 %v9162_v18, %v7418_v19  ;;  %v9125_v32 = vadd.f32 %v9124_v45, %v9123_v25  ;;  %v9165_v59 = vadd.f32 %v9164_v3, %v9163_v48 }
 0xafc   :  { %v7423_v9 = vadd.f32 %v9125_v32, %v7350_v37  ;;  %v9126_v8 = vpop.f32.mrb[236].mxu1  ;;  %v9166_v52 = vpop.f32.mrb[244].mxu0 }
 0xafd   :  { %v9127_v12 = vpop.f32.mrb[237].mxu1  ;;  %v9167_v40 = vpop.f32.mrb[245].mxu0 }
 0xafe   :  { %v7496_v30 = vadd.f32 %v9165_v59, %v7423_v9  ;;  %v9128_v21 = vadd.f32 %v9127_v12, %v9126_v8  ;;  %v9168_v0 = vadd.f32 %v9167_v40, %v9166_v52 }
 0xb00   :  { %v7428_v15 = vadd.f32 %v9128_v21, %v7355_v31  ;;  %v9129_v47 = vpop.f32.mrb[238].mxu1  ;;  %v9169_v49 = vpop.f32.mrb[246].mxu0 }
 0xb01   :  { %v9130_v61 = vpop.f32.mrb[239].mxu1  ;;  %v9170_v36 = vpop.f32.mrb[247].mxu0 }
 0xb02   :  { %v7501_v50 = vadd.f32 %v9168_v0, %v7428_v15  ;;  %v9131_v7 = vadd.f32 %v9130_v61, %v9129_v47  ;;  %v9171_v28 = vadd.f32 %v9170_v36, %v9169_v49 }
 0xb04   :  { %v7433_v38 = vadd.f32 %v9131_v7, %v7360_v16  ;;  %v9132_v2 = vpop.f32.mrb[240].mxu1  ;;  %v9172_v44 = vpop.f32.mrb[248].mxu0 }
 0xb05   :  { %v9133_v51 = vpop.f32.mrb[241].mxu1  ;;  %v9173_v37 = vpop.f32.mrb[249].mxu0 }
 0xb06   :  { %v11513_v20 = vadd.f32 %v9171_v28, %v7433_v38  ;;  %v9134_v6 = vadd.f32 %v9133_v51, %v9132_v2  ;;  %v9174_v35 = vadd.f32 %v9173_v37, %v9172_v44 }
 0xb08   :  { %v7438_v1 = vadd.f32 %v9134_v6, %v7365_v4  ;;  %v9135_v17 = vpop.f32.mrb[242].mxu1  ;;  %v9175_v54 = vpop.f32.mrb[250].mxu0 }
 0xb09   :  { %v9136_v31 = vpop.f32.mrb[243].mxu1  ;;  %v9176_v39 = vpop.f32.mrb[251].mxu0 }
 0xb0a   :  { %v11515_v41 = vadd.f32 %v9174_v35, %v7438_v1  ;;  %v9137_v33 = vadd.f32 %v9136_v31, %v9135_v17  ;;  %v9177_v29 = vadd.f32 %v9176_v39, %v9175_v54 }
 0xb0c   :  { %v7443_v58 = vadd.f32 %v9137_v33, %v7370_v56  ;;  %v9138_v53 = vpop.f32.mrb[244].mxu1  ;;  %v9178_v16 = vpop.f32.mrb[252].mxu0 }
 0xb0d   :  { %v9139_v42 = vpop.f32.mrb[245].mxu1  ;;  %v9179_v22 = vpop.f32.mrb[253].mxu0 }
 0xb0e   :  { %v11517_v5 = vadd.f32 %v9177_v29, %v7443_v58  ;;  %v9140_v18 = vadd.f32 %v9139_v42, %v9138_v53  ;;  %v9180_v19 = vadd.f32 %v9179_v22, %v9178_v16 }
 0xb10   :  { %v7448_v25 = vadd.f32 %v9140_v18, %v7375_v13  ;;  %v9141_v48 = vpop.f32.mrb[246].mxu1  ;;  %v9181_v4 = vpop.f32.mrb[254].mxu0 }
 0xb11   :  { %v9142_v45 = vpop.f32.mrb[247].mxu1  ;;  %v9182_v3 = vpop.f32.mrb[255].mxu0 }
 0xb12   :  { %v11519_v32 = vadd.f32 %v9180_v19, %v7448_v25  ;;  %v9143_v59 = vadd.f32 %v9142_v45, %v9141_v48  ;;  %v9183_v9 = vadd.f32 %v9182_v3, %v9181_v4 }
 0xb14   :  { %v7453_v8 = vadd.f32 %v9143_v59, %v7380_v23  ;;  %v9200_v52 = vpop.f32.mrb[248].mxu1  ;;  %v9240_v56 = vpop.f32.mrb[0].mxu0 }
 0xb15   :  { %v9201_v12 = vpop.f32.mrb[249].mxu1  ;;  %v9241_v40 = vpop.f32.mrb[1].mxu0 }
 0xb16   :  { %v11521_v21 = vadd.f32 %v9183_v9, %v7453_v8  ;;  %v9202_v0 = vadd.f32 %v9201_v12, %v9200_v52  ;;  %v9242_v15 = vadd.f32 %v9241_v40, %v9240_v56 }
 0xb18   :  { %v7564_v47 = vadd.f32 %v9202_v0, %v7491_v55  ;;  %v9203_v49 = vpop.f32.mrb[250].mxu1  ;;  %v9243_v13 = vpop.f32.mrb[2].mxu0 }
 0xb19   :  { %v9204_v61 = vpop.f32.mrb[251].mxu1  ;;  %v9244_v36 = vpop.f32.mrb[3].mxu0 }
 0xb1a   :  { %v7637_v7 = vadd.f32 %v9242_v15, %v7564_v47  ;;  %v9205_v28 = vadd.f32 %v9204_v61, %v9203_v49  ;;  %v9245_v38 = vadd.f32 %v9244_v36, %v9243_v13 }
 0xb1c   :  { %v7569_v2 = vadd.f32 %v9205_v28, %v7496_v30  ;;  %v9206_v44 = vpop.f32.mrb[252].mxu1  ;;  %v9246_v51 = vpop.f32.mrb[4].mxu0  ;;  %v11524_v23 = vadd.f32 %v7637_v7, %v11141_v34 }
 0xb1d   :  { %v9207_v37 = vpop.f32.mrb[253].mxu1  ;;  %v9247_v6 = vpop.f32.mrb[5].mxu0 }
 0xb1e   :  { %v7642_v35 = vadd.f32 %v9245_v38, %v7569_v2  ;;  %v9208_v1 = vadd.f32 %v9207_v37, %v9206_v44  ;;  %v9248_v17 = vadd.f32 %v9247_v6, %v9246_v51  ;;  %7683 = vadd.xlane.f32.xlu0 %v11524_v23 }
 0xb20   :  { %v7574_v55 = vadd.f32 %v9208_v1, %v7501_v50  ;;  %v9209_v54 = vpop.f32.mrb[254].mxu1  ;;  %v9249_v31 = vpop.f32.mrb[6].mxu0  ;;  %v11528_v39 = vadd.f32 %v7642_v35, %v11146_v43 }
 0xb21   :  { %v9210_v33 = vpop.f32.mrb[255].mxu1  ;;  %v9250_v30 = vpop.f32.mrb[7].mxu0 }
 0xb22   :  { %v7647_v29 = vadd.f32 %v9248_v17, %v7574_v55  ;;  %v9211_v58 = vadd.f32 %v9210_v33, %v9209_v54  ;;  %v9251_v53 = vadd.f32 %v9250_v30, %v9249_v31  ;;  %7685 = vadd.xlane.f32.xlu1 %v11528_v39 }
 0xb24   :  { %v7579_v34 = vadd.f32 %v9211_v58, %v11513_v20  ;;  %v9212_v16 = vpop.f32.mrb[0].mxu1  ;;  %v9252_v42 = vpop.f32.mrb[8].mxu0  ;;  %v7677_v22 = vadd.f32 %v7647_v29, %v11157_v10 }
 0xb25   :  { %v9213_v18 = vpop.f32.mrb[1].mxu1  ;;  %v9253_v50 = vpop.f32.mrb[9].mxu0 }
 0xb26   :  { %v7652_v19 = vadd.f32 %v9251_v53, %v7579_v34  ;;  %v9214_v25 = vadd.f32 %v9213_v18, %v9212_v16  ;;  %v9254_v48 = vadd.f32 %v9253_v50, %v9252_v42  ;;  %7687 = vadd.xlane.f32.xlu0 %v7677_v22 }
 0xb28   :  { %v7584_v43 = vadd.f32 %v9214_v25, %v11515_v41  ;;  %v9215_v4 = vpop.f32.mrb[2].mxu1  ;;  %v9255_v45 = vpop.f32.mrb[10].mxu0  ;;  %v7678_v3 = vadd.f32 %v7652_v19, %v11164_v57 }
 0xb29   :  { %v9216_v59 = vpop.f32.mrb[3].mxu1  ;;  %v9256_v9 = vpop.f32.mrb[11].mxu0 }
 0xb2a   :  { %v7657_v8 = vadd.f32 %v9254_v48, %v7584_v43  ;;  %v9217_v20 = vadd.f32 %v9216_v59, %v9215_v4  ;;  %v9257_v52 = vadd.f32 %v9256_v9, %v9255_v45  ;;  %7689 = vadd.xlane.f32.xlu1 %v7678_v3 }
 0xb2c   :  { %v7589_v10 = vadd.f32 %v9217_v20, %v11517_v5  ;;  %v9218_v56 = vpop.f32.mrb[4].mxu1  ;;  %v9258_v12 = vpop.f32.mrb[12].mxu0  ;;  %v7679_v40 = vadd.f32 %v7657_v8, %v11175_v46 }
 0xb2d   :  { %v9219_v0 = vpop.f32.mrb[5].mxu1  ;;  %v9259_v15 = vpop.f32.mrb[13].mxu0 }
 0xb2e   :  { %v7662_v47 = vadd.f32 %v9257_v52, %v7589_v10  ;;  %v9220_v41 = vadd.f32 %v9219_v0, %v9218_v56  ;;  %v9260_v49 = vadd.f32 %v9259_v15, %v9258_v12  ;;  %7691 = vadd.xlane.f32.xlu0 %v7679_v40 }
 0xb30   :  { %v7594_v57 = vadd.f32 %v9220_v41, %v11519_v32  ;;  %v9221_v13 = vpop.f32.mrb[6].mxu1  ;;  %v9261_v61 = vpop.f32.mrb[14].mxu0  ;;  %v7680_v36 = vadd.f32 %v7662_v47, %v11182_v62 }
 0xb31   :  { %v9222_v7 = vpop.f32.mrb[7].mxu1  ;;  %v9262_v28 = vpop.f32.mrb[15].mxu0 }
 0xb32   :  { %v7667_v38 = vadd.f32 %v9260_v49, %v7594_v57  ;;  %v9223_v5 = vadd.f32 %v9222_v7, %v9221_v13  ;;  %v9263_v2 = vadd.f32 %v9262_v28, %v9261_v61  ;;  %7693 = vadd.xlane.f32.xlu1 %v7680_v36  ;;  %v7782_v28 = vrot.slane %v11509_v60, %v10830_v14 }
 0xb34   :  { %v7599_v46 = vadd.f32 %v9223_v5, %v11521_v21  ;;  %v7681_v44 = vadd.f32 %v7667_v38, %v11193_v11 }
 0xb36   :  { %v7672_v51 = vadd.f32 %v9263_v2, %v7599_v46  ;;  %7695 = vadd.xlane.f32.xlu0 %v7681_v44 }
 0xb38   :  { %v7682_v37 = vadd.f32 %v7672_v51, %v11200_v27 }
 0xb3a   :  { %7697 = vadd.xlane.f32.xlu1 %v7682_v37 }
 0xbab   :  { %v7684_v32 = vpop.xlane.xlu0 %7683 }
 0xbac   :  { %v7699_v6 = vmul.f32 0.01, %v7684_v32 }
 0xbae   :  { %v7707_v35 = vsub.f32 %v11524_v23, %v7699_v6 }
 0xbaf   :  { %v7686_v62 = vpop.xlane.xlu1 %7685 }
 0xbb0   :  { %v7700_v1 = vmul.f32 0.01, %v7686_v62  ;;  %v7715_v17 = vmul.f32 %v10208_v26, %v7707_v35 }
 0xbb2   :  { %v7708_v55 = vsub.f32 %v11528_v39, %v7700_v1  ;;  %v7723_v54 = vmul.f32 %v7715_v17, %v7715_v17 }
 0xbb3   :  { %v7688_v31 = vpop.xlane.xlu0 %7687 }
 0xbb4   :  { %v7701_v21 = vmul.f32 0.01, %v7688_v31  ;;  %7731 = vadd.xlane.f32.xlu0 %v7723_v54  ;;  %v11546_v11 = vmul.f32 %v10208_v26, %v7708_v55 }
 0xbb6   :  { %v7709_v33 = vsub.f32 %v7677_v22, %v7701_v21  ;;  %v7724_v27 = vmul.f32 %v11546_v11, %v11546_v11 }
 0xbb7   :  { %v7690_v30 = vpop.xlane.xlu1 %7689 }
 0xbb8   :  { %v7702_v29 = vmul.f32 0.01, %v7690_v30  ;;  %7733 = vadd.xlane.f32.xlu1 %v7724_v27  ;;  %v11551_v23 = vmul.f32 %v10208_v26, %v7709_v33 }
 0xbba   :  { %v7710_v58 = vsub.f32 %v7678_v3, %v7702_v29  ;;  %v7725_v39 = vmul.f32 %v11551_v23, %v11551_v23 }
 0xbbb   :  { %v7692_v53 = vpop.xlane.xlu0 %7691 }
 0xbbc   :  { %v7703_v34 = vmul.f32 0.01, %v7692_v53  ;;  %7735 = vadd.xlane.f32.xlu0 %v7725_v39  ;;  %v11556_v16 = vmul.f32 %v10208_v26, %v7710_v58 }
 0xbbe   :  { %v7711_v42 = vsub.f32 %v7679_v40, %v7703_v34  ;;  %v7726_v22 = vmul.f32 %v11556_v16, %v11556_v16 }
 0xbbf   :  { %v7694_v18 = vpop.xlane.xlu1 %7693 }
 0xbc0   :  { %v7704_v50 = vmul.f32 0.01, %v7694_v18  ;;  %7737 = vadd.xlane.f32.xlu1 %v7726_v22  ;;  %v11561_v19 = vmul.f32 %v10208_v26, %v7711_v42 }
 0xbc2   :  { %v7712_v25 = vsub.f32 %v7680_v36, %v7704_v50  ;;  %v7727_v48 = vmul.f32 %v11561_v19, %v11561_v19 }
 0xbc3   :  { %v7696_v43 = vpop.xlane.xlu0 %7695 }
 0xbc4   :  { %v7705_v4 = vmul.f32 0.01, %v7696_v43  ;;  %7739 = vadd.xlane.f32.xlu0 %v7727_v48  ;;  %v11566_v45 = vmul.f32 %v10208_v26, %v7712_v25 }
 0xbc6   :  { %v7713_v3 = vsub.f32 %v7681_v44, %v7705_v4  ;;  %v7728_v59 = vmul.f32 %v11566_v45, %v11566_v45  ;;  %v7794_v44 = vrot.slane %v11509_v60, %v10461_v24 }
 0xbc7   :  { %v7698_v9 = vpop.xlane.xlu1 %7697 }
 0xbc8   :  { %v7706_v8 = vmul.f32 0.01, %v7698_v9  ;;  %7741 = vadd.xlane.f32.xlu1 %v7728_v59  ;;  %v11571_v20 = vmul.f32 %v10208_v26, %v7713_v3 }
 0xbca   :  { %v7714_v52 = vsub.f32 %v7682_v37, %v7706_v8  ;;  %v7729_v10 = vmul.f32 %v11571_v20, %v11571_v20 }
 0xbcc   :  { %7743 = vadd.xlane.f32.xlu0 %v7729_v10  ;;  %v11576_v56 = vmul.f32 %v10208_v26, %v7714_v52 }
 0xbce   :  { %v7730_v12 = vmul.f32 %v11576_v56, %v11576_v56 }
 0xbd0   :  { %7745 = vadd.xlane.f32.xlu1 %v7730_v12  ;;  %v7901_v12 = vld [vmem:[#allocation2 + $0x188] sm:$0xff] }
 0xc41   :  { %v7732_v40 = vpop.xlane.xlu0 %7731 }
 0xc42   :  { %v7747_v0 = vmul.f32 0.01, %v7732_v40  ;;  %v7902_v40 = vld [vmem:[#allocation2 + $0x190] sm:$0xff] }
 0xc44   :  { %v7755_v15 = vadd.f32 1e-05, %v7747_v0 }
 0xc45   :  { %v7734_v47 = vpop.xlane.xlu1 %7733 }
 0xc46   :  { %9937 = vrsqrt.f32 %v7755_v15  ;;  %v7748_v41 = vmul.f32 0.01, %v7734_v47  ;;  %v7904_v47 = vld [vmem:[#allocation2 + $0x1a0] sm:$0xff] }
 0xc48   :  { %v7756_v49 = vadd.f32 1e-05, %v7748_v41  ;;  %v7905_v41 = vld [vmem:[#allocation2 + $0x1a8] sm:$0xff] }
 0xc49   :  { %v7736_v57 = vpop.xlane.xlu0 %7735 }
 0xc4a   :  { %9939 = vrsqrt.f32 %v7756_v49  ;;  %v7749_v13 = vmul.f32 0.01, %v7736_v57  ;;  %v9568_v49 = vpack.c.bf16 %v7905_v41, %v7904_v47 }
 0xc4c   :  { %v7757_v61 = vadd.f32 1e-05, %v7749_v13 }
 0xc4d   :  { %v7738_v36 = vpop.xlane.xlu1 %7737 }
 0xc4e   :  { %9941 = vrsqrt.f32 %v7757_v61  ;;  %v7750_v7 = vmul.f32 0.01, %v7738_v36 }
 0xc50   :  { %v9938_v38 = vpop.eup %9937  ;;  %v7758_v5 = vadd.f32 1e-05, %v7750_v7 }
 0xc51   :  { %v7740_v2 = vpop.xlane.xlu0 %7739  ;;  %v7771_v46 = vmul.f32 %v9938_v38, %v7715_v17 }
 0xc52   :  { %9943 = vrsqrt.f32 %v7758_v5  ;;  %v7751_v51 = vmul.f32 0.01, %v7740_v2 }
 0xc53   :  { %v7783_v37 = vmul.f32 %v7782_v28, %v7771_v46 }
 0xc54   :  { %v9940_v32 = vpop.eup %9939  ;;  %v7759_v6 = vadd.f32 1e-05, %v7751_v51 }
 0xc55   :  { %v7742_v35 = vpop.xlane.xlu1 %7741  ;;  %v11584_v62 = vadd.f32 %v7794_v44, %v7783_v37  ;;  %v7772_v1 = vmul.f32 %v9940_v32, %v11546_v11 }
 0xc56   :  { %9945 = vrsqrt.f32 %v7759_v6  ;;  %v7752_v55 = vmul.f32 0.01, %v7742_v35 }
 0xc57   :  { %7803 = vadd.xlane.f32.xlu0 %v11584_v62  ;;  %v7784_v14 = vmul.f32 %v7782_v28, %v7772_v1 }
 0xc58   :  { %v9942_v54 = vpop.eup %9941  ;;  %v7760_v17 = vadd.f32 1e-05, %v7752_v55 }
 0xc59   :  { %v7744_v31 = vpop.xlane.xlu0 %7743  ;;  %v11588_v21 = vadd.f32 %v7794_v44, %v7784_v14  ;;  %v7773_v24 = vmul.f32 %v9942_v54, %v11551_v23 }
 0xc5a   :  { %9947 = vrsqrt.f32 %v7760_v17  ;;  %v7753_v60 = vmul.f32 0.01, %v7744_v31 }
 0xc5b   :  { %7805 = vadd.xlane.f32.xlu1 %v11588_v21  ;;  %v7785_v33 = vmul.f32 %v7782_v28, %v7773_v24 }
 0xc5c   :  { %v9944_v27 = vpop.eup %9943  ;;  %v7761_v30 = vadd.f32 1e-05, %v7753_v60  ;;  %v7906_v60 = vld [vmem:[#allocation2 + $0x1b0] sm:$0xff] }
 0xc5d   :  { %v7746_v11 = vpop.xlane.xlu1 %7745  ;;  %v7797_v29 = vadd.f32 %v7794_v44, %v7785_v33  ;;  %v7774_v58 = vmul.f32 %v9944_v27, %v11556_v16  ;;  %v7907_v33 = vld [vmem:[#allocation2 + $0x1b8] sm:$0xff] }
 0xc5e   :  { %9949 = vrsqrt.f32 %v7761_v30  ;;  %v7754_v39 = vmul.f32 0.01, %v7746_v11  ;;  %v9572_v11 = vpack.c.bf16 %v7907_v33, %v7906_v60 }
 0xc5f   :  { %7807 = vadd.xlane.f32.xlu0 %v7797_v29  ;;  %v7786_v53 = vmul.f32 %v7782_v28, %v7774_v58 }
 0xc60   :  { %v9946_v34 = vpop.eup %9945  ;;  %v7762_v42 = vadd.f32 1e-05, %v7754_v39 }
 0xc61   :  { %v7798_v22 = vadd.f32 %v7794_v44, %v7786_v53  ;;  %v7775_v23 = vmul.f32 %v9946_v34, %v11561_v19  ;;  %v7908_v53 = vld [vmem:[#allocation2 + $0x1c0] sm:$0xff]  ;;  %v7909_v34 = vld [vmem:[#allocation2 + $0x1c8] sm:$0xff] }
 0xc62   :  { %9951 = vrsqrt.f32 %v7762_v42 }
 0xc63   :  { %7809 = vadd.xlane.f32.xlu1 %v7798_v22  ;;  %v7787_v18 = vmul.f32 %v7782_v28, %v7775_v23  ;;  %v9576_v23 = vpack.c.bf16 %v7909_v34, %v7908_v53  ;;  %v9986_v53 = vld [vmem:[%s11691_s4 + $0x8] sm:$0xff] }
 0xc64   :  { %v9948_v50 = vpop.eup %9947 }
 0xc65   :  { %v7799_v25 = vadd.f32 %v7794_v44, %v7787_v18  ;;  %v7776_v48 = vmul.f32 %v9948_v50, %v11566_v45  ;;  %v7900_v45 = vld [vmem:[#allocation2 + $0x180] sm:$0xff] }
 0xc66   :  { %v9560_v0 = vpack.c.bf16 %v7901_v12, %v7900_v45  ;;  %v7915_v45 = vld [vmem:[#allocation2 + $0x1f8] sm:$0xff] }
 0xc67   :  { %7811 = vadd.xlane.f32.xlu0 %v7799_v25  ;;  %v7788_v43 = vmul.f32 %v7782_v28, %v7776_v48  ;;  %v7910_v48 = vld [vmem:[#allocation2 + $0x1d0] sm:$0xff] }
 0xc68   :  { %v9950_v4 = vpop.eup %9949  ;;  %9561 = vmatprep.subr.bf16.mxu1 %v9560_v0 }
 0xc69   :  { %v11595_v16 = vadd.f32 %v7794_v44, %v7788_v43  ;;  %v7777_v3 = vmul.f32 %v9950_v4, %v11571_v20  ;;  %v7903_v20 = vld [vmem:[#allocation2 + $0x198] sm:$0xff]  ;;  %9563 = vmatpush3.bf16.msra.mxu1 %v9560_v0 }
 0xc6a   :  { %v9564_v15 = vpack.c.bf16 %v7903_v20, %v7902_v40  ;;  %v7911_v43 = vld [vmem:[#allocation2 + $0x1d8] sm:$0xff] }
 0xc6b   :  { %7813 = vadd.xlane.f32.xlu1 %v11595_v16  ;;  %v7789_v59 = vmul.f32 %v7782_v28, %v7777_v3  ;;  %v9580_v3 = vpack.c.bf16 %v7911_v43, %v7910_v48 }
 0xc6c   :  { %v9952_v9 = vpop.eup %9951  ;;  %9565 = vmatprep.subr.bf16.mxu1 %v9564_v15 }
 0xc6d   :  { %v11599_v8 = vadd.f32 %v7794_v44, %v7789_v59  ;;  %v7778_v19 = vmul.f32 %v9952_v9, %v11576_v56  ;;  %9567 = vmatpush3.bf16.msra.mxu1 %v9564_v15  ;;  %v7912_v9 = vld [vmem:[#allocation2 + $0x1e0] sm:$0xff] }
 0xc6e   :  { %9569 = vmatprep.subr.bf16.mxu1 %v9568_v49 }
 0xc6f   :  { %7815 = vadd.xlane.f32.xlu0 %v11599_v8  ;;  %v7790_v52 = vmul.f32 %v7782_v28, %v7778_v19 }
 0xc71   :  { %v11603_v10 = vadd.f32 %v7794_v44, %v7790_v52  ;;  %9571 = vmatpush3.bf16.msra.mxu1 %v9568_v49 }
 0xc72   :  { %9573 = vmatprep.subr.bf16.mxu1 %v9572_v11 }
 0xc73   :  { %7817 = vadd.xlane.f32.xlu1 %v11603_v10 }
 0xc75   :  { %9575 = vmatpush3.bf16.msra.mxu1 %v9572_v11 }
 0xc76   :  { %9577 = vmatprep.subr.bf16.mxu1 %v9576_v23 }
 0xc79   :  { %9579 = vmatpush3.bf16.msra.mxu1 %v9576_v23 }
 0xc7a   :  { %9581 = vmatprep.subr.bf16.mxu1 %v9580_v3 }
 0xc7d   :  { %9583 = vmatpush3.bf16.msra.mxu1 %v9580_v3 }
 0xce4   :  { %v7804_v56 = vpop.xlane.xlu0 %7803 }
 0xce5   :  { %v7819_v57 = vmul.f32 0.01, %v7804_v56 }
 0xce7   :  { %v7827_v13 = vsub.f32 %v11584_v62, %v7819_v57 }
 0xce8   :  { %v7806_v61 = vpop.xlane.xlu1 %7805 }
 0xce9   :  { %v11608_v36 = vmul.f32 %v10208_v26, %v7827_v13  ;;  %v7820_v7 = vmul.f32 0.01, %v7806_v61 }
 0xceb   :  { %v7828_v28 = vsub.f32 %v11588_v21, %v7820_v7  ;;  %v7843_v38 = vmul.f32 %v11608_v36, %v11608_v36 }
 0xcec   :  { %v7808_v5 = vpop.xlane.xlu0 %7807 }
 0xced   :  { %v11614_v2 = vmul.f32 %v10208_v26, %v7828_v28  ;;  %v7821_v46 = vmul.f32 0.01, %v7808_v5  ;;  %7851 = vadd.xlane.f32.xlu0 %v7843_v38 }
 0xcef   :  { %v7829_v44 = vsub.f32 %v7797_v29, %v7821_v46  ;;  %v7844_v51 = vmul.f32 %v11614_v2, %v11614_v2 }
 0xcf0   :  { %v7810_v37 = vpop.xlane.xlu1 %7809 }
 0xcf1   :  { %v11619_v32 = vmul.f32 %v10208_v26, %v7829_v44  ;;  %v7822_v6 = vmul.f32 0.01, %v7810_v37  ;;  %7853 = vadd.xlane.f32.xlu1 %v7844_v51 }
 0xcf3   :  { %v7830_v35 = vsub.f32 %v7798_v22, %v7822_v6  ;;  %v7845_v62 = vmul.f32 %v11619_v32, %v11619_v32 }
 0xcf4   :  { %v7812_v1 = vpop.xlane.xlu0 %7811 }
 0xcf5   :  { %v11624_v55 = vmul.f32 %v10208_v26, %v7830_v35  ;;  %v7823_v14 = vmul.f32 0.01, %v7812_v1  ;;  %7855 = vadd.xlane.f32.xlu0 %v7845_v62 }
 0xcf7   :  { %v7831_v54 = vsub.f32 %v7799_v25, %v7823_v14  ;;  %v7846_v17 = vmul.f32 %v11624_v55, %v11624_v55 }
 0xcf8   :  { %v7814_v31 = vpop.xlane.xlu1 %7813 }
 0xcf9   :  { %v11629_v21 = vmul.f32 %v10208_v26, %v7831_v54  ;;  %v7824_v24 = vmul.f32 0.01, %v7814_v31  ;;  %7857 = vadd.xlane.f32.xlu1 %v7846_v17 }
 0xcfb   :  { %v7832_v27 = vsub.f32 %v11595_v16, %v7824_v24  ;;  %v7847_v30 = vmul.f32 %v11629_v21, %v11629_v21 }
 0xcfc   :  { %v7816_v29 = vpop.xlane.xlu0 %7815 }
 0xcfd   :  { %v11635_v58 = vmul.f32 %v10208_v26, %v7832_v27  ;;  %v7825_v39 = vmul.f32 0.01, %v7816_v29  ;;  %7859 = vadd.xlane.f32.xlu0 %v7847_v30 }
 0xcff   :  { %v7833_v42 = vsub.f32 %v11599_v8, %v7825_v39  ;;  %v7848_v22 = vmul.f32 %v11635_v58, %v11635_v58  ;;  %v7913_v8 = vld [vmem:[#allocation2 + $0x1e8] sm:$0xff] }
 0xd00   :  { %v7818_v18 = vpop.xlane.xlu1 %7817  ;;  %v9584_v52 = vpack.c.bf16 %v7913_v8, %v7912_v9 }
 0xd01   :  { %v11641_v50 = vmul.f32 %v10208_v26, %v7833_v42  ;;  %v7826_v25 = vmul.f32 0.01, %v7818_v18  ;;  %7861 = vadd.xlane.f32.xlu1 %v7848_v22 }
 0xd02   :  { %9585 = vmatprep.subr.bf16.mxu1 %v9584_v52 }
 0xd03   :  { %v7834_v4 = vsub.f32 %v11603_v10, %v7826_v25  ;;  %v7849_v16 = vmul.f32 %v11641_v50, %v11641_v50  ;;  %9587 = vmatpush3.bf16.msra.mxu1 %v9584_v52  ;;  %v7914_v10 = vld [vmem:[#allocation2 + $0x1f0] sm:$0xff] }
 0xd04   :  { %v9588_v12 = vpack.c.bf16 %v7915_v45, %v7914_v10 }
 0xd05   :  { %v11647_v59 = vmul.f32 %v10208_v26, %v7834_v4  ;;  %7863 = vadd.xlane.f32.xlu0 %v7849_v16 }
 0xd06   :  { %9589 = vmatprep.subr.bf16.mxu1 %v9588_v12 }
 0xd07   :  { %v7850_v19 = vmul.f32 %v11647_v59, %v11647_v59  ;;  %9591 = vmatpush3.bf16.msra.mxu1 %v9588_v12 }
 0xd09   :  { %7865 = vadd.xlane.f32.xlu1 %v7850_v19 }
 0xd7a   :  { %v7852_v40 = vpop.xlane.xlu0 %7851 }
 0xd7b   :  { %v7867_v26 = vmul.f32 0.01, %v7852_v40 }
 0xd7d   :  { %v7875_v0 = vadd.f32 1e-05, %v7867_v26 }
 0xd7e   :  { %v7854_v20 = vpop.xlane.xlu1 %7853 }
 0xd7f   :  { %9953 = vrsqrt.f32 %v7875_v0  ;;  %v7868_v15 = vmul.f32 0.01, %v7854_v20 }
 0xd81   :  { %v7876_v47 = vadd.f32 1e-05, %v7868_v15 }
 0xd82   :  { %v7856_v41 = vpop.xlane.xlu0 %7855 }
 0xd83   :  { %9955 = vrsqrt.f32 %v7876_v47  ;;  %v7869_v49 = vmul.f32 0.01, %v7856_v41 }
 0xd85   :  { %v7877_v56 = vadd.f32 1e-05, %v7869_v49 }
 0xd86   :  { %v7858_v57 = vpop.xlane.xlu1 %7857 }
 0xd87   :  { %9957 = vrsqrt.f32 %v7877_v56  ;;  %v7870_v13 = vmul.f32 0.01, %v7858_v57 }
 0xd89   :  { %v9954_v61 = vpop.eup %9953  ;;  %v7878_v7 = vadd.f32 1e-05, %v7870_v13 }
 0xd8a   :  { %v7860_v28 = vpop.xlane.xlu0 %7859  ;;  %v7891_v38 = vmul.f32 %v9954_v61, %v11608_v36 }
 0xd8b   :  { %9959 = vrsqrt.f32 %v7878_v7  ;;  %v7871_v5 = vmul.f32 0.01, %v7860_v28 }
 0xd8c   :  { %9452 = vmatprep.mubr.f32.mxu1 %v7891_v38 }
 0xd8d   :  { %v9956_v46 = vpop.eup %9955  ;;  %v7879_v44 = vadd.f32 1e-05, %v7871_v5 }
 0xd8e   :  { %v7892_v51 = vmul.f32 %v9956_v46, %v11614_v2  ;;  %v7862_v37 = vpop.xlane.xlu1 %7861 }
 0xd8f   :  { %9961 = vrsqrt.f32 %v7879_v44  ;;  %v7872_v6 = vmul.f32 0.01, %v7862_v37 }
 0xd90   :  { %9453 = vmatmul.mubr.f32.vlgmr.msra.gmra.mrb[8].mxu1 %v7892_v51 }
 0xd91   :  { %v9958_v35 = vpop.eup %9957  ;;  %v7880_v62 = vadd.f32 1e-05, %v7872_v6 }
 0xd92   :  { %v7864_v1 = vpop.xlane.xlu0 %7863  ;;  %v7893_v14 = vmul.f32 %v9958_v35, %v11619_v32 }
 0xd93   :  { %9963 = vrsqrt.f32 %v7880_v62  ;;  %v7873_v54 = vmul.f32 0.01, %v7864_v1 }
 0xd94   :  { %9455 = vmatprep.mubr.f32.mxu1 %v7893_v14 }
 0xd95   :  { %v9960_v36 = vpop.eup %9959  ;;  %v7881_v17 = vadd.f32 1e-05, %v7873_v54 }
 0xd96   :  { %v7866_v31 = vpop.xlane.xlu1 %7865  ;;  %v7894_v24 = vmul.f32 %v9960_v36, %v11624_v55 }
 0xd97   :  { %9965 = vrsqrt.f32 %v7881_v17  ;;  %v7874_v60 = vmul.f32 0.01, %v7866_v31 }
 0xd98   :  { %9456 = vmatmul.mubr.f32.gmra.mrb[10].mxu1 %v7894_v24 }
 0xd99   :  { %v9962_v2 = vpop.eup %9961  ;;  %v7882_v33 = vadd.f32 1e-05, %v7874_v60 }
 0xd9a   :  { %v7895_v27 = vmul.f32 %v9962_v2, %v11629_v21  ;;  %v7919_v21 = vrot.slane %v9986_v53, %v11033_v63 }
 0xd9b   :  { %9967 = vrsqrt.f32 %v7882_v33 }
 0xd9c   :  { %9458 = vmatprep.mubr.f32.mxu1 %v7895_v27 }
 0xd9d   :  { %v9964_v30 = vpop.eup %9963 }
 0xd9e   :  { %v7896_v32 = vmul.f32 %v9964_v30, %v11635_v58 }
 0xda0   :  { %9459 = vmatmul.mubr.f32.gmra.mrb[12].mxu1 %v7896_v32 }
 0xda1   :  { %v9966_v11 = vpop.eup %9965 }
 0xda2   :  { %v7897_v29 = vmul.f32 %v9966_v11, %v11641_v50 }
 0xda4   :  { %9461 = vmatprep.mubr.f32.mxu1 %v7897_v29 }
 0xda5   :  { %v9968_v39 = vpop.eup %9967 }
 0xda6   :  { %v7898_v55 = vmul.f32 %v9968_v39, %v11647_v59 }
 0xda8   :  { %9462 = vmatmul.mubr.f32.gmra.mrb[14].mxu1 %v7898_v55 }
 0xe63   :  { %v9454_v34 = vpop.f32.mrb[8].mxu1 }
 0xe64   :  { %v7992_v42 = vadd.f32 %v9454_v34, %v7919_v21  ;;  %v7986_v22 = vpop.f32.mrb[9].mxu1 }
 0xe65   :  { %v7987_v23 = vadd.f32 %v7986_v22, %v7919_v21 }
 0xe66   :  { %8026 = vst [vmem:[%s11693_s6 + $0x8] sm:$0xff] %v7992_v42 }
 0xe67   :  { %8025 = vst [vmem:[%s11693_s6] sm:$0xff] %v7987_v23 }
 0xe6b   :  { %v9457_v58 = vpop.f32.mrb[10].mxu1 }
 0xe6c   :  { %v8002_v18 = vadd.f32 %v9457_v58, %v7919_v21  ;;  %v7996_v50 = vpop.f32.mrb[11].mxu1 }
 0xe6d   :  { %v7997_v25 = vadd.f32 %v7996_v50, %v7919_v21 }
 0xe6e   :  { %8028 = vst [vmem:[%s11693_s6 + $0x18] sm:$0xff] %v8002_v18 }
 0xe6f   :  { %8027 = vst [vmem:[%s11693_s6 + $0x10] sm:$0xff] %v7997_v25 }
 0xe73   :  { %v9460_v63 = vpop.f32.mrb[12].mxu1 }
 0xe74   :  { %v8012_v48 = vadd.f32 %v9460_v63, %v7919_v21  ;;  %v8006_v43 = vpop.f32.mrb[13].mxu1 }
 0xe75   :  { %v8007_v4 = vadd.f32 %v8006_v43, %v7919_v21 }
 0xe76   :  { %8030 = vst [vmem:[%s11693_s6 + $0x28] sm:$0xff] %v8012_v48 }
 0xe77   :  { %8029 = vst [vmem:[%s11693_s6 + $0x20] sm:$0xff] %v8007_v4 }
 0xe7b   :  { %v9463_v16 = vpop.f32.mrb[14].mxu1 }
 0xe7c   :  { %v8022_v3 = vadd.f32 %v9463_v16, %v7919_v21  ;;  %v8016_v59 = vpop.f32.mrb[15].mxu1 }
 0xe7d   :  { %v8017_v9 = vadd.f32 %v8016_v59, %v7919_v21 }
 0xe7e   :  { %8032 = vst [vmem:[%s11693_s6 + $0x38] sm:$0xff] %v8022_v3 }
 0xe7f   :  { %8031 = vst [vmem:[%s11693_s6 + $0x30] sm:$0xff] %v8017_v9 }
 0xe80   :  { %8037 = vsyncpa [#allocation3], 1 }
 0xe81   :  { %8038 = vsyncpa [#allocation5], 1 }

</bundles_post_ra>
